<compile_context>
chip_gen: v7x
topology: tpu7x:2x2x1
jax: 0.10.0
libtpu: 0.0.40
codegen_flags: <defaults>
</compile_context>

<pallas_src>
import functools

import jax
import jax.numpy as jnp
from jax.experimental import pallas as pl
from jax.experimental.pallas import tpu as pltpu


_TM_TARGET = 1024                 # M tile for the 1x1-conv matmul kernel
_VMEM_LIMIT = 48 * 1024 * 1024    # scoped-VMEM budget (<= v7x 64 MiB physical)
_ACC_BUDGET = 2 * 1024 * 1024     # f32 accumulator budget inside the conv kernel
_LANES = 128                      # lane width
_M_ALIGN = 16                     # keeps bf16 sublane tiles whole across reshapes


def _round_up(x, m):
    return ((x + m - 1) // m) * m


# ----------------------------------------------------------------------------
# Pallas kernel 1: 1x1 conv  ==  (M, Cin) @ (Cin, Coutp) + shift [+ ReLU]
# ----------------------------------------------------------------------------
def _matmul_bias_kernel(x_ref, w_ref, shift_ref, o_ref, *, relu):
    y = jnp.dot(x_ref[...], w_ref[...], preferred_element_type=jnp.float32)
    y = y + shift_ref[...]
    if relu:
        y = jnp.maximum(y, 0.0)
    o_ref[...] = y.astype(o_ref.dtype)


def conv1x1_fused(x, w, shift, relu, out_f32=False):
    """1x1 conv. x: NHWC, w: (Cout, Cin, 1, 1) with BN scale pre-folded."""
    cout, cin = w.shape[0], w.shape[1]
    n, h, wd, _ = x.shape
    m = n * h * wd
    coutp = _round_up(cout, _LANES)

    x2 = x.reshape(m, cin).astype(jnp.bfloat16)
    m8 = _round_up(m, 8)
    if m8 <= _TM_TARGET:
        tm, mp = m8, m8
    else:
        tm = _TM_TARGET
        mp = _round_up(m, tm)
    if mp != m:
        x2 = jnp.pad(x2, ((0, mp - m), (0, 0)))   # tiny (no im2col blow-up)

    wmat = w.reshape(cout, cin).T.astype(jnp.bfloat16)       # (Cin, Cout)
    shiftp = shift.astype(jnp.float32)
    if coutp != cout:
        wmat = jnp.pad(wmat, ((0, 0), (0, coutp - cout)))
        shiftp = jnp.pad(shiftp, (0, coutp - cout))
    shiftp = shiftp.reshape(1, coutp)

    out_dtype = jnp.float32 if out_f32 else jnp.bfloat16
    y = pl.pallas_call(
        functools.partial(_matmul_bias_kernel, relu=relu),
        grid=(mp // tm,),
        in_specs=[
            pl.BlockSpec((tm, cin), lambda i: (i, 0)),       # M-tiled input
            pl.BlockSpec((cin, coutp), lambda i: (0, 0)),    # resident weights
            pl.BlockSpec((1, coutp), lambda i: (0, 0)),      # resident shift
        ],
        out_specs=pl.BlockSpec((tm, coutp), lambda i: (i, 0)),
        out_shape=jax.ShapeDtypeStruct((mp, coutp), out_dtype),
        compiler_params=pltpu.CompilerParams(
            dimension_semantics=("parallel",),
            vmem_limit_bytes=_VMEM_LIMIT,
        ),
    )(x2, wmat, shiftp)
    return y[:m, :cout].reshape(n, h, wd, cout)


# ----------------------------------------------------------------------------
# Pallas kernel 2: implicit-im2col stride-1 conv
#   per tap:  (rows*Wb, Cin) @ (Cin, Coutp)  accumulated in f32,
#   epilogue: + shift, optional ReLU, cast to output dtype.
# ----------------------------------------------------------------------------
def _implicit_conv_kernel(x_ref, w_ref, shift_ref, o_ref, *, kh, kw, relu):
    """x_ref: (Hi, Wb+kw-1, Cin) bf16; w_ref: (kh*kw, Cin, Coutp) bf16;
       shift_ref: (1, Coutp) f32; o_ref: (Ho, Wb, Coutp)."""
    ho, wb, coutp = o_ref.shape
    cin = x_ref.shape[-1]

    # Cap the f32 accumulator so large feature maps do not blow up VMEM/regs.
    row_step = ho
    while row_step > 1 and row_step * wb * coutp * 4 > _ACC_BUDGET:
        row_step = (row_step + 1) // 2

    for r0 in range(0, ho, row_step):
        rows = min(row_step, ho - r0)
        acc = jnp.zeros((rows * wb, coutp), jnp.float32)
        for i in range(kh):
            for j in range(kw):
                xt = x_ref[pl.ds(r0 + i, rows), pl.ds(j, wb), :]
                xt = xt.reshape(rows * wb, cin)           # Wb % 16 == 0 -> tile-aligned
                acc = acc + jnp.dot(xt, w_ref[i * kw + j],
                                    preferred_element_type=jnp.float32)
        y = acc + shift_ref[...]
        if relu:
            y = jnp.maximum(y, 0.0)
        o_ref[pl.ds(r0, rows), :, :] = (
            y.reshape(rows, wb, coutp).astype(o_ref.dtype))


def conv_implicit(xp, wtaps, shift, kh, kw, ho, wo, relu, out_f32=False):
    """Stride-1 conv; padding already applied: xp (N, ho+kh-1, wo+kw-1, Cin)."""
    n, hi, wi, cin = xp.shape
    assert hi == ho + kh - 1 and wi == wo + kw - 1
    t, cin_w, cout = wtaps.shape
    assert t == kh * kw and cin_w == cin

    # Dense blocks: output W padded to a multiple of 16 (tile-aligned reshapes,
    # sublane-dense M) and Cout padded to a multiple of 128 (unmasked stores).
    wb = _round_up(max(wo, _M_ALIGN), _M_ALIGN)
    wib = wb + kw - 1
    if wib != wi:
        xp = jnp.pad(xp, ((0, 0), (0, 0), (0, wib - wi), (0, 0)))
    coutp = _round_up(cout, _LANES)
    wbf = wtaps.astype(jnp.bfloat16)
    shiftp = shift.astype(jnp.float32)
    if coutp != cout:
        wbf = jnp.pad(wbf, ((0, 0), (0, 0), (0, coutp - cout)))
        shiftp = jnp.pad(shiftp, (0, coutp - cout))
    shiftp = shiftp.reshape(1, coutp)

    out_dtype = jnp.float32 if out_f32 else jnp.bfloat16
    # TODO(synk): add halo'd spatial tiling (pl.Element blocks or manual DMA)
    # for very large feature maps; here the grid is one image per step.
    y = pl.pallas_call(
        functools.partial(_implicit_conv_kernel, kh=kh, kw=kw, relu=relu),
        grid=(n,),
        in_specs=[
            pl.BlockSpec((None, hi, wib, cin), lambda i: (i, 0, 0, 0)),
            pl.BlockSpec((t, cin, coutp), lambda i: (0, 0, 0)),   # resident W
            pl.BlockSpec((1, coutp), lambda i: (0, 0)),           # resident shift
        ],
        out_specs=pl.BlockSpec((None, ho, wb, coutp), lambda i: (i, 0, 0, 0)),
        out_shape=jax.ShapeDtypeStruct((n, ho, wb, coutp), out_dtype),
        compiler_params=pltpu.CompilerParams(
            dimension_semantics=("parallel",),
            vmem_limit_bytes=_VMEM_LIMIT,
        ),
    )(xp.astype(jnp.bfloat16), wbf, shiftp)
    return y[:, :, :wo, :cout]


# ----------------------------------------------------------------------------
# Space-to-depth rewrite of strided convs (stride-s KxK -> stride-1 K'xK')
# ----------------------------------------------------------------------------
def _space_to_depth(xpad, s):
    """(N, H, W, C) -> (N, H/s, W/s, s*s*C), channel order (pi, pj, c)."""
    n, hp, wp, c = xpad.shape
    x = xpad.reshape(n, hp // s, s, wp // s, s, c)
    x = jnp.transpose(x, (0, 1, 3, 2, 4, 5))
    return x.reshape(n, hp // s, wp // s, s * s * c)


def _s2d_weights(w, s):
    """(Cout, Cin, K, K) -> (K'*K', s*s*Cin, Cout) matching _space_to_depth."""
    cout, cin, kh, kw = w.shape
    kp = -(-kh // s)
    wz = jnp.zeros((cout, cin, kp * s, kp * s), w.dtype).at[:, :, :kh, :kw].set(w)
    wz = wz.reshape(cout, cin, kp, s, kp, s)
    wz = jnp.transpose(wz, (2, 4, 3, 5, 1, 0))        # (a, b, pi, pj, cin, cout)
    return wz.reshape(kp * kp, s * s * cin, cout)


def conv2d_fused(x, w, shift, stride, pad, relu, out_f32=False):
    """Conv2d (+ folded BN scale in w) + shift (+ ReLU). x NHWC, w PyTorch layout."""
    cout, cin, kh, kw = w.shape
    n, h, wd, _ = x.shape
    ho = (h + 2 * pad - kh) // stride + 1
    wo = (wd + 2 * pad - kw) // stride + 1

    if kh == 1 and kw == 1 and stride == 1 and pad == 0:
        return conv1x1_fused(x, w, shift, relu, out_f32)

    if stride == 1:
        xp = jnp.pad(x, ((0, 0), (pad, pad), (pad, pad), (0, 0)))
        wt = jnp.transpose(w, (2, 3, 1, 0)).reshape(kh * kw, cin, cout)
        return conv_implicit(xp, wt, shift, kh, kw, ho, wo, relu, out_f32)

    # Strided conv -> stride-1 conv over a space-to-depth input (one XLA pass,
    # no kh*kw im2col blow-up; per-tap K becomes s*s*Cin).
    assert kh == kw, "FaceBoxes only uses square kernels"
    s = stride
    kp = -(-kh // s)
    need_h = s * (ho + kp - 1)
    need_w = s * (wo + kp - 1)
    xp = jnp.pad(x, ((0, 0),
                     (pad, max(0, need_h - h - pad)),
                     (pad, max(0, need_w - wd - pad)),
                     (0, 0)))
    xp = xp[:, :need_h, :need_w, :]
    xp = _space_to_depth(xp, s)
    wt = _s2d_weights(w, s)
    return conv_implicit(xp, wt, shift, kp, kp, ho, wo, relu, out_f32)


# ----------------------------------------------------------------------------
# Plain-JAX glue
# ----------------------------------------------------------------------------
def maxpool(x, k=3, stride=2, pad=1):
    # TODO(synk): maxpool is left to XLA (pure elementwise max, no MXU benefit).
    n, h, w, c = x.shape
    xp = jnp.pad(x, ((0, 0), (pad, pad), (pad, pad), (0, 0)),
                 constant_values=-jnp.inf)
    ho = (h + 2 * pad - k) // stride + 1
    wo = (w + 2 * pad - k) // stride + 1
    out = None
    for i in range(k):
        for j in range(k):
            p = xp[:, i:i + stride * ho:stride, j:j + stride * wo:stride, :]
            out = p if out is None else jnp.maximum(out, p)
    return out


def _bn_fold(p, eps=1e-5):
    """Eval-mode BN folded to per-channel (scale, shift); missing-bias safe."""
    scale = p["gamma"] / jnp.sqrt(p["var"] + eps)
    bias = p["b"] if "b" in p else jnp.zeros_like(p["mean"])
    shift = p["beta"] + scale * (bias - p["mean"])
    return scale, shift


def cbr_apply(x, p, stride, pad, act):
    """conv_bn_relu (BN scale folded into W). act in {None, "relu", "crelu"}."""
    scale, shift = _bn_fold(p)
    w = p["w"] * scale[:, None, None, None]
    relu = act in ("relu", "crelu")
    if act == "crelu":
        # CReLU(BN(conv(x))) = relu(x [W|-W] + [shift|-shift])
        w = jnp.concatenate([w, -w], axis=0)
        shift = jnp.concatenate([shift, -shift], axis=0)
    return conv2d_fused(x, w, shift, stride, pad, relu)


def fused_cbr_1x1(x, plist):
    """Several 1x1 conv_bn_relu layers sharing an input -> one matmul."""
    ws, shifts = [], []
    for p in plist:
        scale, shift = _bn_fold(p)
        ws.append(p["w"] * scale[:, None, None, None])
        shifts.append(shift)
    w = jnp.concatenate(ws, axis=0)
    shift = jnp.concatenate(shifts, axis=0)
    return conv2d_fused(x, w, shift, 1, 0, True)


def heads_apply(feat, p_cls, p_reg, p_lmk):
    """Fuse classifier / regression / landmark 3x3 convs of one scale."""
    n_cls = p_cls["w"].shape[0]
    n_reg = p_reg["w"].shape[0]
    w = jnp.concatenate([p_cls["w"], p_reg["w"], p_lmk["w"]], axis=0)
    b = jnp.concatenate([p_cls["b"], p_reg["b"], p_lmk["b"]], axis=0)
    y = conv2d_fused(feat, w, b, 1, 1, False, out_f32=True)
    n = y.shape[0]
    # Channel order [cls | reg | lmk] preserved -> NHWC reshapes match
    # PyTorch's permute(0,2,3,1).view(...) exactly.
    cls = y[..., :n_cls].reshape(n, -1, 2)
    reg = y[..., n_cls:n_cls + n_reg].reshape(n, -1, 4)
    lmk = y[..., n_cls + n_reg:].reshape(n, -1, 10)
    return cls, reg, lmk


# ----------------------------------------------------------------------------
# Network structure
# ----------------------------------------------------------------------------
def inception_apply(x, p):
    # Branches 1, 3, 4 share the same 1x1-conv input -> one fused matmul.
    stems = fused_cbr_1x1(x, [p["b1"], p["b3_1"], p["b4_1"]])
    x1 = stems[..., :32]
    b3 = stems[..., 32:56]
    b4 = stems[..., 56:80]
    x2 = cbr_apply(maxpool(x, 3, 1, 1), p["b2"], 1, 0, "relu")
    x3 = cbr_apply(b3, p["b3_2"], 1, 1, "relu")
    x4 = cbr_apply(cbr_apply(b4, p["b4_2"], 1, 1, "relu"), p["b4_3"], 1, 1, "relu")
    return jnp.concatenate([x1, x2, x3, x4], axis=-1)


def rdcl_apply(x, p):
    x = cbr_apply(x, p["conv1"], 4, 3, "crelu")   # 7x7/s4 via space-to-depth
    x = maxpool(x, 3, 2, 1)
    x = cbr_apply(x, p["conv2"], 2, 2, "crelu")   # 5x5/s2 via space-to-depth
    x = maxpool(x, 3, 2, 1)
    return x


def mscl_apply(x, p):
    x = inception_apply(x, p["inc1"])
    x = inception_apply(x, p["inc2"])
    x = inception_apply(x, p["inc3"])
    x1 = x
    x = cbr_apply(x, p["conv3_1"], 1, 0, "relu")
    x = cbr_apply(x, p["conv3_2"], 2, 1, "relu")
    x2 = x
    x = cbr_apply(x, p["conv4_1"], 1, 0, "relu")
    x = cbr_apply(x, p["conv4_2"], 2, 1, "relu")
    return x1, x2, x


def faceboxes_apply(x_nchw, params):
    # PyTorch-style NCHW input -> internal NHWC, bf16 activations throughout.
    x = jnp.transpose(x_nchw, (0, 2, 3, 1)).astype(jnp.bfloat16)
    x = rdcl_apply(x, params["rdcl"])
    x1, x2, x3 = mscl_apply(x, params["mscl"])

    c1, r1, l1 = heads_apply(x1, params["classifier1"], params["regression1"],
                             params["landmark1"])
    c2, r2, l2 = heads_apply(x2, params["classifier2"], params["regression2"],
                             params["landmark2"])
    c3, r3, l3 = heads_apply(x3, params["classifier3"], params["regression3"],
                             params["landmark3"])

    classifier = jnp.concatenate([c1, c2, c3], axis=1)
    regression = jnp.concatenate([r1, r2, r3], axis=1)
    landmark = jnp.concatenate([l1, l2, l3], axis=1)
    return [classifier, regression, landmark]


# ----------------------------------------------------------------------------
# Deterministic parameter initialization (synthetic, no checkpoint)
# ----------------------------------------------------------------------------
def init_conv(key, cin, cout, k):
    k1, k2 = jax.random.split(key)
    return {
        "w": 0.05 * jax.random.normal(k1, (cout, cin, k, k), jnp.float32),
        "b": 0.05 * jax.random.normal(k2, (cout,), jnp.float32),
    }


def init_cbr(key, cin, cout, k):
    ks = jax.random.split(key, 5)
    p = init_conv(ks[0], cin, cout, k)
    p["gamma"] = 1.0 + 0.1 * jax.random.normal(ks[1], (cout,), jnp.float32)
    p["beta"] = 0.1 * jax.random.normal(ks[2], (cout,), jnp.float32)
    p["mean"] = 0.1 * jax.random.normal(ks[3], (cout,), jnp.float32)
    p["var"] = 1.0 + 0.1 * jnp.abs(jax.random.normal(ks[4], (cout,), jnp.float32))
    return p


def init_inception(key):
    ks = jax.random.split(key, 7)
    return {
        "b1": init_cbr(ks[0], 128, 32, 1),
        "b2": init_cbr(ks[1], 128, 32, 1),
        "b3_1": init_cbr(ks[2], 128, 24, 1),
        "b3_2": init_cbr(ks[3], 24, 32, 3),
        "b4_1": init_cbr(ks[4], 128, 24, 1),
        "b4_2": init_cbr(ks[5], 24, 32, 3),
        "b4_3": init_cbr(ks[6], 32, 32, 3),
    }


def init_faceboxes(key):
    ks = jax.random.split(key, 18)
    return {
        "rdcl": {
            "conv1": init_cbr(ks[0], 3, 24, 7),
            "conv2": init_cbr(ks[1], 48, 64, 5),
        },
        "mscl": {
            "inc1": init_inception(ks[2]),
            "inc2": init_inception(ks[3]),
            "inc3": init_inception(ks[4]),
            "conv3_1": init_cbr(ks[5], 128, 128, 1),
            "conv3_2": init_cbr(ks[6], 128, 256, 3),
            "conv4_1": init_cbr(ks[7], 256, 128, 1),
            "conv4_2": init_cbr(ks[8], 128, 256, 3),
        },
        "regression1": init_conv(ks[9], 128, 21 * 4, 3),
        "classifier1": init_conv(ks[10], 128, 21 * 2, 3),
        "landmark1": init_conv(ks[11], 128, 21 * 10, 3),
        "regression2": init_conv(ks[12], 256, 4, 3),
        "classifier2": init_conv(ks[13], 256, 2, 3),
        "landmark2": init_conv(ks[14], 256, 10, 3),
        "regression3": init_conv(ks[15], 256, 4, 3),
        "classifier3": init_conv(ks[16], 256, 2, 3),
        "landmark3": init_conv(ks[17], 256, 10, 3),
    }


# ----------------------------------------------------------------------------
if __name__ == "__main__":
    key = jax.random.PRNGKey(0)
    pkey, xkey = jax.random.split(key)
    params = init_faceboxes(pkey)

    # Smallest input that survives the /32 (x1), /64 (x2), /128 (x3) strides.
    x = jax.random.normal(xkey, (2, 3, 64, 64), jnp.float32)  # NCHW like PyTorch

    fwd = jax.jit(lambda inp: faceboxes_apply(inp, params))
    classifier, regression, landmark = fwd(x)
    jax.block_until_ready((classifier, regression, landmark))

    # Expected anchor counts: 2*2*21 (x1) + 1*1 (x2) + 1*1 (x3) = 86 per image.
    assert classifier.shape == (2, 86, 2), classifier.shape
    assert regression.shape == (2, 86, 4), regression.shape
    assert landmark.shape == (2, 86, 10), landmark.shape

    print("KERNEL_OK")
</pallas_src>

<mosaic_0001>
module attributes {stable_mosaic.version = 11 : i64} {
  func.func @_implicit_conv_kernel(%arg0: i32, %arg1: memref<1x17x17x48xbf16, #tpu.memory_space<vmem>>, %arg2: memref<4x48x128xbf16, #tpu.memory_space<vmem>>, %arg3: memref<1x128xf32, #tpu.memory_space<vmem>>, %arg4: memref<1x16x16x128xbf16, #tpu.memory_space<vmem>>) attributes {dimension_semantics = [#tpu.dimension_semantics<parallel>], iteration_bounds = array<i64: 2>, scalar_prefetch = 0 : i64, scratch_operands = 0 : i64, tpu.core_type = #tpu.core_type<tc>, window_params = [{transform_indices = @transform_0, window_bounds = array<i64: 1, 17, 17, 48>}, {pipeline_mode = #tpu.pipeline_mode<synchronous>, transform_indices = @transform_1, window_bounds = array<i64: 4, 48, 128>}, {pipeline_mode = #tpu.pipeline_mode<synchronous>, transform_indices = @transform_2, window_bounds = array<i64: 1, 128>}, {transform_indices = @transform_3, window_bounds = array<i64: 1, 16, 16, 128>}]} {
    %cst = arith.constant 0.000000e+00 : f32
    %0 = vector.broadcast %cst : f32 to vector<256x128xf32>
    %c0 = arith.constant 0 : index
    %c0_0 = arith.constant 0 : index
    %c0_1 = arith.constant 0 : index
    %c0_2 = arith.constant 0 : index
    %1 = vector.load %arg1[%c0, %c0_0, %c0_1, %c0_2] : memref<1x17x17x48xbf16, #tpu.memory_space<vmem>>, vector<1x16x16x48xbf16>
    %2 = vector.shape_cast %1 : vector<1x16x16x48xbf16> to vector<16x16x48xbf16>
    %3 = vector.shape_cast %2 : vector<16x16x48xbf16> to vector<256x48xbf16>
    %c0_3 = arith.constant 0 : index
    %c0_4 = arith.constant 0 : index
    %c0_5 = arith.constant 0 : index
    %4 = vector.load %arg2[%c0_3, %c0_4, %c0_5] : memref<4x48x128xbf16, #tpu.memory_space<vmem>>, vector<1x48x128xbf16>
    %5 = vector.shape_cast %4 : vector<1x48x128xbf16> to vector<48x128xbf16>
    %cst_6 = arith.constant dense<0.000000e+00> : vector<256x128xf32>
    %6 = tpu.matmul %3, %5, %cst_6 {dimension_numbers = #tpu.dot_dimension_numbers<[1], [0], [0], [1], [0, 0, 1, 1], [], []>} : vector<256x48xbf16>, vector<48x128xbf16>, vector<256x128xf32> -> vector<256x128xf32>
    %7 = arith.addf %0, %6 : vector<256x128xf32>
    %c0_7 = arith.constant 0 : index
    %c0_8 = arith.constant 0 : index
    %c1 = arith.constant 1 : index
    %c0_9 = arith.constant 0 : index
    %8 = vector.load %arg1[%c0_7, %c0_8, %c1, %c0_9] : memref<1x17x17x48xbf16, #tpu.memory_space<vmem>>, vector<1x16x16x48xbf16>
    %9 = vector.shape_cast %8 : vector<1x16x16x48xbf16> to vector<16x16x48xbf16>
    %10 = vector.shape_cast %9 : vector<16x16x48xbf16> to vector<256x48xbf16>
    %c1_10 = arith.constant 1 : index
    %c0_11 = arith.constant 0 : index
    %c0_12 = arith.constant 0 : index
    %11 = vector.load %arg2[%c1_10, %c0_11, %c0_12] : memref<4x48x128xbf16, #tpu.memory_space<vmem>>, vector<1x48x128xbf16>
    %12 = vector.shape_cast %11 : vector<1x48x128xbf16> to vector<48x128xbf16>
    %cst_13 = arith.constant dense<0.000000e+00> : vector<256x128xf32>
    %13 = tpu.matmul %10, %12, %cst_13 {dimension_numbers = #tpu.dot_dimension_numbers<[1], [0], [0], [1], [0, 0, 1, 1], [], []>} : vector<256x48xbf16>, vector<48x128xbf16>, vector<256x128xf32> -> vector<256x128xf32>
    %14 = arith.addf %7, %13 : vector<256x128xf32>
    %c0_14 = arith.constant 0 : index
    %c1_15 = arith.constant 1 : index
    %c0_16 = arith.constant 0 : index
    %c0_17 = arith.constant 0 : index
    %15 = vector.load %arg1[%c0_14, %c1_15, %c0_16, %c0_17] : memref<1x17x17x48xbf16, #tpu.memory_space<vmem>>, vector<1x16x16x48xbf16>
    %16 = vector.shape_cast %15 : vector<1x16x16x48xbf16> to vector<16x16x48xbf16>
    %17 = vector.shape_cast %16 : vector<16x16x48xbf16> to vector<256x48xbf16>
    %c2 = arith.constant 2 : index
    %c0_18 = arith.constant 0 : index
    %c0_19 = arith.constant 0 : index
    %18 = vector.load %arg2[%c2, %c0_18, %c0_19] : memref<4x48x128xbf16, #tpu.memory_space<vmem>>, vector<1x48x128xbf16>
    %19 = vector.shape_cast %18 : vector<1x48x128xbf16> to vector<48x128xbf16>
    %cst_20 = arith.constant dense<0.000000e+00> : vector<256x128xf32>
    %20 = tpu.matmul %17, %19, %cst_20 {dimension_numbers = #tpu.dot_dimension_numbers<[1], [0], [0], [1], [0, 0, 1, 1], [], []>} : vector<256x48xbf16>, vector<48x128xbf16>, vector<256x128xf32> -> vector<256x128xf32>
    %21 = arith.addf %14, %20 : vector<256x128xf32>
    %c0_21 = arith.constant 0 : index
    %c1_22 = arith.constant 1 : index
    %c1_23 = arith.constant 1 : index
    %c0_24 = arith.constant 0 : index
    %22 = vector.load %arg1[%c0_21, %c1_22, %c1_23, %c0_24] : memref<1x17x17x48xbf16, #tpu.memory_space<vmem>>, vector<1x16x16x48xbf16>
    %23 = vector.shape_cast %22 : vector<1x16x16x48xbf16> to vector<16x16x48xbf16>
    %24 = vector.shape_cast %23 : vector<16x16x48xbf16> to vector<256x48xbf16>
    %c3 = arith.constant 3 : index
    %c0_25 = arith.constant 0 : index
    %c0_26 = arith.constant 0 : index
    %25 = vector.load %arg2[%c3, %c0_25, %c0_26] : memref<4x48x128xbf16, #tpu.memory_space<vmem>>, vector<1x48x128xbf16>
    %26 = vector.shape_cast %25 : vector<1x48x128xbf16> to vector<48x128xbf16>
    %cst_27 = arith.constant dense<0.000000e+00> : vector<256x128xf32>
    %27 = tpu.matmul %24, %26, %cst_27 {dimension_numbers = #tpu.dot_dimension_numbers<[1], [0], [0], [1], [0, 0, 1, 1], [], []>} : vector<256x48xbf16>, vector<48x128xbf16>, vector<256x128xf32> -> vector<256x128xf32>
    %28 = arith.addf %21, %27 : vector<256x128xf32>
    %c0_28 = arith.constant 0 : index
    %c0_29 = arith.constant 0 : index
    %29 = vector.load %arg3[%c0_28, %c0_29] : memref<1x128xf32, #tpu.memory_space<vmem>>, vector<1x128xf32>
    %30 = vector.broadcast %29 : vector<1x128xf32> to vector<256x128xf32>
    %31 = arith.addf %28, %30 : vector<256x128xf32>
    %cst_30 = arith.constant 0.000000e+00 : f32
    %32 = vector.broadcast %cst_30 : f32 to vector<256x128xf32>
    %33 = arith.maximumf %31, %32 : vector<256x128xf32>
    %34 = vector.shape_cast %33 : vector<256x128xf32> to vector<16x16x128xf32>
    %35 = arith.truncf %34 : vector<16x16x128xf32> to vector<16x16x128xbf16>
    %c0_31 = arith.constant 0 : index
    %c0_32 = arith.constant 0 : index
    %c0_33 = arith.constant 0 : index
    %c0_34 = arith.constant 0 : index
    %36 = vector.load %arg4[%c0_31, %c0_32, %c0_33, %c0_34] : memref<1x16x16x128xbf16, #tpu.memory_space<vmem>>, vector<1x16x16x128xbf16>
    %37 = vector.shape_cast %36 : vector<1x16x16x128xbf16> to vector<16x16x128xbf16>
    %38 = vector.shape_cast %35 : vector<16x16x128xbf16> to vector<1x16x16x128xbf16>
    tpu.vector_store %arg4[%c0_31, %c0_32, %c0_33, %c0_34], %38 {strides = array<i32>} : memref<1x16x16x128xbf16, #tpu.memory_space<vmem>>, vector<1x16x16x128xbf16>,
    return
  }
  func.func @transform_0(%arg0: i32) -> (i32, i32, i32, i32) {
    %c0_i32 = arith.constant 0 : i32
    %c0_i32_0 = arith.constant 0 : i32
    %c0_i32_1 = arith.constant 0 : i32
    %c0_i32_2 = arith.constant 0 : i32
    return %arg0, %c0_i32, %c0_i32_0, %c0_i32_1 : i32, i32, i32, i32
  }
  func.func @transform_1(%arg0: i32) -> (i32, i32, i32) {
    %c0_i32 = arith.constant 0 : i32
    %c0_i32_0 = arith.constant 0 : i32
    %c0_i32_1 = arith.constant 0 : i32
    %c0_i32_2 = arith.constant 0 : i32
    return %c0_i32, %c0_i32_0, %c0_i32_1 : i32, i32, i32
  }
  func.func @transform_2(%arg0: i32) -> (i32, i32) {
    %c0_i32 = arith.constant 0 : i32
    %c0_i32_0 = arith.constant 0 : i32
    %c0_i32_1 = arith.constant 0 : i32
    return %c0_i32, %c0_i32_0 : i32, i32
  }
  func.func @transform_3(%arg0: i32) -> (i32, i32, i32, i32) {
    %c0_i32 = arith.constant 0 : i32
    %c0_i32_0 = arith.constant 0 : i32
    %c0_i32_1 = arith.constant 0 : i32
    %c0_i32_2 = arith.constant 0 : i32
    return %arg0, %c0_i32, %c0_i32_0, %c0_i32_1 : i32, i32, i32, i32
  }
}

module attributes {stable_mosaic.version = 11 : i64} {
  func.func @_implicit_conv_kernel(%arg0: i32, %arg1: memref<1x6x18x192xbf16, #tpu.memory_space<vmem>>, %arg2: memref<9x192x128xbf16, #tpu.memory_space<vmem>>, %arg3: memref<1x128xf32, #tpu.memory_space<vmem>>, %arg4: memref<1x4x16x128xbf16, #tpu.memory_space<vmem>>) attributes {dimension_semantics = [#tpu.dimension_semantics<parallel>], iteration_bounds = array<i64: 2>, scalar_prefetch = 0 : i64, scratch_operands = 0 : i64, tpu.core_type = #tpu.core_type<tc>, window_params = [{transform_indices = @transform_0, window_bounds = array<i64: 1, 6, 18, 192>}, {pipeline_mode = #tpu.pipeline_mode<synchronous>, transform_indices = @transform_1, window_bounds = array<i64: 9, 192, 128>}, {pipeline_mode = #tpu.pipeline_mode<synchronous>, transform_indices = @transform_2, window_bounds = array<i64: 1, 128>}, {transform_indices = @transform_3, window_bounds = array<i64: 1, 4, 16, 128>}]} {
    %cst = arith.constant 0.000000e+00 : f32
    %0 = vector.broadcast %cst : f32 to vector<64x128xf32>
    %c0 = arith.constant 0 : index
    %c0_0 = arith.constant 0 : index
    %c0_1 = arith.constant 0 : index
    %c0_2 = arith.constant 0 : index
    %1 = vector.load %arg1[%c0, %c0_0, %c0_1, %c0_2] : memref<1x6x18x192xbf16, #tpu.memory_space<vmem>>, vector<1x4x16x192xbf16>
    %2 = vector.shape_cast %1 : vector<1x4x16x192xbf16> to vector<4x16x192xbf16>
    %3 = vector.shape_cast %2 : vector<4x16x192xbf16> to vector<64x192xbf16>
    %c0_3 = arith.constant 0 : index
    %c0_4 = arith.constant 0 : index
    %c0_5 = arith.constant 0 : index
    %4 = vector.load %arg2[%c0_3, %c0_4, %c0_5] : memref<9x192x128xbf16, #tpu.memory_space<vmem>>, vector<1x192x128xbf16>
    %5 = vector.shape_cast %4 : vector<1x192x128xbf16> to vector<192x128xbf16>
    %cst_6 = arith.constant dense<0.000000e+00> : vector<64x128xf32>
    %6 = tpu.matmul %3, %5, %cst_6 {dimension_numbers = #tpu.dot_dimension_numbers<[1], [0], [0], [1], [0, 0, 1, 1], [], []>} : vector<64x192xbf16>, vector<192x128xbf16>, vector<64x128xf32> -> vector<64x128xf32>
    %7 = arith.addf %0, %6 : vector<64x128xf32>
    %c0_7 = arith.constant 0 : index
    %c0_8 = arith.constant 0 : index
    %c1 = arith.constant 1 : index
    %c0_9 = arith.constant 0 : index
    %8 = vector.load %arg1[%c0_7, %c0_8, %c1, %c0_9] : memref<1x6x18x192xbf16, #tpu.memory_space<vmem>>, vector<1x4x16x192xbf16>
    %9 = vector.shape_cast %8 : vector<1x4x16x192xbf16> to vector<4x16x192xbf16>
    %10 = vector.shape_cast %9 : vector<4x16x192xbf16> to vector<64x192xbf16>
    %c1_10 = arith.constant 1 : index
    %c0_11 = arith.constant 0 : index
    %c0_12 = arith.constant 0 : index
    %11 = vector.load %arg2[%c1_10, %c0_11, %c0_12] : memref<9x192x128xbf16, #tpu.memory_space<vmem>>, vector<1x192x128xbf16>
    %12 = vector.shape_cast %11 : vector<1x192x128xbf16> to vector<192x128xbf16>
    %cst_13 = arith.constant dense<0.000000e+00> : vector<64x128xf32>
    %13 = tpu.matmul %10, %12, %cst_13 {dimension_numbers = #tpu.dot_dimension_numbers<[1], [0], [0], [1], [0, 0, 1, 1], [], []>} : vector<64x192xbf16>, vector<192x128xbf16>, vector<64x128xf32> -> vector<64x128xf32>
    %14 = arith.addf %7, %13 : vector<64x128xf32>
    %c0_14 = arith.constant 0 : index
    %c0_15 = arith.constant 0 : index
    %c2 = arith.constant 2 : index
    %c0_16 = arith.constant 0 : index
    %15 = vector.load %arg1[%c0_14, %c0_15, %c2, %c0_16] : memref<1x6x18x192xbf16, #tpu.memory_space<vmem>>, vector<1x4x16x192xbf16>
    %16 = vector.shape_cast %15 : vector<1x4x16x192xbf16> to vector<4x16x192xbf16>
    %17 = vector.shape_cast %16 : vector<4x16x192xbf16> to vector<64x192xbf16>
    %c2_17 = arith.constant 2 : index
    %c0_18 = arith.constant 0 : index
    %c0_19 = arith.constant 0 : index
    %18 = vector.load %arg2[%c2_17, %c0_18, %c0_19] : memref<9x192x128xbf16, #tpu.memory_space<vmem>>, vector<1x192x128xbf16>
    %19 = vector.shape_cast %18 : vector<1x192x128xbf16> to vector<192x128xbf16>
    %cst_20 = arith.constant dense<0.000000e+00> : vector<64x128xf32>
    %20 = tpu.matmul %17, %19, %cst_20 {dimension_numbers = #tpu.dot_dimension_numbers<[1], [0], [0], [1], [0, 0, 1, 1], [], []>} : vector<64x192xbf16>, vector<192x128xbf16>, vector<64x128xf32> -> vector<64x128xf32>
    %21 = arith.addf %14, %20 : vector<64x128xf32>
    %c0_21 = arith.constant 0 : index
    %c1_22 = arith.constant 1 : index
    %c0_23 = arith.constant 0 : index
    %c0_24 = arith.constant 0 : index
    %22 = vector.load %arg1[%c0_21, %c1_22, %c0_23, %c0_24] : memref<1x6x18x192xbf16, #tpu.memory_space<vmem>>, vector<1x4x16x192xbf16>
    %23 = vector.shape_cast %22 : vector<1x4x16x192xbf16> to vector<4x16x192xbf16>
    %24 = vector.shape_cast %23 : vector<4x16x192xbf16> to vector<64x192xbf16>
    %c3 = arith.constant 3 : index
    %c0_25 = arith.constant 0 : index
    %c0_26 = arith.constant 0 : index
    %25 = vector.load %arg2[%c3, %c0_25, %c0_26] : memref<9x192x128xbf16, #tpu.memory_space<vmem>>, vector<1x192x128xbf16>
    %26 = vector.shape_cast %25 : vector<1x192x128xbf16> to vector<192x128xbf16>
    %cst_27 = arith.constant dense<0.000000e+00> : vector<64x128xf32>
    %27 = tpu.matmul %24, %26, %cst_27 {dimension_numbers = #tpu.dot_dimension_numbers<[1], [0], [0], [1], [0, 0, 1, 1], [], []>} : vector<64x192xbf16>, vector<192x128xbf16>, vector<64x128xf32> -> vector<64x128xf32>
    %28 = arith.addf %21, %27 : vector<64x128xf32>
    %c0_28 = arith.constant 0 : index
    %c1_29 = arith.constant 1 : index
    %c1_30 = arith.constant 1 : index
    %c0_31 = arith.constant 0 : index
    %29 = vector.load %arg1[%c0_28, %c1_29, %c1_30, %c0_31] : memref<1x6x18x192xbf16, #tpu.memory_space<vmem>>, vector<1x4x16x192xbf16>
    %30 = vector.shape_cast %29 : vector<1x4x16x192xbf16> to vector<4x16x192xbf16>
    %31 = vector.shape_cast %30 : vector<4x16x192xbf16> to vector<64x192xbf16>
    %c4 = arith.constant 4 : index
    %c0_32 = arith.constant 0 : index
    %c0_33 = arith.constant 0 : index
    %32 = vector.load %arg2[%c4, %c0_32, %c0_33] : memref<9x192x128xbf16, #tpu.memory_space<vmem>>, vector<1x192x128xbf16>
    %33 = vector.shape_cast %32 : vector<1x192x128xbf16> to vector<192x128xbf16>
    %cst_34 = arith.constant dense<0.000000e+00> : vector<64x128xf32>
    %34 = tpu.matmul %31, %33, %cst_34 {dimension_numbers = #tpu.dot_dimension_numbers<[1], [0], [0], [1], [0, 0, 1, 1], [], []>} : vector<64x192xbf16>, vector<192x128xbf16>, vector<64x128xf32> -> vector<64x128xf32>
    %35 = arith.addf %28, %34 : vector<64x128xf32>
    %c0_35 = arith.constant 0 : index
    %c1_36 = arith.constant 1 : index
    %c2_37 = arith.constant 2 : index
    %c0_38 = arith.constant 0 : index
    %36 = vector.load %arg1[%c0_35, %c1_36, %c2_37, %c0_38] : memref<1x6x18x192xbf16, #tpu.memory_space<vmem>>, vector<1x4x16x192xbf16>
    %37 = vector.shape_cast %36 : vector<1x4x16x192xbf16> to vector<4x16x192xbf16>
    %38 = vector.shape_cast %37 : vector<4x16x192xbf16> to vector<64x192xbf16>
    %c5 = arith.constant 5 : index
    %c0_39 = arith.constant 0 : index
    %c0_40 = arith.constant 0 : index
    %39 = vector.load %arg2[%c5, %c0_39, %c0_40] : memref<9x192x128xbf16, #tpu.memory_space<vmem>>, vector<1x192x128xbf16>
    %40 = vector.shape_cast %39 : vector<1x192x128xbf16> to vector<192x128xbf16>
    %cst_41 = arith.constant dense<0.000000e+00> : vector<64x128xf32>
    %41 = tpu.matmul %38, %40, %cst_41 {dimension_numbers = #tpu.dot_dimension_numbers<[1], [0], [0], [1], [0, 0, 1, 1], [], []>} : vector<64x192xbf16>, vector<192x128xbf16>, vector<64x128xf32> -> vector<64x128xf32>
    %42 = arith.addf %35, %41 : vector<64x128xf32>
    %c0_42 = arith.constant 0 : index
    %c2_43 = arith.constant 2 : index
    %c0_44 = arith.constant 0 : index
    %c0_45 = arith.constant 0 : index
    %43 = vector.load %arg1[%c0_42, %c2_43, %c0_44, %c0_45] : memref<1x6x18x192xbf16, #tpu.memory_space<vmem>>, vector<1x4x16x192xbf16>
    %44 = vector.shape_cast %43 : vector<1x4x16x192xbf16> to vector<4x16x192xbf16>
    %45 = vector.shape_cast %44 : vector<4x16x192xbf16> to vector<64x192xbf16>
    %c6 = arith.constant 6 : index
    %c0_46 = arith.constant 0 : index
    %c0_47 = arith.constant 0 : index
    %46 = vector.load %arg2[%c6, %c0_46, %c0_47] : memref<9x192x128xbf16, #tpu.memory_space<vmem>>, vector<1x192x128xbf16>
    %47 = vector.shape_cast %46 : vector<1x192x128xbf16> to vector<192x128xbf16>
    %cst_48 = arith.constant dense<0.000000e+00> : vector<64x128xf32>
    %48 = tpu.matmul %45, %47, %cst_48 {dimension_numbers = #tpu.dot_dimension_numbers<[1], [0], [0], [1], [0, 0, 1, 1], [], []>} : vector<64x192xbf16>, vector<192x128xbf16>, vector<64x128xf32> -> vector<64x128xf32>
    %49 = arith.addf %42, %48 : vector<64x128xf32>
    %c0_49 = arith.constant 0 : index
    %c2_50 = arith.constant 2 : index
    %c1_51 = arith.constant 1 : index
    %c0_52 = arith.constant 0 : index
    %50 = vector.load %arg1[%c0_49, %c2_50, %c1_51, %c0_52] : memref<1x6x18x192xbf16, #tpu.memory_space<vmem>>, vector<1x4x16x192xbf16>
    %51 = vector.shape_cast %50 : vector<1x4x16x192xbf16> to vector<4x16x192xbf16>
    %52 = vector.shape_cast %51 : vector<4x16x192xbf16> to vector<64x192xbf16>
    %c7 = arith.constant 7 : index
    %c0_53 = arith.constant 0 : index
    %c0_54 = arith.constant 0 : index
    %53 = vector.load %arg2[%c7, %c0_53, %c0_54] : memref<9x192x128xbf16, #tpu.memory_space<vmem>>, vector<1x192x128xbf16>
    %54 = vector.shape_cast %53 : vector<1x192x128xbf16> to vector<192x128xbf16>
    %cst_55 = arith.constant dense<0.000000e+00> : vector<64x128xf32>
    %55 = tpu.matmul %52, %54, %cst_55 {dimension_numbers = #tpu.dot_dimension_numbers<[1], [0], [0], [1], [0, 0, 1, 1], [], []>} : vector<64x192xbf16>, vector<192x128xbf16>, vector<64x128xf32> -> vector<64x128xf32>
    %56 = arith.addf %49, %55 : vector<64x128xf32>
    %c0_56 = arith.constant 0 : index
    %c2_57 = arith.constant 2 : index
    %c2_58 = arith.constant 2 : index
    %c0_59 = arith.constant 0 : index
    %57 = vector.load %arg1[%c0_56, %c2_57, %c2_58, %c0_59] : memref<1x6x18x192xbf16, #tpu.memory_space<vmem>>, vector<1x4x16x192xbf16>
    %58 = vector.shape_cast %57 : vector<1x4x16x192xbf16> to vector<4x16x192xbf16>
    %59 = vector.shape_cast %58 : vector<4x16x192xbf16> to vector<64x192xbf16>
    %c8 = arith.constant 8 : index
    %c0_60 = arith.constant 0 : index
    %c0_61 = arith.constant 0 : index
    %60 = vector.load %arg2[%c8, %c0_60, %c0_61] : memref<9x192x128xbf16, #tpu.memory_space<vmem>>, vector<1x192x128xbf16>
    %61 = vector.shape_cast %60 : vector<1x192x128xbf16> to vector<192x128xbf16>
    %cst_62 = arith.constant dense<0.000000e+00> : vector<64x128xf32>
    %62 = tpu.matmul %59, %61, %cst_62 {dimension_numbers = #tpu.dot_dimension_numbers<[1], [0], [0], [1], [0, 0, 1, 1], [], []>} : vector<64x192xbf16>, vector<192x128xbf16>, vector<64x128xf32> -> vector<64x128xf32>
    %63 = arith.addf %56, %62 : vector<64x128xf32>
    %c0_63 = arith.constant 0 : index
    %c0_64 = arith.constant 0 : index
    %64 = vector.load %arg3[%c0_63, %c0_64] : memref<1x128xf32, #tpu.memory_space<vmem>>, vector<1x128xf32>
    %65 = vector.broadcast %64 : vector<1x128xf32> to vector<64x128xf32>
    %66 = arith.addf %63, %65 : vector<64x128xf32>
    %cst_65 = arith.constant 0.000000e+00 : f32
    %67 = vector.broadcast %cst_65 : f32 to vector<64x128xf32>
    %68 = arith.maximumf %66, %67 : vector<64x128xf32>
    %69 = vector.shape_cast %68 : vector<64x128xf32> to vector<4x16x128xf32>
    %70 = arith.truncf %69 : vector<4x16x128xf32> to vector<4x16x128xbf16>
    %c0_66 = arith.constant 0 : index
    %c0_67 = arith.constant 0 : index
    %c0_68 = arith.constant 0 : index
    %c0_69 = arith.constant 0 : index
    %71 = vector.load %arg4[%c0_66, %c0_67, %c0_68, %c0_69] : memref<1x4x16x128xbf16, #tpu.memory_space<vmem>>, vector<1x4x16x128xbf16>
    %72 = vector.shape_cast %71 : vector<1x4x16x128xbf16> to vector<4x16x128xbf16>
    %73 = vector.shape_cast %70 : vector<4x16x128xbf16> to vector<1x4x16x128xbf16>
    tpu.vector_store %arg4[%c0_66, %c0_67, %c0_68, %c0_69], %73 {strides = array<i32>} : memref<1x4x16x128xbf16, #tpu.memory_space<vmem>>, vector<1x4x16x128xbf16>,
    return
  }
  func.func @transform_0(%arg0: i32) -> (i32, i32, i32, i32) {
    %c0_i32 = arith.constant 0 : i32
    %c0_i32_0 = arith.constant 0 : i32
    %c0_i32_1 = arith.constant 0 : i32
    %c0_i32_2 = arith.constant 0 : i32
    return %arg0, %c0_i32, %c0_i32_0, %c0_i32_1 : i32, i32, i32, i32
  }
  func.func @transform_1(%arg0: i32) -> (i32, i32, i32) {
    %c0_i32 = arith.constant 0 : i32
    %c0_i32_0 = arith.constant 0 : i32
    %c0_i32_1 = arith.constant 0 : i32
    %c0_i32_2 = arith.constant 0 : i32
    return %c0_i32, %c0_i32_0, %c0_i32_1 : i32, i32, i32
  }
  func.func @transform_2(%arg0: i32) -> (i32, i32) {
    %c0_i32 = arith.constant 0 : i32
    %c0_i32_0 = arith.constant 0 : i32
    %c0_i32_1 = arith.constant 0 : i32
    return %c0_i32, %c0_i32_0 : i32, i32
  }
  func.func @transform_3(%arg0: i32) -> (i32, i32, i32, i32) {
    %c0_i32 = arith.constant 0 : i32
    %c0_i32_0 = arith.constant 0 : i32
    %c0_i32_1 = arith.constant 0 : i32
    %c0_i32_2 = arith.constant 0 : i32
    return %arg0, %c0_i32, %c0_i32_0, %c0_i32_1 : i32, i32, i32, i32
  }
}

module attributes {stable_mosaic.version = 11 : i64} {
  func.func @_implicit_conv_kernel(%arg0: i32, %arg1: memref<1x4x18x24xbf16, #tpu.memory_space<vmem>>, %arg2: memref<9x24x128xbf16, #tpu.memory_space<vmem>>, %arg3: memref<1x128xf32, #tpu.memory_space<vmem>>, %arg4: memref<1x2x16x128xbf16, #tpu.memory_space<vmem>>) attributes {dimension_semantics = [#tpu.dimension_semantics<parallel>], iteration_bounds = array<i64: 2>, scalar_prefetch = 0 : i64, scratch_operands = 0 : i64, tpu.core_type = #tpu.core_type<tc>, window_params = [{transform_indices = @transform_0, window_bounds = array<i64: 1, 4, 18, 24>}, {pipeline_mode = #tpu.pipeline_mode<synchronous>, transform_indices = @transform_1, window_bounds = array<i64: 9, 24, 128>}, {pipeline_mode = #tpu.pipeline_mode<synchronous>, transform_indices = @transform_2, window_bounds = array<i64: 1, 128>}, {transform_indices = @transform_3, window_bounds = array<i64: 1, 2, 16, 128>}]} {
    %cst = arith.constant 0.000000e+00 : f32
    %0 = vector.broadcast %cst : f32 to vector<32x128xf32>
    %c0 = arith.constant 0 : index
    %c0_0 = arith.constant 0 : index
    %c0_1 = arith.constant 0 : index
    %c0_2 = arith.constant 0 : index
    %1 = vector.load %arg1[%c0, %c0_0, %c0_1, %c0_2] : memref<1x4x18x24xbf16, #tpu.memory_space<vmem>>, vector<1x2x16x24xbf16>
    %2 = vector.shape_cast %1 : vector<1x2x16x24xbf16> to vector<2x16x24xbf16>
    %3 = vector.shape_cast %2 : vector<2x16x24xbf16> to vector<32x24xbf16>
    %c0_3 = arith.constant 0 : index
    %c0_4 = arith.constant 0 : index
    %c0_5 = arith.constant 0 : index
    %4 = vector.load %arg2[%c0_3, %c0_4, %c0_5] : memref<9x24x128xbf16, #tpu.memory_space<vmem>>, vector<1x24x128xbf16>
    %5 = vector.shape_cast %4 : vector<1x24x128xbf16> to vector<24x128xbf16>
    %cst_6 = arith.constant dense<0.000000e+00> : vector<32x128xf32>
    %6 = tpu.matmul %3, %5, %cst_6 {dimension_numbers = #tpu.dot_dimension_numbers<[1], [0], [0], [1], [0, 0, 1, 1], [], []>} : vector<32x24xbf16>, vector<24x128xbf16>, vector<32x128xf32> -> vector<32x128xf32>
    %7 = arith.addf %0, %6 : vector<32x128xf32>
    %c0_7 = arith.constant 0 : index
    %c0_8 = arith.constant 0 : index
    %c1 = arith.constant 1 : index
    %c0_9 = arith.constant 0 : index
    %8 = vector.load %arg1[%c0_7, %c0_8, %c1, %c0_9] : memref<1x4x18x24xbf16, #tpu.memory_space<vmem>>, vector<1x2x16x24xbf16>
    %9 = vector.shape_cast %8 : vector<1x2x16x24xbf16> to vector<2x16x24xbf16>
    %10 = vector.shape_cast %9 : vector<2x16x24xbf16> to vector<32x24xbf16>
    %c1_10 = arith.constant 1 : index
    %c0_11 = arith.constant 0 : index
    %c0_12 = arith.constant 0 : index
    %11 = vector.load %arg2[%c1_10, %c0_11, %c0_12] : memref<9x24x128xbf16, #tpu.memory_space<vmem>>, vector<1x24x128xbf16>
    %12 = vector.shape_cast %11 : vector<1x24x128xbf16> to vector<24x128xbf16>
    %cst_13 = arith.constant dense<0.000000e+00> : vector<32x128xf32>
    %13 = tpu.matmul %10, %12, %cst_13 {dimension_numbers = #tpu.dot_dimension_numbers<[1], [0], [0], [1], [0, 0, 1, 1], [], []>} : vector<32x24xbf16>, vector<24x128xbf16>, vector<32x128xf32> -> vector<32x128xf32>
    %14 = arith.addf %7, %13 : vector<32x128xf32>
    %c0_14 = arith.constant 0 : index
    %c0_15 = arith.constant 0 : index
    %c2 = arith.constant 2 : index
    %c0_16 = arith.constant 0 : index
    %15 = vector.load %arg1[%c0_14, %c0_15, %c2, %c0_16] : memref<1x4x18x24xbf16, #tpu.memory_space<vmem>>, vector<1x2x16x24xbf16>
    %16 = vector.shape_cast %15 : vector<1x2x16x24xbf16> to vector<2x16x24xbf16>
    %17 = vector.shape_cast %16 : vector<2x16x24xbf16> to vector<32x24xbf16>
    %c2_17 = arith.constant 2 : index
    %c0_18 = arith.constant 0 : index
    %c0_19 = arith.constant 0 : index
    %18 = vector.load %arg2[%c2_17, %c0_18, %c0_19] : memref<9x24x128xbf16, #tpu.memory_space<vmem>>, vector<1x24x128xbf16>
    %19 = vector.shape_cast %18 : vector<1x24x128xbf16> to vector<24x128xbf16>
    %cst_20 = arith.constant dense<0.000000e+00> : vector<32x128xf32>
    %20 = tpu.matmul %17, %19, %cst_20 {dimension_numbers = #tpu.dot_dimension_numbers<[1], [0], [0], [1], [0, 0, 1, 1], [], []>} : vector<32x24xbf16>, vector<24x128xbf16>, vector<32x128xf32> -> vector<32x128xf32>
    %21 = arith.addf %14, %20 : vector<32x128xf32>
    %c0_21 = arith.constant 0 : index
    %c1_22 = arith.constant 1 : index
    %c0_23 = arith.constant 0 : index
    %c0_24 = arith.constant 0 : index
    %22 = vector.load %arg1[%c0_21, %c1_22, %c0_23, %c0_24] : memref<1x4x18x24xbf16, #tpu.memory_space<vmem>>, vector<1x2x16x24xbf16>
    %23 = vector.shape_cast %22 : vector<1x2x16x24xbf16> to vector<2x16x24xbf16>
    %24 = vector.shape_cast %23 : vector<2x16x24xbf16> to vector<32x24xbf16>
    %c3 = arith.constant 3 : index
    %c0_25 = arith.constant 0 : index
    %c0_26 = arith.constant 0 : index
    %25 = vector.load %arg2[%c3, %c0_25, %c0_26] : memref<9x24x128xbf16, #tpu.memory_space<vmem>>, vector<1x24x128xbf16>
    %26 = vector.shape_cast %25 : vector<1x24x128xbf16> to vector<24x128xbf16>
    %cst_27 = arith.constant dense<0.000000e+00> : vector<32x128xf32>
    %27 = tpu.matmul %24, %26, %cst_27 {dimension_numbers = #tpu.dot_dimension_numbers<[1], [0], [0], [1], [0, 0, 1, 1], [], []>} : vector<32x24xbf16>, vector<24x128xbf16>, vector<32x128xf32> -> vector<32x128xf32>
    %28 = arith.addf %21, %27 : vector<32x128xf32>
    %c0_28 = arith.constant 0 : index
    %c1_29 = arith.constant 1 : index
    %c1_30 = arith.constant 1 : index
    %c0_31 = arith.constant 0 : index
    %29 = vector.load %arg1[%c0_28, %c1_29, %c1_30, %c0_31] : memref<1x4x18x24xbf16, #tpu.memory_space<vmem>>, vector<1x2x16x24xbf16>
    %30 = vector.shape_cast %29 : vector<1x2x16x24xbf16> to vector<2x16x24xbf16>
    %31 = vector.shape_cast %30 : vector<2x16x24xbf16> to vector<32x24xbf16>
    %c4 = arith.constant 4 : index
    %c0_32 = arith.constant 0 : index
    %c0_33 = arith.constant 0 : index
    %32 = vector.load %arg2[%c4, %c0_32, %c0_33] : memref<9x24x128xbf16, #tpu.memory_space<vmem>>, vector<1x24x128xbf16>
    %33 = vector.shape_cast %32 : vector<1x24x128xbf16> to vector<24x128xbf16>
    %cst_34 = arith.constant dense<0.000000e+00> : vector<32x128xf32>
    %34 = tpu.matmul %31, %33, %cst_34 {dimension_numbers = #tpu.dot_dimension_numbers<[1], [0], [0], [1], [0, 0, 1, 1], [], []>} : vector<32x24xbf16>, vector<24x128xbf16>, vector<32x128xf32> -> vector<32x128xf32>
    %35 = arith.addf %28, %34 : vector<32x128xf32>
    %c0_35 = arith.constant 0 : index
    %c1_36 = arith.constant 1 : index
    %c2_37 = arith.constant 2 : index
    %c0_38 = arith.constant 0 : index
    %36 = vector.load %arg1[%c0_35, %c1_36, %c2_37, %c0_38] : memref<1x4x18x24xbf16, #tpu.memory_space<vmem>>, vector<1x2x16x24xbf16>
    %37 = vector.shape_cast %36 : vector<1x2x16x24xbf16> to vector<2x16x24xbf16>
    %38 = vector.shape_cast %37 : vector<2x16x24xbf16> to vector<32x24xbf16>
    %c5 = arith.constant 5 : index
    %c0_39 = arith.constant 0 : index
    %c0_40 = arith.constant 0 : index
    %39 = vector.load %arg2[%c5, %c0_39, %c0_40] : memref<9x24x128xbf16, #tpu.memory_space<vmem>>, vector<1x24x128xbf16>
    %40 = vector.shape_cast %39 : vector<1x24x128xbf16> to vector<24x128xbf16>
    %cst_41 = arith.constant dense<0.000000e+00> : vector<32x128xf32>
    %41 = tpu.matmul %38, %40, %cst_41 {dimension_numbers = #tpu.dot_dimension_numbers<[1], [0], [0], [1], [0, 0, 1, 1], [], []>} : vector<32x24xbf16>, vector<24x128xbf16>, vector<32x128xf32> -> vector<32x128xf32>
    %42 = arith.addf %35, %41 : vector<32x128xf32>
    %c0_42 = arith.constant 0 : index
    %c2_43 = arith.constant 2 : index
    %c0_44 = arith.constant 0 : index
    %c0_45 = arith.constant 0 : index
    %43 = vector.load %arg1[%c0_42, %c2_43, %c0_44, %c0_45] : memref<1x4x18x24xbf16, #tpu.memory_space<vmem>>, vector<1x2x16x24xbf16>
    %44 = vector.shape_cast %43 : vector<1x2x16x24xbf16> to vector<2x16x24xbf16>
    %45 = vector.shape_cast %44 : vector<2x16x24xbf16> to vector<32x24xbf16>
    %c6 = arith.constant 6 : index
    %c0_46 = arith.constant 0 : index
    %c0_47 = arith.constant 0 : index
    %46 = vector.load %arg2[%c6, %c0_46, %c0_47] : memref<9x24x128xbf16, #tpu.memory_space<vmem>>, vector<1x24x128xbf16>
    %47 = vector.shape_cast %46 : vector<1x24x128xbf16> to vector<24x128xbf16>
    %cst_48 = arith.constant dense<0.000000e+00> : vector<32x128xf32>
    %48 = tpu.matmul %45, %47, %cst_48 {dimension_numbers = #tpu.dot_dimension_numbers<[1], [0], [0], [1], [0, 0, 1, 1], [], []>} : vector<32x24xbf16>, vector<24x128xbf16>, vector<32x128xf32> -> vector<32x128xf32>
    %49 = arith.addf %42, %48 : vector<32x128xf32>
    %c0_49 = arith.constant 0 : index
    %c2_50 = arith.constant 2 : index
    %c1_51 = arith.constant 1 : index
    %c0_52 = arith.constant 0 : index
    %50 = vector.load %arg1[%c0_49, %c2_50, %c1_51, %c0_52] : memref<1x4x18x24xbf16, #tpu.memory_space<vmem>>, vector<1x2x16x24xbf16>
    %51 = vector.shape_cast %50 : vector<1x2x16x24xbf16> to vector<2x16x24xbf16>
    %52 = vector.shape_cast %51 : vector<2x16x24xbf16> to vector<32x24xbf16>
    %c7 = arith.constant 7 : index
    %c0_53 = arith.constant 0 : index
    %c0_54 = arith.constant 0 : index
    %53 = vector.load %arg2[%c7, %c0_53, %c0_54] : memref<9x24x128xbf16, #tpu.memory_space<vmem>>, vector<1x24x128xbf16>
    %54 = vector.shape_cast %53 : vector<1x24x128xbf16> to vector<24x128xbf16>
    %cst_55 = arith.constant dense<0.000000e+00> : vector<32x128xf32>
    %55 = tpu.matmul %52, %54, %cst_55 {dimension_numbers = #tpu.dot_dimension_numbers<[1], [0], [0], [1], [0, 0, 1, 1], [], []>} : vector<32x24xbf16>, vector<24x128xbf16>, vector<32x128xf32> -> vector<32x128xf32>
    %56 = arith.addf %49, %55 : vector<32x128xf32>
    %c0_56 = arith.constant 0 : index
    %c2_57 = arith.constant 2 : index
    %c2_58 = arith.constant 2 : index
    %c0_59 = arith.constant 0 : index
    %57 = vector.load %arg1[%c0_56, %c2_57, %c2_58, %c0_59] : memref<1x4x18x24xbf16, #tpu.memory_space<vmem>>, vector<1x2x16x24xbf16>
    %58 = vector.shape_cast %57 : vector<1x2x16x24xbf16> to vector<2x16x24xbf16>
    %59 = vector.shape_cast %58 : vector<2x16x24xbf16> to vector<32x24xbf16>
    %c8 = arith.constant 8 : index
    %c0_60 = arith.constant 0 : index
    %c0_61 = arith.constant 0 : index
    %60 = vector.load %arg2[%c8, %c0_60, %c0_61] : memref<9x24x128xbf16, #tpu.memory_space<vmem>>, vector<1x24x128xbf16>
    %61 = vector.shape_cast %60 : vector<1x24x128xbf16> to vector<24x128xbf16>
    %cst_62 = arith.constant dense<0.000000e+00> : vector<32x128xf32>
    %62 = tpu.matmul %59, %61, %cst_62 {dimension_numbers = #tpu.dot_dimension_numbers<[1], [0], [0], [1], [0, 0, 1, 1], [], []>} : vector<32x24xbf16>, vector<24x128xbf16>, vector<32x128xf32> -> vector<32x128xf32>
    %63 = arith.addf %56, %62 : vector<32x128xf32>
    %c0_63 = arith.constant 0 : index
    %c0_64 = arith.constant 0 : index
    %64 = vector.load %arg3[%c0_63, %c0_64] : memref<1x128xf32, #tpu.memory_space<vmem>>, vector<1x128xf32>
    %65 = vector.broadcast %64 : vector<1x128xf32> to vector<32x128xf32>
    %66 = arith.addf %63, %65 : vector<32x128xf32>
    %cst_65 = arith.constant 0.000000e+00 : f32
    %67 = vector.broadcast %cst_65 : f32 to vector<32x128xf32>
    %68 = arith.maximumf %66, %67 : vector<32x128xf32>
    %69 = vector.shape_cast %68 : vector<32x128xf32> to vector<2x16x128xf32>
    %70 = arith.truncf %69 : vector<2x16x128xf32> to vector<2x16x128xbf16>
    %c0_66 = arith.constant 0 : index
    %c0_67 = arith.constant 0 : index
    %c0_68 = arith.constant 0 : index
    %c0_69 = arith.constant 0 : index
    %71 = vector.load %arg4[%c0_66, %c0_67, %c0_68, %c0_69] : memref<1x2x16x128xbf16, #tpu.memory_space<vmem>>, vector<1x2x16x128xbf16>
    %72 = vector.shape_cast %71 : vector<1x2x16x128xbf16> to vector<2x16x128xbf16>
    %73 = vector.shape_cast %70 : vector<2x16x128xbf16> to vector<1x2x16x128xbf16>
    tpu.vector_store %arg4[%c0_66, %c0_67, %c0_68, %c0_69], %73 {strides = array<i32>} : memref<1x2x16x128xbf16, #tpu.memory_space<vmem>>, vector<1x2x16x128xbf16>,
    return
  }
  func.func @transform_0(%arg0: i32) -> (i32, i32, i32, i32) {
    %c0_i32 = arith.constant 0 : i32
    %c0_i32_0 = arith.constant 0 : i32
    %c0_i32_1 = arith.constant 0 : i32
    %c0_i32_2 = arith.constant 0 : i32
    return %arg0, %c0_i32, %c0_i32_0, %c0_i32_1 : i32, i32, i32, i32
  }
  func.func @transform_1(%arg0: i32) -> (i32, i32, i32) {
    %c0_i32 = arith.constant 0 : i32
    %c0_i32_0 = arith.constant 0 : i32
    %c0_i32_1 = arith.constant 0 : i32
    %c0_i32_2 = arith.constant 0 : i32
    return %c0_i32, %c0_i32_0, %c0_i32_1 : i32, i32, i32
  }
  func.func @transform_2(%arg0: i32) -> (i32, i32) {
    %c0_i32 = arith.constant 0 : i32
    %c0_i32_0 = arith.constant 0 : i32
    %c0_i32_1 = arith.constant 0 : i32
    return %c0_i32, %c0_i32_0 : i32, i32
  }
  func.func @transform_3(%arg0: i32) -> (i32, i32, i32, i32) {
    %c0_i32 = arith.constant 0 : i32
    %c0_i32_0 = arith.constant 0 : i32
    %c0_i32_1 = arith.constant 0 : i32
    %c0_i32_2 = arith.constant 0 : i32
    return %arg0, %c0_i32, %c0_i32_0, %c0_i32_1 : i32, i32, i32, i32
  }
}

module attributes {stable_mosaic.version = 11 : i64} {
  func.func @_matmul_bias_kernel(%arg0: i32, %arg1: memref<8x128xbf16, #tpu.memory_space<vmem>>, %arg2: memref<128x128xbf16, #tpu.memory_space<vmem>>, %arg3: memref<1x128xf32, #tpu.memory_space<vmem>>, %arg4: memref<8x128xbf16, #tpu.memory_space<vmem>>) attributes {dimension_semantics = [#tpu.dimension_semantics<parallel>], iteration_bounds = array<i64: 1>, scalar_prefetch = 0 : i64, scratch_operands = 0 : i64, tpu.core_type = #tpu.core_type<tc>, window_params = [{transform_indices = @transform_0, window_bounds = array<i64: 8, 128>}, {pipeline_mode = #tpu.pipeline_mode<synchronous>, transform_indices = @transform_1, window_bounds = array<i64: 128, 128>}, {pipeline_mode = #tpu.pipeline_mode<synchronous>, transform_indices = @transform_2, window_bounds = array<i64: 1, 128>}, {transform_indices = @transform_3, window_bounds = array<i64: 8, 128>}]} {
    %c0 = arith.constant 0 : index
    %c0_0 = arith.constant 0 : index
    %0 = vector.load %arg1[%c0, %c0_0] : memref<8x128xbf16, #tpu.memory_space<vmem>>, vector<8x128xbf16>
    %c0_1 = arith.constant 0 : index
    %c0_2 = arith.constant 0 : index
    %1 = vector.load %arg2[%c0_1, %c0_2] : memref<128x128xbf16, #tpu.memory_space<vmem>>, vector<128x128xbf16>
    %cst = arith.constant dense<0.000000e+00> : vector<8x128xf32>
    %2 = tpu.matmul %0, %1, %cst {dimension_numbers = #tpu.dot_dimension_numbers<[1], [0], [0], [1], [0, 0, 1, 1], [], []>} : vector<8x128xbf16>, vector<128x128xbf16>, vector<8x128xf32> -> vector<8x128xf32>
    %c0_3 = arith.constant 0 : index
    %c0_4 = arith.constant 0 : index
    %3 = vector.load %arg3[%c0_3, %c0_4] : memref<1x128xf32, #tpu.memory_space<vmem>>, vector<1x128xf32>
    %4 = vector.broadcast %3 : vector<1x128xf32> to vector<8x128xf32>
    %5 = arith.addf %2, %4 : vector<8x128xf32>
    %cst_5 = arith.constant 0.000000e+00 : f32
    %6 = vector.broadcast %cst_5 : f32 to vector<8x128xf32>
    %7 = arith.maximumf %5, %6 : vector<8x128xf32>
    %8 = arith.truncf %7 : vector<8x128xf32> to vector<8x128xbf16>
    %c0_6 = arith.constant 0 : index
    %c0_7 = arith.constant 0 : index
    %9 = vector.load %arg4[%c0_6, %c0_7] : memref<8x128xbf16, #tpu.memory_space<vmem>>, vector<8x128xbf16>
    tpu.vector_store %arg4[%c0_6, %c0_7], %8 {strides = array<i32>} : memref<8x128xbf16, #tpu.memory_space<vmem>>, vector<8x128xbf16>,
    return
  }
  func.func @transform_0(%arg0: i32) -> (i32, i32) {
    %c0_i32 = arith.constant 0 : i32
    %c0_i32_0 = arith.constant 0 : i32
    return %arg0, %c0_i32 : i32, i32
  }
  func.func @transform_1(%arg0: i32) -> (i32, i32) {
    %c0_i32 = arith.constant 0 : i32
    %c0_i32_0 = arith.constant 0 : i32
    %c0_i32_1 = arith.constant 0 : i32
    return %c0_i32, %c0_i32_0 : i32, i32
  }
  func.func @transform_2(%arg0: i32) -> (i32, i32) {
    %c0_i32 = arith.constant 0 : i32
    %c0_i32_0 = arith.constant 0 : i32
    %c0_i32_1 = arith.constant 0 : i32
    return %c0_i32, %c0_i32_0 : i32, i32
  }
  func.func @transform_3(%arg0: i32) -> (i32, i32) {
    %c0_i32 = arith.constant 0 : i32
    %c0_i32_0 = arith.constant 0 : i32
    return %arg0, %c0_i32 : i32, i32
  }
}

module attributes {stable_mosaic.version = 11 : i64} {
  func.func @_implicit_conv_kernel(%arg0: i32, %arg1: memref<1x4x18x32xbf16, #tpu.memory_space<vmem>>, %arg2: memref<9x32x128xbf16, #tpu.memory_space<vmem>>, %arg3: memref<1x128xf32, #tpu.memory_space<vmem>>, %arg4: memref<1x2x16x128xbf16, #tpu.memory_space<vmem>>) attributes {dimension_semantics = [#tpu.dimension_semantics<parallel>], iteration_bounds = array<i64: 2>, scalar_prefetch = 0 : i64, scratch_operands = 0 : i64, tpu.core_type = #tpu.core_type<tc>, window_params = [{transform_indices = @transform_0, window_bounds = array<i64: 1, 4, 18, 32>}, {pipeline_mode = #tpu.pipeline_mode<synchronous>, transform_indices = @transform_1, window_bounds = array<i64: 9, 32, 128>}, {pipeline_mode = #tpu.pipeline_mode<synchronous>, transform_indices = @transform_2, window_bounds = array<i64: 1, 128>}, {transform_indices = @transform_3, window_bounds = array<i64: 1, 2, 16, 128>}]} {
    %cst = arith.constant 0.000000e+00 : f32
    %0 = vector.broadcast %cst : f32 to vector<32x128xf32>
    %c0 = arith.constant 0 : index
    %c0_0 = arith.constant 0 : index
    %c0_1 = arith.constant 0 : index
    %c0_2 = arith.constant 0 : index
    %1 = vector.load %arg1[%c0, %c0_0, %c0_1, %c0_2] : memref<1x4x18x32xbf16, #tpu.memory_space<vmem>>, vector<1x2x16x32xbf16>
    %2 = vector.shape_cast %1 : vector<1x2x16x32xbf16> to vector<2x16x32xbf16>
    %3 = vector.shape_cast %2 : vector<2x16x32xbf16> to vector<32x32xbf16>
    %c0_3 = arith.constant 0 : index
    %c0_4 = arith.constant 0 : index
    %c0_5 = arith.constant 0 : index
    %4 = vector.load %arg2[%c0_3, %c0_4, %c0_5] : memref<9x32x128xbf16, #tpu.memory_space<vmem>>, vector<1x32x128xbf16>
    %5 = vector.shape_cast %4 : vector<1x32x128xbf16> to vector<32x128xbf16>
    %cst_6 = arith.constant dense<0.000000e+00> : vector<32x128xf32>
    %6 = tpu.matmul %3, %5, %cst_6 {dimension_numbers = #tpu.dot_dimension_numbers<[1], [0], [0], [1], [0, 0, 1, 1], [], []>} : vector<32x32xbf16>, vector<32x128xbf16>, vector<32x128xf32> -> vector<32x128xf32>
    %7 = arith.addf %0, %6 : vector<32x128xf32>
    %c0_7 = arith.constant 0 : index
    %c0_8 = arith.constant 0 : index
    %c1 = arith.constant 1 : index
    %c0_9 = arith.constant 0 : index
    %8 = vector.load %arg1[%c0_7, %c0_8, %c1, %c0_9] : memref<1x4x18x32xbf16, #tpu.memory_space<vmem>>, vector<1x2x16x32xbf16>
    %9 = vector.shape_cast %8 : vector<1x2x16x32xbf16> to vector<2x16x32xbf16>
    %10 = vector.shape_cast %9 : vector<2x16x32xbf16> to vector<32x32xbf16>
    %c1_10 = arith.constant 1 : index
    %c0_11 = arith.constant 0 : index
    %c0_12 = arith.constant 0 : index
    %11 = vector.load %arg2[%c1_10, %c0_11, %c0_12] : memref<9x32x128xbf16, #tpu.memory_space<vmem>>, vector<1x32x128xbf16>
    %12 = vector.shape_cast %11 : vector<1x32x128xbf16> to vector<32x128xbf16>
    %cst_13 = arith.constant dense<0.000000e+00> : vector<32x128xf32>
    %13 = tpu.matmul %10, %12, %cst_13 {dimension_numbers = #tpu.dot_dimension_numbers<[1], [0], [0], [1], [0, 0, 1, 1], [], []>} : vector<32x32xbf16>, vector<32x128xbf16>, vector<32x128xf32> -> vector<32x128xf32>
    %14 = arith.addf %7, %13 : vector<32x128xf32>
    %c0_14 = arith.constant 0 : index
    %c0_15 = arith.constant 0 : index
    %c2 = arith.constant 2 : index
    %c0_16 = arith.constant 0 : index
    %15 = vector.load %arg1[%c0_14, %c0_15, %c2, %c0_16] : memref<1x4x18x32xbf16, #tpu.memory_space<vmem>>, vector<1x2x16x32xbf16>
    %16 = vector.shape_cast %15 : vector<1x2x16x32xbf16> to vector<2x16x32xbf16>
    %17 = vector.shape_cast %16 : vector<2x16x32xbf16> to vector<32x32xbf16>
    %c2_17 = arith.constant 2 : index
    %c0_18 = arith.constant 0 : index
    %c0_19 = arith.constant 0 : index
    %18 = vector.load %arg2[%c2_17, %c0_18, %c0_19] : memref<9x32x128xbf16, #tpu.memory_space<vmem>>, vector<1x32x128xbf16>
    %19 = vector.shape_cast %18 : vector<1x32x128xbf16> to vector<32x128xbf16>
    %cst_20 = arith.constant dense<0.000000e+00> : vector<32x128xf32>
    %20 = tpu.matmul %17, %19, %cst_20 {dimension_numbers = #tpu.dot_dimension_numbers<[1], [0], [0], [1], [0, 0, 1, 1], [], []>} : vector<32x32xbf16>, vector<32x128xbf16>, vector<32x128xf32> -> vector<32x128xf32>
    %21 = arith.addf %14, %20 : vector<32x128xf32>
    %c0_21 = arith.constant 0 : index
    %c1_22 = arith.constant 1 : index
    %c0_23 = arith.constant 0 : index
    %c0_24 = arith.constant 0 : index
    %22 = vector.load %arg1[%c0_21, %c1_22, %c0_23, %c0_24] : memref<1x4x18x32xbf16, #tpu.memory_space<vmem>>, vector<1x2x16x32xbf16>
    %23 = vector.shape_cast %22 : vector<1x2x16x32xbf16> to vector<2x16x32xbf16>
    %24 = vector.shape_cast %23 : vector<2x16x32xbf16> to vector<32x32xbf16>
    %c3 = arith.constant 3 : index
    %c0_25 = arith.constant 0 : index
    %c0_26 = arith.constant 0 : index
    %25 = vector.load %arg2[%c3, %c0_25, %c0_26] : memref<9x32x128xbf16, #tpu.memory_space<vmem>>, vector<1x32x128xbf16>
    %26 = vector.shape_cast %25 : vector<1x32x128xbf16> to vector<32x128xbf16>
    %cst_27 = arith.constant dense<0.000000e+00> : vector<32x128xf32>
    %27 = tpu.matmul %24, %26, %cst_27 {dimension_numbers = #tpu.dot_dimension_numbers<[1], [0], [0], [1], [0, 0, 1, 1], [], []>} : vector<32x32xbf16>, vector<32x128xbf16>, vector<32x128xf32> -> vector<32x128xf32>
    %28 = arith.addf %21, %27 : vector<32x128xf32>
    %c0_28 = arith.constant 0 : index
    %c1_29 = arith.constant 1 : index
    %c1_30 = arith.constant 1 : index
    %c0_31 = arith.constant 0 : index
    %29 = vector.load %arg1[%c0_28, %c1_29, %c1_30, %c0_31] : memref<1x4x18x32xbf16, #tpu.memory_space<vmem>>, vector<1x2x16x32xbf16>
    %30 = vector.shape_cast %29 : vector<1x2x16x32xbf16> to vector<2x16x32xbf16>
    %31 = vector.shape_cast %30 : vector<2x16x32xbf16> to vector<32x32xbf16>
    %c4 = arith.constant 4 : index
    %c0_32 = arith.constant 0 : index
    %c0_33 = arith.constant 0 : index
    %32 = vector.load %arg2[%c4, %c0_32, %c0_33] : memref<9x32x128xbf16, #tpu.memory_space<vmem>>, vector<1x32x128xbf16>
    %33 = vector.shape_cast %32 : vector<1x32x128xbf16> to vector<32x128xbf16>
    %cst_34 = arith.constant dense<0.000000e+00> : vector<32x128xf32>
    %34 = tpu.matmul %31, %33, %cst_34 {dimension_numbers = #tpu.dot_dimension_numbers<[1], [0], [0], [1], [0, 0, 1, 1], [], []>} : vector<32x32xbf16>, vector<32x128xbf16>, vector<32x128xf32> -> vector<32x128xf32>
    %35 = arith.addf %28, %34 : vector<32x128xf32>
    %c0_35 = arith.constant 0 : index
    %c1_36 = arith.constant 1 : index
    %c2_37 = arith.constant 2 : index
    %c0_38 = arith.constant 0 : index
    %36 = vector.load %arg1[%c0_35, %c1_36, %c2_37, %c0_38] : memref<1x4x18x32xbf16, #tpu.memory_space<vmem>>, vector<1x2x16x32xbf16>
    %37 = vector.shape_cast %36 : vector<1x2x16x32xbf16> to vector<2x16x32xbf16>
    %38 = vector.shape_cast %37 : vector<2x16x32xbf16> to vector<32x32xbf16>
    %c5 = arith.constant 5 : index
    %c0_39 = arith.constant 0 : index
    %c0_40 = arith.constant 0 : index
    %39 = vector.load %arg2[%c5, %c0_39, %c0_40] : memref<9x32x128xbf16, #tpu.memory_space<vmem>>, vector<1x32x128xbf16>
    %40 = vector.shape_cast %39 : vector<1x32x128xbf16> to vector<32x128xbf16>
    %cst_41 = arith.constant dense<0.000000e+00> : vector<32x128xf32>
    %41 = tpu.matmul %38, %40, %cst_41 {dimension_numbers = #tpu.dot_dimension_numbers<[1], [0], [0], [1], [0, 0, 1, 1], [], []>} : vector<32x32xbf16>, vector<32x128xbf16>, vector<32x128xf32> -> vector<32x128xf32>
    %42 = arith.addf %35, %41 : vector<32x128xf32>
    %c0_42 = arith.constant 0 : index
    %c2_43 = arith.constant 2 : index
    %c0_44 = arith.constant 0 : index
    %c0_45 = arith.constant 0 : index
    %43 = vector.load %arg1[%c0_42, %c2_43, %c0_44, %c0_45] : memref<1x4x18x32xbf16, #tpu.memory_space<vmem>>, vector<1x2x16x32xbf16>
    %44 = vector.shape_cast %43 : vector<1x2x16x32xbf16> to vector<2x16x32xbf16>
    %45 = vector.shape_cast %44 : vector<2x16x32xbf16> to vector<32x32xbf16>
    %c6 = arith.constant 6 : index
    %c0_46 = arith.constant 0 : index
    %c0_47 = arith.constant 0 : index
    %46 = vector.load %arg2[%c6, %c0_46, %c0_47] : memref<9x32x128xbf16, #tpu.memory_space<vmem>>, vector<1x32x128xbf16>
    %47 = vector.shape_cast %46 : vector<1x32x128xbf16> to vector<32x128xbf16>
    %cst_48 = arith.constant dense<0.000000e+00> : vector<32x128xf32>
    %48 = tpu.matmul %45, %47, %cst_48 {dimension_numbers = #tpu.dot_dimension_numbers<[1], [0], [0], [1], [0, 0, 1, 1], [], []>} : vector<32x32xbf16>, vector<32x128xbf16>, vector<32x128xf32> -> vector<32x128xf32>
    %49 = arith.addf %42, %48 : vector<32x128xf32>
    %c0_49 = arith.constant 0 : index
    %c2_50 = arith.constant 2 : index
    %c1_51 = arith.constant 1 : index
    %c0_52 = arith.constant 0 : index
    %50 = vector.load %arg1[%c0_49, %c2_50, %c1_51, %c0_52] : memref<1x4x18x32xbf16, #tpu.memory_space<vmem>>, vector<1x2x16x32xbf16>
    %51 = vector.shape_cast %50 : vector<1x2x16x32xbf16> to vector<2x16x32xbf16>
    %52 = vector.shape_cast %51 : vector<2x16x32xbf16> to vector<32x32xbf16>
    %c7 = arith.constant 7 : index
    %c0_53 = arith.constant 0 : index
    %c0_54 = arith.constant 0 : index
    %53 = vector.load %arg2[%c7, %c0_53, %c0_54] : memref<9x32x128xbf16, #tpu.memory_space<vmem>>, vector<1x32x128xbf16>
    %54 = vector.shape_cast %53 : vector<1x32x128xbf16> to vector<32x128xbf16>
    %cst_55 = arith.constant dense<0.000000e+00> : vector<32x128xf32>
    %55 = tpu.matmul %52, %54, %cst_55 {dimension_numbers = #tpu.dot_dimension_numbers<[1], [0], [0], [1], [0, 0, 1, 1], [], []>} : vector<32x32xbf16>, vector<32x128xbf16>, vector<32x128xf32> -> vector<32x128xf32>
    %56 = arith.addf %49, %55 : vector<32x128xf32>
    %c0_56 = arith.constant 0 : index
    %c2_57 = arith.constant 2 : index
    %c2_58 = arith.constant 2 : index
    %c0_59 = arith.constant 0 : index
    %57 = vector.load %arg1[%c0_56, %c2_57, %c2_58, %c0_59] : memref<1x4x18x32xbf16, #tpu.memory_space<vmem>>, vector<1x2x16x32xbf16>
    %58 = vector.shape_cast %57 : vector<1x2x16x32xbf16> to vector<2x16x32xbf16>
    %59 = vector.shape_cast %58 : vector<2x16x32xbf16> to vector<32x32xbf16>
    %c8 = arith.constant 8 : index
    %c0_60 = arith.constant 0 : index
    %c0_61 = arith.constant 0 : index
    %60 = vector.load %arg2[%c8, %c0_60, %c0_61] : memref<9x32x128xbf16, #tpu.memory_space<vmem>>, vector<1x32x128xbf16>
    %61 = vector.shape_cast %60 : vector<1x32x128xbf16> to vector<32x128xbf16>
    %cst_62 = arith.constant dense<0.000000e+00> : vector<32x128xf32>
    %62 = tpu.matmul %59, %61, %cst_62 {dimension_numbers = #tpu.dot_dimension_numbers<[1], [0], [0], [1], [0, 0, 1, 1], [], []>} : vector<32x32xbf16>, vector<32x128xbf16>, vector<32x128xf32> -> vector<32x128xf32>
    %63 = arith.addf %56, %62 : vector<32x128xf32>
    %c0_63 = arith.constant 0 : index
    %c0_64 = arith.constant 0 : index
    %64 = vector.load %arg3[%c0_63, %c0_64] : memref<1x128xf32, #tpu.memory_space<vmem>>, vector<1x128xf32>
    %65 = vector.broadcast %64 : vector<1x128xf32> to vector<32x128xf32>
    %66 = arith.addf %63, %65 : vector<32x128xf32>
    %cst_65 = arith.constant 0.000000e+00 : f32
    %67 = vector.broadcast %cst_65 : f32 to vector<32x128xf32>
    %68 = arith.maximumf %66, %67 : vector<32x128xf32>
    %69 = vector.shape_cast %68 : vector<32x128xf32> to vector<2x16x128xf32>
    %70 = arith.truncf %69 : vector<2x16x128xf32> to vector<2x16x128xbf16>
    %c0_66 = arith.constant 0 : index
    %c0_67 = arith.constant 0 : index
    %c0_68 = arith.constant 0 : index
    %c0_69 = arith.constant 0 : index
    %71 = vector.load %arg4[%c0_66, %c0_67, %c0_68, %c0_69] : memref<1x2x16x128xbf16, #tpu.memory_space<vmem>>, vector<1x2x16x128xbf16>
    %72 = vector.shape_cast %71 : vector<1x2x16x128xbf16> to vector<2x16x128xbf16>
    %73 = vector.shape_cast %70 : vector<2x16x128xbf16> to vector<1x2x16x128xbf16>
    tpu.vector_store %arg4[%c0_66, %c0_67, %c0_68, %c0_69], %73 {strides = array<i32>} : memref<1x2x16x128xbf16, #tpu.memory_space<vmem>>, vector<1x2x16x128xbf16>,
    return
  }
  func.func @transform_0(%arg0: i32) -> (i32, i32, i32, i32) {
    %c0_i32 = arith.constant 0 : i32
    %c0_i32_0 = arith.constant 0 : i32
    %c0_i32_1 = arith.constant 0 : i32
    %c0_i32_2 = arith.constant 0 : i32
    return %arg0, %c0_i32, %c0_i32_0, %c0_i32_1 : i32, i32, i32, i32
  }
  func.func @transform_1(%arg0: i32) -> (i32, i32, i32) {
    %c0_i32 = arith.constant 0 : i32
    %c0_i32_0 = arith.constant 0 : i32
    %c0_i32_1 = arith.constant 0 : i32
    %c0_i32_2 = arith.constant 0 : i32
    return %c0_i32, %c0_i32_0, %c0_i32_1 : i32, i32, i32
  }
  func.func @transform_2(%arg0: i32) -> (i32, i32) {
    %c0_i32 = arith.constant 0 : i32
    %c0_i32_0 = arith.constant 0 : i32
    %c0_i32_1 = arith.constant 0 : i32
    return %c0_i32, %c0_i32_0 : i32, i32
  }
  func.func @transform_3(%arg0: i32) -> (i32, i32, i32, i32) {
    %c0_i32 = arith.constant 0 : i32
    %c0_i32_0 = arith.constant 0 : i32
    %c0_i32_1 = arith.constant 0 : i32
    %c0_i32_2 = arith.constant 0 : i32
    return %arg0, %c0_i32, %c0_i32_0, %c0_i32_1 : i32, i32, i32, i32
  }
}

module attributes {stable_mosaic.version = 11 : i64} {
  func.func @_implicit_conv_kernel(%arg0: i32, %arg1: memref<1x4x18x128xbf16, #tpu.memory_space<vmem>>, %arg2: memref<9x128x384xbf16, #tpu.memory_space<vmem>>, %arg3: memref<1x384xf32, #tpu.memory_space<vmem>>, %arg4: memref<1x2x16x384xf32, #tpu.memory_space<vmem>>) attributes {dimension_semantics = [#tpu.dimension_semantics<parallel>], iteration_bounds = array<i64: 2>, scalar_prefetch = 0 : i64, scratch_operands = 0 : i64, tpu.core_type = #tpu.core_type<tc>, window_params = [{transform_indices = @transform_0, window_bounds = array<i64: 1, 4, 18, 128>}, {pipeline_mode = #tpu.pipeline_mode<synchronous>, transform_indices = @transform_1, window_bounds = array<i64: 9, 128, 384>}, {pipeline_mode = #tpu.pipeline_mode<synchronous>, transform_indices = @transform_2, window_bounds = array<i64: 1, 384>}, {transform_indices = @transform_3, window_bounds = array<i64: 1, 2, 16, 384>}]} {
    %cst = arith.constant 0.000000e+00 : f32
    %0 = vector.broadcast %cst : f32 to vector<32x384xf32>
    %c0 = arith.constant 0 : index
    %c0_0 = arith.constant 0 : index
    %c0_1 = arith.constant 0 : index
    %c0_2 = arith.constant 0 : index
    %1 = vector.load %arg1[%c0, %c0_0, %c0_1, %c0_2] : memref<1x4x18x128xbf16, #tpu.memory_space<vmem>>, vector<1x2x16x128xbf16>
    %2 = vector.shape_cast %1 : vector<1x2x16x128xbf16> to vector<2x16x128xbf16>
    %3 = vector.shape_cast %2 : vector<2x16x128xbf16> to vector<32x128xbf16>
    %c0_3 = arith.constant 0 : index
    %c0_4 = arith.constant 0 : index
    %c0_5 = arith.constant 0 : index
    %4 = vector.load %arg2[%c0_3, %c0_4, %c0_5] : memref<9x128x384xbf16, #tpu.memory_space<vmem>>, vector<1x128x384xbf16>
    %5 = vector.shape_cast %4 : vector<1x128x384xbf16> to vector<128x384xbf16>
    %cst_6 = arith.constant dense<0.000000e+00> : vector<32x384xf32>
    %6 = tpu.matmul %3, %5, %cst_6 {dimension_numbers = #tpu.dot_dimension_numbers<[1], [0], [0], [1], [0, 0, 1, 1], [], []>} : vector<32x128xbf16>, vector<128x384xbf16>, vector<32x384xf32> -> vector<32x384xf32>
    %7 = arith.addf %0, %6 : vector<32x384xf32>
    %c0_7 = arith.constant 0 : index
    %c0_8 = arith.constant 0 : index
    %c1 = arith.constant 1 : index
    %c0_9 = arith.constant 0 : index
    %8 = vector.load %arg1[%c0_7, %c0_8, %c1, %c0_9] : memref<1x4x18x128xbf16, #tpu.memory_space<vmem>>, vector<1x2x16x128xbf16>
    %9 = vector.shape_cast %8 : vector<1x2x16x128xbf16> to vector<2x16x128xbf16>
    %10 = vector.shape_cast %9 : vector<2x16x128xbf16> to vector<32x128xbf16>
    %c1_10 = arith.constant 1 : index
    %c0_11 = arith.constant 0 : index
    %c0_12 = arith.constant 0 : index
    %11 = vector.load %arg2[%c1_10, %c0_11, %c0_12] : memref<9x128x384xbf16, #tpu.memory_space<vmem>>, vector<1x128x384xbf16>
    %12 = vector.shape_cast %11 : vector<1x128x384xbf16> to vector<128x384xbf16>
    %cst_13 = arith.constant dense<0.000000e+00> : vector<32x384xf32>
    %13 = tpu.matmul %10, %12, %cst_13 {dimension_numbers = #tpu.dot_dimension_numbers<[1], [0], [0], [1], [0, 0, 1, 1], [], []>} : vector<32x128xbf16>, vector<128x384xbf16>, vector<32x384xf32> -> vector<32x384xf32>
    %14 = arith.addf %7, %13 : vector<32x384xf32>
    %c0_14 = arith.constant 0 : index
    %c0_15 = arith.constant 0 : index
    %c2 = arith.constant 2 : index
    %c0_16 = arith.constant 0 : index
    %15 = vector.load %arg1[%c0_14, %c0_15, %c2, %c0_16] : memref<1x4x18x128xbf16, #tpu.memory_space<vmem>>, vector<1x2x16x128xbf16>
    %16 = vector.shape_cast %15 : vector<1x2x16x128xbf16> to vector<2x16x128xbf16>
    %17 = vector.shape_cast %16 : vector<2x16x128xbf16> to vector<32x128xbf16>
    %c2_17 = arith.constant 2 : index
    %c0_18 = arith.constant 0 : index
    %c0_19 = arith.constant 0 : index
    %18 = vector.load %arg2[%c2_17, %c0_18, %c0_19] : memref<9x128x384xbf16, #tpu.memory_space<vmem>>, vector<1x128x384xbf16>
    %19 = vector.shape_cast %18 : vector<1x128x384xbf16> to vector<128x384xbf16>
    %cst_20 = arith.constant dense<0.000000e+00> : vector<32x384xf32>
    %20 = tpu.matmul %17, %19, %cst_20 {dimension_numbers = #tpu.dot_dimension_numbers<[1], [0], [0], [1], [0, 0, 1, 1], [], []>} : vector<32x128xbf16>, vector<128x384xbf16>, vector<32x384xf32> -> vector<32x384xf32>
    %21 = arith.addf %14, %20 : vector<32x384xf32>
    %c0_21 = arith.constant 0 : index
    %c1_22 = arith.constant 1 : index
    %c0_23 = arith.constant 0 : index
    %c0_24 = arith.constant 0 : index
    %22 = vector.load %arg1[%c0_21, %c1_22, %c0_23, %c0_24] : memref<1x4x18x128xbf16, #tpu.memory_space<vmem>>, vector<1x2x16x128xbf16>
    %23 = vector.shape_cast %22 : vector<1x2x16x128xbf16> to vector<2x16x128xbf16>
    %24 = vector.shape_cast %23 : vector<2x16x128xbf16> to vector<32x128xbf16>
    %c3 = arith.constant 3 : index
    %c0_25 = arith.constant 0 : index
    %c0_26 = arith.constant 0 : index
    %25 = vector.load %arg2[%c3, %c0_25, %c0_26] : memref<9x128x384xbf16, #tpu.memory_space<vmem>>, vector<1x128x384xbf16>
    %26 = vector.shape_cast %25 : vector<1x128x384xbf16> to vector<128x384xbf16>
    %cst_27 = arith.constant dense<0.000000e+00> : vector<32x384xf32>
    %27 = tpu.matmul %24, %26, %cst_27 {dimension_numbers = #tpu.dot_dimension_numbers<[1], [0], [0], [1], [0, 0, 1, 1], [], []>} : vector<32x128xbf16>, vector<128x384xbf16>, vector<32x384xf32> -> vector<32x384xf32>
    %28 = arith.addf %21, %27 : vector<32x384xf32>
    %c0_28 = arith.constant 0 : index
    %c1_29 = arith.constant 1 : index
    %c1_30 = arith.constant 1 : index
    %c0_31 = arith.constant 0 : index
    %29 = vector.load %arg1[%c0_28, %c1_29, %c1_30, %c0_31] : memref<1x4x18x128xbf16, #tpu.memory_space<vmem>>, vector<1x2x16x128xbf16>
    %30 = vector.shape_cast %29 : vector<1x2x16x128xbf16> to vector<2x16x128xbf16>
    %31 = vector.shape_cast %30 : vector<2x16x128xbf16> to vector<32x128xbf16>
    %c4 = arith.constant 4 : index
    %c0_32 = arith.constant 0 : index
    %c0_33 = arith.constant 0 : index
    %32 = vector.load %arg2[%c4, %c0_32, %c0_33] : memref<9x128x384xbf16, #tpu.memory_space<vmem>>, vector<1x128x384xbf16>
    %33 = vector.shape_cast %32 : vector<1x128x384xbf16> to vector<128x384xbf16>
    %cst_34 = arith.constant dense<0.000000e+00> : vector<32x384xf32>
    %34 = tpu.matmul %31, %33, %cst_34 {dimension_numbers = #tpu.dot_dimension_numbers<[1], [0], [0], [1], [0, 0, 1, 1], [], []>} : vector<32x128xbf16>, vector<128x384xbf16>, vector<32x384xf32> -> vector<32x384xf32>
    %35 = arith.addf %28, %34 : vector<32x384xf32>
    %c0_35 = arith.constant 0 : index
    %c1_36 = arith.constant 1 : index
    %c2_37 = arith.constant 2 : index
    %c0_38 = arith.constant 0 : index
    %36 = vector.load %arg1[%c0_35, %c1_36, %c2_37, %c0_38] : memref<1x4x18x128xbf16, #tpu.memory_space<vmem>>, vector<1x2x16x128xbf16>
    %37 = vector.shape_cast %36 : vector<1x2x16x128xbf16> to vector<2x16x128xbf16>
    %38 = vector.shape_cast %37 : vector<2x16x128xbf16> to vector<32x128xbf16>
    %c5 = arith.constant 5 : index
    %c0_39 = arith.constant 0 : index
    %c0_40 = arith.constant 0 : index
    %39 = vector.load %arg2[%c5, %c0_39, %c0_40] : memref<9x128x384xbf16, #tpu.memory_space<vmem>>, vector<1x128x384xbf16>
    %40 = vector.shape_cast %39 : vector<1x128x384xbf16> to vector<128x384xbf16>
    %cst_41 = arith.constant dense<0.000000e+00> : vector<32x384xf32>
    %41 = tpu.matmul %38, %40, %cst_41 {dimension_numbers = #tpu.dot_dimension_numbers<[1], [0], [0], [1], [0, 0, 1, 1], [], []>} : vector<32x128xbf16>, vector<128x384xbf16>, vector<32x384xf32> -> vector<32x384xf32>
    %42 = arith.addf %35, %41 : vector<32x384xf32>
    %c0_42 = arith.constant 0 : index
    %c2_43 = arith.constant 2 : index
    %c0_44 = arith.constant 0 : index
    %c0_45 = arith.constant 0 : index
    %43 = vector.load %arg1[%c0_42, %c2_43, %c0_44, %c0_45] : memref<1x4x18x128xbf16, #tpu.memory_space<vmem>>, vector<1x2x16x128xbf16>
    %44 = vector.shape_cast %43 : vector<1x2x16x128xbf16> to vector<2x16x128xbf16>
    %45 = vector.shape_cast %44 : vector<2x16x128xbf16> to vector<32x128xbf16>
    %c6 = arith.constant 6 : index
    %c0_46 = arith.constant 0 : index
    %c0_47 = arith.constant 0 : index
    %46 = vector.load %arg2[%c6, %c0_46, %c0_47] : memref<9x128x384xbf16, #tpu.memory_space<vmem>>, vector<1x128x384xbf16>
    %47 = vector.shape_cast %46 : vector<1x128x384xbf16> to vector<128x384xbf16>
    %cst_48 = arith.constant dense<0.000000e+00> : vector<32x384xf32>
    %48 = tpu.matmul %45, %47, %cst_48 {dimension_numbers = #tpu.dot_dimension_numbers<[1], [0], [0], [1], [0, 0, 1, 1], [], []>} : vector<32x128xbf16>, vector<128x384xbf16>, vector<32x384xf32> -> vector<32x384xf32>
    %49 = arith.addf %42, %48 : vector<32x384xf32>
    %c0_49 = arith.constant 0 : index
    %c2_50 = arith.constant 2 : index
    %c1_51 = arith.constant 1 : index
    %c0_52 = arith.constant 0 : index
    %50 = vector.load %arg1[%c0_49, %c2_50, %c1_51, %c0_52] : memref<1x4x18x128xbf16, #tpu.memory_space<vmem>>, vector<1x2x16x128xbf16>
    %51 = vector.shape_cast %50 : vector<1x2x16x128xbf16> to vector<2x16x128xbf16>
    %52 = vector.shape_cast %51 : vector<2x16x128xbf16> to vector<32x128xbf16>
    %c7 = arith.constant 7 : index
    %c0_53 = arith.constant 0 : index
    %c0_54 = arith.constant 0 : index
    %53 = vector.load %arg2[%c7, %c0_53, %c0_54] : memref<9x128x384xbf16, #tpu.memory_space<vmem>>, vector<1x128x384xbf16>
    %54 = vector.shape_cast %53 : vector<1x128x384xbf16> to vector<128x384xbf16>
    %cst_55 = arith.constant dense<0.000000e+00> : vector<32x384xf32>
    %55 = tpu.matmul %52, %54, %cst_55 {dimension_numbers = #tpu.dot_dimension_numbers<[1], [0], [0], [1], [0, 0, 1, 1], [], []>} : vector<32x128xbf16>, vector<128x384xbf16>, vector<32x384xf32> -> vector<32x384xf32>
    %56 = arith.addf %49, %55 : vector<32x384xf32>
    %c0_56 = arith.constant 0 : index
    %c2_57 = arith.constant 2 : index
    %c2_58 = arith.constant 2 : index
    %c0_59 = arith.constant 0 : index
    %57 = vector.load %arg1[%c0_56, %c2_57, %c2_58, %c0_59] : memref<1x4x18x128xbf16, #tpu.memory_space<vmem>>, vector<1x2x16x128xbf16>
    %58 = vector.shape_cast %57 : vector<1x2x16x128xbf16> to vector<2x16x128xbf16>
    %59 = vector.shape_cast %58 : vector<2x16x128xbf16> to vector<32x128xbf16>
    %c8 = arith.constant 8 : index
    %c0_60 = arith.constant 0 : index
    %c0_61 = arith.constant 0 : index
    %60 = vector.load %arg2[%c8, %c0_60, %c0_61] : memref<9x128x384xbf16, #tpu.memory_space<vmem>>, vector<1x128x384xbf16>
    %61 = vector.shape_cast %60 : vector<1x128x384xbf16> to vector<128x384xbf16>
    %cst_62 = arith.constant dense<0.000000e+00> : vector<32x384xf32>
    %62 = tpu.matmul %59, %61, %cst_62 {dimension_numbers = #tpu.dot_dimension_numbers<[1], [0], [0], [1], [0, 0, 1, 1], [], []>} : vector<32x128xbf16>, vector<128x384xbf16>, vector<32x384xf32> -> vector<32x384xf32>
    %63 = arith.addf %56, %62 : vector<32x384xf32>
    %c0_63 = arith.constant 0 : index
    %c0_64 = arith.constant 0 : index
    %64 = vector.load %arg3[%c0_63, %c0_64] : memref<1x384xf32, #tpu.memory_space<vmem>>, vector<1x384xf32>
    %65 = vector.broadcast %64 : vector<1x384xf32> to vector<32x384xf32>
    %66 = arith.addf %63, %65 : vector<32x384xf32>
    %67 = vector.shape_cast %66 : vector<32x384xf32> to vector<2x16x384xf32>
    %c0_65 = arith.constant 0 : index
    %c0_66 = arith.constant 0 : index
    %c0_67 = arith.constant 0 : index
    %c0_68 = arith.constant 0 : index
    %68 = vector.load %arg4[%c0_65, %c0_66, %c0_67, %c0_68] : memref<1x2x16x384xf32, #tpu.memory_space<vmem>>, vector<1x2x16x384xf32>
    %69 = vector.shape_cast %68 : vector<1x2x16x384xf32> to vector<2x16x384xf32>
    %70 = vector.shape_cast %67 : vector<2x16x384xf32> to vector<1x2x16x384xf32>
    tpu.vector_store %arg4[%c0_65, %c0_66, %c0_67, %c0_68], %70 {strides = array<i32>} : memref<1x2x16x384xf32, #tpu.memory_space<vmem>>, vector<1x2x16x384xf32>,
    return
  }
  func.func @transform_0(%arg0: i32) -> (i32, i32, i32, i32) {
    %c0_i32 = arith.constant 0 : i32
    %c0_i32_0 = arith.constant 0 : i32
    %c0_i32_1 = arith.constant 0 : i32
    %c0_i32_2 = arith.constant 0 : i32
    return %arg0, %c0_i32, %c0_i32_0, %c0_i32_1 : i32, i32, i32, i32
  }
  func.func @transform_1(%arg0: i32) -> (i32, i32, i32) {
    %c0_i32 = arith.constant 0 : i32
    %c0_i32_0 = arith.constant 0 : i32
    %c0_i32_1 = arith.constant 0 : i32
    %c0_i32_2 = arith.constant 0 : i32
    return %c0_i32, %c0_i32_0, %c0_i32_1 : i32, i32, i32
  }
  func.func @transform_2(%arg0: i32) -> (i32, i32) {
    %c0_i32 = arith.constant 0 : i32
    %c0_i32_0 = arith.constant 0 : i32
    %c0_i32_1 = arith.constant 0 : i32
    return %c0_i32, %c0_i32_0 : i32, i32
  }
  func.func @transform_3(%arg0: i32) -> (i32, i32, i32, i32) {
    %c0_i32 = arith.constant 0 : i32
    %c0_i32_0 = arith.constant 0 : i32
    %c0_i32_1 = arith.constant 0 : i32
    %c0_i32_2 = arith.constant 0 : i32
    return %arg0, %c0_i32, %c0_i32_0, %c0_i32_1 : i32, i32, i32, i32
  }
}

module attributes {stable_mosaic.version = 11 : i64} {
  func.func @_implicit_conv_kernel(%arg0: i32, %arg1: memref<1x2x17x512xbf16, #tpu.memory_space<vmem>>, %arg2: memref<4x512x256xbf16, #tpu.memory_space<vmem>>, %arg3: memref<1x256xf32, #tpu.memory_space<vmem>>, %arg4: memref<1x1x16x256xbf16, #tpu.memory_space<vmem>>) attributes {dimension_semantics = [#tpu.dimension_semantics<parallel>], iteration_bounds = array<i64: 2>, scalar_prefetch = 0 : i64, scratch_operands = 0 : i64, tpu.core_type = #tpu.core_type<tc>, window_params = [{transform_indices = @transform_0, window_bounds = array<i64: 1, 2, 17, 512>}, {pipeline_mode = #tpu.pipeline_mode<synchronous>, transform_indices = @transform_1, window_bounds = array<i64: 4, 512, 256>}, {pipeline_mode = #tpu.pipeline_mode<synchronous>, transform_indices = @transform_2, window_bounds = array<i64: 1, 256>}, {transform_indices = @transform_3, window_bounds = array<i64: 1, 1, 16, 256>}]} {
    %cst = arith.constant 0.000000e+00 : f32
    %0 = vector.broadcast %cst : f32 to vector<16x256xf32>
    %c0 = arith.constant 0 : index
    %c0_0 = arith.constant 0 : index
    %c0_1 = arith.constant 0 : index
    %c0_2 = arith.constant 0 : index
    %1 = vector.load %arg1[%c0, %c0_0, %c0_1, %c0_2] : memref<1x2x17x512xbf16, #tpu.memory_space<vmem>>, vector<1x1x16x512xbf16>
    %2 = vector.shape_cast %1 : vector<1x1x16x512xbf16> to vector<1x16x512xbf16>
    %3 = vector.shape_cast %2 : vector<1x16x512xbf16> to vector<16x512xbf16>
    %c0_3 = arith.constant 0 : index
    %c0_4 = arith.constant 0 : index
    %c0_5 = arith.constant 0 : index
    %4 = vector.load %arg2[%c0_3, %c0_4, %c0_5] : memref<4x512x256xbf16, #tpu.memory_space<vmem>>, vector<1x512x256xbf16>
    %5 = vector.shape_cast %4 : vector<1x512x256xbf16> to vector<512x256xbf16>
    %cst_6 = arith.constant dense<0.000000e+00> : vector<16x256xf32>
    %6 = tpu.matmul %3, %5, %cst_6 {dimension_numbers = #tpu.dot_dimension_numbers<[1], [0], [0], [1], [0, 0, 1, 1], [], []>} : vector<16x512xbf16>, vector<512x256xbf16>, vector<16x256xf32> -> vector<16x256xf32>
    %7 = arith.addf %0, %6 : vector<16x256xf32>
    %c0_7 = arith.constant 0 : index
    %c0_8 = arith.constant 0 : index
    %c1 = arith.constant 1 : index
    %c0_9 = arith.constant 0 : index
    %8 = vector.load %arg1[%c0_7, %c0_8, %c1, %c0_9] : memref<1x2x17x512xbf16, #tpu.memory_space<vmem>>, vector<1x1x16x512xbf16>
    %9 = vector.shape_cast %8 : vector<1x1x16x512xbf16> to vector<1x16x512xbf16>
    %10 = vector.shape_cast %9 : vector<1x16x512xbf16> to vector<16x512xbf16>
    %c1_10 = arith.constant 1 : index
    %c0_11 = arith.constant 0 : index
    %c0_12 = arith.constant 0 : index
    %11 = vector.load %arg2[%c1_10, %c0_11, %c0_12] : memref<4x512x256xbf16, #tpu.memory_space<vmem>>, vector<1x512x256xbf16>
    %12 = vector.shape_cast %11 : vector<1x512x256xbf16> to vector<512x256xbf16>
    %cst_13 = arith.constant dense<0.000000e+00> : vector<16x256xf32>
    %13 = tpu.matmul %10, %12, %cst_13 {dimension_numbers = #tpu.dot_dimension_numbers<[1], [0], [0], [1], [0, 0, 1, 1], [], []>} : vector<16x512xbf16>, vector<512x256xbf16>, vector<16x256xf32> -> vector<16x256xf32>
    %14 = arith.addf %7, %13 : vector<16x256xf32>
    %c0_14 = arith.constant 0 : index
    %c1_15 = arith.constant 1 : index
    %c0_16 = arith.constant 0 : index
    %c0_17 = arith.constant 0 : index
    %15 = vector.load %arg1[%c0_14, %c1_15, %c0_16, %c0_17] : memref<1x2x17x512xbf16, #tpu.memory_space<vmem>>, vector<1x1x16x512xbf16>
    %16 = vector.shape_cast %15 : vector<1x1x16x512xbf16> to vector<1x16x512xbf16>
    %17 = vector.shape_cast %16 : vector<1x16x512xbf16> to vector<16x512xbf16>
    %c2 = arith.constant 2 : index
    %c0_18 = arith.constant 0 : index
    %c0_19 = arith.constant 0 : index
    %18 = vector.load %arg2[%c2, %c0_18, %c0_19] : memref<4x512x256xbf16, #tpu.memory_space<vmem>>, vector<1x512x256xbf16>
    %19 = vector.shape_cast %18 : vector<1x512x256xbf16> to vector<512x256xbf16>
    %cst_20 = arith.constant dense<0.000000e+00> : vector<16x256xf32>
    %20 = tpu.matmul %17, %19, %cst_20 {dimension_numbers = #tpu.dot_dimension_numbers<[1], [0], [0], [1], [0, 0, 1, 1], [], []>} : vector<16x512xbf16>, vector<512x256xbf16>, vector<16x256xf32> -> vector<16x256xf32>
    %21 = arith.addf %14, %20 : vector<16x256xf32>
    %c0_21 = arith.constant 0 : index
    %c1_22 = arith.constant 1 : index
    %c1_23 = arith.constant 1 : index
    %c0_24 = arith.constant 0 : index
    %22 = vector.load %arg1[%c0_21, %c1_22, %c1_23, %c0_24] : memref<1x2x17x512xbf16, #tpu.memory_space<vmem>>, vector<1x1x16x512xbf16>
    %23 = vector.shape_cast %22 : vector<1x1x16x512xbf16> to vector<1x16x512xbf16>
    %24 = vector.shape_cast %23 : vector<1x16x512xbf16> to vector<16x512xbf16>
    %c3 = arith.constant 3 : index
    %c0_25 = arith.constant 0 : index
    %c0_26 = arith.constant 0 : index
    %25 = vector.load %arg2[%c3, %c0_25, %c0_26] : memref<4x512x256xbf16, #tpu.memory_space<vmem>>, vector<1x512x256xbf16>
    %26 = vector.shape_cast %25 : vector<1x512x256xbf16> to vector<512x256xbf16>
    %cst_27 = arith.constant dense<0.000000e+00> : vector<16x256xf32>
    %27 = tpu.matmul %24, %26, %cst_27 {dimension_numbers = #tpu.dot_dimension_numbers<[1], [0], [0], [1], [0, 0, 1, 1], [], []>} : vector<16x512xbf16>, vector<512x256xbf16>, vector<16x256xf32> -> vector<16x256xf32>
    %28 = arith.addf %21, %27 : vector<16x256xf32>
    %c0_28 = arith.constant 0 : index
    %c0_29 = arith.constant 0 : index
    %29 = vector.load %arg3[%c0_28, %c0_29] : memref<1x256xf32, #tpu.memory_space<vmem>>, vector<1x256xf32>
    %30 = vector.broadcast %29 : vector<1x256xf32> to vector<16x256xf32>
    %31 = arith.addf %28, %30 : vector<16x256xf32>
    %cst_30 = arith.constant 0.000000e+00 : f32
    %32 = vector.broadcast %cst_30 : f32 to vector<16x256xf32>
    %33 = arith.maximumf %31, %32 : vector<16x256xf32>
    %34 = vector.shape_cast %33 : vector<16x256xf32> to vector<1x16x256xf32>
    %35 = arith.truncf %34 : vector<1x16x256xf32> to vector<1x16x256xbf16>
    %c0_31 = arith.constant 0 : index
    %c0_32 = arith.constant 0 : index
    %c0_33 = arith.constant 0 : index
    %c0_34 = arith.constant 0 : index
    %36 = vector.load %arg4[%c0_31, %c0_32, %c0_33, %c0_34] : memref<1x1x16x256xbf16, #tpu.memory_space<vmem>>, vector<1x1x16x256xbf16>
    %37 = vector.shape_cast %36 : vector<1x1x16x256xbf16> to vector<1x16x256xbf16>
    %38 = vector.shape_cast %35 : vector<1x16x256xbf16> to vector<1x1x16x256xbf16>
    tpu.vector_store %arg4[%c0_31, %c0_32, %c0_33, %c0_34], %38 {strides = array<i32>} : memref<1x1x16x256xbf16, #tpu.memory_space<vmem>>, vector<1x1x16x256xbf16>,
    return
  }
  func.func @transform_0(%arg0: i32) -> (i32, i32, i32, i32) {
    %c0_i32 = arith.constant 0 : i32
    %c0_i32_0 = arith.constant 0 : i32
    %c0_i32_1 = arith.constant 0 : i32
    %c0_i32_2 = arith.constant 0 : i32
    return %arg0, %c0_i32, %c0_i32_0, %c0_i32_1 : i32, i32, i32, i32
  }
  func.func @transform_1(%arg0: i32) -> (i32, i32, i32) {
    %c0_i32 = arith.constant 0 : i32
    %c0_i32_0 = arith.constant 0 : i32
    %c0_i32_1 = arith.constant 0 : i32
    %c0_i32_2 = arith.constant 0 : i32
    return %c0_i32, %c0_i32_0, %c0_i32_1 : i32, i32, i32
  }
  func.func @transform_2(%arg0: i32) -> (i32, i32) {
    %c0_i32 = arith.constant 0 : i32
    %c0_i32_0 = arith.constant 0 : i32
    %c0_i32_1 = arith.constant 0 : i32
    return %c0_i32, %c0_i32_0 : i32, i32
  }
  func.func @transform_3(%arg0: i32) -> (i32, i32, i32, i32) {
    %c0_i32 = arith.constant 0 : i32
    %c0_i32_0 = arith.constant 0 : i32
    %c0_i32_1 = arith.constant 0 : i32
    %c0_i32_2 = arith.constant 0 : i32
    return %arg0, %c0_i32, %c0_i32_0, %c0_i32_1 : i32, i32, i32, i32
  }
}

module attributes {stable_mosaic.version = 11 : i64} {
  func.func @_matmul_bias_kernel(%arg0: i32, %arg1: memref<8x256xbf16, #tpu.memory_space<vmem>>, %arg2: memref<256x128xbf16, #tpu.memory_space<vmem>>, %arg3: memref<1x128xf32, #tpu.memory_space<vmem>>, %arg4: memref<8x128xbf16, #tpu.memory_space<vmem>>) attributes {dimension_semantics = [#tpu.dimension_semantics<parallel>], iteration_bounds = array<i64: 1>, scalar_prefetch = 0 : i64, scratch_operands = 0 : i64, tpu.core_type = #tpu.core_type<tc>, window_params = [{transform_indices = @transform_0, window_bounds = array<i64: 8, 256>}, {pipeline_mode = #tpu.pipeline_mode<synchronous>, transform_indices = @transform_1, window_bounds = array<i64: 256, 128>}, {pipeline_mode = #tpu.pipeline_mode<synchronous>, transform_indices = @transform_2, window_bounds = array<i64: 1, 128>}, {transform_indices = @transform_3, window_bounds = array<i64: 8, 128>}]} {
    %c0 = arith.constant 0 : index
    %c0_0 = arith.constant 0 : index
    %0 = vector.load %arg1[%c0, %c0_0] : memref<8x256xbf16, #tpu.memory_space<vmem>>, vector<8x256xbf16>
    %c0_1 = arith.constant 0 : index
    %c0_2 = arith.constant 0 : index
    %1 = vector.load %arg2[%c0_1, %c0_2] : memref<256x128xbf16, #tpu.memory_space<vmem>>, vector<256x128xbf16>
    %cst = arith.constant dense<0.000000e+00> : vector<8x128xf32>
    %2 = tpu.matmul %0, %1, %cst {dimension_numbers = #tpu.dot_dimension_numbers<[1], [0], [0], [1], [0, 0, 1, 1], [], []>} : vector<8x256xbf16>, vector<256x128xbf16>, vector<8x128xf32> -> vector<8x128xf32>
    %c0_3 = arith.constant 0 : index
    %c0_4 = arith.constant 0 : index
    %3 = vector.load %arg3[%c0_3, %c0_4] : memref<1x128xf32, #tpu.memory_space<vmem>>, vector<1x128xf32>
    %4 = vector.broadcast %3 : vector<1x128xf32> to vector<8x128xf32>
    %5 = arith.addf %2, %4 : vector<8x128xf32>
    %cst_5 = arith.constant 0.000000e+00 : f32
    %6 = vector.broadcast %cst_5 : f32 to vector<8x128xf32>
    %7 = arith.maximumf %5, %6 : vector<8x128xf32>
    %8 = arith.truncf %7 : vector<8x128xf32> to vector<8x128xbf16>
    %c0_6 = arith.constant 0 : index
    %c0_7 = arith.constant 0 : index
    %9 = vector.load %arg4[%c0_6, %c0_7] : memref<8x128xbf16, #tpu.memory_space<vmem>>, vector<8x128xbf16>
    tpu.vector_store %arg4[%c0_6, %c0_7], %8 {strides = array<i32>} : memref<8x128xbf16, #tpu.memory_space<vmem>>, vector<8x128xbf16>,
    return
  }
  func.func @transform_0(%arg0: i32) -> (i32, i32) {
    %c0_i32 = arith.constant 0 : i32
    %c0_i32_0 = arith.constant 0 : i32
    return %arg0, %c0_i32 : i32, i32
  }
  func.func @transform_1(%arg0: i32) -> (i32, i32) {
    %c0_i32 = arith.constant 0 : i32
    %c0_i32_0 = arith.constant 0 : i32
    %c0_i32_1 = arith.constant 0 : i32
    return %c0_i32, %c0_i32_0 : i32, i32
  }
  func.func @transform_2(%arg0: i32) -> (i32, i32) {
    %c0_i32 = arith.constant 0 : i32
    %c0_i32_0 = arith.constant 0 : i32
    %c0_i32_1 = arith.constant 0 : i32
    return %c0_i32, %c0_i32_0 : i32, i32
  }
  func.func @transform_3(%arg0: i32) -> (i32, i32) {
    %c0_i32 = arith.constant 0 : i32
    %c0_i32_0 = arith.constant 0 : i32
    return %arg0, %c0_i32 : i32, i32
  }
}

module attributes {stable_mosaic.version = 11 : i64} {
  func.func @_implicit_conv_kernel(%arg0: i32, %arg1: memref<1x3x18x256xbf16, #tpu.memory_space<vmem>>, %arg2: memref<9x256x128xbf16, #tpu.memory_space<vmem>>, %arg3: memref<1x128xf32, #tpu.memory_space<vmem>>, %arg4: memref<1x1x16x128xf32, #tpu.memory_space<vmem>>) attributes {dimension_semantics = [#tpu.dimension_semantics<parallel>], iteration_bounds = array<i64: 2>, scalar_prefetch = 0 : i64, scratch_operands = 0 : i64, tpu.core_type = #tpu.core_type<tc>, window_params = [{transform_indices = @transform_0, window_bounds = array<i64: 1, 3, 18, 256>}, {pipeline_mode = #tpu.pipeline_mode<synchronous>, transform_indices = @transform_1, window_bounds = array<i64: 9, 256, 128>}, {pipeline_mode = #tpu.pipeline_mode<synchronous>, transform_indices = @transform_2, window_bounds = array<i64: 1, 128>}, {transform_indices = @transform_3, window_bounds = array<i64: 1, 1, 16, 128>}]} {
    %cst = arith.constant 0.000000e+00 : f32
    %0 = vector.broadcast %cst : f32 to vector<16x128xf32>
    %c0 = arith.constant 0 : index
    %c0_0 = arith.constant 0 : index
    %c0_1 = arith.constant 0 : index
    %c0_2 = arith.constant 0 : index
    %1 = vector.load %arg1[%c0, %c0_0, %c0_1, %c0_2] : memref<1x3x18x256xbf16, #tpu.memory_space<vmem>>, vector<1x1x16x256xbf16>
    %2 = vector.shape_cast %1 : vector<1x1x16x256xbf16> to vector<1x16x256xbf16>
    %3 = vector.shape_cast %2 : vector<1x16x256xbf16> to vector<16x256xbf16>
    %c0_3 = arith.constant 0 : index
    %c0_4 = arith.constant 0 : index
    %c0_5 = arith.constant 0 : index
    %4 = vector.load %arg2[%c0_3, %c0_4, %c0_5] : memref<9x256x128xbf16, #tpu.memory_space<vmem>>, vector<1x256x128xbf16>
    %5 = vector.shape_cast %4 : vector<1x256x128xbf16> to vector<256x128xbf16>
    %cst_6 = arith.constant dense<0.000000e+00> : vector<16x128xf32>
    %6 = tpu.matmul %3, %5, %cst_6 {dimension_numbers = #tpu.dot_dimension_numbers<[1], [0], [0], [1], [0, 0, 1, 1], [], []>} : vector<16x256xbf16>, vector<256x128xbf16>, vector<16x128xf32> -> vector<16x128xf32>
    %7 = arith.addf %0, %6 : vector<16x128xf32>
    %c0_7 = arith.constant 0 : index
    %c0_8 = arith.constant 0 : index
    %c1 = arith.constant 1 : index
    %c0_9 = arith.constant 0 : index
    %8 = vector.load %arg1[%c0_7, %c0_8, %c1, %c0_9] : memref<1x3x18x256xbf16, #tpu.memory_space<vmem>>, vector<1x1x16x256xbf16>
    %9 = vector.shape_cast %8 : vector<1x1x16x256xbf16> to vector<1x16x256xbf16>
    %10 = vector.shape_cast %9 : vector<1x16x256xbf16> to vector<16x256xbf16>
    %c1_10 = arith.constant 1 : index
    %c0_11 = arith.constant 0 : index
    %c0_12 = arith.constant 0 : index
    %11 = vector.load %arg2[%c1_10, %c0_11, %c0_12] : memref<9x256x128xbf16, #tpu.memory_space<vmem>>, vector<1x256x128xbf16>
    %12 = vector.shape_cast %11 : vector<1x256x128xbf16> to vector<256x128xbf16>
    %cst_13 = arith.constant dense<0.000000e+00> : vector<16x128xf32>
    %13 = tpu.matmul %10, %12, %cst_13 {dimension_numbers = #tpu.dot_dimension_numbers<[1], [0], [0], [1], [0, 0, 1, 1], [], []>} : vector<16x256xbf16>, vector<256x128xbf16>, vector<16x128xf32> -> vector<16x128xf32>
    %14 = arith.addf %7, %13 : vector<16x128xf32>
    %c0_14 = arith.constant 0 : index
    %c0_15 = arith.constant 0 : index
    %c2 = arith.constant 2 : index
    %c0_16 = arith.constant 0 : index
    %15 = vector.load %arg1[%c0_14, %c0_15, %c2, %c0_16] : memref<1x3x18x256xbf16, #tpu.memory_space<vmem>>, vector<1x1x16x256xbf16>
    %16 = vector.shape_cast %15 : vector<1x1x16x256xbf16> to vector<1x16x256xbf16>
    %17 = vector.shape_cast %16 : vector<1x16x256xbf16> to vector<16x256xbf16>
    %c2_17 = arith.constant 2 : index
    %c0_18 = arith.constant 0 : index
    %c0_19 = arith.constant 0 : index
    %18 = vector.load %arg2[%c2_17, %c0_18, %c0_19] : memref<9x256x128xbf16, #tpu.memory_space<vmem>>, vector<1x256x128xbf16>
    %19 = vector.shape_cast %18 : vector<1x256x128xbf16> to vector<256x128xbf16>
    %cst_20 = arith.constant dense<0.000000e+00> : vector<16x128xf32>
    %20 = tpu.matmul %17, %19, %cst_20 {dimension_numbers = #tpu.dot_dimension_numbers<[1], [0], [0], [1], [0, 0, 1, 1], [], []>} : vector<16x256xbf16>, vector<256x128xbf16>, vector<16x128xf32> -> vector<16x128xf32>
    %21 = arith.addf %14, %20 : vector<16x128xf32>
    %c0_21 = arith.constant 0 : index
    %c1_22 = arith.constant 1 : index
    %c0_23 = arith.constant 0 : index
    %c0_24 = arith.constant 0 : index
    %22 = vector.load %arg1[%c0_21, %c1_22, %c0_23, %c0_24] : memref<1x3x18x256xbf16, #tpu.memory_space<vmem>>, vector<1x1x16x256xbf16>
    %23 = vector.shape_cast %22 : vector<1x1x16x256xbf16> to vector<1x16x256xbf16>
    %24 = vector.shape_cast %23 : vector<1x16x256xbf16> to vector<16x256xbf16>
    %c3 = arith.constant 3 : index
    %c0_25 = arith.constant 0 : index
    %c0_26 = arith.constant 0 : index
    %25 = vector.load %arg2[%c3, %c0_25, %c0_26] : memref<9x256x128xbf16, #tpu.memory_space<vmem>>, vector<1x256x128xbf16>
    %26 = vector.shape_cast %25 : vector<1x256x128xbf16> to vector<256x128xbf16>
    %cst_27 = arith.constant dense<0.000000e+00> : vector<16x128xf32>
    %27 = tpu.matmul %24, %26, %cst_27 {dimension_numbers = #tpu.dot_dimension_numbers<[1], [0], [0], [1], [0, 0, 1, 1], [], []>} : vector<16x256xbf16>, vector<256x128xbf16>, vector<16x128xf32> -> vector<16x128xf32>
    %28 = arith.addf %21, %27 : vector<16x128xf32>
    %c0_28 = arith.constant 0 : index
    %c1_29 = arith.constant 1 : index
    %c1_30 = arith.constant 1 : index
    %c0_31 = arith.constant 0 : index
    %29 = vector.load %arg1[%c0_28, %c1_29, %c1_30, %c0_31] : memref<1x3x18x256xbf16, #tpu.memory_space<vmem>>, vector<1x1x16x256xbf16>
    %30 = vector.shape_cast %29 : vector<1x1x16x256xbf16> to vector<1x16x256xbf16>
    %31 = vector.shape_cast %30 : vector<1x16x256xbf16> to vector<16x256xbf16>
    %c4 = arith.constant 4 : index
    %c0_32 = arith.constant 0 : index
    %c0_33 = arith.constant 0 : index
    %32 = vector.load %arg2[%c4, %c0_32, %c0_33] : memref<9x256x128xbf16, #tpu.memory_space<vmem>>, vector<1x256x128xbf16>
    %33 = vector.shape_cast %32 : vector<1x256x128xbf16> to vector<256x128xbf16>
    %cst_34 = arith.constant dense<0.000000e+00> : vector<16x128xf32>
    %34 = tpu.matmul %31, %33, %cst_34 {dimension_numbers = #tpu.dot_dimension_numbers<[1], [0], [0], [1], [0, 0, 1, 1], [], []>} : vector<16x256xbf16>, vector<256x128xbf16>, vector<16x128xf32> -> vector<16x128xf32>
    %35 = arith.addf %28, %34 : vector<16x128xf32>
    %c0_35 = arith.constant 0 : index
    %c1_36 = arith.constant 1 : index
    %c2_37 = arith.constant 2 : index
    %c0_38 = arith.constant 0 : index
    %36 = vector.load %arg1[%c0_35, %c1_36, %c2_37, %c0_38] : memref<1x3x18x256xbf16, #tpu.memory_space<vmem>>, vector<1x1x16x256xbf16>
    %37 = vector.shape_cast %36 : vector<1x1x16x256xbf16> to vector<1x16x256xbf16>
    %38 = vector.shape_cast %37 : vector<1x16x256xbf16> to vector<16x256xbf16>
    %c5 = arith.constant 5 : index
    %c0_39 = arith.constant 0 : index
    %c0_40 = arith.constant 0 : index
    %39 = vector.load %arg2[%c5, %c0_39, %c0_40] : memref<9x256x128xbf16, #tpu.memory_space<vmem>>, vector<1x256x128xbf16>
    %40 = vector.shape_cast %39 : vector<1x256x128xbf16> to vector<256x128xbf16>
    %cst_41 = arith.constant dense<0.000000e+00> : vector<16x128xf32>
    %41 = tpu.matmul %38, %40, %cst_41 {dimension_numbers = #tpu.dot_dimension_numbers<[1], [0], [0], [1], [0, 0, 1, 1], [], []>} : vector<16x256xbf16>, vector<256x128xbf16>, vector<16x128xf32> -> vector<16x128xf32>
    %42 = arith.addf %35, %41 : vector<16x128xf32>
    %c0_42 = arith.constant 0 : index
    %c2_43 = arith.constant 2 : index
    %c0_44 = arith.constant 0 : index
    %c0_45 = arith.constant 0 : index
    %43 = vector.load %arg1[%c0_42, %c2_43, %c0_44, %c0_45] : memref<1x3x18x256xbf16, #tpu.memory_space<vmem>>, vector<1x1x16x256xbf16>
    %44 = vector.shape_cast %43 : vector<1x1x16x256xbf16> to vector<1x16x256xbf16>
    %45 = vector.shape_cast %44 : vector<1x16x256xbf16> to vector<16x256xbf16>
    %c6 = arith.constant 6 : index
    %c0_46 = arith.constant 0 : index
    %c0_47 = arith.constant 0 : index
    %46 = vector.load %arg2[%c6, %c0_46, %c0_47] : memref<9x256x128xbf16, #tpu.memory_space<vmem>>, vector<1x256x128xbf16>
    %47 = vector.shape_cast %46 : vector<1x256x128xbf16> to vector<256x128xbf16>
    %cst_48 = arith.constant dense<0.000000e+00> : vector<16x128xf32>
    %48 = tpu.matmul %45, %47, %cst_48 {dimension_numbers = #tpu.dot_dimension_numbers<[1], [0], [0], [1], [0, 0, 1, 1], [], []>} : vector<16x256xbf16>, vector<256x128xbf16>, vector<16x128xf32> -> vector<16x128xf32>
    %49 = arith.addf %42, %48 : vector<16x128xf32>
    %c0_49 = arith.constant 0 : index
    %c2_50 = arith.constant 2 : index
    %c1_51 = arith.constant 1 : index
    %c0_52 = arith.constant 0 : index
    %50 = vector.load %arg1[%c0_49, %c2_50, %c1_51, %c0_52] : memref<1x3x18x256xbf16, #tpu.memory_space<vmem>>, vector<1x1x16x256xbf16>
    %51 = vector.shape_cast %50 : vector<1x1x16x256xbf16> to vector<1x16x256xbf16>
    %52 = vector.shape_cast %51 : vector<1x16x256xbf16> to vector<16x256xbf16>
    %c7 = arith.constant 7 : index
    %c0_53 = arith.constant 0 : index
    %c0_54 = arith.constant 0 : index
    %53 = vector.load %arg2[%c7, %c0_53, %c0_54] : memref<9x256x128xbf16, #tpu.memory_space<vmem>>, vector<1x256x128xbf16>
    %54 = vector.shape_cast %53 : vector<1x256x128xbf16> to vector<256x128xbf16>
    %cst_55 = arith.constant dense<0.000000e+00> : vector<16x128xf32>
    %55 = tpu.matmul %52, %54, %cst_55 {dimension_numbers = #tpu.dot_dimension_numbers<[1], [0], [0], [1], [0, 0, 1, 1], [], []>} : vector<16x256xbf16>, vector<256x128xbf16>, vector<16x128xf32> -> vector<16x128xf32>
    %56 = arith.addf %49, %55 : vector<16x128xf32>
    %c0_56 = arith.constant 0 : index
    %c2_57 = arith.constant 2 : index
    %c2_58 = arith.constant 2 : index
    %c0_59 = arith.constant 0 : index
    %57 = vector.load %arg1[%c0_56, %c2_57, %c2_58, %c0_59] : memref<1x3x18x256xbf16, #tpu.memory_space<vmem>>, vector<1x1x16x256xbf16>
    %58 = vector.shape_cast %57 : vector<1x1x16x256xbf16> to vector<1x16x256xbf16>
    %59 = vector.shape_cast %58 : vector<1x16x256xbf16> to vector<16x256xbf16>
    %c8 = arith.constant 8 : index
    %c0_60 = arith.constant 0 : index
    %c0_61 = arith.constant 0 : index
    %60 = vector.load %arg2[%c8, %c0_60, %c0_61] : memref<9x256x128xbf16, #tpu.memory_space<vmem>>, vector<1x256x128xbf16>
    %61 = vector.shape_cast %60 : vector<1x256x128xbf16> to vector<256x128xbf16>
    %cst_62 = arith.constant dense<0.000000e+00> : vector<16x128xf32>
    %62 = tpu.matmul %59, %61, %cst_62 {dimension_numbers = #tpu.dot_dimension_numbers<[1], [0], [0], [1], [0, 0, 1, 1], [], []>} : vector<16x256xbf16>, vector<256x128xbf16>, vector<16x128xf32> -> vector<16x128xf32>
    %63 = arith.addf %56, %62 : vector<16x128xf32>
    %c0_63 = arith.constant 0 : index
    %c0_64 = arith.constant 0 : index
    %64 = vector.load %arg3[%c0_63, %c0_64] : memref<1x128xf32, #tpu.memory_space<vmem>>, vector<1x128xf32>
    %65 = vector.broadcast %64 : vector<1x128xf32> to vector<16x128xf32>
    %66 = arith.addf %63, %65 : vector<16x128xf32>
    %67 = vector.shape_cast %66 : vector<16x128xf32> to vector<1x16x128xf32>
    %c0_65 = arith.constant 0 : index
    %c0_66 = arith.constant 0 : index
    %c0_67 = arith.constant 0 : index
    %c0_68 = arith.constant 0 : index
    %68 = vector.load %arg4[%c0_65, %c0_66, %c0_67, %c0_68] : memref<1x1x16x128xf32, #tpu.memory_space<vmem>>, vector<1x1x16x128xf32>
    %69 = vector.shape_cast %68 : vector<1x1x16x128xf32> to vector<1x16x128xf32>
    %70 = vector.shape_cast %67 : vector<1x16x128xf32> to vector<1x1x16x128xf32>
    tpu.vector_store %arg4[%c0_65, %c0_66, %c0_67, %c0_68], %70 {strides = array<i32>} : memref<1x1x16x128xf32, #tpu.memory_space<vmem>>, vector<1x1x16x128xf32>,
    return
  }
  func.func @transform_0(%arg0: i32) -> (i32, i32, i32, i32) {
    %c0_i32 = arith.constant 0 : i32
    %c0_i32_0 = arith.constant 0 : i32
    %c0_i32_1 = arith.constant 0 : i32
    %c0_i32_2 = arith.constant 0 : i32
    return %arg0, %c0_i32, %c0_i32_0, %c0_i32_1 : i32, i32, i32, i32
  }
  func.func @transform_1(%arg0: i32) -> (i32, i32, i32) {
    %c0_i32 = arith.constant 0 : i32
    %c0_i32_0 = arith.constant 0 : i32
    %c0_i32_1 = arith.constant 0 : i32
    %c0_i32_2 = arith.constant 0 : i32
    return %c0_i32, %c0_i32_0, %c0_i32_1 : i32, i32, i32
  }
  func.func @transform_2(%arg0: i32) -> (i32, i32) {
    %c0_i32 = arith.constant 0 : i32
    %c0_i32_0 = arith.constant 0 : i32
    %c0_i32_1 = arith.constant 0 : i32
    return %c0_i32, %c0_i32_0 : i32, i32
  }
  func.func @transform_3(%arg0: i32) -> (i32, i32, i32, i32) {
    %c0_i32 = arith.constant 0 : i32
    %c0_i32_0 = arith.constant 0 : i32
    %c0_i32_1 = arith.constant 0 : i32
    %c0_i32_2 = arith.constant 0 : i32
    return %arg0, %c0_i32, %c0_i32_0, %c0_i32_1 : i32, i32, i32, i32
  }
}

</mosaic_0001>

<bundles_post_ra>
// kernel: _lambda_.24
= control target key start
LH: loop header
LB: loop body
LE: loop exit
PB: predicated region body
PF: predicated region fallthrough
CT: control target
= control target key end

     0   :  { %s3428_s12 = smov 0   ;;  %s4025_s0 = inlined_call_operand.vmem [shape: bf16[2,17,17,48], index: 0, kind: input, shape index: {}]   ;;  %s4026_s1 = inlined_call_operand.vmem [shape: bf16[4,48,128], index: 1, kind: input, shape index: {}]   ;;  %s4027_s2 = inlined_call_operand.vmem [shape: f32[1,128], index: 2, kind: input, shape index: {}]   ;;  %s4028_s3 = inlined_call_operand.vmem [shape: bf16[2,16,16,128], index: 3, kind: output, shape index: {}]  }
   0x1 LB: > { %s2614_s13 = sadd.s32 4294967295, %s3406_s12   ;;  %p2618_p0 = scmp.ge.s32.totalorder %s3406_s12, 1  ;;  %s3406_s12 = sphi %s3428_s12, %s13_s12  }
   0x2   : > { %p137_p1 = scmp.lt.s32.totalorder %s3406_s12, 3 }
   0x4   : > { %p138_p2 = pnand %p2618_p0, %p137_p1 }
   0x5   : > { %v3356_v0 = vld [vmem:[%s4026_s1 + $0x30] sm:$0xff] (!%p138_p2)   ;;  %p161_p3 = scmp.lt.s32.totalorder (!%p138_p2), %s2614_s13, 1  ;;  %v3357_v1 = vld [vmem:[%s4026_s1 + $0x18] sm:$0xff] (!%p138_p2)   ;;  %v3359_v3 = vld [vmem:[%s4026_s1 + $0x20] sm:$0xff] (!%p138_p2)   ;;  %vm686_vm0 = vcmask (!%p138_p2), 392192  }
   0x6   : > { %141 = sbr.rel (%p138_p2) target bundleno = 388 (0x184), region = 32  ;;  %3175 = vmatprep.subr.bf16.mxu0 (!%p138_p2), %v3356_v0  ;;  %v3358_v2 = vld [vmem:[%s4026_s1 + $0x38] sm:$0xff] (!%p138_p2)   ;;  %3099 = vmatprep.subr.bf16.mxu1 (!%p138_p2), %v3357_v1  ;;  %v3360_v4 = vld [vmem:[%s4026_s1 + $0x40] sm:$0xff] (!%p138_p2)   ;;  %v3362_v5 = vld [vmem:[%s4026_s1 + $0x28] sm:$0xff] (!%p138_p2)   ;;  %vm226_vm1 = vsmask.f32 (!%p138_p2), 3328 }
   0x7   : > { %3176 = vmatpush3.bf16.msra.mxu0 (!%p138_p2), %v3356_v0  ;;  %3100 = vmatpush3.bf16.msra.mxu1 (!%p138_p2), %v3357_v1  ;;  %vm227_vm2 = vsmask.f32 (!%p138_p2), 7440  ;;  %v3479_v16 = vld [vmem:[%s4026_s1] sm:$0xff] (!%p138_p2)   ;;  %v3365_v22 = vld [vmem:[%s4026_s1 + $0x48] sm:$0xff] (!%p138_p2)  }
   0x8   : > { %3177 = vmatprep.subr.bf16.mxu0 (!%p138_p2), %v3358_v2  ;;  %3101 = vmatprep.subr.bf16.mxu1 (!%p138_p2), %v3359_v3  ;;  %vm3500_vm3 = vmor (!%p138_p2), %vm226_vm1, %vm227_vm2 }
   0xb   : > { %3178 = vmatpush3.bf16.msra.mxu0 (!%p138_p2), %v3358_v2  ;;  %3102 = vmatpush3.bf16.msra.mxu1 (!%p138_p2), %v3359_v3 }
   0xc   : > { %3179 = vmatprep.subr.bf16.mxu0 (!%p138_p2), %v3360_v4  ;;  %3103 = vmatprep.subr.bf16.mxu1 (!%p138_p2), %v3362_v5 }
   0xd   : > { %s4032_s13 = smov (!%p161_p3, %s2614_s13), 1 }
   0xe   : > { %s3347_s24 = smul.u32 204, %s4032_s13  ;;  %s2895_s19 = sshll.u32 %s4032_s13, 7 }
   0xf   : > { %3180 = vmatpush3.bf16.msra.mxu0 %v3360_v4  ;;  %3104 = vmatpush3.bf16.msra.mxu1 %v3362_v5  ;;  %s3976_s22 = scalar_lea.vmem %s4028_s3, %s2895_s19 }
  0x10   : > { %s3460_s29 = scalar_lea.vmem %s4025_s0, %s3347_s24  ;;  %3137 = vmatprep.subr.bf16.mxu1 %v3479_v16  ;;  %3213 = vmatprep.subr.bf16.mxu0 %v3365_v22 }
  0x11   : > { %v3361_v6 = vld [vmem:[%s3460_s29 + $0xc] sm:$0xff]   ;;  %v3363_v7 = vld [vmem:[%s3460_s29 + $0x18] sm:$0xff]   ;;  %v3466_v8 = vld [vmem:[%s3460_s29] sm:$0xf] }
  0x12   : > { %3181 = vmatprep.mubr.msk.bf16.mxu0 %vm686_vm0, %v3361_v6  ;;  %v3469_v9 = vld [vmem:[%s3460_s29 + $0x4] sm:$0xf]  ;;  %v210_v10 = vld [vmem:[%s3460_s29 + $0x8] sm:$0x1]  ;;  %v230_v11 = vshrl.u32 %v3466_v8, 16  ;;  %v233_v12 = vshll.u32 %v3466_v8, 16 }
  0x13   : > { %v239_v13 = vshll.u32 %v3469_v9, 16  ;;  %v243_v14 = vshrl.u32 %v3469_v9, 16  ;;  %v249_v15 = vshll.u32 %v210_v10, 16  ;;  %v2663_v17 = vcombine.low %v3466_v8, %v3469_v9  ;;  %v3366_v23 = vld [vmem:[%s3460_s29 + $0x24] sm:$0xff]   ;;  %v3489_v25 = vld [vmem:[%s3460_s29 + $0xc] sm:$0xf]  ;;  %3182 = vmatmul.mubr.msk.bf16.vlgmr.msra.gmra.mrb[0].mxu0 %vm686_vm0, %v3363_v7 }
  0x14   : > { %v232_v18 = vrot.slane %v230_v11, 4  ;;  %v235_v19 = vrot.slane %v233_v12, 5  ;;  %v3492_v26 = vld [vmem:[%s3460_s29 + $0x10] sm:$0xf]  ;;  %v211_v29 = vld [vmem:[%s3460_s29 + $0x14] sm:$0x1]  ;;  %3214 = vmatpush3.bf16.msra.mxu0 %v3365_v22  ;;  %3185 = vmatprep.mubr.msk.bf16.mxu0 %vm686_vm0, %v3366_v23 }
  0x15   : > { %v241_v20 = vrot.slane %v239_v13, 5  ;;  %v245_v21 = vrot.slane %v243_v14, 4  ;;  %v251_v24 = vrot.slane %v249_v15, 5  ;;  %v254_v30 = vshrl.u32 %v3489_v25, 16  ;;  %v3367_v41 = vld [vmem:[%s3460_s29 + $0x30] sm:$0xff]   ;;  %v3368_v45 = vld [vmem:[%s3460_s29 + $0x3c] sm:$0xff]  }
  0x16   : > { %v236_v27 = vor.u32 %v235_v19, %v232_v18  ;;  %v257_v31 = vshll.u32 %v3489_v25, 16  ;;  %v263_v33 = vshll.u32 %v3492_v26, 16  ;;  %v267_v34 = vshrl.u32 %v3492_v26, 16  ;;  %v3516_v49 = vld [vmem:[%s3460_s29 + $0x18] sm:$0xf]  ;;  %v3369_v19 = vld [vmem:[%s3460_s29 + $0x48] sm:$0xff]  }
  0x17   : > { %v246_v28 = vor.u32 %v245_v21, %v241_v20  ;;  %v273_v35 = vshll.u32 %v211_v29, 16  ;;  %v2664_v36 = vcombine.low %v3489_v25, %v3492_v26  ;;  %v256_v39 = vrot.slane %v254_v30, 4  ;;  %v3519_v50 = vld [vmem:[%s3460_s29 + $0x1c] sm:$0xf]  ;;  %v212_v51 = vld [vmem:[%s3460_s29 + $0x20] sm:$0x1] }
  0x18   : > { %v237_v37 = vrot.slane %v236_v27, 4  ;;  %v259_v40 = vrot.slane %v257_v31, 5  ;;  %v265_v42 = vrot.slane %v263_v33, 5  ;;  %v269_v43 = vrot.slane %v267_v34, 4  ;;  %v3525_v56 = vld [vmem:[%s3460_s29 + $0x24] sm:$0xf] }
  0x19   : > { %v247_v38 = vrot.slane %v246_v28, 4  ;;  %v275_v44 = vrot.slane %v273_v35, 5  ;;  %v278_v54 = vshrl.u32 %v3516_v49, 16  ;;  %v281_v55 = vshll.u32 %v3516_v49, 16  ;;  %v3528_v57 = vld [vmem:[%s3460_s29 + $0x28] sm:$0xf] }
  0x1a   : > { %v242_v46 = vsel %vm3500_vm3, %v237_v37, %v241_v20  ;;  %v260_v48 = vor.u32 %v259_v40, %v256_v39  ;;  %v270_v53 = vor.u32 %v269_v43, %v265_v42  ;;  %v287_v59 = vshll.u32 %v3519_v50, 16  ;;  %v213_v62 = vld [vmem:[%s3460_s29 + $0x2c] sm:$0x1]  ;;  %v3546_v20 = vld [vmem:[%s3460_s29 + $0x30] sm:$0xf]  ;;  %v3370_v28 = vld [vmem:[%s3460_s29 + $0x54] sm:$0xff]  }
  0x1b   : > { %v252_v47 = vsel %vm3500_vm3, %v247_v38, %v251_v24  ;;  %v291_v60 = vshrl.u32 %v3519_v50, 16  ;;  %v297_v61 = vshll.u32 %v212_v51, 16  ;;  %v280_v0 = vrot.slane %v278_v54, 4  ;;  %3186 = vmatmul.mubr.msk.bf16.gmra.mrb[4].mxu0 %vm686_vm0, %v3367_v41  ;;  %v3549_v24 = vld [vmem:[%s3460_s29 + $0x34] sm:$0xf] }
  0x1c   : > { %v2628_v52 = vcombine.low %v242_v46, %v252_v47  ;;  %v261_v58 = vrot.slane %v260_v48, 4  ;;  %v271_v63 = vrot.slane %v270_v53, 4  ;;  %v283_v1 = vrot.slane %v281_v55, 5  ;;  %3189 = vmatprep.mubr.msk.bf16.mxu0 %vm686_vm0, %v3368_v45  ;;  %v214_v33 = vld [vmem:[%s3460_s29 + $0x38] sm:$0x1] }
  0x1d   : > { %v302_v2 = vshrl.u32 %v3525_v56, 16  ;;  %v289_v4 = vrot.slane %v287_v59, 5  ;;  %v293_v5 = vrot.slane %v291_v60, 4  ;;  %v299_v6 = vrot.slane %v297_v61, 5  ;;  %v3560_v40 = vld [vmem:[%s3460_s29 + $0x3c] sm:$0xf] }
  0x1e   : > { %3105 = vmatprep.mubr.msk.bf16.mxu1 %vm686_vm0, %v2628_v52  ;;  %v266_v3 = vsel %vm3500_vm3, %v261_v58, %v265_v42  ;;  %v276_v7 = vsel %vm3500_vm3, %v271_v63, %v275_v44  ;;  %v284_v10 = vor.u32 %v283_v1, %v280_v0  ;;  %v305_v12 = vshll.u32 %v3525_v56, 16  ;;  %v3563_v41 = vld [vmem:[%s3460_s29 + $0x40] sm:$0xf]  ;;  %v215_v51 = vld [vmem:[%s3460_s29 + $0x44] sm:$0x1]  ;;  %v3372_v58 = vld [vmem:[%s4026_s1 + $0x8] sm:$0xff]  }
  0x1f   : > { %v304_v11 = vrot.slane %v302_v2, 4  ;;  %v2629_v13 = vcombine.low %v266_v3, %v276_v7  ;;  %v294_v14 = vor.u32 %v293_v5, %v289_v4  ;;  %v311_v15 = vshll.u32 %v3528_v57, 16  ;;  %v3373_v63 = vld [vmem:[%s4026_s1 + $0x50] sm:$0xff]   ;;  %v2786_v25 = vld [vmem:[%s3460_s29 + $0x48] sm:$0xf] }
  0x20   : > { %v315_v18 = vshrl.u32 %v3528_v57, 16  ;;  %v285_v21 = vrot.slane %v284_v10, 4  ;;  %v307_v22 = vrot.slane %v305_v12, 5  ;;  %v321_v23 = vshll.u32 %v213_v62, 16  ;;  %3215 = vmatprep.subr.bf16.mxu0 %v3373_v63 }
  0x21   : > { %v326_v27 = vshrl.u32 %v3546_v20, 16  ;;  %3106 = vmatmul.mubr.msk.bf16.vlgmr.msra.gmra.mrb[0].mxu1 %vm686_vm0, %v2629_v13  ;;  %v295_v29 = vrot.slane %v294_v14, 4  ;;  %v313_v30 = vrot.slane %v311_v15, 5  ;;  %v329_v34 = vshll.u32 %v3546_v20, 16  ;;  %3216 = vmatpush3.bf16.msra.mxu0 %v3373_v63  ;;  %v3591_v14 = vld [vmem:[%s3460_s29 + $0x48] sm:$0xf] }
  0x22   : > { %v317_v31 = vrot.slane %v315_v18, 4  ;;  %3138 = vmatpush3.bf16.msra.mxu1 %v3479_v16  ;;  %v290_v35 = vsel %vm3500_vm3, %v285_v21, %v289_v4  ;;  %v308_v37 = vor.u32 %v307_v22, %v304_v11  ;;  %v323_v38 = vrot.slane %v321_v23, 5  ;;  %v3371_v4 = vld [vmem:[%s3460_s29 + $0x60] sm:$0xff]   ;;  %v3594_v15 = vld [vmem:[%s3460_s29 + $0x4c] sm:$0xf] }
  0x23   : > { %v328_v39 = vrot.slane %v326_v27, 4  ;;  %v300_v42 = vsel %vm3500_vm3, %v295_v29, %v299_v6  ;;  %v331_v44 = vrot.slane %v329_v34, 5  ;;  %v335_v45 = vshll.u32 %v3549_v24, 16  ;;  %3190 = vmatmul.mubr.msk.bf16.gmra.mrb[8].mxu0 %vm686_vm0, %v3369_v19  ;;  %3139 = vmatprep.subr.bf16.mxu1 %v3372_v58  ;;  %v216_v23 = vld [vmem:[%s3460_s29 + $0x50] sm:$0x1] }
  0x24   : > { %v318_v43 = vor.u32 %v317_v31, %v313_v30  ;;  %v2630_v46 = vcombine.low %v290_v35, %v300_v42  ;;  %v309_v47 = vrot.slane %v308_v37, 4  ;;  %v339_v16 = vshrl.u32 %v3549_v24, 16  ;;  %3193 = vmatprep.mubr.msk.bf16.mxu0 %vm686_vm0, %v3370_v28  ;;  %v3374_v28 = vld [vmem:[%s3460_s29 + $0x6c] sm:$0xff]   ;;  %v3606_v34 = vld [vmem:[%s3460_s29 + $0x54] sm:$0xf] }
  0x25   : > { %v345_v48 = vshll.u32 %v214_v33, 16  ;;  %v332_v53 = vor.u32 %v331_v44, %v328_v39  ;;  %v337_v54 = vrot.slane %v335_v45, 5  ;;  %v350_v55 = vshrl.u32 %v3560_v40, 16  ;;  %v3611_v42 = vld [vmem:[%s3460_s29 + $0x58] sm:$0xf] }
  0x26   : > { %v319_v52 = vrot.slane %v318_v43, 4  ;;  %3109 = vmatprep.mubr.msk.bf16.mxu1 %vm686_vm0, %v2630_v46  ;;  %v314_v59 = vsel %vm3500_vm3, %v309_v47, %v313_v30  ;;  %v341_v60 = vrot.slane %v339_v16, 4  ;;  %v353_v62 = vshll.u32 %v3560_v40, 16  ;;  %3140 = vmatpush3.bf16.msra.mxu1 %v3372_v58  ;;  %v217_v47 = vld [vmem:[%s3460_s29 + $0x5c] sm:$0x1] }
  0x27   : > { %v347_v61 = vrot.slane %v345_v48, 5  ;;  %v333_v1 = vrot.slane %v332_v53, 4  ;;  %v352_v2 = vrot.slane %v350_v55, 4  ;;  %v359_v3 = vshll.u32 %v3563_v41, 16  ;;  %v3626_v63 = vld [vmem:[%s3460_s29 + $0x60] sm:$0xf] }
  0x28   : > { %v324_v0 = vsel %vm3500_vm3, %v319_v52, %v323_v38  ;;  %v342_v6 = vor.u32 %v341_v60, %v337_v54  ;;  %v355_v7 = vrot.slane %v353_v62, 5  ;;  %v363_v10 = vshrl.u32 %v3563_v41, 16 }
  0x29   : > { %v2631_v5 = vcombine.low %v314_v59, %v324_v0  ;;  %v338_v11 = vsel %vm3500_vm3, %v333_v1, %v337_v54  ;;  %v361_v12 = vrot.slane %v359_v3, 5  ;;  %v369_v13 = vshll.u32 %v215_v51, 16  ;;  %v3378_v0 = vld [vmem:[%s4026_s1 + $0x10] sm:$0xff]  }
  0x2a   : > { %v2665_v18 = vcombine.low %v3516_v49, %v3519_v50  ;;  %v343_v19 = vrot.slane %v342_v6, 4  ;;  %v356_v21 = vor.u32 %v355_v7, %v352_v2  ;;  %v365_v22 = vrot.slane %v363_v10, 4  ;;  %v3376_v6 = vld [vmem:[%s3460_s29 + $0x84] sm:$0xff]   ;;  %3141 = vmatprep.subr.bf16.mxu1 %v3378_v0 }
  0x2b   : > { %3110 = vmatmul.mubr.msk.bf16.gmra.mrb[4].mxu1 %vm686_vm0, %v2631_v5  ;;  %v374_v27 = vshrl.u32 %v3591_v14, 16  ;;  %v371_v29 = vrot.slane %v369_v13, 5  ;;  %v377_v30 = vshll.u32 %v3591_v14, 16  ;;  %v383_v31 = vshll.u32 %v3594_v15, 16  ;;  %3194 = vmatmul.mubr.msk.bf16.gmra.mrb[12].mxu0 %vm686_vm0, %v3371_v4  ;;  %v3375_v5 = vld [vmem:[%s3460_s29 + $0x78] sm:$0xff]  }
  0x2c   : > { %v387_v33 = vshrl.u32 %v3594_v15, 16  ;;  %v348_v35 = vsel %vm3500_vm3, %v343_v19, %v347_v61  ;;  %v357_v37 = vrot.slane %v356_v21, 4  ;;  %v366_v38 = vor.u32 %v365_v22, %v361_v12  ;;  %3197 = vmatprep.mubr.msk.bf16.mxu0 %vm686_vm0, %v3374_v28  ;;  %v3645_v28 = vld [vmem:[%s3460_s29 + $0x6c] sm:$0xf]  ;;  %3142 = vmatpush3.bf16.msra.mxu1 %v3378_v0 }
  0x2d   : > { %v376_v39 = vrot.slane %v374_v27, 4  ;;  %v2632_v43 = vcombine.low %v338_v11, %v348_v35  ;;  %v379_v44 = vrot.slane %v377_v30, 5  ;;  %v385_v45 = vrot.slane %v383_v31, 5 }
  0x2e   : > { %v389_v46 = vrot.slane %v387_v33, 4  ;;  %v362_v16 = vsel %vm3500_vm3, %v357_v37, %v361_v12  ;;  %v367_v48 = vrot.slane %v366_v38, 4  ;;  %v393_v51 = vshll.u32 %v216_v23, 16  ;;  %v3634_v12 = vld [vmem:[%s3460_s29 + $0x64] sm:$0xf] }
  0x2f   : > { %v398_v52 = vshrl.u32 %v3606_v34, 16  ;;  %3113 = vmatprep.mubr.msk.bf16.mxu1 %vm686_vm0, %v2632_v43  ;;  %v380_v53 = vor.u32 %v379_v44, %v376_v39  ;;  %v401_v55 = vshll.u32 %v3606_v34, 16  ;;  %v407_v58 = vshll.u32 %v3611_v42, 16  ;;  %v218_v23 = vld [vmem:[%s3460_s29 + $0x68] sm:$0x1] }
  0x30   : > { %v390_v54 = vor.u32 %v389_v46, %v385_v45  ;;  %v372_v59 = vsel %vm3500_vm3, %v367_v48, %v371_v29  ;;  %v395_v60 = vrot.slane %v393_v51, 5  ;;  %v411_v62 = vshrl.u32 %v3611_v42, 16  ;;  %v3380_v29 = vld [vmem:[%s4026_s1 + $0x58] sm:$0xff]   ;;  %v3651_v37 = vld [vmem:[%s3460_s29 + $0x70] sm:$0xf] }
  0x31   : > { %v400_v61 = vrot.slane %v398_v52, 4  ;;  %v2633_v1 = vcombine.low %v362_v16, %v372_v59  ;;  %v381_v2 = vrot.slane %v380_v53, 4  ;;  %v403_v4 = vrot.slane %v401_v55, 5  ;;  %3217 = vmatprep.subr.bf16.mxu0 %v3380_v29  ;;  %v3664_v55 = vld [vmem:[%s3460_s29 + $0x78] sm:$0xf] }
  0x32   : > { %v391_v3 = vrot.slane %v390_v54, 4  ;;  %v409_v7 = vrot.slane %v407_v58, 5  ;;  %v413_v10 = vrot.slane %v411_v62, 4  ;;  %v417_v11 = vshll.u32 %v217_v47, 16  ;;  %3218 = vmatpush3.bf16.msra.mxu0 %v3380_v29  ;;  %v3377_v62 = vld [vmem:[%s3460_s29 + $0x90] sm:$0xff]  }
  0x33   : > { %v422_v13 = vshrl.u32 %v3626_v63, 16  ;;  %3114 = vmatmul.mubr.msk.bf16.gmra.mrb[8].mxu1 %vm686_vm0, %v2633_v1  ;;  %v386_v19 = vsel %vm3500_vm3, %v381_v2, %v385_v45  ;;  %v404_v22 = vor.u32 %v403_v4, %v400_v61  ;;  %v425_v27 = vshll.u32 %v3626_v63, 16  ;;  %3198 = vmatmul.mubr.msk.bf16.gmra.mrb[16].mxu0 %vm686_vm0, %v3375_v5  ;;  %v219_v45 = vld [vmem:[%s3460_s29 + $0x74] sm:$0x1]  ;;  %v3671_v4 = vld [vmem:[%s3460_s29 + $0x7c] sm:$0xf] }
  0x34   : > { %v396_v21 = vsel %vm3500_vm3, %v391_v3, %v395_v60  ;;  %v414_v31 = vor.u32 %v413_v10, %v409_v7  ;;  %v419_v33 = vrot.slane %v417_v11, 5  ;;  %v431_v43 = vshll.u32 %v3634_v12, 16  ;;  %3201 = vmatprep.mubr.msk.bf16.mxu0 %vm686_vm0, %v3376_v6  ;;  %v220_v5 = vld [vmem:[%s3460_s29 + $0x80] sm:$0x1]  ;;  %v3685_v29 = vld [vmem:[%s3460_s29 + $0x88] sm:$0xf] }
  0x35   : > { %v2634_v30 = vcombine.low %v386_v19, %v396_v21  ;;  %v424_v35 = vrot.slane %v422_v13, 4  ;;  %v405_v38 = vrot.slane %v404_v22, 4  ;;  %v427_v39 = vrot.slane %v425_v27, 5  ;;  %v3677_v13 = vld [vmem:[%s3460_s29 + $0x84] sm:$0xf]  ;;  %v3379_v19 = vld [vmem:[%s3460_s29 + $0x9c] sm:$0xff]  }
  0x36   : > { %v435_v44 = vshrl.u32 %v3634_v12, 16  ;;  %v415_v46 = vrot.slane %v414_v31, 4  ;;  %v441_v47 = vshll.u32 %v218_v23, 16  ;;  %v446_v16 = vshrl.u32 %v3645_v28, 16 }
  0x37   : > { %3117 = vmatprep.mubr.msk.bf16.mxu1 %vm686_vm0, %v2634_v30  ;;  %v449_v48 = vshll.u32 %v3645_v28, 16  ;;  %v410_v51 = vsel %vm3500_vm3, %v405_v38, %v409_v7  ;;  %v428_v52 = vor.u32 %v427_v39, %v424_v35  ;;  %v433_v53 = vrot.slane %v431_v43, 5 }
  0x38   : > { %v437_v54 = vrot.slane %v435_v44, 4  ;;  %v420_v58 = vsel %vm3500_vm3, %v415_v46, %v419_v33  ;;  %v443_v59 = vrot.slane %v441_v47, 5  ;;  %v448_v60 = vrot.slane %v446_v16, 4 }
  0x39   : > { %v451_v61 = vrot.slane %v449_v48, 5  ;;  %v2635_v0 = vcombine.low %v410_v51, %v420_v58  ;;  %v429_v1 = vrot.slane %v428_v52, 4  ;;  %v455_v3 = vshll.u32 %v3651_v37, 16 }
  0x3a   : > { %v438_v2 = vor.u32 %v437_v54, %v433_v53  ;;  %v459_v7 = vshrl.u32 %v3651_v37, 16  ;;  %v465_v10 = vshll.u32 %v219_v45, 16  ;;  %v470_v11 = vshrl.u32 %v3664_v55, 16  ;;  %v221_v45 = vld [vmem:[%s3460_s29 + $0x8c] sm:$0x1] }
  0x3b   : > { %v452_v6 = vor.u32 %v451_v61, %v448_v60  ;;  %3118 = vmatmul.mubr.msk.bf16.gmra.mrb[12].mxu1 %vm686_vm0, %v2635_v0  ;;  %v434_v21 = vsel %vm3500_vm3, %v429_v1, %v433_v53  ;;  %v457_v23 = vrot.slane %v455_v3, 5  ;;  %v473_v27 = vshll.u32 %v3664_v55, 16  ;;  %3202 = vmatmul.mubr.msk.bf16.gmra.mrb[20].mxu0 %vm686_vm0, %v3377_v62  ;;  %v3381_v3 = vld [vmem:[%s3460_s29 + $0xa8] sm:$0xff]  }
  0x3c   : > { %v439_v22 = vrot.slane %v438_v2, 4  ;;  %v461_v31 = vrot.slane %v459_v7, 4  ;;  %v467_v33 = vrot.slane %v465_v10, 5  ;;  %v472_v35 = vrot.slane %v470_v11, 4  ;;  %3205 = vmatprep.mubr.msk.bf16.mxu0 %vm686_vm0, %v3379_v19  ;;  %v3382_v11 = vld [vmem:[%s3460_s29 + $0xb4] sm:$0xff]  }
  0x3d   : > { %v453_v30 = vrot.slane %v452_v6, 4  ;;  %v475_v39 = vrot.slane %v473_v27, 5  ;;  %v479_v43 = vshll.u32 %v3671_v4, 16  ;;  %v483_v44 = vshrl.u32 %v3671_v4, 16  ;;  %v3708_v27 = vld [vmem:[%s3460_s29 + $0x90] sm:$0xf] }
  0x3e   : > { %v444_v38 = vsel %vm3500_vm3, %v439_v22, %v443_v59  ;;  %v462_v16 = vor.u32 %v461_v31, %v457_v23  ;;  %v489_v48 = vshll.u32 %v220_v5, 16  ;;  %v494_v54 = vshrl.u32 %v3677_v13, 16 }
  0x3f   : > { %v2636_v46 = vcombine.low %v434_v21, %v444_v38  ;;  %v458_v47 = vsel %vm3500_vm3, %v453_v30, %v457_v23  ;;  %v476_v51 = vor.u32 %v475_v39, %v472_v35  ;;  %v481_v52 = vrot.slane %v479_v43, 5  ;;  %v3711_v30 = vld [vmem:[%s3460_s29 + $0x94] sm:$0xf] }
  0x40   : > { %v485_v53 = vrot.slane %v483_v44, 4  ;;  %v463_v58 = vrot.slane %v462_v16, 4  ;;  %v491_v59 = vrot.slane %v489_v48, 5  ;;  %v497_v60 = vshll.u32 %v3677_v13, 16  ;;  %v3726_v16 = vld [vmem:[%s3460_s29 + $0xa0] sm:$0xf] }
  0x41   : > { %3121 = vmatprep.mubr.msk.bf16.mxu1 %vm686_vm0, %v2636_v46  ;;  %v503_v61 = vshll.u32 %v3685_v29, 16  ;;  %v477_v62 = vrot.slane %v476_v51, 4  ;;  %v496_v1 = vrot.slane %v494_v54, 4  ;;  %v507_v2 = vshrl.u32 %v3685_v29, 16  ;;  %v223_v54 = vld [vmem:[%s3460_s29 + $0xa4] sm:$0x1] }
  0x42   : > { %v486_v0 = vor.u32 %v485_v53, %v481_v52  ;;  %v468_v5 = vsel %vm3500_vm3, %v463_v58, %v467_v33  ;;  %v499_v6 = vrot.slane %v497_v60, 5  ;;  %v513_v10 = vshll.u32 %v221_v45, 16  ;;  %v222_v33 = vld [vmem:[%s3460_s29 + $0x98] sm:$0x1] }
  0x43   : > { %v505_v7 = vrot.slane %v503_v61, 5  ;;  %v2637_v19 = vcombine.low %v458_v47, %v468_v5  ;;  %v482_v21 = vsel %vm3500_vm3, %v477_v62, %v481_v52  ;;  %v509_v23 = vrot.slane %v507_v2, 4  ;;  %3206 = vmatmul.mubr.msk.bf16.gmra.mrb[24].mxu0 %vm686_vm0, %v3381_v3  ;;  %v3723_v47 = vld [vmem:[%s3460_s29 + $0x9c] sm:$0xf]  ;;  %v3383_v62 = vld [vmem:[%s3460_s29 + $0xc0] sm:$0xff]  }
  0x44   : > { %v487_v22 = vrot.slane %v486_v0, 4  ;;  %v500_v31 = vor.u32 %v499_v6, %v496_v1  ;;  %v515_v35 = vrot.slane %v513_v10, 5  ;;  %v518_v38 = vshrl.u32 %v3708_v27, 16  ;;  %3209 = vmatprep.mubr.msk.bf16.mxu0 %vm686_vm0, %v3382_v11 }
  0x45   : > { %v521_v39 = vshll.u32 %v3708_v27, 16  ;;  %3122 = vmatmul.mubr.msk.bf16.gmra.mrb[16].mxu1 %vm686_vm0, %v2637_v19  ;;  %v510_v44 = vor.u32 %v509_v23, %v505_v7  ;;  %v527_v45 = vshll.u32 %v3711_v30, 16  ;;  %v531_v46 = vshrl.u32 %v3711_v30, 16  ;;  %v3740_v19 = vld [vmem:[%s3460_s29 + $0xa8] sm:$0xf] }
  0x46   : > { %v492_v43 = vsel %vm3500_vm3, %v487_v22, %v491_v59  ;;  %v501_v51 = vrot.slane %v500_v31, 4  ;;  %v520_v52 = vrot.slane %v518_v38, 4  ;;  %v537_v61 = vshll.u32 %v222_v33, 16 }
  0x47   : > { %v2638_v48 = vcombine.low %v482_v21, %v492_v43  ;;  %v523_v53 = vrot.slane %v521_v39, 5  ;;  %v511_v58 = vrot.slane %v510_v44, 4  ;;  %v529_v59 = vrot.slane %v527_v45, 5  ;;  %v224_v45 = vld [vmem:[%s3460_s29 + $0xb0] sm:$0x1] }
  0x48   : > { %v533_v60 = vrot.slane %v531_v46, 4  ;;  %v506_v0 = vsel %vm3500_vm3, %v501_v51, %v505_v7  ;;  %v542_v2 = vshrl.u32 %v3723_v47, 16  ;;  %v545_v3 = vshll.u32 %v3723_v47, 16  ;;  %v3743_v7 = vld [vmem:[%s3460_s29 + $0xac] sm:$0xf] }
  0x49   : > { %3125 = vmatprep.mubr.msk.bf16.mxu1 %vm686_vm0, %v2638_v48  ;;  %v524_v1 = vor.u32 %v523_v53, %v520_v52  ;;  %v516_v5 = vsel %vm3500_vm3, %v511_v58, %v515_v35  ;;  %v539_v10 = vrot.slane %v537_v61, 5  ;;  %v551_v11 = vshll.u32 %v3726_v16, 16  ;;  %v3757_v58 = vld [vmem:[%s3460_s29 + $0xb4] sm:$0xf] }
  0x4a   : > { %v534_v6 = vor.u32 %v533_v60, %v529_v59  ;;  %v2639_v21 = vcombine.low %v506_v0, %v516_v5  ;;  %v544_v23 = vrot.slane %v542_v2, 4  ;;  %v547_v31 = vrot.slane %v545_v3, 5 }
  0x4b   : > { %v525_v22 = vrot.slane %v524_v1, 4  ;;  %v553_v38 = vrot.slane %v551_v11, 5  ;;  %v555_v39 = vshrl.u32 %v3726_v16, 16  ;;  %v561_v43 = vshll.u32 %v223_v54, 16  ;;  %3210 = vmatmul.mubr.msk.bf16.gmra.mrb[28].mxu0 %vm686_vm0, %v3383_v62  ;;  %v3760_v1 = vld [vmem:[%s3460_s29 + $0xb8] sm:$0xf] }
  0x4c   : > { %v535_v33 = vrot.slane %v534_v6, 4  ;;  %v548_v44 = vor.u32 %v547_v31, %v544_v23  ;;  %v566_v46 = vshrl.u32 %v3740_v19, 16  ;;  %v569_v48 = vshll.u32 %v3740_v19, 16  ;;  %v225_v11 = vld [vmem:[%s3460_s29 + $0xbc] sm:$0x1] }
  0x4d   : > { %v530_v35 = vsel %vm3500_vm3, %v525_v22, %v529_v59  ;;  %3126 = vmatmul.mubr.msk.bf16.gmra.mrb[20].mxu1 %vm686_vm0, %v2639_v21  ;;  %v557_v52 = vrot.slane %v555_v39, 4  ;;  %v563_v53 = vrot.slane %v561_v43, 5  ;;  %v575_v54 = vshll.u32 %v3743_v7, 16 }
  0x4e   : > { %v540_v51 = vsel %vm3500_vm3, %v535_v33, %v539_v10  ;;  %v549_v60 = vrot.slane %v548_v44, 4  ;;  %v568_v61 = vrot.slane %v566_v46, 4  ;;  %v571_v0 = vrot.slane %v569_v48, 5  ;;  %v2771_v46 = vld [vmem:[%s3460_s29 + $0xc] sm:$0xf] }
  0x4f   : > { %v2640_v59 = vcombine.low %v530_v35, %v540_v51  ;;  %v558_v2 = vor.u32 %v557_v52, %v553_v38  ;;  %v577_v3 = vrot.slane %v575_v54, 5  ;;  %v579_v5 = vshrl.u32 %v3743_v7, 16  ;;  %v2772_v54 = vld [vmem:[%s3460_s29 + $0x10] sm:$0xf] }
  0x50   : > { %v585_v6 = vshll.u32 %v224_v45, 16  ;;  %v554_v62 = vsel %vm3500_vm3, %v549_v60, %v553_v38  ;;  %v572_v10 = vor.u32 %v571_v0, %v568_v61  ;;  %v590_v21 = vshrl.u32 %v3757_v58, 16 }
  0x51   : > { %3129 = vmatprep.mubr.msk.bf16.mxu1 %vm686_vm0, %v2640_v59  ;;  %v593_v22 = vshll.u32 %v3757_v58, 16  ;;  %v559_v23 = vrot.slane %v558_v2, 4  ;;  %v581_v31 = vrot.slane %v579_v5, 4  ;;  %v599_v39 = vshll.u32 %v3760_v1, 16  ;;  %v2773_v2 = vld [vmem:[%s3460_s29 + $0x14] sm:$0x1] }
  0x52   : > { %v587_v33 = vrot.slane %v585_v6, 5  ;;  %v573_v43 = vrot.slane %v572_v10, 4  ;;  %v592_v35 = vrot.slane %v590_v21, 4  ;;  %v603_v45 = vshrl.u32 %v3760_v1, 16 }
  0x53   : > { %v595_v44 = vrot.slane %v593_v22, 5  ;;  %v564_v38 = vsel %vm3500_vm3, %v559_v23, %v563_v53  ;;  %v582_v48 = vor.u32 %v581_v31, %v577_v3  ;;  %v601_v51 = vrot.slane %v599_v39, 5  ;;  %v2774_v31 = vld [vmem:[%s3460_s29 + $0x18] sm:$0xf] }
  0x54   : > { %v609_v52 = vshll.u32 %v225_v11, 16  ;;  %v2641_v59 = vcombine.low %v554_v62, %v564_v38  ;;  %v578_v60 = vsel %vm3500_vm3, %v573_v43, %v577_v3  ;;  %v605_v0 = vrot.slane %v603_v45, 4 }
  0x55   : > { %v596_v61 = vor.u32 %v595_v44, %v592_v35  ;;  %v583_v5 = vrot.slane %v582_v48, 4  ;;  %v1631_v10 = vshrl.u32 %v2771_v46, 16  ;;  %v1634_v21 = vshll.u32 %v2771_v46, 16  ;;  %v2775_v35 = vld [vmem:[%s3460_s29 + $0x1c] sm:$0xf] }
  0x56   : > { %v611_v6 = vrot.slane %v609_v52, 5  ;;  %3130 = vmatmul.mubr.msk.bf16.gmra.mrb[24].mxu1 %vm686_vm0, %v2641_v59  ;;  %v606_v22 = vor.u32 %v605_v0, %v601_v51  ;;  %v1640_v11 = vshll.u32 %v2772_v54, 16  ;;  %v1644_v23 = vshrl.u32 %v2772_v54, 16  ;;  %v2776_v54 = vld [vmem:[%s3460_s29 + $0x20] sm:$0x1] }
  0x57   : > { %v597_v53 = vrot.slane %v596_v61, 4  ;;  %v588_v62 = vsel %vm3500_vm3, %v583_v5, %v587_v33  ;;  %v1633_v3 = vrot.slane %v1631_v10, 4  ;;  %v1636_v39 = vrot.slane %v1634_v21, 5 }
  0x58   : > { %v1650_v43 = vshll.u32 %v2773_v2, 16  ;;  %v2642_v44 = vcombine.low %v578_v60, %v588_v62  ;;  %v607_v46 = vrot.slane %v606_v22, 4  ;;  %v1642_v38 = vrot.slane %v1640_v11, 5  ;;  %v2777_v60 = vld [vmem:[%s3460_s29 + $0x24] sm:$0xf] }
  0x59   : > { %v602_v45 = vsel %vm3500_vm3, %v597_v53, %v601_v51  ;;  %v1637_v48 = vor.u32 %v1636_v39, %v1633_v3  ;;  %v1646_v52 = vrot.slane %v1644_v23, 4  ;;  %v1655_v61 = vshrl.u32 %v2774_v31, 16  ;;  %v2778_v22 = vld [vmem:[%s3460_s29 + $0x28] sm:$0xf] }
  0x5a   : > { %v1652_v59 = vrot.slane %v1650_v43, 5  ;;  %3133 = vmatprep.mubr.msk.bf16.mxu1 %vm686_vm0, %v2642_v44  ;;  %v612_v33 = vsel %vm3500_vm3, %v607_v46, %v611_v6  ;;  %v1658_v0 = vshll.u32 %v2774_v31, 16  ;;  %v1664_v2 = vshll.u32 %v2775_v35, 16  ;;  %v2779_v46 = vld [vmem:[%s3460_s29 + $0x2c] sm:$0x1] }
  0x5b   : > { %v1668_v5 = vshrl.u32 %v2775_v35, 16  ;;  %v2643_v10 = vcombine.low %v602_v45, %v612_v33  ;;  %v1638_v21 = vrot.slane %v1637_v48, 4  ;;  %v1647_v51 = vor.u32 %v1646_v52, %v1642_v38  ;;  %v2780_v52 = vld [vmem:[%s3460_s29 + $0x30] sm:$0xf] }
  0x5c   : > { %v1657_v53 = vrot.slane %v1655_v61, 4  ;;  %v1660_v11 = vrot.slane %v1658_v0, 5  ;;  %v1666_v23 = vrot.slane %v1664_v2, 5  ;;  %v1674_v3 = vshll.u32 %v2776_v54, 16  ;;  %v2781_v0 = vld [vmem:[%s3460_s29 + $0x34] sm:$0xf] }
  0x5d   : > { %v1670_v62 = vrot.slane %v1668_v5, 4  ;;  %v1643_v39 = vsel %vm3500_vm3, %v1638_v21, %v1642_v38  ;;  %v1648_v6 = vrot.slane %v1647_v51, 4  ;;  %v1679_v31 = vshrl.u32 %v2777_v60, 16 }
  0x5e   : > { %v1682_v43 = vshll.u32 %v2777_v60, 16  ;;  %3134 = vmatmul.mubr.msk.bf16.gmra.mrb[28].mxu1 %vm686_vm0, %v2643_v10  ;;  %v1661_v35 = vor.u32 %v1660_v11, %v1657_v53  ;;  %v1676_v45 = vrot.slane %v1674_v3, 5  ;;  %v1688_v48 = vshll.u32 %v2778_v22, 16 }
  0x5f   : > { %v1671_v44 = vor.u32 %v1670_v62, %v1666_v23  ;;  %v1653_v61 = vsel %vm3500_vm3, %v1648_v6, %v1652_v59  ;;  %3143 = vmatprep.mubr.msk.bf16.mxu1 %vm686_vm0, %v2663_v17  ;;  %v1681_v38 = vrot.slane %v1679_v31, 4  ;;  %v1692_v33 = vshrl.u32 %v2778_v22, 16  ;;  %v2782_v17 = vld [vmem:[%s3460_s29 + $0x38] sm:$0x1]  ;;  %v2783_v31 = vld [vmem:[%s3460_s29 + $0x3c] sm:$0xf] }
  0x60   : > { %v1684_v54 = vrot.slane %v1682_v43, 5  ;;  %v2825_v2 = vcombine.low %v1643_v39, %v1653_v61  ;;  %v1662_v5 = vrot.slane %v1661_v35, 4  ;;  %v1690_v10 = vrot.slane %v1688_v48, 5  ;;  %v2784_v48 = vld [vmem:[%s3460_s29 + $0x40] sm:$0xf] }
  0x61   : > { %v1672_v60 = vrot.slane %v1671_v44, 4  ;;  %v1694_v51 = vrot.slane %v1692_v33, 4  ;;  %v1698_v53 = vshll.u32 %v2779_v46, 16  ;;  %v1703_v11 = vshrl.u32 %v2780_v52, 16  ;;  %v2785_v33 = vld [vmem:[%s3460_s29 + $0x44] sm:$0x1] }
  0x62   : > { %v1685_v21 = vor.u32 %v1684_v54, %v1681_v38  ;;  %3219 = vmatprep.mubr.msk.bf16.mxu0 %vm686_vm0, %v2825_v2  ;;  %v1667_v8 = vsel %vm3500_vm3, %v1662_v5, %v1666_v23  ;;  %v1706_v59 = vshll.u32 %v2780_v52, 16  ;;  %v1712_v22 = vshll.u32 %v2781_v0, 16 }
  0x63   : > { %v1677_v9 = vsel %vm3500_vm3, %v1672_v60, %v1676_v45  ;;  %v1695_v39 = vor.u32 %v1694_v51, %v1690_v10  ;;  %v1700_v6 = vrot.slane %v1698_v53, 5  ;;  %v1705_v43 = vrot.slane %v1703_v11, 4  ;;  %v2787_v51 = vld [vmem:[%s3460_s29 + $0x4c] sm:$0xf] }
  0x64   : > { %v2826_v62 = vcombine.low %v1667_v8, %v1677_v9  ;;  %v1686_v3 = vrot.slane %v1685_v21, 4  ;;  %v1708_v35 = vrot.slane %v1706_v59, 5  ;;  %v1714_v44 = vrot.slane %v1712_v22, 5 }
  0x65   : > { %v1716_v46 = vshrl.u32 %v2781_v0, 16  ;;  %v1696_v45 = vrot.slane %v1695_v39, 4  ;;  %v1722_v52 = vshll.u32 %v2782_v17, 16  ;;  %v2666_v61 = vcombine.low %v3525_v56, %v3528_v57 }
  0x66   : > { %3220 = vmatmul.mubr.msk.bf16.vlgmr.msra.gmra.mrb[0].mxu0 %vm686_vm0, %v2826_v62  ;;  %v1691_v23 = vsel %vm3500_vm3, %v1686_v3, %v1690_v10  ;;  %3144 = vmatmul.mubr.msk.bf16.vlgmr.msra.gmra.mrb[0].mxu1 %vm686_vm0, %v2664_v36  ;;  %v1709_v38 = vor.u32 %v1708_v35, %v1705_v43  ;;  %v1727_v0 = vshrl.u32 %v2783_v31, 16  ;;  %v1730_v2 = vshll.u32 %v2783_v31, 16  ;;  %v2788_v3 = vld [vmem:[%s3460_s29 + $0x50] sm:$0x1] }
  0x67   : > { %v1718_v54 = vrot.slane %v1716_v46, 4  ;;  %v1701_v5 = vsel %vm3500_vm3, %v1696_v45, %v1700_v6  ;;  %v1724_v60 = vrot.slane %v1722_v52, 5  ;;  %3147 = vmatprep.mubr.msk.bf16.mxu1 %vm686_vm0, %v2665_v18  ;;  %v1736_v56 = vshll.u32 %v2784_v48, 16  ;;  %v2789_v46 = vld [vmem:[%s3460_s29 + $0x54] sm:$0xf] }
  0x68   : > { %v1740_v57 = vshrl.u32 %v2784_v48, 16  ;;  %v2827_v26 = vcombine.low %v1691_v23, %v1701_v5  ;;  %v1710_v36 = vrot.slane %v1709_v38, 4  ;;  %v1729_v21 = vrot.slane %v1727_v0, 4  ;;  %v2790_v0 = vld [vmem:[%s3460_s29 + $0x58] sm:$0xf] }
  0x69   : > { %v1719_v10 = vor.u32 %v1718_v54, %v1714_v44  ;;  %v1732_v53 = vrot.slane %v1730_v2, 5  ;;  %v1738_v11 = vrot.slane %v1736_v56, 5  ;;  %v1746_v9 = vshll.u32 %v2785_v33, 16 }
  0x6a   : > { %v1742_v8 = vrot.slane %v1740_v57, 4  ;;  %3223 = vmatprep.mubr.msk.bf16.mxu0 %vm686_vm0, %v2827_v26  ;;  %v1715_v49 = vsel %vm3500_vm3, %v1710_v36, %v1714_v44  ;;  %v1751_v18 = vshrl.u32 %v2786_v25, 16  ;;  %v1754_v17 = vshll.u32 %v2786_v25, 16  ;;  %v2792_v57 = vld [vmem:[%s3460_s29 + $0x60] sm:$0xf] }
  0x6b   : > { %v1720_v50 = vrot.slane %v1719_v10, 4  ;;  %v1733_v59 = vor.u32 %v1732_v53, %v1729_v21  ;;  %v1748_v62 = vrot.slane %v1746_v9, 5  ;;  %v1760_v39 = vshll.u32 %v2787_v51, 16  ;;  %v2793_v53 = vld [vmem:[%s3460_s29 + $0x64] sm:$0xf] }
  0x6c   : > { %v1743_v22 = vor.u32 %v1742_v8, %v1738_v11  ;;  %v1753_v31 = vrot.slane %v1751_v18, 4  ;;  %v1756_v43 = vrot.slane %v1754_v17, 5  ;;  %v1764_v35 = vshrl.u32 %v2787_v51, 16  ;;  %v2794_v18 = vld [vmem:[%s3460_s29 + $0x68] sm:$0x1] }
  0x6d   : > { %v1725_v6 = vsel %vm3500_vm3, %v1720_v50, %v1724_v60  ;;  %v1734_v44 = vrot.slane %v1733_v59, 4  ;;  %v1762_v45 = vrot.slane %v1760_v39, 5  ;;  %v1770_v54 = vshll.u32 %v2788_v3, 16 }
  0x6e   : > { %v2828_v48 = vcombine.low %v1715_v49, %v1725_v6  ;;  %v1744_v23 = vrot.slane %v1743_v22, 4  ;;  %3148 = vmatmul.mubr.msk.bf16.gmra.mrb[4].mxu1 %vm686_vm0, %v2666_v61  ;;  %v1757_v52 = vor.u32 %v1756_v43, %v1753_v31  ;;  %v1766_v38 = vrot.slane %v1764_v35, 4  ;;  %v2791_v61 = vld [vmem:[%s3460_s29 + $0x5c] sm:$0x1]  ;;  %v2795_v35 = vld [vmem:[%s3460_s29 + $0x6c] sm:$0xf] }
  0x6f   : > { %v2667_v33 = vcombine.low %v3546_v20, %v3549_v24  ;;  %v1739_v2 = vsel %vm3500_vm3, %v1734_v44, %v1738_v11  ;;  %v2668_v60 = vcombine.low %v3560_v40, %v3563_v41  ;;  %v1775_v56 = vshrl.u32 %v2789_v46, 16 }
  0x70   : > { %3224 = vmatmul.mubr.msk.bf16.gmra.mrb[4].mxu0 %vm686_vm0, %v2828_v48  ;;  %v1749_v5 = vsel %vm3500_vm3, %v1744_v23, %v1748_v62  ;;  %v1758_v26 = vrot.slane %v1757_v52, 4  ;;  %v1767_v36 = vor.u32 %v1766_v38, %v1762_v45  ;;  %v1772_v20 = vrot.slane %v1770_v54, 5 }
  0x71   : > { %v2829_v25 = vcombine.low %v1739_v2, %v1749_v5  ;;  %3151 = vmatprep.mubr.msk.bf16.mxu1 %vm686_vm0, %v2667_v33  ;;  %v1777_v24 = vrot.slane %v1775_v56, 4  ;;  %v1778_v10 = vshll.u32 %v2789_v46, 16  ;;  %v1784_v21 = vshll.u32 %v2790_v0, 16  ;;  %v2797_v5 = vld [vmem:[%s3460_s29 + $0x74] sm:$0x1] }
  0x72   : > { %v1788_v51 = vshrl.u32 %v2790_v0, 16  ;;  %v1763_v40 = vsel %vm3500_vm3, %v1758_v26, %v1762_v45  ;;  %v1768_v41 = vrot.slane %v1767_v36, 4  ;;  %v1794_v11 = vshll.u32 %v2791_v61, 16  ;;  %v2796_v45 = vld [vmem:[%s3460_s29 + $0x70] sm:$0xf] }
  0x73   : > { %3227 = vmatprep.mubr.msk.bf16.mxu0 %vm686_vm0, %v2829_v25  ;;  %v1799_v8 = vshrl.u32 %v2792_v57, 16  ;;  %v1780_v9 = vrot.slane %v1778_v10, 5  ;;  %v1786_v49 = vrot.slane %v1784_v21, 5  ;;  %v1802_v17 = vshll.u32 %v2792_v57, 16  ;;  %v2798_v25 = vld [vmem:[%s3460_s29 + $0x78] sm:$0xf] }
  0x74   : > { %v1790_v50 = vrot.slane %v1788_v51, 4  ;;  %v1773_v59 = vsel %vm3500_vm3, %v1768_v41, %v1772_v20  ;;  %v1796_v22 = vrot.slane %v1794_v11, 5  ;;  %v1808_v3 = vshll.u32 %v2793_v53, 16  ;;  %v2799_v20 = vld [vmem:[%s3460_s29 + $0x7c] sm:$0xf] }
  0x75   : > { %v1801_v62 = vrot.slane %v1799_v8, 4  ;;  %v2830_v39 = vcombine.low %v1763_v40, %v1773_v59  ;;  %v1781_v6 = vor.u32 %v1780_v9, %v1777_v24  ;;  %v1804_v43 = vrot.slane %v1802_v17, 5 }
  0x76   : > { %v1791_v31 = vor.u32 %v1790_v50, %v1786_v49  ;;  %3152 = vmatmul.mubr.msk.bf16.gmra.mrb[8].mxu1 %vm686_vm0, %v2668_v60  ;;  %v1810_v46 = vrot.slane %v1808_v3, 5  ;;  %v1812_v48 = vshrl.u32 %v2793_v53, 16  ;;  %v1818_v44 = vshll.u32 %v2794_v18, 16  ;;  %v2801_v3 = vld [vmem:[%s3460_s29 + $0x84] sm:$0xf] }
  0x77   : > { %v2669_v23 = vcombine.low %v3591_v14, %v3594_v15  ;;  %v1782_v52 = vrot.slane %v1781_v6, 4  ;;  %v1805_v54 = vor.u32 %v1804_v43, %v1801_v62  ;;  %v2670_v33 = vcombine.low %v3606_v34, %v3611_v42 }
  0x78   : > { %3228 = vmatmul.mubr.msk.bf16.gmra.mrb[8].mxu0 %vm686_vm0, %v2830_v39  ;;  %v1792_v38 = vrot.slane %v1791_v31, 4  ;;  %v1814_v0 = vrot.slane %v1812_v48, 4  ;;  %v1820_v2 = vrot.slane %v1818_v44, 5  ;;  %v1823_v60 = vshrl.u32 %v2795_v35, 16 }
  0x79   : > { %3155 = vmatprep.mubr.msk.bf16.mxu1 %vm686_vm0, %v2669_v23  ;;  %v1826_v61 = vshll.u32 %v2795_v35, 16  ;;  %v1787_v14 = vsel %vm3500_vm3, %v1782_v52, %v1786_v49  ;;  %v1806_v56 = vrot.slane %v1805_v54, 4  ;;  %v1832_v57 = vshll.u32 %v2796_v45, 16  ;;  %v2800_v49 = vld [vmem:[%s3460_s29 + $0x80] sm:$0x1] }
  0x7a   : > { %v1797_v15 = vsel %vm3500_vm3, %v1792_v38, %v1796_v22  ;;  %v1815_v34 = vor.u32 %v1814_v0, %v1810_v46  ;;  %v1825_v42 = vrot.slane %v1823_v60, 4  ;;  %v1836_v21 = vshrl.u32 %v2796_v45, 16  ;;  %v2802_v35 = vld [vmem:[%s3460_s29 + $0x88] sm:$0xf]  ;;  %v2803_v54 = vld [vmem:[%s3460_s29 + $0x8c] sm:$0x1] }
  0x7b   : > { %v2831_v26 = vcombine.low %v1787_v14, %v1797_v15  ;;  %v1828_v36 = vrot.slane %v1826_v61, 5  ;;  %v1811_v24 = vsel %vm3500_vm3, %v1806_v56, %v1810_v46  ;;  %v1834_v10 = vrot.slane %v1832_v57, 5  ;;  %v2804_v61 = vld [vmem:[%s3460_s29 + $0x90] sm:$0xf]  ;;  %v2805_v56 = vld [vmem:[%s3460_s29 + $0x94] sm:$0xf] }
  0x7c   : > { %v1842_v51 = vshll.u32 %v2797_v5, 16  ;;  %v1816_v53 = vrot.slane %v1815_v34, 4  ;;  %v1847_v41 = vshrl.u32 %v2798_v25, 16  ;;  %v1850_v11 = vshll.u32 %v2798_v25, 16 }
  0x7d   : > { %3231 = vmatprep.mubr.msk.bf16.mxu0 %vm686_vm0, %v2831_v26  ;;  %v1829_v40 = vor.u32 %v1828_v36, %v1825_v42  ;;  %v1838_v8 = vrot.slane %v1836_v21, 4  ;;  %v1856_v50 = vshll.u32 %v2799_v20, 16  ;;  %v1860_v18 = vshrl.u32 %v2799_v20, 16  ;;  %v2806_v36 = vld [vmem:[%s3460_s29 + $0x98] sm:$0x1] }
  0x7e   : > { %v1844_v9 = vrot.slane %v1842_v51, 5  ;;  %v1821_v17 = vsel %vm3500_vm3, %v1816_v53, %v1820_v2  ;;  %3156 = vmatmul.mubr.msk.bf16.gmra.mrb[12].mxu1 %vm686_vm0, %v2670_v33  ;;  %v1849_v22 = vrot.slane %v1847_v41, 4  ;;  %v1852_v62 = vrot.slane %v1850_v11, 5 }
  0x7f   : > { %v1830_v59 = vrot.slane %v1829_v40, 4  ;;  %v2832_v39 = vcombine.low %v1811_v24, %v1821_v17  ;;  %v1839_v6 = vor.u32 %v1838_v8, %v1834_v10  ;;  %v1858_v31 = vrot.slane %v1856_v50, 5  ;;  %v2807_v8 = vld [vmem:[%s3460_s29 + $0x9c] sm:$0xf]  ;;  %v2808_v17 = vld [vmem:[%s3460_s29 + $0xa0] sm:$0xf] }
  0x80   : > { %v1862_v43 = vrot.slane %v1860_v18, 4  ;;  %v1853_v48 = vor.u32 %v1852_v62, %v1849_v22  ;;  %v1866_v44 = vshll.u32 %v2800_v49, 16  ;;  %v2671_v23 = vcombine.low %v3626_v63, %v3634_v12 }
  0x81   : > { %v1835_v46 = vsel %vm3500_vm3, %v1830_v59, %v1834_v10  ;;  %3232 = vmatmul.mubr.msk.bf16.gmra.mrb[12].mxu0 %vm686_vm0, %v2832_v39  ;;  %v1840_v45 = vrot.slane %v1839_v6, 4  ;;  %v2672_v38 = vcombine.low %v3645_v28, %v3651_v37  ;;  %v1871_v33 = vshrl.u32 %v2801_v3, 16 }
  0x82   : > { %v1863_v52 = vor.u32 %v1862_v43, %v1858_v31  ;;  %v1854_v0 = vrot.slane %v1853_v48, 4  ;;  %v1868_v2 = vrot.slane %v1866_v44, 5  ;;  %3159 = vmatprep.mubr.msk.bf16.mxu1 %vm686_vm0, %v2671_v23  ;;  %v1874_v5 = vshll.u32 %v2801_v3, 16  ;;  %v2809_v43 = vld [vmem:[%s3460_s29 + $0xa4] sm:$0x1] }
  0x83   : > { %v1880_v60 = vshll.u32 %v2802_v35, 16  ;;  %v1845_v63 = vsel %vm3500_vm3, %v1840_v45, %v1844_v9  ;;  %v1873_v14 = vrot.slane %v1871_v33, 4  ;;  %v1884_v15 = vshrl.u32 %v2802_v35, 16 }
  0x84   : > { %v1864_v12 = vrot.slane %v1863_v52, 4  ;;  %v2833_v57 = vcombine.low %v1835_v46, %v1845_v63  ;;  %v1859_v28 = vsel %vm3500_vm3, %v1854_v0, %v1858_v31  ;;  %v1876_v37 = vrot.slane %v1874_v5, 5  ;;  %v2811_v52 = vld [vmem:[%s3460_s29 + $0xac] sm:$0xf] }
  0x85   : > { %v1882_v25 = vrot.slane %v1880_v60, 5  ;;  %v1886_v34 = vrot.slane %v1884_v15, 4  ;;  %v1890_v42 = vshll.u32 %v2803_v54, 16  ;;  %v1895_v20 = vshrl.u32 %v2804_v61, 16  ;;  %v2812_v60 = vld [vmem:[%s3460_s29 + $0xb0] sm:$0x1] }
  0x86   : > { %v1869_v26 = vsel %vm3500_vm3, %v1864_v12, %v1868_v2  ;;  %3235 = vmatprep.mubr.msk.bf16.mxu0 %vm686_vm0, %v2833_v57  ;;  %3160 = vmatmul.mubr.msk.bf16.gmra.mrb[16].mxu1 %vm686_vm0, %v2672_v38  ;;  %v1877_v10 = vor.u32 %v1876_v37, %v1873_v14  ;;  %v1898_v21 = vshll.u32 %v2804_v61, 16  ;;  %v1904_v51 = vshll.u32 %v2805_v56, 16 }
  0x87   : > { %v2834_v24 = vcombine.low %v1859_v28, %v1869_v26  ;;  %v1887_v53 = vor.u32 %v1886_v34, %v1882_v25  ;;  %v1892_v40 = vrot.slane %v1890_v42, 5  ;;  %v1897_v41 = vrot.slane %v1895_v20, 4  ;;  %v2813_v26 = vld [vmem:[%s3460_s29 + $0xb4] sm:$0xf] }
  0x88   : > { %v1908_v11 = vshrl.u32 %v2805_v56, 16  ;;  %v1878_v9 = vrot.slane %v1877_v10, 4  ;;  %v1900_v49 = vrot.slane %v1898_v21, 5  ;;  %v1906_v50 = vrot.slane %v1904_v51, 5 }
  0x89   : > { %v1914_v18 = vshll.u32 %v2806_v36, 16  ;;  %3236 = vmatmul.mubr.msk.bf16.gmra.mrb[16].mxu0 %vm686_vm0, %v2834_v24  ;;  %v1888_v59 = vrot.slane %v1887_v53, 4  ;;  %v2673_v62 = vcombine.low %v3664_v55, %v3671_v4  ;;  %v2674_v3 = vcombine.low %v3677_v13, %v3685_v29  ;;  %v2810_v4 = vld [vmem:[%s3460_s29 + $0xa8] sm:$0xf]  ;;  %v2814_v24 = vld [vmem:[%s3460_s29 + $0xb8] sm:$0xf] }
  0x8a   : > { %v1910_v22 = vrot.slane %v1908_v11, 4  ;;  %v1883_v39 = vsel %vm3500_vm3, %v1878_v9, %v1882_v25  ;;  %v1901_v6 = vor.u32 %v1900_v49, %v1897_v41  ;;  %v1919_v35 = vshrl.u32 %v2807_v8, 16 }
  0x8b   : > { %v1916_v31 = vrot.slane %v1914_v18, 5  ;;  %v1893_v46 = vsel %vm3500_vm3, %v1888_v59, %v1892_v40  ;;  %3163 = vmatprep.mubr.msk.bf16.mxu1 %vm686_vm0, %v2673_v62  ;;  %v1922_v44 = vshll.u32 %v2807_v8, 16  ;;  %v1928_v55 = vshll.u32 %v2808_v17, 16  ;;  %v2815_v8 = vld [vmem:[%s3460_s29 + $0xbc] sm:$0x1] }
  0x8c   : > { %v1911_v48 = vor.u32 %v1910_v22, %v1906_v50  ;;  %v2835_v23 = vcombine.low %v1883_v39, %v1893_v46  ;;  %v1902_v13 = vrot.slane %v1901_v6, 4  ;;  %v1921_v29 = vrot.slane %v1919_v35, 4  ;;  %v2817_v22 = vld [vmem:[%s3460_s29 + $0xc4] sm:$0xf] }
  0x8d   : > { %v1932_v45 = vshrl.u32 %v2808_v17, 16  ;;  %v1924_v54 = vrot.slane %v1922_v44, 5  ;;  %v1930_v33 = vrot.slane %v1928_v55, 5  ;;  %v1938_v0 = vshll.u32 %v2809_v43, 16  ;;  %v2818_v55 = vld [vmem:[%s3460_s29 + $0xc8] sm:$0x1] }
  0x8e   : > { %v1912_v38 = vrot.slane %v1911_v48, 4  ;;  %3239 = vmatprep.mubr.msk.bf16.mxu0 %vm686_vm0, %v2835_v23  ;;  %v1907_v2 = vsel %vm3500_vm3, %v1902_v13, %v1906_v50  ;;  %3164 = vmatmul.mubr.msk.bf16.gmra.mrb[20].mxu1 %vm686_vm0, %v2674_v3  ;;  %v1943_v61 = vshrl.u32 %v2810_v4, 16  ;;  %v1946_v63 = vshll.u32 %v2810_v4, 16 }
  0x8f   : > { %v1934_v5 = vrot.slane %v1932_v45, 4  ;;  %v1925_v14 = vor.u32 %v1924_v54, %v1921_v29  ;;  %v1940_v15 = vrot.slane %v1938_v0, 5  ;;  %v1952_v56 = vshll.u32 %v2811_v52, 16 }
  0x90   : > { %v1917_v12 = vsel %vm3500_vm3, %v1912_v38, %v1916_v31  ;;  %v1945_v37 = vrot.slane %v1943_v61, 4  ;;  %v1948_v25 = vrot.slane %v1946_v63, 5  ;;  %v1956_v36 = vshrl.u32 %v2811_v52, 16 }
  0x91   : > { %v2836_v57 = vcombine.low %v1907_v2, %v1917_v12  ;;  %v1935_v28 = vor.u32 %v1934_v5, %v1930_v33  ;;  %v1926_v34 = vrot.slane %v1925_v14, 4  ;;  %v1954_v42 = vrot.slane %v1952_v56, 5 }
  0x92   : > { %v1962_v20 = vshll.u32 %v2812_v60, 16  ;;  %v1949_v21 = vor.u32 %v1948_v25, %v1945_v37  ;;  %v2675_v51 = vcombine.low %v3708_v27, %v3711_v30  ;;  %v2676_v53 = vcombine.low %v3723_v47, %v3726_v16  ;;  %v2816_v27 = vld [vmem:[%s3460_s29 + $0xc0] sm:$0xf] }
  0x93   : > { %3240 = vmatmul.mubr.msk.bf16.gmra.mrb[20].mxu0 %vm686_vm0, %v2836_v57  ;;  %v1936_v10 = vrot.slane %v1935_v28, 4  ;;  %v1931_v40 = vsel %vm3500_vm3, %v1926_v34, %v1930_v33  ;;  %v1958_v41 = vrot.slane %v1956_v36, 4  ;;  %v1967_v9 = vshrl.u32 %v2813_v26, 16  ;;  %v3966_v34 = vld [vmem:[%s4027_s2] ss:$0 sm:$0xff] }
  0x94   : > { %v1964_v11 = vrot.slane %v1962_v20, 5  ;;  %v1950_v50 = vrot.slane %v1949_v21, 4  ;;  %3167 = vmatprep.mubr.msk.bf16.mxu1 %vm686_vm0, %v2675_v51  ;;  %v1970_v18 = vshll.u32 %v2813_v26, 16  ;;  %v1976_v17 = vshll.u32 %v2814_v24, 16 }
  0x95   : > { %v1941_v49 = vsel %vm3500_vm3, %v1936_v10, %v1940_v15  ;;  %v1959_v59 = vor.u32 %v1958_v41, %v1954_v42  ;;  %v1969_v47 = vrot.slane %v1967_v9, 4  ;;  %v1980_v16 = vshrl.u32 %v2814_v24, 16 }
  0x96   : > { %v2837_v30 = vcombine.low %v1931_v40, %v1941_v49  ;;  %v1955_v62 = vsel %vm3500_vm3, %v1950_v50, %v1954_v42  ;;  %3168 = vmatmul.mubr.msk.bf16.gmra.mrb[24].mxu1 %vm686_vm0, %v2676_v53  ;;  %v1972_v3 = vrot.slane %v1970_v18, 5  ;;  %v1978_v39 = vrot.slane %v1976_v17, 5 }
  0x97   : > { %v1986_v6 = vshll.u32 %v2815_v8, 16  ;;  %v1960_v31 = vrot.slane %v1959_v59, 4  ;;  %v1982_v43 = vrot.slane %v1980_v16, 4  ;;  %v1991_v35 = vshrl.u32 %v2816_v27, 16 }
  0x98   : > { %3243 = vmatprep.mubr.msk.bf16.mxu0 %vm686_vm0, %v2837_v30  ;;  %v1994_v46 = vshll.u32 %v2816_v27, 16  ;;  %v1973_v48 = vor.u32 %v1972_v3, %v1969_v47  ;;  %v2000_v4 = vshll.u32 %v2817_v22, 16  ;;  %v2004_v23 = vshrl.u32 %v2817_v22, 16 }
  0x99   : > { %v1988_v44 = vrot.slane %v1986_v6, 5  ;;  %v1965_v13 = vsel %vm3500_vm3, %v1960_v31, %v1964_v11  ;;  %v1983_v29 = vor.u32 %v1982_v43, %v1978_v39  ;;  %v1993_v45 = vrot.slane %v1991_v35, 4 }
  0x9a   : > { %v1996_v52 = vrot.slane %v1994_v46, 5  ;;  %v2838_v38 = vcombine.low %v1955_v62, %v1965_v13  ;;  %v1974_v54 = vrot.slane %v1973_v48, 4  ;;  %v2002_v33 = vrot.slane %v2000_v4, 5 }
  0x9b   : > { %v2006_v0 = vrot.slane %v2004_v23, 4  ;;  %v1984_v2 = vrot.slane %v1983_v29, 4  ;;  %v2010_v60 = vshll.u32 %v2818_v55, 16  ;;  %v2677_v61 = vcombine.low %v3740_v19, %v3743_v7 }
  0x9c   : > { %v1997_v5 = vor.u32 %v1996_v52, %v1993_v45  ;;  %3244 = vmatmul.mubr.msk.bf16.gmra.mrb[24].mxu0 %vm686_vm0, %v2838_v38  ;;  %v1979_v63 = vsel %vm3500_vm3, %v1974_v54, %v1978_v39  ;;  %v2678_v14 = vcombine.low %v3757_v58, %v3760_v1 }
  0x9d   : > { %v2007_v12 = vor.u32 %v2006_v0, %v2002_v33  ;;  %v1989_v15 = vsel %vm3500_vm3, %v1984_v2, %v1988_v44  ;;  %v2012_v57 = vrot.slane %v2010_v60, 5  ;;  %3171 = vmatprep.mubr.msk.bf16.mxu1 %vm686_vm0, %v2677_v61 }
  0x9e   : > { %v1998_v56 = vrot.slane %v1997_v5, 4  ;;  %v2839_v28 = vcombine.low %v1979_v63, %v1989_v15  ;;  %3172 = vmatmul.mubr.msk.bf16.gmra.mrb[28].mxu1 %vm686_vm0, %v2678_v14 }
  0x9f   : > { %v2008_v37 = vrot.slane %v2007_v12, 4 }
  0xa0   : > { %v2003_v19 = vsel %vm3500_vm3, %v1998_v56, %v2002_v33  ;;  %3247 = vmatprep.mubr.msk.bf16.mxu0 %vm686_vm0, %v2839_v28 }
  0xa1   : > { %v2013_v7 = vsel %vm3500_vm3, %v2008_v37, %v2012_v57 }
  0xa2   : > { %v2840_v58 = vcombine.low %v2003_v19, %v2013_v7 }
  0xa4   : > { %3248 = vmatmul.mubr.msk.bf16.gmra.mrb[28].mxu0 %vm686_vm0, %v2840_v58 }
 0x139   : > { %v3221_v1 = vpop.f32.mrb[0].mxu0  ;;  %v3145_v26 = vpop.f32.mrb[0].mxu1 }
 0x13a   : > { %v2169_v25 = vpop.f32.mrb[1].mxu0  ;;  %v3251_v36 = vadd.f32 %v3221_v1, %v3145_v26  ;;  %v1076_v20 = vpop.f32.mrb[1].mxu1 }
 0x13b   : > { %v3222_v42 = vpop.f32.mrb[2].mxu0  ;;  %v3252_v10 = vadd.f32 %v2169_v25, %v1076_v20  ;;  %v3146_v21 = vpop.f32.mrb[2].mxu1 }
 0x13c   : > { %v2172_v24 = vpop.f32.mrb[3].mxu0  ;;  %v2337_v32 = vadd.f32 %v3251_v36, %v3966_v34  ;;  %v3253_v51 = vadd.f32 %v3222_v42, %v3146_v21  ;;  %v1079_v53 = vpop.f32.mrb[3].mxu1 }
 0x13d   : > { %v2335_v40 = vadd.f32 %v3252_v10, %v3966_v34  ;;  %v3254_v41 = vadd.f32 %v2172_v24, %v1079_v53 }
 0x13e   : > { %v2338_v11 = vadd.f32 %v3253_v51, %v3966_v34  ;;  %v2369_v9 = vmax.f32 %v2337_v32, 0.0 }
 0x13f   : > { %v2336_v8 = vadd.f32 %v3254_v41, %v3966_v34  ;;  %v2367_v50 = vmax.f32 %v2335_v40, 0.0 }
 0x140   : > { %v2370_v49 = vmax.f32 %v2338_v11, 0.0 }
 0x141   : > { %v2368_v18 = vmax.f32 %v2336_v8, 0.0  ;;  %v3149_v17 = vpop.f32.mrb[4].mxu1 }
 0x142   : > { %v2936_v27 = vpack.c.bf16 %v2370_v49, %v2369_v9  ;;  %v1092_v59 = vpop.f32.mrb[5].mxu1 }
 0x143   : > { %v3225_v30 = vpop.f32.mrb[4].mxu0  ;;  %v2931_v47 = vpack.c.bf16 %v2368_v18, %v2367_v50  ;;  %v3150_v62 = vpop.f32.mrb[6].mxu1 }
 0x144   : > { %v2185_v16 = vpop.f32.mrb[5].mxu0  ;;  %v3255_v22 = vadd.f32 %v3225_v30, %v3149_v17  ;;  %3008 = vst [vmem:[%s3976_s22 + $0x8] sm:$0xff] %v2936_v27   ;;  %v1095_v6 = vpop.f32.mrb[7].mxu1 }
 0x145   : > { %v3226_v3 = vpop.f32.mrb[6].mxu0  ;;  %v3256_v39 = vadd.f32 %v2185_v16, %v1092_v59  ;;  %2932 = vst [vmem:[%s3976_s22] sm:$0xff] %v2931_v47  }
 0x146   : > { %v2188_v31 = vpop.f32.mrb[7].mxu0  ;;  %v2341_v43 = vadd.f32 %v3255_v22, %v3966_v34  ;;  %v3257_v35 = vadd.f32 %v3226_v3, %v3150_v62 }
 0x147   : > { %v2339_v46 = vadd.f32 %v3256_v39, %v3966_v34  ;;  %v3258_v48 = vadd.f32 %v2188_v31, %v1095_v6 }
 0x148   : > { %v2342_v44 = vadd.f32 %v3257_v35, %v3966_v34  ;;  %v2373_v4 = vmax.f32 %v2341_v43, 0.0 }
 0x149   : > { %v2340_v55 = vadd.f32 %v3258_v48, %v3966_v34  ;;  %v3153_v13 = vpop.f32.mrb[8].mxu1  ;;  %v2371_v29 = vmax.f32 %v2339_v46, 0.0 }
 0x14a   : > { %v2374_v23 = vmax.f32 %v2342_v44, 0.0  ;;  %v1108_v38 = vpop.f32.mrb[9].mxu1 }
 0x14b   : > { %v2372_v45 = vmax.f32 %v2340_v55, 0.0  ;;  %v3229_v52 = vpop.f32.mrb[8].mxu0  ;;  %v3154_v2 = vpop.f32.mrb[10].mxu1 }
 0x14c   : > { %v2946_v54 = vpack.c.bf16 %v2374_v23, %v2373_v4  ;;  %v2201_v33 = vpop.f32.mrb[9].mxu0  ;;  %v3259_v0 = vadd.f32 %v3229_v52, %v3153_v13  ;;  %v1111_v63 = vpop.f32.mrb[11].mxu1 }
 0x14d   : > { %v2941_v5 = vpack.c.bf16 %v2372_v45, %v2371_v29  ;;  %v3230_v60 = vpop.f32.mrb[10].mxu0  ;;  %v3260_v61 = vadd.f32 %v2201_v33, %v1108_v38 }
 0x14e   : > { %3010 = vst [vmem:[%s3976_s22 + $0x18] sm:$0xff] %v2946_v54   ;;  %v2204_v12 = vpop.f32.mrb[11].mxu0  ;;  %v2345_v14 = vadd.f32 %v3259_v0, %v3966_v34  ;;  %v3261_v15 = vadd.f32 %v3230_v60, %v3154_v2 }
 0x14f   : > { %3009 = vst [vmem:[%s3976_s22 + $0x10] sm:$0xff] %v2941_v5   ;;  %v2343_v56 = vadd.f32 %v3260_v61, %v3966_v34  ;;  %v3262_v57 = vadd.f32 %v2204_v12, %v1111_v63 }
 0x150   : > { %v2346_v28 = vadd.f32 %v3261_v15, %v3966_v34  ;;  %v2377_v19 = vmax.f32 %v2345_v14, 0.0 }
 0x151   : > { %v2344_v37 = vadd.f32 %v3262_v57, %v3966_v34  ;;  %v3157_v58 = vpop.f32.mrb[12].mxu1  ;;  %v2375_v1 = vmax.f32 %v2343_v56, 0.0 }
 0x152   : > { %v2378_v7 = vmax.f32 %v2346_v28, 0.0  ;;  %v1124_v26 = vpop.f32.mrb[13].mxu1 }
 0x153   : > { %v2376_v25 = vmax.f32 %v2344_v37, 0.0  ;;  %v3158_v36 = vpop.f32.mrb[14].mxu1 }
 0x154   : > { %v2956_v42 = vpack.c.bf16 %v2378_v7, %v2377_v19  ;;  %v3233_v24 = vpop.f32.mrb[12].mxu0  ;;  %v1127_v10 = vpop.f32.mrb[15].mxu1 }
 0x155   : > { %v2951_v20 = vpack.c.bf16 %v2376_v25, %v2375_v1  ;;  %v2217_v21 = vpop.f32.mrb[13].mxu0  ;;  %v3263_v32 = vadd.f32 %v3233_v24, %v3157_v58 }
 0x156   : > { %3012 = vst [vmem:[%s3976_s22 + $0x28] sm:$0xff] %v2956_v42   ;;  %v3234_v51 = vpop.f32.mrb[14].mxu0  ;;  %v3264_v53 = vadd.f32 %v2217_v21, %v1124_v26 }
 0x157   : > { %3011 = vst [vmem:[%s3976_s22 + $0x20] sm:$0xff] %v2951_v20   ;;  %v2220_v40 = vpop.f32.mrb[15].mxu0  ;;  %v2349_v41 = vadd.f32 %v3263_v32, %v3966_v34  ;;  %v3265_v11 = vadd.f32 %v3234_v51, %v3158_v36 }
 0x158   : > { %v2347_v8 = vadd.f32 %v3264_v53, %v3966_v34  ;;  %v3266_v9 = vadd.f32 %v2220_v40, %v1127_v10 }
 0x159   : > { %v2350_v49 = vadd.f32 %v3265_v11, %v3966_v34  ;;  %v3161_v50 = vpop.f32.mrb[16].mxu1  ;;  %v2381_v27 = vmax.f32 %v2349_v41, 0.0 }
 0x15a   : > { %v2348_v18 = vadd.f32 %v3266_v9, %v3966_v34  ;;  %v1140_v17 = vpop.f32.mrb[17].mxu1  ;;  %v2379_v47 = vmax.f32 %v2347_v8, 0.0 }
 0x15b   : > { %v2382_v30 = vmax.f32 %v2350_v49, 0.0  ;;  %v3162_v59 = vpop.f32.mrb[18].mxu1 }
 0x15c   : > { %v2380_v16 = vmax.f32 %v2348_v18, 0.0  ;;  %v3237_v22 = vpop.f32.mrb[16].mxu0  ;;  %v1143_v62 = vpop.f32.mrb[19].mxu1 }
 0x15d   : > { %v2966_v3 = vpack.c.bf16 %v2382_v30, %v2381_v27  ;;  %v2233_v39 = vpop.f32.mrb[17].mxu0  ;;  %v3267_v6 = vadd.f32 %v3237_v22, %v3161_v50 }
 0x15e   : > { %v2961_v31 = vpack.c.bf16 %v2380_v16, %v2379_v47  ;;  %v3238_v43 = vpop.f32.mrb[18].mxu0  ;;  %v3268_v35 = vadd.f32 %v2233_v39, %v1140_v17 }
 0x15f   : > { %3014 = vst [vmem:[%s3976_s22 + $0x38] sm:$0xff] %v2966_v3   ;;  %v2236_v46 = vpop.f32.mrb[19].mxu0  ;;  %v2353_v48 = vadd.f32 %v3267_v6, %v3966_v34  ;;  %v3269_v44 = vadd.f32 %v3238_v43, %v3162_v59 }
 0x160   : > { %3013 = vst [vmem:[%s3976_s22 + $0x30] sm:$0xff] %v2961_v31   ;;  %v2351_v55 = vadd.f32 %v3268_v35, %v3966_v34  ;;  %v3270_v4 = vadd.f32 %v2236_v46, %v1143_v62 }
 0x161   : > { %v2354_v23 = vadd.f32 %v3269_v44, %v3966_v34  ;;  %v3165_v13 = vpop.f32.mrb[20].mxu1  ;;  %v2385_v52 = vmax.f32 %v2353_v48, 0.0 }
 0x162   : > { %v2352_v29 = vadd.f32 %v3270_v4, %v3966_v34  ;;  %v1156_v45 = vpop.f32.mrb[21].mxu1  ;;  %v2383_v33 = vmax.f32 %v2351_v55, 0.0 }
 0x163   : > { %v2386_v38 = vmax.f32 %v2354_v23, 0.0  ;;  %v3166_v54 = vpop.f32.mrb[22].mxu1 }
 0x164   : > { %v2384_v0 = vmax.f32 %v2352_v29, 0.0  ;;  %v1159_v2 = vpop.f32.mrb[23].mxu1 }
 0x165   : > { %v2976_v5 = vpack.c.bf16 %v2386_v38, %v2385_v52 }
 0x166   : > { %v3241_v60 = vpop.f32.mrb[20].mxu0  ;;  %v2971_v61 = vpack.c.bf16 %v2384_v0, %v2383_v33 }
 0x167   : > { %v2249_v63 = vpop.f32.mrb[21].mxu0  ;;  %v3271_v12 = vadd.f32 %v3241_v60, %v3165_v13  ;;  %3016 = vst [vmem:[%s3976_s22 + $0x48] sm:$0xff] %v2976_v5  }
 0x168   : > { %v3242_v14 = vpop.f32.mrb[22].mxu0  ;;  %v3272_v15 = vadd.f32 %v2249_v63, %v1156_v45  ;;  %3015 = vst [vmem:[%s3976_s22 + $0x40] sm:$0xff] %v2971_v61  }
 0x169   : > { %v2252_v56 = vpop.f32.mrb[23].mxu0  ;;  %v2357_v57 = vadd.f32 %v3271_v12, %v3966_v34  ;;  %v3273_v28 = vadd.f32 %v3242_v14, %v3166_v54  ;;  %v3169_v7 = vpop.f32.mrb[24].mxu1 }
 0x16a   : > { %v2355_v37 = vadd.f32 %v3272_v15, %v3966_v34  ;;  %v3274_v19 = vadd.f32 %v2252_v56, %v1159_v2  ;;  %v1172_v1 = vpop.f32.mrb[25].mxu1 }
 0x16b   : > { %v2358_v58 = vadd.f32 %v3273_v28, %v3966_v34  ;;  %v3170_v26 = vpop.f32.mrb[26].mxu1  ;;  %v2389_v42 = vmax.f32 %v2357_v57, 0.0 }
 0x16c   : > { %v2356_v25 = vadd.f32 %v3274_v19, %v3966_v34  ;;  %v1175_v20 = vpop.f32.mrb[27].mxu1  ;;  %v2387_v24 = vmax.f32 %v2355_v37, 0.0 }
 0x16d   : > { %v2390_v36 = vmax.f32 %v2358_v58, 0.0 }
 0x16e   : > { %v2388_v10 = vmax.f32 %v2356_v25, 0.0 }
 0x16f   : > { %v2986_v21 = vpack.c.bf16 %v2390_v36, %v2389_v42  ;;  %v3245_v51 = vpop.f32.mrb[24].mxu0 }
 0x170   : > { %v2981_v32 = vpack.c.bf16 %v2388_v10, %v2387_v24  ;;  %v2265_v53 = vpop.f32.mrb[25].mxu0  ;;  %v3275_v40 = vadd.f32 %v3245_v51, %v3169_v7 }
 0x171   : > { %3018 = vst [vmem:[%s3976_s22 + $0x58] sm:$0xff] %v2986_v21   ;;  %v3246_v41 = vpop.f32.mrb[26].mxu0  ;;  %v3276_v11 = vadd.f32 %v2265_v53, %v1172_v1  ;;  %v3173_v8 = vpop.f32.mrb[28].mxu1 }
 0x172   : > { %3017 = vst [vmem:[%s3976_s22 + $0x50] sm:$0xff] %v2981_v32   ;;  %v2268_v9 = vpop.f32.mrb[27].mxu0  ;;  %v2361_v49 = vadd.f32 %v3275_v40, %v3966_v34  ;;  %v3277_v50 = vadd.f32 %v3246_v41, %v3170_v26  ;;  %v1188_v18 = vpop.f32.mrb[29].mxu1 }
 0x173   : > { %v2359_v17 = vadd.f32 %v3276_v11, %v3966_v34  ;;  %v3278_v27 = vadd.f32 %v2268_v9, %v1175_v20  ;;  %v3174_v30 = vpop.f32.mrb[30].mxu1 }
 0x174   : > { %v2362_v59 = vadd.f32 %v3277_v50, %v3966_v34  ;;  %v1191_v47 = vpop.f32.mrb[31].mxu1  ;;  %v2393_v22 = vmax.f32 %v2361_v49, 0.0 }
 0x175   : > { %v2360_v16 = vadd.f32 %v3278_v27, %v3966_v34  ;;  %v2391_v3 = vmax.f32 %v2359_v17, 0.0 }
 0x176   : > { %v2394_v62 = vmax.f32 %v2362_v59, 0.0 }
 0x177   : > { %v2392_v39 = vmax.f32 %v2360_v16, 0.0  ;;  %v3249_v6 = vpop.f32.mrb[28].mxu0 }
 0x178   : > { %v2996_v31 = vpack.c.bf16 %v2394_v62, %v2393_v22  ;;  %v2281_v43 = vpop.f32.mrb[29].mxu0  ;;  %v3279_v35 = vadd.f32 %v3249_v6, %v3173_v8 }
 0x179   : > { %v2991_v46 = vpack.c.bf16 %v2392_v39, %v2391_v3  ;;  %v3250_v48 = vpop.f32.mrb[30].mxu0  ;;  %v3280_v44 = vadd.f32 %v2281_v43, %v1188_v18 }
 0x17a   : > { %3020 = vst [vmem:[%s3976_s22 + $0x68] sm:$0xff] %v2996_v31   ;;  %v2284_v55 = vpop.f32.mrb[31].mxu0  ;;  %v2365_v4 = vadd.f32 %v3279_v35, %v3966_v34  ;;  %v3281_v23 = vadd.f32 %v3250_v48, %v3174_v30 }
 0x17b   : > { %3019 = vst [vmem:[%s3976_s22 + $0x60] sm:$0xff] %v2991_v46   ;;  %v2363_v13 = vadd.f32 %v3280_v44, %v3966_v34  ;;  %v3282_v29 = vadd.f32 %v2284_v55, %v1191_v47 }
 0x17c   : > { %v2366_v45 = vadd.f32 %v3281_v23, %v3966_v34  ;;  %v2397_v38 = vmax.f32 %v2365_v4, 0.0 }
 0x17d   : > { %v2364_v52 = vadd.f32 %v3282_v29, %v3966_v34  ;;  %v2395_v33 = vmax.f32 %v2363_v13, 0.0 }
 0x17e   : > { %v2398_v54 = vmax.f32 %v2366_v45, 0.0 }
 0x17f   : > { %v2396_v0 = vmax.f32 %v2364_v52, 0.0 }
 0x180   : > { %v3006_v2 = vpack.c.bf16 %v2398_v54, %v2397_v38 }
 0x181   : > { %v3001_v5 = vpack.c.bf16 %v2396_v0, %v2395_v33 }
 0x182   : > { %3022 = vst [vmem:[%s3976_s22 + $0x78] sm:$0xff] %v3006_v2  }
 0x183   : > { %3021 = vst [vmem:[%s3976_s22 + $0x70] sm:$0xff] %v3001_v5  }
 0x184 PF: > { %s13_s12 = sadd.s32 1, %s3406_s12  }
 0x185   : > { %p10_p4 = scmp.ge.s32.totalorder %s13_s12, 4  }
 0x187   :  { %12 = sbr.rel (!%p10_p4) target bundleno = 1 (0x1), region = 66 }

// kernel: _lambda_.26
= control target key start
LH: loop header
LB: loop body
LE: loop exit
PB: predicated region body
PF: predicated region fallthrough
CT: control target
= control target key end

     0   :  { %v182_v0 = vmov 0.0   ;;  %vm183_vm0 = vmmov 0   ;;  %s237_s1 = inlined_call_operand.vmem [shape: bf16[128,128], index: 1, kind: input, shape index: {}]   ;;  %s238_s0 = inlined_call_operand.vmem [shape: bf16[8,128], index: 0, kind: input, shape index: {}]   ;;  %s239_s2 = inlined_call_operand.vmem [shape: f32[1,128], index: 2, kind: input, shape index: {}]   ;;  %s240_s3 = inlined_call_operand.vmem [shape: bf16[8,128], index: 3, kind: output, shape index: {}]  }
   0x1   :  { %152 = vmatprep.subr.bf16.mxu0 %v182_v0  ;;  %v174_v1 = vld [vmem:[%s237_s1] sm:$0xff]   ;;  %168 = vmatprep.mubr.msk.bf16.mxu0 %vm183_vm0, %v182_v0  ;;  %v175_v2 = vld [vmem:[%s237_s1 + $0x8] sm:$0xff]   ;;  %v176_v3 = vld [vmem:[%s237_s1 + $0x10] sm:$0xff]  }
   0x2   :  { %153 = vmatpush3.bf16.msra.mxu0 %v174_v1  ;;  %v177_v4 = vld [vmem:[%s237_s1 + $0x18] sm:$0xff]   ;;  %v178_v5 = vld [vmem:[%s237_s1 + $0x20] sm:$0xff]   ;;  %v179_v6 = vld [vmem:[%s237_s1 + $0x28] sm:$0xff]  }
   0x3   :  { %154 = vmatprep.subr.bf16.mxu0 %v182_v0  ;;  %v180_v7 = vld [vmem:[%s237_s1 + $0x30] sm:$0xff]   ;;  %v181_v8 = vld [vmem:[%s237_s1 + $0x38] sm:$0xff]   ;;  %v15_v9 = vld [vmem:[%s238_s0] sm:$0xf] }
   0x4   :  { %v134_v10 = vld [vmem:[%s239_s2] ss:$0 sm:$0xff] }
   0x6   :  { %155 = vmatpush3.bf16.msra.mxu0 %v175_v2 }
   0x7   :  { %156 = vmatprep.subr.bf16.mxu0 %v182_v0 }
   0xa   :  { %157 = vmatpush3.bf16.msra.mxu0 %v176_v3 }
   0xb   :  { %158 = vmatprep.subr.bf16.mxu0 %v182_v0 }
   0xe   :  { %159 = vmatpush3.bf16.msra.mxu0 %v177_v4 }
   0xf   :  { %160 = vmatprep.subr.bf16.mxu0 %v182_v0 }
  0x12   :  { %161 = vmatpush3.bf16.msra.mxu0 %v178_v5 }
  0x13   :  { %162 = vmatprep.subr.bf16.mxu0 %v182_v0 }
  0x16   :  { %163 = vmatpush3.bf16.msra.mxu0 %v179_v6 }
  0x17   :  { %164 = vmatprep.subr.bf16.mxu0 %v182_v0 }
  0x1a   :  { %165 = vmatpush3.bf16.msra.mxu0 %v180_v7 }
  0x1b   :  { %166 = vmatprep.subr.bf16.mxu0 %v182_v0 }
  0x1e   :  { %167 = vmatpush3.bf16.msra.mxu0 %v181_v8 }
  0x21   :  { %169 = vmatmul.mubr.bf16.vlgmr.msra.gmra.mrb[0].mxu0 %v15_v9 }
  0xf4   :  { %v121_v11 = vpop.f32.mrb[0].mxu0 }
  0xf5   :  { %v122_v12 = vadd.f32 %v134_v10, %v121_v11  ;;  %v170_v13 = vpop.f32.mrb[1].mxu0 }
  0xf6   :  { %v124_v14 = vpop.f32.mrb[2].mxu0 }
  0xf7   :  { %v127_v15 = vmax.f32 %v122_v12, 0.0  ;;  %v171_v16 = vpop.f32.mrb[3].mxu0 }
  0xf9   :  { %v128_v17 = vpack.c.bf16 %v127_v15, %v127_v15 }
  0xfb   :  { %129 = vst [vmem:[%s240_s3] sm:$0xf] %v128_v17 }

// kernel: _lambda_.29
= control target key start
LH: loop header
LB: loop body
LE: loop exit
PB: predicated region body
PF: predicated region fallthrough
CT: control target
= control target key end

     0   :  { %s1587_s12 = smov 0   ;;  %s1859_s0 = inlined_call_operand.vmem [shape: bf16[2,4,18,24], index: 0, kind: input, shape index: {}]   ;;  %s1860_s1 = inlined_call_operand.vmem [shape: bf16[9,24,128], index: 1, kind: input, shape index: {}]   ;;  %s1861_s2 = inlined_call_operand.vmem [shape: f32[1,128], index: 2, kind: input, shape index: {}]   ;;  %s1862_s3 = inlined_call_operand.vmem [shape: bf16[2,2,16,128], index: 3, kind: output, shape index: {}]  }
   0x1 LB: > { %s1238_s13 = sadd.s32 4294967295, %s1565_s12   ;;  %p1242_p0 = scmp.ge.s32.totalorder %s1565_s12, 1  ;;  %s1565_s12 = sphi %s1587_s12, %s13_s12  }
   0x2   : > { %p137_p1 = scmp.lt.s32.totalorder %s1565_s12, 3 }
   0x4   : > { %p138_p2 = pnand %p1242_p0, %p137_p1 }
   0x5   : > { %v1535_v0 = vld [vmem:[%s1860_s1 + $0x30] sm:$0xff] (!%p138_p2)   ;;  %vm258_vm0 = vcmask (!%p138_p2), 1043456   ;;  %p161_p3 = scmp.lt.s32.totalorder (!%p138_p2), %s1238_s13, 1  ;;  %v1537_v2 = vld [vmem:[%s1860_s1 + $0x38] ss:$0 sps:$4 sm:$0xff] (!%p138_p2)   ;;  %v1614_v5 = vld [vmem:[%s1860_s1 + $0x3c] sm:$0xff] (!%p138_p2)  }
   0x6   : > { %141 = sbr.rel (%p138_p2) target bundleno = 314 (0x13a), region = 32  ;;  %v1536_v1 = vld [vmem:[%s1860_s1 + $0xc] sm:$0xff] (!%p138_p2)   ;;  %1445 = vmatprep.subr.bf16.mxu0 (!%p138_p2), %v1535_v0  ;;  %v1538_v3 = vld [vmem:[%s1860_s1 + $0x14] ss:$0 sps:$4 sm:$0xff] (!%p138_p2)   ;;  %v662_v4 = vsel (!%p138_p2), %vm258_vm0, %v1537_v2, 0  ;;  %v1622_v7 = vld [vmem:[%s1860_s1] sm:$0xff] (!%p138_p2)  }
   0x7   : > { %1413 = vmatprep.subr.bf16.mxu1 (!%p138_p2), %v1536_v1  ;;  %1446 = vmatpush3.bf16.msra.mxu0 (!%p138_p2), %v1535_v0  ;;  %v260_v6 = vsel (!%p138_p2), %vm258_vm0, %v1538_v3, 0  ;;  %vm181_vm1 = vsmask.f32 (!%p138_p2), 3328  ;;  %vm182_vm2 = vsmask.f32 (!%p138_p2), 7440  ;;  %vm251_vm4 = vcmask (!%p138_p2), 195584  }
   0x8   : > { %1414 = vmatpush3.bf16.msra.mxu1 (!%p138_p2), %v1536_v1  ;;  %1521 = vmatprep.subr.msk.bf16.mxu0 (!%p138_p2), %vm258_vm0, %v1537_v2  ;;  %vm1660_vm3 = vmor (!%p138_p2), %vm181_vm1, %vm182_vm2  ;;  %vm394_vm5 = vcmask (!%p138_p2), 1042432   ;;  %vm395_vm6 = vcmask (!%p138_p2), 1046532  }
   0x9   : > { %1517 = vmatprep.subr.msk.bf16.mxu1 (!%p138_p2), %vm258_vm0, %v1538_v3  ;;  %vm1707_vm7 = vmor (!%p138_p2), %vm394_vm5, %vm395_vm6 }
   0xb   : > { %1448 = vmatpush3.bf16.msra.mxu0 (!%p138_p2), %v662_v4 }
   0xc   : > { %1416 = vmatpush3.bf16.msra.mxu1 (!%p138_p2), %v260_v6  ;;  %1453 = vmatprep.subr.bf16.mxu0 (!%p138_p2), %v1614_v5 }
   0xd   : > { %s1868_s13 = smov (!%p161_p3, %s1238_s13), 1  ;;  %1421 = vmatprep.subr.bf16.mxu1 %v1622_v7 }
   0xe   : > { %s1526_s24 = smul.u32 48, %s1868_s13  ;;  %s1361_s4 = sshll.u32 %s1868_s13, 4 }
   0xf   : > { %s170_s7 = scalar_lea.vmem %s1862_s3, %s1361_s4 }
  0x10   : > { %s1627_s29 = scalar_lea.vmem %s1859_s0, %s1526_s24 }
  0x11   : > { %v1630_v8 = vld [vmem:[%s1627_s29] sm:$0xf]  ;;  %v1633_v9 = vld [vmem:[%s1627_s29 + $0x4] sm:$0xf]  ;;  %v1636_v10 = vld [vmem:[%s1627_s29 + $0x8] sm:$0x1] }
  0x12   : > { %v185_v11 = vshrl.u32 %v1630_v8, 16  ;;  %v188_v12 = vshll.u32 %v1630_v8, 16  ;;  %v194_v13 = vshll.u32 %v1633_v9, 16  ;;  %v198_v14 = vshrl.u32 %v1633_v9, 16  ;;  %v1285_v15 = vld [vmem:[%s1627_s29 + $0xc] sm:$0xf] }
  0x13   : > { %v204_v16 = vshll.u32 %v1636_v10, 16  ;;  %v1647_v17 = vld [vmem:[%s1627_s29 + $0x10] sm:$0xf]  ;;  %v1650_v18 = vld [vmem:[%s1627_s29 + $0x14] sm:$0x1]  ;;  %v589_v24 = vshrl.u32 %v1285_v15, 16 }
  0x14   : > { %v187_v19 = vrot.slane %v185_v11, 4  ;;  %v190_v20 = vrot.slane %v188_v12, 5  ;;  %v196_v21 = vrot.slane %v194_v13, 5  ;;  %v200_v22 = vrot.slane %v198_v14, 4  ;;  %v1656_v31 = vld [vmem:[%s1627_s29 + $0xc] sm:$0xf] }
  0x15   : > { %v206_v23 = vrot.slane %v204_v16, 5  ;;  %v592_v25 = vshll.u32 %v1285_v15, 16  ;;  %v598_v26 = vshll.u32 %v1647_v17, 16  ;;  %v602_v29 = vshrl.u32 %v1647_v17, 16  ;;  %v1665_v36 = vld [vmem:[%s1627_s29 + $0x10] sm:$0xf] }
  0x16   : > { %v191_v27 = vor.u32 %v190_v20, %v187_v19  ;;  %v201_v28 = vor.u32 %v200_v22, %v196_v21  ;;  %v608_v30 = vshll.u32 %v1650_v18, 16  ;;  %v591_v33 = vrot.slane %v589_v24, 4  ;;  %v1668_v40 = vld [vmem:[%s1627_s29 + $0x14] sm:$0x1]  ;;  %v1288_v45 = vld [vmem:[%s1627_s29 + $0x18] sm:$0xf] }
  0x17   : > { %v594_v34 = vrot.slane %v592_v25, 5  ;;  %v600_v35 = vrot.slane %v598_v26, 5  ;;  %v604_v39 = vrot.slane %v602_v29, 4  ;;  %v209_v43 = vshrl.u32 %v1656_v31, 16  ;;  %v1679_v50 = vld [vmem:[%s1627_s29 + $0x1c] sm:$0xf] }
  0x18   : > { %v192_v37 = vrot.slane %v191_v27, 4  ;;  %v202_v38 = vrot.slane %v201_v28, 4  ;;  %v610_v42 = vrot.slane %v608_v30, 5  ;;  %v212_v44 = vshll.u32 %v1656_v31, 16  ;;  %v1682_v55 = vld [vmem:[%s1627_s29 + $0x20] sm:$0x1] }
  0x19   : > { %v595_v41 = vor.u32 %v594_v34, %v591_v33  ;;  %v605_v48 = vor.u32 %v604_v39, %v600_v35  ;;  %v218_v49 = vshll.u32 %v1665_v36, 16  ;;  %v211_v53 = vrot.slane %v209_v43, 4  ;;  %v1542_v25 = vld [vmem:[%s1860_s1 + $0x8] ss:$0 sps:$4 sm:$0xff]  }
  0x1a   : > { %v197_v46 = vsel %vm1660_vm3, %v192_v37, %v196_v21  ;;  %v207_v47 = vsel %vm1660_vm3, %v202_v38, %v206_v23  ;;  %v214_v54 = vrot.slane %v212_v44, 5  ;;  %v222_v58 = vshrl.u32 %v1665_v36, 16  ;;  %v388_v37 = vld [vmem:[%s1627_s29] sm:$0xe] }
  0x1b   : > { %v1249_v51 = vcombine.low %v197_v46, %v207_v47  ;;  %v596_v52 = vrot.slane %v595_v41, 4  ;;  %v606_v56 = vrot.slane %v605_v48, 4  ;;  %v220_v57 = vrot.slane %v218_v49, 5 }
  0x1c   : > { %v228_v59 = vshll.u32 %v1668_v40, 16  ;;  %v727_v61 = vrot.slane %v1647_v17, 5  ;;  %v215_v62 = vor.u32 %v214_v54, %v211_v53  ;;  %v613_v63 = vshrl.u32 %v1288_v45, 16  ;;  %v1300_v17 = vld [vmem:[%s1627_s29 + $0xc] sm:$0xe] }
  0x1d   : > { %1417 = vmatprep.mubr.msk.bf16.mxu1 %vm251_vm4, %v1249_v51  ;;  %v601_v60 = vsel %vm1660_vm3, %v596_v52, %v600_v35  ;;  %v611_v0 = vsel %vm1660_vm3, %v606_v56, %v610_v42  ;;  %v224_v1 = vrot.slane %v222_v58, 4  ;;  %v616_v3 = vshll.u32 %v1288_v45, 16  ;;  %v1541_v42 = vld [vmem:[%s1860_s1 + $0x44] ss:$0 sps:$4 sm:$0xff]   ;;  %v1301_v51 = vld [vmem:[%s1627_s29 + $0x18] sm:$0xe] }
  0x1e   : > { %v230_v2 = vrot.slane %v228_v59, 5  ;;  %v1294_v4 = vcombine.low %v601_v60, %v611_v0  ;;  %v216_v6 = vrot.slane %v215_v62, 4  ;;  %v615_v11 = vrot.slane %v613_v63, 4  ;;  %v1738_v53 = vld [vmem:[%s1627_s29 + $0x1c] sm:$0xf]  ;;  %v1544_v58 = vld [vmem:[%s1860_s1 + $0x48] sm:$0xff]  }
  0x1f   : > { %v622_v12 = vshll.u32 %v1679_v50, 16  ;;  %v225_v13 = vor.u32 %v224_v1, %v220_v57  ;;  %v618_v14 = vrot.slane %v616_v3, 5  ;;  %v626_v15 = vshrl.u32 %v1679_v50, 16 }
  0x20   : > { %v632_v16 = vshll.u32 %v1682_v55, 16  ;;  %1449 = vmatprep.mubr.msk.bf16.mxu0 %vm251_vm4, %v1294_v4  ;;  %v730_v19 = vrot.slane %v1650_v18, 5  ;;  %v221_v21 = vsel %vm1660_vm3, %v216_v6, %v220_v57  ;;  %v1255_v26 = vcombine.low %v1630_v8, %v1633_v9  ;;  %v389_v4 = vld [vmem:[%s1627_s29 + $0xc] sm:$0xe]  ;;  %v1548_v6 = vld [vmem:[%s1860_s1 + $0x20] ss:$0 sps:$4 sm:$0xff]  }
  0x21   : > { %v624_v20 = vrot.slane %v622_v12, 5  ;;  %v226_v22 = vrot.slane %v225_v13, 4  ;;  %v619_v23 = vor.u32 %v618_v14, %v615_v11  ;;  %v628_v24 = vrot.slane %v626_v15, 4 }
  0x22   : > { %v1302_v27 = vrot.slane %v1300_v17, 9  ;;  %v729_v28 = vrot.slane %v727_v61, 4  ;;  %v634_v33 = vrot.slane %v632_v16, 5  ;;  %v399_v43 = vrot.slane %v1633_v9, 5  ;;  %v1768_v17 = vld [vmem:[%s1627_s29 + $0x20] sm:$0x1] }
  0x23   : > { %v231_v18 = vsel %vm1660_vm3, %v226_v22, %v230_v2  ;;  %v620_v29 = vrot.slane %v619_v23, 4  ;;  %v629_v30 = vor.u32 %v628_v24, %v624_v20  ;;  %v402_v44 = vrot.slane %v1636_v10, 5  ;;  %v1546_v10 = vld [vmem:[%s1860_s1 + $0x18] sm:$0xff]   ;;  %v1779_v22 = vld [vmem:[%s1627_s29 + $0x28] sm:$0xf] }
  0x24   : > { %v1250_v35 = vcombine.low %v221_v21, %v231_v18  ;;  %v728_v39 = vsel %vm1707_vm7, %v1302_v27, %v727_v61  ;;  %v731_v41 = vsel %vm1707_vm7, %v729_v28, %v730_v19  ;;  %v337_v46 = vsel %vm258_vm0, %v1542_v25, 0  ;;  %v1547_v19 = vld [vmem:[%s1860_s1 + $0x50] ss:$0 sps:$4 sm:$0xff]   ;;  %v1549_v21 = vld [vmem:[%s1627_s29 + $0x18] sm:$0xff]   ;;  %v1552_v23 = vld [vmem:[%s1860_s1 + $0x24] sm:$0xff]  }
  0x25   : > { %v625_v38 = vsel %vm1660_vm3, %v620_v29, %v624_v20  ;;  %v630_v8 = vrot.slane %v629_v30, 4  ;;  %v734_v47 = vrot.slane %v1679_v50, 5  ;;  %v1307_v49 = vcombine.low %v728_v39, %v731_v41 }
  0x26   : > { %1418 = vmatmul.mubr.msk.bf16.vlgmr.msra.gmra.mrb[0].mxu1 %vm251_vm4, %v1250_v35  ;;  %v1261_v9 = vrot.slane %v388_v37, 9  ;;  %v401_v52 = vrot.slane %v399_v43, 4  ;;  %v737_v54 = vrot.slane %v1682_v55, 5  ;;  %v765_v50 = vsel %vm258_vm0, %v1541_v42, 0  ;;  %v1550_v37 = vld [vmem:[%s1860_s1 + $0x54] sm:$0xff]  }
  0x27   : > { %v635_v45 = vsel %vm1660_vm3, %v630_v8, %v634_v33  ;;  %1422 = vmatpush3.bf16.msra.mxu1 %v1622_v7  ;;  %1425 = vmatprep.mubr.msk.bf16.mxu1 %vm251_vm4, %v1255_v26  ;;  %v1326_v7 = vld [vmem:[%s1627_s29 + $0x18] sm:$0xf]  ;;  %v1303_v56 = vrot.slane %v1301_v51, 9  ;;  %v736_v57 = vrot.slane %v734_v47, 4  ;;  %v926_v61 = vshll.u32 %v1738_v53, 16 }
  0x28   : > { %v1295_v48 = vcombine.low %v625_v38, %v635_v45  ;;  %1518 = vmatprep.subr.msk.bf16.mxu1 %vm258_vm0, %v1542_v25  ;;  %v400_v59 = vsel %vm1707_vm7, %v1261_v9, %v399_v43  ;;  %v917_v55 = vshrl.u32 %v1326_v7, 16  ;;  %v920_v60 = vshll.u32 %v1326_v7, 16  ;;  %v1551_v9 = vld [vmem:[%s1627_s29 + $0x24] sm:$0xff]  }
  0x29   : > { %v930_v62 = vshrl.u32 %v1738_v53, 16  ;;  %v1256_v63 = vcombine.low %v1656_v31, %v1665_v36  ;;  %v406_v0 = vrot.slane %v1665_v36, 5  ;;  %v735_v1 = vsel %vm1707_vm7, %v1303_v56, %v734_v47  ;;  %v1554_v47 = vld [vmem:[%s1860_s1 + $0x2c] ss:$0 sps:$4 sm:$0xff]  }
  0x2a   : > { %1450 = vmatmul.mubr.msk.bf16.vlgmr.msra.gmra.mrb[0].mxu0 %vm251_vm4, %v1295_v48  ;;  %v738_v2 = vsel %vm1707_vm7, %v736_v57, %v737_v54  ;;  %v919_v11 = vrot.slane %v917_v55, 4  ;;  %v922_v31 = vrot.slane %v920_v60, 5  ;;  %v928_v36 = vrot.slane %v926_v61, 5  ;;  %v1331_v48 = vld [vmem:[%s1627_s29 + $0x2c] sm:$0x1]  ;;  %v1556_v61 = vld [vmem:[%s1860_s1 + $0x60] sm:$0xff]  }
  0x2b   : > { %1454 = vmatpush3.bf16.msra.mxu0 %v1614_v5  ;;  %1424 = vmatpush3.bf16.msra.mxu1 %v337_v46  ;;  %v403_v5 = vsel %vm1707_vm7, %v401_v52, %v402_v44  ;;  %v932_v12 = vrot.slane %v930_v62, 4  ;;  %v409_v13 = vrot.slane %v1668_v40, 5  ;;  %v1308_v14 = vcombine.low %v735_v1, %v738_v2  ;;  %v1329_v40 = vld [vmem:[%s1627_s29 + $0x24] sm:$0xf]  ;;  %v1553_v54 = vld [vmem:[%s1860_s1 + $0x5c] ss:$0 sps:$4 sm:$0xff]  }
  0x2c   : > { %1522 = vmatprep.subr.msk.bf16.mxu0 %vm258_vm0, %v1541_v42  ;;  %1457 = vmatprep.mubr.msk.bf16.mxu0 %vm251_vm4, %v1307_v49  ;;  %v1266_v3 = vcombine.low %v400_v59, %v403_v5  ;;  %v1262_v15 = vrot.slane %v389_v4, 9  ;;  %v408_v16 = vrot.slane %v406_v0, 4  ;;  %v437_v20 = vsel %vm258_vm0, %v1548_v6, 0  ;;  %v1555_v42 = vld [vmem:[%s1627_s29 + $0xc] sm:$0xff]  }
  0x2d   : > { %1429 = vmatprep.subr.bf16.mxu1 %v1546_v10  ;;  %v923_v24 = vor.u32 %v922_v31, %v919_v11  ;;  %v933_v25 = vor.u32 %v932_v12, %v928_v36  ;;  %v936_v26 = vshll.u32 %v1768_v17, 16  ;;  %v941_v18 = vshrl.u32 %v1329_v40, 16  ;;  %v1342_v12 = vld [vmem:[%s1627_s29 + $0x24] sm:$0xe] }
  0x2e   : > { %v407_v27 = vsel %vm1707_vm7, %v1262_v15, %v406_v0  ;;  %v410_v28 = vsel %vm1707_vm7, %v408_v16, %v409_v13  ;;  %v944_v29 = vshll.u32 %v1329_v40, 16  ;;  %v950_v30 = vshll.u32 %v1779_v22, 16  ;;  %v1557_v0 = vld [vmem:[%s1627_s29 + $0x18] sm:$0xff]  }
  0x2f   : > { %1456 = vmatpush3.bf16.msra.mxu0 %v765_v50  ;;  %v954_v33 = vshrl.u32 %v1779_v22, 16  ;;  %v855_v35 = vsel %vm258_vm0, %v1547_v19, 0  ;;  %v924_v38 = vrot.slane %v923_v24, 4  ;;  %v934_v8 = vrot.slane %v933_v25, 4  ;;  %v1354_v24 = vld [vmem:[%s1861_s2] ss:$0 sm:$0xff] }
  0x30   : > { %1461 = vmatprep.subr.bf16.mxu0 %v1544_v58  ;;  %v938_v39 = vrot.slane %v936_v26, 5  ;;  %v1267_v41 = vcombine.low %v407_v27, %v410_v28  ;;  %v943_v43 = vrot.slane %v941_v18, 4  ;;  %v946_v44 = vrot.slane %v944_v29, 5 }
  0x31   : > { %v952_v45 = vrot.slane %v950_v30, 5  ;;  %v956_v46 = vrot.slane %v954_v33, 4  ;;  %v929_v49 = vsel %vm1660_vm3, %v924_v38, %v928_v36  ;;  %v960_v7 = vshll.u32 %v1331_v48, 16  ;;  %v1558_v36 = vld [vmem:[%s1860_s1 + $0x68] ss:$0 sps:$4 sm:$0xff]  }
  0x32   : > { %1426 = vmatmul.mubr.msk.bf16.vlgmr.msra.gmra.mrb[0].mxu1 %vm251_vm4, %v1256_v63  ;;  %v939_v51 = vsel %vm1660_vm3, %v934_v8, %v938_v39  ;;  %v947_v52 = vor.u32 %v946_v44, %v943_v43  ;;  %v527_v50 = vsel %vm258_vm0, %v1554_v47, 0  ;;  %v1055_v57 = vrot.slane %v1738_v53, 5 }
  0x33   : > { %1430 = vmatpush3.bf16.msra.mxu1 %v1546_v10  ;;  %1433 = vmatprep.mubr.msk.bf16.mxu1 %vm251_vm4, %v1266_v3  ;;  %v957_v10 = vor.u32 %v956_v46, %v952_v45  ;;  %v1335_v56 = vcombine.low %v929_v49, %v939_v51  ;;  %v962_v55 = vrot.slane %v960_v7, 5  ;;  %v990_v60 = vsel %vm258_vm0, %v1553_v54, 0 }
  0x34   : > { %1519 = vmatprep.subr.msk.bf16.mxu1 %vm258_vm0, %v1548_v6  ;;  %v948_v59 = vrot.slane %v947_v52, 4  ;;  %v1057_v62 = vrot.slane %v1055_v57, 4  ;;  %v1058_v63 = vrot.slane %v1768_v17, 5  ;;  %v1062_v31 = vrot.slane %v1779_v22, 5 }
  0x35   : > { %v958_v5 = vrot.slane %v957_v10, 4  ;;  %v1344_v32 = vrot.slane %v1342_v12, 9  ;;  %v1093_v15 = vsel %vm258_vm0, %v1558_v36, 0 }
  0x36   : > { %1458 = vmatmul.mubr.msk.bf16.vlgmr.msra.gmra.mrb[0].mxu0 %vm251_vm4, %v1308_v14  ;;  %v953_v1 = vsel %vm1660_vm3, %v948_v59, %v952_v45  ;;  %v1059_v4 = vsel %vm1707_vm7, %v1057_v62, %v1058_v63  ;;  %v1064_v13 = vrot.slane %v1062_v31, 4  ;;  %v1065_v14 = vrot.slane %v1331_v48, 5 }
  0x37   : > { %1462 = vmatpush3.bf16.msra.mxu0 %v1544_v58  ;;  %1432 = vmatpush3.bf16.msra.mxu1 %v437_v20  ;;  %v1341_v58 = vld [vmem:[%s1627_s29 + $0x18] sm:$0xe]  ;;  %v963_v2 = vsel %vm1660_vm3, %v958_v5, %v962_v55  ;;  %v1063_v16 = vsel %vm1707_vm7, %v1344_v32, %v1062_v31 }
  0x38   : > { %1523 = vmatprep.subr.msk.bf16.mxu0 %vm258_vm0, %v1547_v19  ;;  %1465 = vmatprep.mubr.msk.bf16.mxu0 %vm251_vm4, %v1549_v21  ;;  %v1343_v53 = vrot.slane %v1341_v58, 9  ;;  %v1336_v6 = vcombine.low %v953_v1, %v963_v2  ;;  %v1066_v17 = vsel %vm1707_vm7, %v1064_v13, %v1065_v14 }
  0x39   : > { %1437 = vmatprep.subr.bf16.mxu1 %v1552_v23  ;;  %v1349_v19 = vcombine.low %v1063_v16, %v1066_v17 }
  0x3a   : > { %v1056_v3 = vsel %vm1707_vm7, %v1343_v53, %v1055_v57 }
  0x3b   : > { %1464 = vmatpush3.bf16.msra.mxu0 %v855_v35  ;;  %v1348_v11 = vcombine.low %v1056_v3, %v1059_v4 }
  0x3c   : > { %1469 = vmatprep.subr.bf16.mxu0 %v1550_v37 }
  0x3e   : > { %1434 = vmatmul.mubr.msk.bf16.vlgmr.msra.gmra.mrb[0].mxu1 %vm251_vm4, %v1267_v41 }
  0x3f   : > { %1438 = vmatpush3.bf16.msra.mxu1 %v1552_v23  ;;  %1441 = vmatprep.mubr.msk.bf16.mxu1 %vm251_vm4, %v1555_v42 }
  0x40   : > { %1520 = vmatprep.subr.msk.bf16.mxu1 %vm258_vm0, %v1554_v47 }
  0x42   : > { %1466 = vmatmul.mubr.msk.bf16.vlgmr.msra.gmra.mrb[0].mxu0 %vm251_vm4, %v1551_v9 }
  0x43   : > { %1470 = vmatpush3.bf16.msra.mxu0 %v1550_v37  ;;  %1440 = vmatpush3.bf16.msra.mxu1 %v527_v50 }
  0x44   : > { %1524 = vmatprep.subr.msk.bf16.mxu0 %vm258_vm0, %v1553_v54  ;;  %1473 = vmatprep.mubr.msk.bf16.mxu0 %vm251_vm4, %v1335_v56 }
  0x47   : > { %1472 = vmatpush3.bf16.msra.mxu0 %v990_v60 }
  0x48   : > { %1477 = vmatprep.subr.bf16.mxu0 %v1556_v61 }
  0x4a   : > { %1442 = vmatmul.mubr.msk.bf16.vlgmr.msra.gmra.mrb[0].mxu1 %vm251_vm4, %v1557_v0 }
  0x4e   : > { %1474 = vmatmul.mubr.msk.bf16.vlgmr.msra.gmra.mrb[0].mxu0 %vm251_vm4, %v1336_v6 }
  0x4f   : > { %1478 = vmatpush3.bf16.msra.mxu0 %v1556_v61  ;;  %1481 = vmatprep.mubr.msk.bf16.mxu0 %vm251_vm4, %v1348_v11 }
  0x50   : > { %1525 = vmatprep.subr.msk.bf16.mxu0 %vm258_vm0, %v1558_v36 }
  0x53   : > { %1480 = vmatpush3.bf16.msra.mxu0 %v1093_v15 }
  0x5a   : > { %1482 = vmatmul.mubr.msk.bf16.vlgmr.msra.gmra.mrb[0].mxu0 %vm251_vm4, %v1349_v19 }
 0x11d   : > { %v1443_v20 = vpop.f32.mrb[0].mxu1 }
 0x11e   : > { %v563_v21 = vpop.f32.mrb[1].mxu1 }
 0x11f   : > { %v1444_v40 = vpop.f32.mrb[2].mxu1 }
 0x120   : > { %v566_v22 = vpop.f32.mrb[3].mxu1 }
 0x12d   : > { %v1483_v23 = vpop.f32.mrb[0].mxu0 }
 0x12e   : > { %v1485_v25 = vadd.f32 %v1483_v23, %v1443_v20  ;;  %v1129_v26 = vpop.f32.mrb[1].mxu0 }
 0x12f   : > { %v1486_v27 = vadd.f32 %v1129_v26, %v563_v21  ;;  %v1484_v28 = vpop.f32.mrb[2].mxu0 }
 0x130   : > { %v1157_v18 = vadd.f32 %v1485_v25, %v1354_v24  ;;  %v1487_v34 = vadd.f32 %v1484_v28, %v1444_v40  ;;  %v1132_v29 = vpop.f32.mrb[3].mxu0 }
 0x131   : > { %v1155_v30 = vadd.f32 %v1486_v27, %v1354_v24  ;;  %v1488_v33 = vadd.f32 %v1132_v29, %v566_v22 }
 0x132   : > { %v1158_v35 = vadd.f32 %v1487_v34, %v1354_v24  ;;  %v1161_v38 = vmax.f32 %v1157_v18, 0.0 }
 0x133   : > { %v1156_v37 = vadd.f32 %v1488_v33, %v1354_v24  ;;  %v1159_v39 = vmax.f32 %v1155_v30, 0.0 }
 0x134   : > { %v1162_v8 = vmax.f32 %v1158_v35, 0.0 }
 0x135   : > { %v1160_v41 = vmax.f32 %v1156_v37, 0.0 }
 0x136   : > { %v1374_v42 = vpack.c.bf16 %v1162_v8, %v1161_v38 }
 0x137   : > { %v1369_v43 = vpack.c.bf16 %v1160_v41, %v1159_v39 }
 0x138   : > { %1376 = vst [vmem:[%s170_s7 + $0x8] sm:$0xff] %v1374_v42  }
 0x139   : > { %1370 = vst [vmem:[%s170_s7] sm:$0xff] %v1369_v43  }
 0x13a PF: > { %s13_s12 = sadd.s32 1, %s1565_s12  }
 0x13b   : > { %p10_p4 = scmp.ge.s32.totalorder %s13_s12, 4  }
 0x13d   :  { %12 = sbr.rel (!%p10_p4) target bundleno = 1 (0x1), region = 72 }

// kernel: _lambda_.25
= control target key start
LH: loop header
LB: loop body
LE: loop exit
PB: predicated region body
PF: predicated region fallthrough
CT: control target
= control target key end

     0   :  { %s3370_s12 = smov 0   ;;  %s4330_s0 = inlined_call_operand.vmem [shape: bf16[2,6,18,192], index: 0, kind: input, shape index: {}]   ;;  %s4331_s1 = inlined_call_operand.vmem [shape: bf16[9,192,128], index: 1, kind: input, shape index: {}]   ;;  %s4332_s2 = inlined_call_operand.vmem [shape: f32[1,128], index: 2, kind: input, shape index: {}]   ;;  %s4333_s3 = inlined_call_operand.vmem [shape: bf16[2,4,16,128], index: 3, kind: output, shape index: {}]  }
   0x1 LB: > { %s2664_s13 = sadd.s32 4294967295, %s3347_s12   ;;  %p2668_p0 = scmp.ge.s32.totalorder %s3347_s12, 1  ;;  %s3347_s12 = sphi %s3370_s12, %s13_s12  }
   0x2   : > { %p137_p1 = scmp.lt.s32.totalorder %s3347_s12, 3 }
   0x4   : > { %p138_p2 = pnand %p2668_p0, %p137_p1 }
   0x5   : > { %v3217_v0 = vld [vmem:[%s4331_s1 + $0x60] sm:$0xff] (!%p138_p2)   ;;  %v3349_v1 = vmov (!%p138_p2), 0   ;;  %v3219_v3 = vld [vmem:[%s4331_s1 + $0x68] sm:$0xff] (!%p138_p2)   ;;  %v3221_v5 = vld [vmem:[%s4331_s1 + $0x70] sm:$0xff] (!%p138_p2)   ;;  %p161_p3 = scmp.lt.s32.totalorder (!%p138_p2), %s2664_s13, 1  ;;  %vm432_vm0 = vcmask (!%p138_p2), 523264  }
   0x6   : > { %141 = sbr.rel (%p138_p2) target bundleno = 478 (0x1de), region = 32  ;;  %445 = vmatprep.subr.bf16.mxu0 (!%p138_p2), %v3349_v1  ;;  %630 = vmatprep.subr.bf16.mxu1 (!%p138_p2), %v3349_v1  ;;  %v3218_v2 = vld [vmem:[%s4331_s1] sm:$0xff] (!%p138_p2)   ;;  %v3220_v4 = vld [vmem:[%s4331_s1 + $0x8] sm:$0xff] (!%p138_p2)   ;;  %v3222_v6 = vld [vmem:[%s4331_s1 + $0x10] sm:$0xff] (!%p138_p2)   ;;  %vm208_vm1 = vsmask.f32 (!%p138_p2), 3328 }
   0x7   : > { %446 = vmatpush1.bf16.msra.mxu0 (!%p138_p2), %v3217_v0  ;;  %631 = vmatpush1.bf16.msra.mxu1 (!%p138_p2), %v3218_v2  ;;  %v3223_v7 = vld [vmem:[%s4331_s1 + $0x78] sm:$0xff] (!%p138_p2)   ;;  %v3225_v9 = vld [vmem:[%s4331_s1 + $0x80] sm:$0xff] (!%p138_p2)   ;;  %v3227_v11 = vld [vmem:[%s4331_s1 + $0x88] sm:$0xff] (!%p138_p2)   ;;  %vm209_vm2 = vsmask.f32 (!%p138_p2), 7440  ;;  %vm707_vm4 = vcmask (!%p138_p2), 1042432  }
   0x8   : > { %447 = vmatprep.subr.bf16.mxu0 (!%p138_p2), %v3349_v1  ;;  %632 = vmatprep.subr.bf16.mxu1 (!%p138_p2), %v3349_v1  ;;  %v3224_v8 = vld [vmem:[%s4331_s1 + $0x18] sm:$0xff] (!%p138_p2)   ;;  %v3226_v10 = vld [vmem:[%s4331_s1 + $0x20] sm:$0xff] (!%p138_p2)   ;;  %v3228_v12 = vld [vmem:[%s4331_s1 + $0x28] sm:$0xff] (!%p138_p2)   ;;  %vm708_vm5 = vcmask (!%p138_p2), 1046532  }
   0x9   : > { %v3229_v13 = vld [vmem:[%s4331_s1 + $0x90] sm:$0xff] (!%p138_p2)   ;;  %v3231_v18 = vld [vmem:[%s4331_s1 + $0x98] sm:$0xff] (!%p138_p2)   ;;  %v3233_v29 = vld [vmem:[%s4331_s1 + $0xa0] sm:$0xff] (!%p138_p2)  }
   0xa   : > { %v3230_v14 = vld [vmem:[%s4331_s1 + $0x30] sm:$0xff] (!%p138_p2)   ;;  %v3232_v25 = vld [vmem:[%s4331_s1 + $0x38] sm:$0xff] (!%p138_p2)   ;;  %vm3472_vm3 = vmor (!%p138_p2), %vm208_vm1, %vm209_vm2 }
   0xb   : > { %448 = vmatpush1.bf16.msra.mxu0 (!%p138_p2), %v3219_v3  ;;  %633 = vmatpush1.bf16.msra.mxu1 (!%p138_p2), %v3220_v4  ;;  %v3234_v35 = vld [vmem:[%s4331_s1 + $0x40] sm:$0xff] (!%p138_p2)   ;;  %v3235_v39 = vld [vmem:[%s4331_s1 + $0xa8] sm:$0xff] (!%p138_p2)   ;;  %v3237_v44 = vld [vmem:[%s4331_s1 + $0xb0] sm:$0xff] (!%p138_p2)  }
   0xc   : > { %449 = vmatprep.subr.bf16.mxu0 (!%p138_p2), %v3349_v1  ;;  %634 = vmatprep.subr.bf16.mxu1 (!%p138_p2), %v3349_v1  ;;  %v3236_v41 = vld [vmem:[%s4331_s1 + $0x48] sm:$0xff] (!%p138_p2)   ;;  %v3238_v49 = vld [vmem:[%s4331_s1 + $0x50] sm:$0xff] (!%p138_p2)   ;;  %v3239_v55 = vld [vmem:[%s4331_s1 + $0xb8] sm:$0xff] (!%p138_p2)  }
   0xd   : > { %s4339_s13 = smov (!%p161_p3, %s2664_s13), 1  ;;  %v3240_v59 = vld [vmem:[%s4331_s1 + $0x58] sm:$0xff]   ;;  %vm3662_vm6 = vmor %vm707_vm4, %vm708_vm5  ;;  %v3332_v32 = vld [vmem:[%s4331_s1 + $0x328] sm:$0xff]  }
   0xe   : > { %s3207_s7 = smul.u32 144, %s4339_s13  ;;  %s3151_s18 = sshll.u32 %s4339_s13, 5 }
   0xf   : > { %450 = vmatpush1.bf16.msra.mxu0 %v3221_v5  ;;  %635 = vmatpush1.bf16.msra.mxu1 %v3222_v6  ;;  %s170_s21 = scalar_lea.vmem %s4333_s3, %s3151_s18 }
  0x10   : > { %451 = vmatprep.subr.bf16.mxu0 %v3349_v1  ;;  %636 = vmatprep.subr.bf16.mxu1 %v3349_v1  ;;  %s3432_s16 = scalar_lea.vmem %s4330_s0, %s3207_s7 }
  0x11   : > { %v3443_v15 = vld [vmem:[%s3432_s16] sm:$0xff]  ;;  %v3446_v16 = vld [vmem:[%s3432_s16 + $0x8] sm:$0xff]  ;;  %v3449_v17 = vld [vmem:[%s3432_s16 + $0x10] sm:$0x11] }
  0x12   : > { %v212_v19 = vshrl.u32 %v3443_v15, 16  ;;  %v215_v20 = vshll.u32 %v3443_v15, 16  ;;  %v221_v21 = vshll.u32 %v3446_v16, 16  ;;  %v225_v22 = vshrl.u32 %v3446_v16, 16  ;;  %v3497_v43 = vld [vmem:[%s3432_s16 + $0x18] sm:$0xff]  ;;  %v3504_v45 = vld [vmem:[%s3432_s16 + $0x20] sm:$0xff] }
  0x13   : > { %452 = vmatpush1.bf16.msra.mxu0 %v3223_v7  ;;  %637 = vmatpush1.bf16.msra.mxu1 %v3224_v8  ;;  %v231_v23 = vshll.u32 %v3449_v17, 16  ;;  %v2721_v24 = vcombine.high %v3443_v15, %v3446_v16  ;;  %v3507_v46 = vld [vmem:[%s3432_s16 + $0x28] sm:$0x11]  ;;  %v236_v47 = vshrl.u32 %v3497_v43, 16  ;;  %v239_v48 = vshll.u32 %v3497_v43, 16  ;;  %v3526_v62 = vld [vmem:[%s3432_s16 + $0x30] sm:$0xff] }
  0x14   : > { %453 = vmatprep.subr.bf16.mxu0 %v3349_v1  ;;  %638 = vmatprep.subr.bf16.mxu1 %v3349_v1  ;;  %v214_v26 = vrot.slane %v212_v19, 4  ;;  %v217_v27 = vrot.slane %v215_v20, 5  ;;  %v223_v28 = vrot.slane %v221_v21, 5  ;;  %v227_v30 = vrot.slane %v225_v22, 4  ;;  %v3530_v0 = vld [vmem:[%s3432_s16 + $0x38] sm:$0xff]  ;;  %v3245_v22 = vld [vmem:[%s4331_s1 + $0xc8] sm:$0xff]  }
  0x15   : > { %2740 = vmatprep.mubr.msk.bf16.mxu1 %vm432_vm0, %v2721_v24  ;;  %v233_v34 = vrot.slane %v231_v23, 5  ;;  %v245_v50 = vshll.u32 %v3504_v45, 16  ;;  %v249_v51 = vshrl.u32 %v3504_v45, 16  ;;  %v255_v52 = vshll.u32 %v3507_v46, 16  ;;  %v3533_v2 = vld [vmem:[%s3432_s16 + $0x40] sm:$0x11] }
  0x16   : > { %v218_v31 = vor.u32 %v217_v27, %v214_v26  ;;  %v228_v33 = vor.u32 %v227_v30, %v223_v28  ;;  %v238_v53 = vrot.slane %v236_v47, 4  ;;  %v241_v54 = vrot.slane %v239_v48, 5  ;;  %v3576_v30 = vld [vmem:[%s3432_s16 + $0x58] sm:$0x11] }
  0x17   : > { %454 = vmatpush1.bf16.msra.mxu0 %v3225_v9  ;;  %639 = vmatpush1.bf16.msra.mxu1 %v3226_v10  ;;  %v247_v56 = vrot.slane %v245_v50, 5  ;;  %v251_v57 = vrot.slane %v249_v51, 4  ;;  %v257_v61 = vrot.slane %v255_v52, 5  ;;  %v260_v3 = vshrl.u32 %v3526_v62, 16  ;;  %v3248_v52 = vld [vmem:[%s4331_s1 + $0x130] sm:$0xff]  }
  0x18   : > { %455 = vmatprep.subr.bf16.mxu0 %v3349_v1  ;;  %640 = vmatprep.subr.bf16.mxu1 %v3349_v1  ;;  %v219_v36 = vrot.slane %v218_v31, 4  ;;  %v229_v37 = vrot.slane %v228_v33, 4  ;;  %v242_v58 = vor.u32 %v241_v54, %v238_v53  ;;  %v263_v4 = vshll.u32 %v3526_v62, 16 }
  0x19   : > { %v252_v60 = vor.u32 %v251_v57, %v247_v56  ;;  %v269_v7 = vshll.u32 %v3530_v0, 16  ;;  %v273_v8 = vshrl.u32 %v3530_v0, 16  ;;  %v262_v10 = vrot.slane %v260_v3, 4 }
  0x1a   : > { %v3483_v38 = vsel %vm3472_vm3, %v219_v36, %v223_v28  ;;  %v234_v40 = vsel %vm3472_vm3, %v229_v37, %v233_v34  ;;  %v243_v63 = vrot.slane %v242_v58, 4  ;;  %v3570_v28 = vld [vmem:[%s3432_s16 + $0x48] sm:$0xff]  ;;  %v3606_v50 = vcombine.low %v3497_v43, %v3504_v45  ;;  %v3249_v58 = vld [vmem:[%s4331_s1 + $0xd8] sm:$0xff]  }
  0x1b   : > { %456 = vmatpush1.bf16.msra.mxu0 %v3227_v11  ;;  %641 = vmatpush1.bf16.msra.mxu1 %v3228_v12  ;;  %v2697_v42 = vcombine.high %v3483_v38, %v234_v40  ;;  %v2696_v5 = vcombine.low %v3483_v38, %v234_v40  ;;  %v3539_v6 = vrot.slane %v252_v60, 4  ;;  %v265_v11 = vrot.slane %v263_v4, 5  ;;  %v3246_v36 = vld [vmem:[%s4331_s1 + $0x128] sm:$0xff]   ;;  %v3247_v38 = vld [vmem:[%s4331_s1 + $0xd0] sm:$0xff]   ;;  %v3251_v60 = vld [vmem:[%s4331_s1 + $0xe0] sm:$0xff]  }
  0x1c   : > { %457 = vmatprep.subr.bf16.mxu0 %v3349_v1  ;;  %642 = vmatprep.subr.bf16.mxu1 %v3349_v1  ;;  %v3545_v9 = vsel %vm3472_vm3, %v243_v63, %v247_v56  ;;  %v279_v12 = vshll.u32 %v3533_v2, 16  ;;  %v271_v20 = vrot.slane %v269_v7, 5  ;;  %v275_v21 = vrot.slane %v273_v8, 4  ;;  %v695_v7 = vld [vmem:[%s3432_s16] sm:$0xee] }
  0x1d   : > { %2716 = vmatprep.mubr.msk.bf16.mxu0 %vm432_vm0, %v2697_v42  ;;  %v258_v19 = vsel %vm3472_vm3, %v3539_v6, %v257_v61  ;;  %v284_v33 = vshrl.u32 %v3570_v28, 16  ;;  %v287_v34 = vshll.u32 %v3570_v28, 16  ;;  %v712_v4 = vrot.slane %v3446_v16, 5  ;;  %v3252_v8 = vld [vmem:[%s4331_s1 + $0x140] sm:$0xff]  }
  0x1e   : > { %v2699_v23 = vcombine.high %v3545_v9, %v258_v19  ;;  %v276_v24 = vor.u32 %v275_v21, %v271_v20  ;;  %v281_v27 = vrot.slane %v279_v12, 5  ;;  %v2744_v12 = vrot.slane %v695_v7, 9  ;;  %v3257_v21 = vld [vmem:[%s4331_s1 + $0xf0] sm:$0xff]  }
  0x1f   : > { %458 = vmatpush1.bf16.msra.mxu0 %v3229_v13  ;;  %643 = vmatpush1.bf16.msra.mxu1 %v3230_v14  ;;  %v2720_v13 = vcombine.low %v3443_v15, %v3446_v16  ;;  %v3243_v14 = vld [vmem:[%s4331_s1 + $0xc0] sm:$0xff]   ;;  %v266_v15 = vor.u32 %v265_v11, %v262_v10  ;;  %v286_v40 = vrot.slane %v284_v33, 4  ;;  %v715_v10 = vrot.slane %v3449_v17, 5  ;;  %v3254_v17 = vld [vmem:[%s4331_s1 + $0xe8] sm:$0xff]  }
  0x20   : > { %459 = vmatprep.subr.bf16.mxu0 %v3349_v1  ;;  %644 = vmatprep.subr.bf16.mxu1 %v3349_v1  ;;  %v3578_v31 = vrot.slane %v276_v24, 4  ;;  %v3260_v24 = vld [vmem:[%s4331_s1 + $0xf8] sm:$0xff]   ;;  %v3266_v33 = vld [vmem:[%s4331_s1 + $0x108] sm:$0xff]  }
  0x21   : > { %v267_v26 = vrot.slane %v266_v15, 4 }
  0x22   : > { %v282_v47 = vsel %vm3472_vm3, %v3578_v31, %v281_v27  ;;  %v3263_v27 = vld [vmem:[%s4331_s1 + $0x100] sm:$0xff]  }
  0x23   : > { %460 = vmatpush1.bf16.msra.mxu0 %v3231_v18  ;;  %645 = vmatpush1.bf16.msra.mxu1 %v3232_v25  ;;  %v3244_v18 = vld [vmem:[%s4331_s1 + $0x120] sm:$0xff]   ;;  %v3567_v25 = vcombine.high %v3497_v43, %v3504_v45 }
  0x24   : > { %461 = vmatprep.subr.bf16.mxu0 %v3349_v1  ;;  %646 = vmatprep.subr.bf16.mxu1 %v3349_v1 }
  0x27   : > { %462 = vmatpush1.bf16.msra.mxu0 %v3233_v29  ;;  %647 = vmatpush1.bf16.msra.mxu1 %v3234_v35  ;;  %v3573_v29 = vld [vmem:[%s3432_s16 + $0x50] sm:$0xff] }
  0x28   : > { %463 = vmatprep.subr.bf16.mxu0 %v3349_v1  ;;  %648 = vmatprep.subr.bf16.mxu1 %v3349_v1  ;;  %v293_v35 = vshll.u32 %v3573_v29, 16  ;;  %v297_v37 = vshrl.u32 %v3573_v29, 16  ;;  %v3658_v16 = vcombine.high %v3570_v28, %v3573_v29  ;;  %v3692_v15 = vcombine.low %v3570_v28, %v3573_v29  ;;  %v3264_v28 = vld [vmem:[%s4331_s1 + $0x160] sm:$0xff]  }
  0x2a   : > { %v295_v42 = vrot.slane %v293_v35, 5  ;;  %v299_v48 = vrot.slane %v297_v37, 4  ;;  %v696_v35 = vld [vmem:[%s3432_s16 + $0x18] sm:$0xee] }
  0x2b   : > { %464 = vmatpush1.bf16.msra.mxu0 %v3235_v39  ;;  %649 = vmatpush1.bf16.msra.mxu1 %v3236_v41  ;;  %v2698_v39 = vcombine.low %v3545_v9, %v258_v19  ;;  %v289_v41 = vrot.slane %v287_v34, 5  ;;  %v3681_v19 = vsel %vm3662_vm6, %v2744_v12, %v712_v4  ;;  %v3729_v34 = vld [vmem:[%s3432_s16 + $0x28] sm:$0x11] }
  0x2c   : > { %465 = vmatprep.subr.bf16.mxu0 %v3349_v1  ;;  %650 = vmatprep.subr.bf16.mxu1 %v3349_v1  ;;  %v300_v53 = vor.u32 %v299_v48, %v295_v42  ;;  %v1207_v37 = vshll.u32 %v3729_v34, 16  ;;  %v2745_v48 = vrot.slane %v696_v35, 9 }
  0x2d   : > { %v290_v51 = vor.u32 %v289_v41, %v286_v40  ;;  %v3270_v40 = vld [vmem:[%s4331_s1 + $0x170] sm:$0xff]   ;;  %v722_v41 = vrot.slane %v3507_v46, 5  ;;  %v3271_v46 = vld [vmem:[%s4331_s1 + $0x118] sm:$0xff]  }
  0x2e   : > { %v3618_v56 = vrot.slane %v300_v53, 4 }
  0x2f   : > { %466 = vmatpush1.bf16.msra.mxu0 %v3237_v44  ;;  %651 = vmatpush1.bf16.msra.mxu1 %v3238_v49  ;;  %v3598_v44 = vsel %vm3472_vm3, %v267_v26, %v271_v20  ;;  %v303_v49 = vshll.u32 %v3576_v30, 16  ;;  %v291_v43 = vrot.slane %v290_v51, 4  ;;  %v3261_v26 = vld [vmem:[%s4331_s1 + $0x158] sm:$0xff]  }
  0x30   : > { %467 = vmatprep.subr.bf16.mxu0 %v3349_v1  ;;  %652 = vmatprep.subr.bf16.mxu1 %v3349_v1  ;;  %v2701_v54 = vcombine.high %v3598_v44, %v282_v47  ;;  %v2700_v61 = vcombine.low %v3598_v44, %v282_v47  ;;  %v3753_v47 = vld [vmem:[%s3432_s16 + $0x40] sm:$0x11] }
  0x31   : > { %v305_v57 = vrot.slane %v303_v49, 5  ;;  %v3638_v63 = vsel %vm3472_vm3, %v291_v43, %v295_v42 }
  0x33   : > { %468 = vmatpush1.bf16.msra.mxu0 %v3239_v55  ;;  %653 = vmatpush1.bf16.msra.mxu1 %v3240_v59  ;;  %v3616_v55 = vcombine.high %v3526_v62, %v3530_v0  ;;  %v3250_v59 = vld [vmem:[%s4331_s1 + $0x138] sm:$0xff]   ;;  %v306_v3 = vsel %vm3472_vm3, %v3618_v56, %v305_v57 }
  0x34   : > { %875 = vmatprep.subr.bf16.mxu0 %v3349_v1  ;;  %1102 = vmatprep.subr.bf16.mxu1 %v3349_v1  ;;  %v2703_v11 = vcombine.high %v3638_v63, %v306_v3 }
  0x36   : > { %478 = vmatmul.mubr.bf16.vlgmr.msra.gmra.mrb[0].mxu0 %v2696_v5  ;;  %663 = vmatmul.mubr.bf16.vlgmr.msra.gmra.mrb[0].mxu1 %v2720_v13  ;;  %v3646_v5 = vcombine.low %v3526_v62, %v3530_v0  ;;  %v714_v13 = vrot.slane %v712_v4, 4 }
  0x37   : > { %876 = vmatpush1.bf16.msra.mxu0 %v3243_v14  ;;  %1103 = vmatpush1.bf16.msra.mxu1 %v3244_v18  ;;  %v3255_v14 = vld [vmem:[%s4331_s1 + $0x148] sm:$0xff]   ;;  %v2702_v18 = vcombine.low %v3638_v63, %v306_v3 }
  0x38   : > { %877 = vmatprep.subr.bf16.mxu0 %v3349_v1  ;;  %1104 = vmatprep.subr.bf16.mxu1 %v3349_v1  ;;  %v3685_v20 = vsel %vm3662_vm6, %v714_v13, %v715_v10  ;;  %v729_v13 = vrot.slane %v3533_v2, 5  ;;  %v3276_v2 = vld [vmem:[%s4331_s1 + $0x1e8] sm:$0xff]  }
  0x39   : > { %2717 = vmatprep.mubr.msk.bf16.mxu0 %vm432_vm0, %v2699_v23  ;;  %2741 = vmatprep.mubr.msk.bf16.mxu1 %vm432_vm0, %v3567_v25  ;;  %v2773_v23 = vcombine.high %v3681_v19, %v3685_v20  ;;  %v2772_v43 = vcombine.low %v3681_v19, %v3685_v20 }
  0x3b   : > { %878 = vmatpush1.bf16.msra.mxu0 %v3245_v22  ;;  %1105 = vmatpush1.bf16.msra.mxu1 %v3246_v36  ;;  %v3258_v22 = vld [vmem:[%s4331_s1 + $0x150] sm:$0xff]   ;;  %v3734_v36 = vrot.slane %v3504_v45, 5 }
  0x3c   : > { %879 = vmatprep.subr.bf16.mxu0 %v3349_v1  ;;  %1106 = vmatprep.subr.bf16.mxu1 %v3349_v1 }
  0x3d   : > { %v721_v45 = vrot.slane %v3734_v36, 4  ;;  %v720_v57 = vsel %vm3662_vm6, %v2745_v48, %v3734_v36 }
  0x3e   : > { %486 = vmatmul.mubr.bf16.gmra.mrb[4].mxu0 %v2698_v39  ;;  %671 = vmatmul.mubr.bf16.gmra.mrb[4].mxu1 %v3606_v50  ;;  %v1209_v39 = vrot.slane %v1207_v37, 5  ;;  %v3869_v37 = vld [vmem:[%s3432_s16 + $0x60] sm:$0xff] }
  0x3f   : > { %880 = vmatpush1.bf16.msra.mxu0 %v3247_v38  ;;  %1107 = vmatpush1.bf16.msra.mxu1 %v3248_v52  ;;  %v3269_v38 = vld [vmem:[%s4331_s1 + $0x110] sm:$0xff]   ;;  %v1231_v52 = vshll.u32 %v3753_v47, 16 }
  0x40   : > { %881 = vmatprep.subr.bf16.mxu0 %v3349_v1  ;;  %1108 = vmatprep.subr.bf16.mxu1 %v3349_v1  ;;  %v3750_v42 = vsel %vm3472_vm3, %v3539_v6, %v1209_v39  ;;  %v3272_v6 = vld [vmem:[%s4331_s1 + $0x178] sm:$0xff]  }
  0x41   : > { %2718 = vmatprep.mubr.msk.bf16.mxu0 %vm432_vm0, %v2701_v54  ;;  %2742 = vmatprep.mubr.msk.bf16.mxu1 %vm432_vm0, %v3616_v55  ;;  %v2888_v49 = vcombine.low %v3545_v9, %v3750_v42  ;;  %v2889_v51 = vcombine.high %v3545_v9, %v3750_v42  ;;  %v1233_v53 = vrot.slane %v1231_v52, 5  ;;  %v3769_v54 = vrot.slane %v3530_v0, 5  ;;  %v3787_v0 = vld [vmem:[%s3432_s16 + $0x58] sm:$0x11]  ;;  %v2912_v39 = vld [vmem:[%s3432_s16 + $0x18] sm:$0xee] }
  0x42   : > { %v1255_v7 = vshll.u32 %v3787_v0, 16  ;;  %v2916_v52 = vrot.slane %v2912_v39, 9  ;;  %v3302_v9 = vld [vmem:[%s4331_s1 + $0x2a8] sm:$0xff]   ;;  %v4005_v42 = vld [vmem:[%s3432_s16 + $0x30] sm:$0xff] }
  0x43   : > { %882 = vmatpush1.bf16.msra.mxu0 %v3249_v58  ;;  %1109 = vmatpush1.bf16.msra.mxu1 %v3250_v59  ;;  %v723_v58 = vsel %vm3662_vm6, %v721_v45, %v722_v41  ;;  %v697_v59 = vld [vmem:[%s3432_s16 + $0x30] sm:$0xee]  ;;  %v728_v10 = vrot.slane %v3769_v54, 4  ;;  %v3283_v41 = vld [vmem:[%s4331_s1 + $0x1a8] sm:$0xff]  }
  0x44   : > { %883 = vmatprep.subr.bf16.mxu0 %v3349_v1  ;;  %1110 = vmatprep.subr.bf16.mxu1 %v3349_v1  ;;  %v2746_v12 = vrot.slane %v697_v59, 9  ;;  %v2774_v19 = vcombine.low %v720_v57, %v723_v58 }
  0x46   : > { %494 = vmatmul.mubr.bf16.gmra.mrb[8].mxu0 %v2700_v61  ;;  %679 = vmatmul.mubr.bf16.gmra.mrb[8].mxu1 %v3646_v5  ;;  %v3273_v61 = vld [vmem:[%s4331_s1 + $0x180] sm:$0xff]   ;;  %v727_v20 = vsel %vm3662_vm6, %v2746_v12, %v3769_v54  ;;  %v2913_v12 = vld [vmem:[%s3432_s16 + $0x30] sm:$0xee] }
  0x47   : > { %884 = vmatpush1.bf16.msra.mxu0 %v3251_v60  ;;  %1111 = vmatpush1.bf16.msra.mxu1 %v3252_v8  ;;  %v3784_v60 = vsel %vm3472_vm3, %v3578_v31, %v1233_v53  ;;  %v3274_v31 = vld [vmem:[%s4331_s1 + $0x1e0] sm:$0xff]   ;;  %v2775_v8 = vcombine.high %v720_v57, %v723_v58  ;;  %v3287_v58 = vld [vmem:[%s4331_s1 + $0x210] sm:$0xff]  }
  0x48   : > { %885 = vmatprep.subr.bf16.mxu0 %v3349_v1  ;;  %1112 = vmatprep.subr.bf16.mxu1 %v3349_v1  ;;  %v2891_v3 = vcombine.high %v3598_v44, %v3784_v60  ;;  %v2890_v4 = vcombine.low %v3598_v44, %v3784_v60  ;;  %v3306_v44 = vld [vmem:[%s4331_s1 + $0x2b8] sm:$0xff]   ;;  %v4053_v60 = vld [vmem:[%s3432_s16 + $0x40] sm:$0x11] }
  0x49   : > { %2719 = vmatprep.mubr.msk.bf16.mxu0 %vm432_vm0, %v2703_v11  ;;  %2743 = vmatprep.mubr.msk.bf16.mxu1 %vm432_vm0, %v3658_v16  ;;  %v1257_v11 = vrot.slane %v1255_v7, 5  ;;  %v3292_v7 = vld [vmem:[%s4331_s1 + $0x220] sm:$0xff]  }
  0x4b   : > { %886 = vmatpush1.bf16.msra.mxu0 %v3254_v17  ;;  %1113 = vmatpush1.bf16.msra.mxu1 %v3255_v14  ;;  %v3275_v17 = vld [vmem:[%s4331_s1 + $0x188] sm:$0xff]   ;;  %v3811_v14 = vsel %vm3472_vm3, %v3618_v56, %v1257_v11  ;;  %v3277_v56 = vld [vmem:[%s4331_s1 + $0x190] sm:$0xff]  }
  0x4c   : > { %887 = vmatprep.subr.bf16.mxu0 %v3349_v1  ;;  %1114 = vmatprep.subr.bf16.mxu1 %v3349_v1  ;;  %v3296_v11 = vld [vmem:[%s4331_s1 + $0x230] sm:$0xff]  }
  0x4e   : > { %502 = vmatmul.mubr.bf16.gmra.mrb[12].mxu0 %v2702_v18  ;;  %687 = vmatmul.mubr.bf16.gmra.mrb[12].mxu1 %v3692_v15  ;;  %v2892_v18 = vcombine.low %v3638_v63, %v3811_v14 }
  0x4f   : > { %888 = vmatpush1.bf16.msra.mxu0 %v3257_v21  ;;  %1115 = vmatpush1.bf16.msra.mxu1 %v3258_v22  ;;  %v730_v21 = vsel %vm3662_vm6, %v728_v10, %v729_v13  ;;  %v3836_v22 = vrot.slane %v3573_v29, 5  ;;  %v3297_v13 = vld [vmem:[%s4331_s1 + $0x1d8] sm:$0xff]  }
  0x50   : > { %889 = vmatprep.subr.bf16.mxu0 %v3349_v1  ;;  %1116 = vmatprep.subr.bf16.mxu1 %v3349_v1 }
  0x51   : > { %2792 = vmatprep.mubr.msk.bf16.mxu0 %vm432_vm0, %v2773_v23  ;;  %2848 = vmatprep.mubr.msk.bf16.mxu1 %vm432_vm0, %v3567_v25  ;;  %v3267_v25 = vld [vmem:[%s4331_s1 + $0x168] sm:$0xff]   ;;  %v735_v29 = vrot.slane %v3836_v22, 4 }
  0x52   : > { %v698_v23 = vld [vmem:[%s3432_s16 + $0x48] sm:$0xee] }
  0x53   : > { %890 = vmatpush1.bf16.msra.mxu0 %v3260_v24  ;;  %1117 = vmatpush1.bf16.msra.mxu1 %v3261_v26  ;;  %v2777_v24 = vcombine.high %v727_v20, %v730_v21  ;;  %v736_v26 = vrot.slane %v3576_v30, 5  ;;  %v3280_v30 = vld [vmem:[%s4331_s1 + $0x1f8] sm:$0xff]  }
  0x54   : > { %891 = vmatprep.subr.bf16.mxu0 %v3349_v1  ;;  %1118 = vmatprep.subr.bf16.mxu1 %v3349_v1 }
  0x55   : > { %v737_v35 = vsel %vm3662_vm6, %v735_v29, %v736_v26 }
  0x57   : > { %892 = vmatpush1.bf16.msra.mxu0 %v3263_v27  ;;  %1119 = vmatpush1.bf16.msra.mxu1 %v3264_v28  ;;  %v2747_v27 = vrot.slane %v698_v23, 9  ;;  %v3279_v28 = vld [vmem:[%s4331_s1 + $0x198] sm:$0xff]  }
  0x58   : > { %893 = vmatprep.subr.bf16.mxu0 %v3349_v1  ;;  %1120 = vmatprep.subr.bf16.mxu1 %v3349_v1 }
  0x5b   : > { %894 = vmatpush1.bf16.msra.mxu0 %v3266_v33  ;;  %1121 = vmatpush1.bf16.msra.mxu1 %v3267_v25  ;;  %v2776_v33 = vcombine.low %v727_v20, %v730_v21  ;;  %v734_v25 = vsel %vm3662_vm6, %v2747_v27, %v3836_v22  ;;  %v1263_v20 = vshll.u32 %v3869_v37, 16  ;;  %v2914_v27 = vld [vmem:[%s3432_s16 + $0x48] sm:$0xee] }
  0x5c   : > { %895 = vmatprep.subr.bf16.mxu0 %v3349_v1  ;;  %1122 = vmatprep.subr.bf16.mxu1 %v3349_v1  ;;  %v2778_v53 = vcombine.low %v734_v25, %v737_v35 }
  0x5f   : > { %896 = vmatpush1.bf16.msra.mxu0 %v3269_v38  ;;  %1123 = vmatpush1.bf16.msra.mxu1 %v3270_v40  ;;  %v3872_v38 = vld [vmem:[%s3432_s16 + $0x68] sm:$0xff]  ;;  %v2779_v40 = vcombine.high %v734_v25, %v737_v35  ;;  %v2918_v25 = vrot.slane %v2914_v27, 9  ;;  %v1528_v35 = vrot.slane %v3787_v0, 5 }
  0x60   : > { %897 = vmatprep.subr.bf16.mxu0 %v3349_v1  ;;  %1124 = vmatprep.subr.bf16.mxu1 %v3349_v1  ;;  %v3885_v48 = vcombine.high %v3869_v37, %v3872_v38  ;;  %v1269_v21 = vshll.u32 %v3872_v38, 16  ;;  %v1273_v23 = vshrl.u32 %v3872_v38, 16 }
  0x63   : > { %898 = vmatpush1.bf16.msra.mxu0 %v3271_v46  ;;  %1125 = vmatpush1.bf16.msra.mxu1 %v3272_v6  ;;  %v1514_v46 = vrot.slane %v3729_v34, 5  ;;  %v3284_v6 = vld [vmem:[%s4331_s1 + $0x208] sm:$0xff]   ;;  %v3902_v34 = vcombine.low %v3869_v37, %v3872_v38 }
  0x64   : > { %1420 = vmatprep.subr.bf16.mxu0 %v3349_v1  ;;  %1674 = vmatprep.subr.bf16.mxu1 %v3349_v1 }
  0x65   : > { %v3913_v57 = vsel %vm3662_vm6, %v721_v45, %v1514_v46  ;;  %v3290_v45 = vld [vmem:[%s4331_s1 + $0x218] sm:$0xff]   ;;  %v1526_v46 = vsel %vm3662_vm6, %v2918_v25, %v3836_v22  ;;  %v3304_v22 = vld [vmem:[%s4331_s1 + $0x2b0] sm:$0xff]  }
  0x66   : > { %908 = vmatmul.mubr.bf16.vlgmr.msra.gmra.mrb[16].mxu0 %v2772_v43  ;;  %1135 = vmatmul.mubr.bf16.vlgmr.msra.gmra.mrb[16].mxu1 %v3606_v50  ;;  %v2893_v50 = vcombine.high %v3638_v63, %v3811_v14  ;;  %v3907_v43 = vsel %vm3662_vm6, %v2916_v52, %v3734_v36  ;;  %v3289_v36 = vld [vmem:[%s4331_s1 + $0x1b8] sm:$0xff]   ;;  %v3311_v14 = vld [vmem:[%s4331_s1 + $0x270] sm:$0xff]  }
  0x67   : > { %1421 = vmatpush1.bf16.msra.mxu0 %v3273_v61  ;;  %1675 = vmatpush1.bf16.msra.mxu1 %v3274_v31  ;;  %v2945_v59 = vcombine.high %v3907_v43, %v3913_v57  ;;  %v3291_v61 = vld [vmem:[%s4331_s1 + $0x1c0] sm:$0xff]   ;;  %v3294_v31 = vld [vmem:[%s4331_s1 + $0x228] sm:$0xff]  }
  0x68   : > { %1422 = vmatprep.subr.bf16.mxu0 %v3349_v1  ;;  %1676 = vmatprep.subr.bf16.mxu1 %v3349_v1 }
  0x69   : > { %2793 = vmatprep.mubr.msk.bf16.mxu0 %vm432_vm0, %v2775_v8  ;;  %2849 = vmatprep.mubr.msk.bf16.mxu1 %vm432_vm0, %v3616_v55  ;;  %v3278_v55 = vld [vmem:[%s4331_s1 + $0x1f0] sm:$0xff]  }
  0x6a   : > { %v3295_v8 = vld [vmem:[%s4331_s1 + $0x1d0] sm:$0xff]  }
  0x6b   : > { %1423 = vmatpush1.bf16.msra.mxu0 %v3275_v17  ;;  %1677 = vmatpush1.bf16.msra.mxu1 %v3276_v2  ;;  %v2917_v17 = vrot.slane %v2913_v12, 9  ;;  %v1521_v2 = vrot.slane %v3753_v47, 5  ;;  %v2944_v47 = vcombine.low %v3907_v43, %v3913_v57 }
  0x6c   : > { %1424 = vmatprep.subr.bf16.mxu0 %v3349_v1  ;;  %1678 = vmatprep.subr.bf16.mxu1 %v3349_v1 }
  0x6d   : > { %v1522_v26 = vsel %vm3662_vm6, %v728_v10, %v1521_v2 }
  0x6e   : > { %916 = vmatmul.mubr.bf16.gmra.mrb[20].mxu0 %v2774_v19  ;;  %1143 = vmatmul.mubr.bf16.gmra.mrb[20].mxu1 %v3646_v5  ;;  %v3281_v5 = vld [vmem:[%s4331_s1 + $0x1a0] sm:$0xff]   ;;  %v3298_v19 = vld [vmem:[%s4331_s1 + $0x238] sm:$0xff]  }
  0x6f   : > { %1425 = vmatpush1.bf16.msra.mxu0 %v3277_v56  ;;  %1679 = vmatpush1.bf16.msra.mxu1 %v3278_v55  ;;  %v1260_v56 = vshrl.u32 %v3869_v37, 16  ;;  %v3299_v55 = vld [vmem:[%s4331_s1 + $0x240] sm:$0xff]   ;;  %v3301_v37 = vld [vmem:[%s4331_s1 + $0x248] sm:$0xff]  }
  0x70   : > { %1426 = vmatprep.subr.bf16.mxu0 %v3349_v1  ;;  %1680 = vmatprep.subr.bf16.mxu1 %v3349_v1 }
  0x71   : > { %2794 = vmatprep.mubr.msk.bf16.mxu0 %vm432_vm0, %v2777_v24  ;;  %2850 = vmatprep.mubr.msk.bf16.mxu1 %vm432_vm0, %v3658_v16  ;;  %v3282_v16 = vld [vmem:[%s4331_s1 + $0x200] sm:$0xff]   ;;  %v1519_v24 = vsel %vm3662_vm6, %v2917_v17, %v3769_v54  ;;  %v1275_v54 = vrot.slane %v1273_v23, 4 }
  0x72   : > { %v2947_v10 = vcombine.high %v1519_v24, %v1522_v26  ;;  %v2946_v52 = vcombine.low %v1519_v24, %v1522_v26  ;;  %v3308_v23 = vld [vmem:[%s4331_s1 + $0x2c0] sm:$0xff]   ;;  %v3309_v24 = vld [vmem:[%s4331_s1 + $0x268] sm:$0xff]  }
  0x73   : > { %1427 = vmatpush1.bf16.msra.mxu0 %v3279_v28  ;;  %1681 = vmatpush1.bf16.msra.mxu1 %v3280_v30  ;;  %v3300_v28 = vld [vmem:[%s4331_s1 + $0x2a0] sm:$0xff]   ;;  %v1262_v30 = vrot.slane %v1260_v56, 4 }
  0x74   : > { %1428 = vmatprep.subr.bf16.mxu0 %v3349_v1  ;;  %1682 = vmatprep.subr.bf16.mxu1 %v3349_v1 }
  0x76   : > { %924 = vmatmul.mubr.bf16.gmra.mrb[24].mxu0 %v2776_v33  ;;  %1151 = vmatmul.mubr.bf16.gmra.mrb[24].mxu1 %v3692_v15  ;;  %v3286_v15 = vld [vmem:[%s4331_s1 + $0x1b0] sm:$0xff]   ;;  %v1271_v33 = vrot.slane %v1269_v21, 5  ;;  %v2006_v21 = vshll.u32 %v4053_v60, 16 }
  0x77   : > { %1429 = vmatpush1.bf16.msra.mxu0 %v3281_v5  ;;  %1683 = vmatpush1.bf16.msra.mxu1 %v3282_v16  ;;  %v1265_v5 = vrot.slane %v1263_v20, 5  ;;  %v2863_v16 = vld [vmem:[%s3432_s16 + $0x70] sm:$0x11] }
  0x78   : > { %1430 = vmatprep.subr.bf16.mxu0 %v3349_v1  ;;  %1684 = vmatprep.subr.bf16.mxu1 %v3349_v1  ;;  %v1276_v39 = vor.u32 %v1275_v54, %v1271_v33  ;;  %v3312_v54 = vld [vmem:[%s4331_s1 + $0x2d0] sm:$0xff]  }
  0x79   : > { %2795 = vmatprep.mubr.msk.bf16.mxu0 %vm432_vm0, %v2779_v40  ;;  %2851 = vmatprep.mubr.msk.bf16.mxu1 %vm432_vm0, %v3885_v48  ;;  %v1266_v0 = vor.u32 %v1265_v5, %v1262_v30  ;;  %v4016_v40 = vrot.slane %v3872_v38, 5  ;;  %v2915_v38 = vld [vmem:[%s3432_s16 + $0x60] sm:$0xee]  ;;  %v3310_v30 = vld [vmem:[%s4331_s1 + $0x2c8] sm:$0xff]  }
  0x7b   : > { %1431 = vmatpush1.bf16.msra.mxu0 %v3283_v41  ;;  %1685 = vmatpush1.bf16.msra.mxu1 %v3284_v6  ;;  %v3303_v41 = vld [vmem:[%s4331_s1 + $0x250] sm:$0xff]   ;;  %v1279_v6 = vshll.u32 %v2863_v16, 16 }
  0x7c   : > { %1432 = vmatprep.subr.bf16.mxu0 %v3349_v1  ;;  %1686 = vmatprep.subr.bf16.mxu1 %v3349_v1 }
  0x7e   : > { %932 = vmatmul.mubr.bf16.gmra.mrb[28].mxu0 %v2778_v53  ;;  %1159 = vmatmul.mubr.bf16.gmra.mrb[28].mxu1 %v3902_v34  ;;  %v1987_v53 = vshrl.u32 %v4005_v42, 16 }
  0x7f   : > { %1433 = vmatpush1.bf16.msra.mxu0 %v3286_v15  ;;  %1687 = vmatpush1.bf16.msra.mxu1 %v3287_v58  ;;  %v1990_v15 = vshll.u32 %v4005_v42, 16  ;;  %v4039_v58 = vrot.slane %v1276_v39, 4 }
  0x80   : > { %1434 = vmatprep.subr.bf16.mxu0 %v3349_v1  ;;  %1688 = vmatprep.subr.bf16.mxu1 %v3349_v1 }
  0x81   : > { %2908 = vmatprep.mubr.msk.bf16.mxu0 %vm432_vm0, %v2889_v51  ;;  %2964 = vmatprep.mubr.msk.bf16.mxu1 %vm432_vm0, %v2945_v59  ;;  %v3293_v51 = vld [vmem:[%s4331_s1 + $0x1c8] sm:$0xff]   ;;  %v1534_v59 = vrot.slane %v4016_v40, 4 }
  0x83   : > { %1435 = vmatpush1.bf16.msra.mxu0 %v3289_v36  ;;  %1689 = vmatpush1.bf16.msra.mxu1 %v3290_v45  ;;  %v1281_v45 = vrot.slane %v1279_v6, 5  ;;  %v3317_v6 = vld [vmem:[%s4331_s1 + $0x288] sm:$0xff]  }
  0x84   : > { %1436 = vmatprep.subr.bf16.mxu0 %v3349_v1  ;;  %1690 = vmatprep.subr.bf16.mxu1 %v3349_v1 }
  0x85   : > { %v1282_v17 = vsel %vm3472_vm3, %v4039_v58, %v1281_v45 }
  0x87   : > { %1437 = vmatpush1.bf16.msra.mxu0 %v3291_v61  ;;  %1691 = vmatpush1.bf16.msra.mxu1 %v3292_v7  ;;  %v2919_v61 = vrot.slane %v2915_v38, 9  ;;  %v1535_v7 = vrot.slane %v2863_v16, 5  ;;  %v4127_v16 = vld [vmem:[%s3432_s16 + $0x48] sm:$0xff] }
  0x88   : > { %1438 = vmatprep.subr.bf16.mxu0 %v3349_v1  ;;  %1692 = vmatprep.subr.bf16.mxu1 %v3349_v1  ;;  %v2011_v39 = vshrl.u32 %v4127_v16, 16 }
  0x89   : > { %v1533_v2 = vsel %vm3662_vm6, %v2919_v61, %v4016_v40 }
  0x8a   : > { %v2013_v38 = vrot.slane %v2011_v39, 4 }
  0x8b   : > { %1439 = vmatpush1.bf16.msra.mxu0 %v3293_v51  ;;  %1693 = vmatpush1.bf16.msra.mxu1 %v3294_v31  ;;  %v3305_v51 = vld [vmem:[%s4331_s1 + $0x258] sm:$0xff]   ;;  %v1989_v31 = vrot.slane %v1987_v53, 4 }
  0x8c   : > { %1440 = vmatprep.subr.bf16.mxu0 %v3349_v1  ;;  %1694 = vmatprep.subr.bf16.mxu1 %v3349_v1 }
  0x8f   : > { %1441 = vmatpush1.bf16.msra.mxu0 %v3295_v8  ;;  %1695 = vmatpush1.bf16.msra.mxu1 %v3296_v11  ;;  %v1992_v8 = vrot.slane %v1990_v15, 5 }
  0x90   : > { %1442 = vmatprep.subr.bf16.mxu0 %v3349_v1  ;;  %1696 = vmatprep.subr.bf16.mxu1 %v3349_v1 }
  0x91   : > { %v1993_v56 = vor.u32 %v1992_v8, %v1989_v31 }
  0x93   : > { %1443 = vmatpush1.bf16.msra.mxu0 %v3297_v13  ;;  %1697 = vmatpush1.bf16.msra.mxu1 %v3298_v19  ;;  %v1536_v19 = vsel %vm3662_vm6, %v1534_v59, %v1535_v7  ;;  %v1994_v26 = vrot.slane %v1993_v56, 4  ;;  %v3320_v7 = vld [vmem:[%s4331_s1 + $0x2f0] sm:$0xff]  }
  0x94   : > { %1901 = vmatprep.subr.bf16.mxu0 %v3349_v1  ;;  %2219 = vmatprep.subr.bf16.mxu1 %v3349_v1 }
  0x96   : > { %1453 = vmatmul.mubr.bf16.vlgmr.msra.gmra.mrb[32].mxu0 %v2888_v49  ;;  %1707 = vmatmul.mubr.bf16.vlgmr.msra.gmra.mrb[32].mxu1 %v2944_v47  ;;  %v4008_v49 = vld [vmem:[%s3432_s16 + $0x38] sm:$0xff] }
  0x97   : > { %1902 = vmatpush1.bf16.msra.mxu0 %v3299_v55  ;;  %2220 = vmatpush1.bf16.msra.mxu1 %v3300_v28  ;;  %v1996_v43 = vshll.u32 %v4008_v49, 16  ;;  %v2000_v57 = vshrl.u32 %v4008_v49, 16  ;;  %v2951_v55 = vcombine.high %v1533_v2, %v1536_v19  ;;  %v2008_v28 = vrot.slane %v2006_v21, 5  ;;  %v3325_v21 = vld [vmem:[%s4331_s1 + $0x300] sm:$0xff]  }
  0x98   : > { %1903 = vmatprep.subr.bf16.mxu0 %v3349_v1  ;;  %2221 = vmatprep.subr.bf16.mxu1 %v3349_v1 }
  0x99   : > { %2909 = vmatprep.mubr.msk.bf16.mxu0 %vm432_vm0, %v2891_v3  ;;  %2965 = vmatprep.mubr.msk.bf16.mxu1 %vm432_vm0, %v2947_v10  ;;  %v1529_v3 = vsel %vm3662_vm6, %v735_v29, %v1528_v35  ;;  %v1267_v29 = vrot.slane %v1266_v0, 4  ;;  %v1998_v11 = vrot.slane %v1996_v43, 5  ;;  %v2002_v12 = vrot.slane %v2000_v57, 4  ;;  %v3313_v35 = vld [vmem:[%s4331_s1 + $0x278] sm:$0xff]   ;;  %v3315_v0 = vld [vmem:[%s4331_s1 + $0x280] sm:$0xff]   ;;  %v3318_v57 = vld [vmem:[%s4331_s1 + $0x2e8] sm:$0xff]  }
  0x9a   : > { %v2949_v36 = vcombine.high %v1526_v46, %v1529_v3  ;;  %v3001_v10 = vcombine.high %v4005_v42, %v4008_v49 }
  0x9b   : > { %1904 = vmatpush1.bf16.msra.mxu0 %v3301_v37  ;;  %2222 = vmatpush1.bf16.msra.mxu1 %v3302_v9  ;;  %v4063_v13 = vsel %vm3472_vm3, %v1267_v29, %v1271_v33  ;;  %v2003_v20 = vor.u32 %v2002_v12, %v1998_v11  ;;  %v4104_v5 = vsel %vm3472_vm3, %v1994_v26, %v1998_v11  ;;  %v3314_v37 = vld [vmem:[%s4331_s1 + $0x2d8] sm:$0xff]   ;;  %v4130_v9 = vld [vmem:[%s3432_s16 + $0x50] sm:$0xff] }
  0x9c   : > { %1905 = vmatprep.subr.bf16.mxu0 %v3349_v1  ;;  %2223 = vmatprep.subr.bf16.mxu1 %v3349_v1  ;;  %v2895_v47 = vcombine.high %v4063_v13, %v1282_v17  ;;  %v2894_v63 = vcombine.low %v4063_v13, %v1282_v17  ;;  %v3319_v29 = vld [vmem:[%s4331_s1 + $0x290] sm:$0xff]   ;;  %v4181_v17 = vld [vmem:[%s3432_s16 + $0x80] sm:$0xff] }
  0x9d   : > { %v2004_v27 = vrot.slane %v2003_v20, 4  ;;  %v4171_v12 = vld [vmem:[%s3432_s16 + $0x70] sm:$0x11] }
  0x9e   : > { %1461 = vmatmul.mubr.bf16.gmra.mrb[36].mxu0 %v2890_v4  ;;  %1715 = vmatmul.mubr.bf16.gmra.mrb[36].mxu1 %v2946_v52  ;;  %v2948_v4 = vcombine.low %v1526_v46, %v1529_v3  ;;  %v2020_v52 = vshll.u32 %v4130_v9, 16  ;;  %v2024_v46 = vshrl.u32 %v4130_v9, 16  ;;  %v3316_v3 = vld [vmem:[%s4331_s1 + $0x2e0] sm:$0xff]  }
  0x9f   : > { %1906 = vmatpush1.bf16.msra.mxu0 %v3303_v41  ;;  %2224 = vmatpush1.bf16.msra.mxu1 %v3304_v22  ;;  %v4108_v33 = vsel %vm3472_vm3, %v2004_v27, %v2008_v28  ;;  %v2014_v41 = vshll.u32 %v4127_v16, 16  ;;  %v4155_v22 = vld [vmem:[%s3432_s16 + $0x58] sm:$0x11]  ;;  %v3326_v28 = vld [vmem:[%s4331_s1 + $0x308] sm:$0xff]  }
  0xa0   : > { %1907 = vmatprep.subr.bf16.mxu0 %v3349_v1  ;;  %2225 = vmatprep.subr.bf16.mxu1 %v3349_v1  ;;  %v3061_v25 = vcombine.high %v4104_v5, %v4108_v33  ;;  %v2022_v15 = vrot.slane %v2020_v52, 5  ;;  %v2026_v43 = vrot.slane %v2024_v46, 4  ;;  %v2030_v61 = vshll.u32 %v4155_v22, 16 }
  0xa1   : > { %2910 = vmatprep.mubr.msk.bf16.mxu0 %vm432_vm0, %v2893_v50  ;;  %2966 = vmatprep.mubr.msk.bf16.mxu1 %vm432_vm0, %v2949_v36  ;;  %v3307_v50 = vld [vmem:[%s4331_s1 + $0x260] sm:$0xff]   ;;  %v2016_v53 = vrot.slane %v2014_v41, 5  ;;  %v2310_v46 = vrot.slane %v4008_v49, 5 }
  0xa2   : > { %v2027_v45 = vor.u32 %v2026_v43, %v2022_v15  ;;  %v2032_v11 = vrot.slane %v2030_v61, 5 }
  0xa3   : > { %1908 = vmatpush1.bf16.msra.mxu0 %v3305_v51  ;;  %2226 = vmatpush1.bf16.msra.mxu1 %v3306_v44  ;;  %v2017_v36 = vor.u32 %v2016_v53, %v2013_v38  ;;  %v3321_v51 = vld [vmem:[%s4331_s1 + $0x298] sm:$0xff]  }
  0xa4   : > { %1909 = vmatprep.subr.bf16.mxu0 %v3349_v1  ;;  %2227 = vmatprep.subr.bf16.mxu1 %v3349_v1  ;;  %v2028_v8 = vrot.slane %v2027_v45, 4  ;;  %v4174_v44 = vld [vmem:[%s3432_s16 + $0x78] sm:$0xff]  ;;  %v2327_v45 = vrot.slane %v4171_v12, 5 }
  0xa5   : > { %v2018_v31 = vrot.slane %v2017_v36, 4  ;;  %v2059_v56 = vshrl.u32 %v4174_v44, 16  ;;  %v2062_v20 = vshll.u32 %v4174_v44, 16 }
  0xa6   : > { %1469 = vmatmul.mubr.bf16.gmra.mrb[40].mxu0 %v2892_v18  ;;  %1723 = vmatmul.mubr.bf16.gmra.mrb[40].mxu1 %v2948_v4  ;;  %v2950_v18 = vcombine.low %v1533_v2, %v1536_v19  ;;  %v3322_v4 = vld [vmem:[%s4331_s1 + $0x2f8] sm:$0xff]   ;;  %v3000_v2 = vcombine.low %v4005_v42, %v4008_v49  ;;  %v2054_v19 = vshll.u32 %v4171_v12, 16  ;;  %v2033_v42 = vsel %vm3472_vm3, %v2028_v8, %v2032_v11 }
  0xa7   : > { %1910 = vmatpush1.bf16.msra.mxu0 %v3307_v50  ;;  %2228 = vmatpush1.bf16.msra.mxu1 %v3308_v23  ;;  %v3060_v50 = vcombine.low %v4104_v5, %v4108_v33  ;;  %v2023_v23 = vsel %vm3472_vm3, %v2018_v31, %v2022_v15  ;;  %v4209_v5 = vld [vmem:[%s3432_s16 + $0x88] sm:$0x11]  ;;  %v3002_v33 = vcombine.low %v4127_v16, %v4130_v9  ;;  %v3084_v15 = vld [vmem:[%s3432_s16 + $0x30] sm:$0xee] }
  0xa8   : > { %1911 = vmatprep.subr.bf16.mxu0 %v3349_v1  ;;  %2229 = vmatprep.subr.bf16.mxu1 %v3349_v1  ;;  %v3063_v26 = vcombine.high %v2023_v23, %v2033_v42  ;;  %v2056_v27 = vrot.slane %v2054_v19, 5  ;;  %v3007_v49 = vcombine.high %v4174_v44, %v4181_v17  ;;  %v2328_v8 = vsel %vm3662_vm6, %v1534_v59, %v2327_v45  ;;  %v3338_v59 = vld [vmem:[%s4331_s1 + $0x348] sm:$0xff]   ;;  %v3087_v19 = vld [vmem:[%s3432_s16 + $0x78] sm:$0xee] }
  0xa9   : > { %2911 = vmatprep.mubr.msk.bf16.mxu0 %vm432_vm0, %v2895_v47  ;;  %2967 = vmatprep.mubr.msk.bf16.mxu1 %vm432_vm0, %v2951_v55  ;;  %v2068_v47 = vshll.u32 %v4181_v17, 16  ;;  %v2072_v55 = vshrl.u32 %v4181_v17, 16 }
  0xab   : > { %1912 = vmatpush1.bf16.msra.mxu0 %v3309_v24  ;;  %2230 = vmatpush1.bf16.msra.mxu1 %v3310_v30  ;;  %v3003_v24 = vcombine.high %v4127_v16, %v4130_v9  ;;  %v2061_v30 = vrot.slane %v2059_v56, 4  ;;  %v3339_v56 = vld [vmem:[%s4331_s1 + $0x350] sm:$0xff]  }
  0xac   : > { %1913 = vmatprep.subr.bf16.mxu0 %v3349_v1  ;;  %2231 = vmatprep.subr.bf16.mxu1 %v3349_v1 }
  0xae   : > { %1477 = vmatmul.mubr.bf16.gmra.mrb[44].mxu0 %v2894_v63  ;;  %1731 = vmatmul.mubr.bf16.gmra.mrb[44].mxu1 %v2950_v18  ;;  %v2064_v63 = vrot.slane %v2062_v20, 5  ;;  %v2074_v18 = vrot.slane %v2072_v55, 4 }
  0xaf   : > { %1914 = vmatpush1.bf16.msra.mxu0 %v3311_v14  ;;  %2232 = vmatpush1.bf16.msra.mxu1 %v3312_v54  ;;  %v2070_v14 = vrot.slane %v2068_v47, 5  ;;  %v2057_v54 = vsel %vm3472_vm3, %v4039_v58, %v2056_v27  ;;  %v3330_v58 = vld [vmem:[%s4331_s1 + $0x318] sm:$0xff]   ;;  %v2334_v47 = vrot.slane %v4209_v5, 5 }
  0xb0   : > { %1915 = vmatprep.subr.bf16.mxu0 %v3349_v1  ;;  %2233 = vmatprep.subr.bf16.mxu1 %v3349_v1  ;;  %v3065_v16 = vcombine.high %v4063_v13, %v2057_v54 }
  0xb1   : > { %3020 = vmatprep.mubr.msk.bf16.mxu0 %vm432_vm0, %v3001_v10  ;;  %3080 = vmatprep.mubr.msk.bf16.mxu1 %vm432_vm0, %v3061_v25  ;;  %v3329_v10 = vld [vmem:[%s4331_s1 + $0x310] sm:$0xff]   ;;  %v3062_v25 = vcombine.low %v2023_v23, %v2033_v42  ;;  %v2320_v23 = vrot.slane %v4155_v22, 5 }
  0xb3   : > { %1916 = vmatpush1.bf16.msra.mxu0 %v3313_v35  ;;  %2234 = vmatpush1.bf16.msra.mxu1 %v3314_v37  ;;  %v2065_v35 = vor.u32 %v2064_v63, %v2061_v30  ;;  %v2075_v37 = vor.u32 %v2074_v18, %v2070_v14 }
  0xb4   : > { %1917 = vmatprep.subr.bf16.mxu0 %v3349_v1  ;;  %2235 = vmatprep.subr.bf16.mxu1 %v3349_v1 }
  0xb5   : > { %v2066_v39 = vrot.slane %v2065_v35, 4  ;;  %v2076_v41 = vrot.slane %v2075_v37, 4 }
  0xb7   : > { %1918 = vmatpush1.bf16.msra.mxu0 %v3315_v0  ;;  %2236 = vmatpush1.bf16.msra.mxu1 %v3316_v3  ;;  %v2078_v0 = vshll.u32 %v4209_v5, 16  ;;  %v3331_v3 = vld [vmem:[%s4331_s1 + $0x320] sm:$0xff]   ;;  %v2071_v38 = vsel %vm3472_vm3, %v2066_v39, %v2070_v14 }
  0xb8   : > { %1919 = vmatprep.subr.bf16.mxu0 %v3349_v1  ;;  %2237 = vmatprep.subr.bf16.mxu1 %v3349_v1 }
  0xb9   : > { %v2080_v52 = vrot.slane %v2078_v0, 5 }
  0xbb   : > { %1920 = vmatpush1.bf16.msra.mxu0 %v3317_v6  ;;  %2238 = vmatpush1.bf16.msra.mxu1 %v3318_v57  ;;  %v3064_v6 = vcombine.low %v4063_v13, %v2057_v54  ;;  %v2081_v53 = vsel %vm3472_vm3, %v2076_v41, %v2080_v52  ;;  %v3088_v13 = vrot.slane %v3084_v15, 9  ;;  %v2312_v57 = vrot.slane %v2310_v46, 4 }
  0xbc   : > { %1921 = vmatprep.subr.bf16.mxu0 %v3349_v1  ;;  %2239 = vmatprep.subr.bf16.mxu1 %v3349_v1  ;;  %v3067_v43 = vcombine.high %v2071_v38, %v2081_v53 }
  0xbf   : > { %1922 = vmatpush1.bf16.msra.mxu0 %v3319_v29  ;;  %2240 = vmatpush1.bf16.msra.mxu1 %v3320_v7  ;;  %v2313_v29 = vrot.slane %v4053_v60, 5  ;;  %v2311_v60 = vsel %vm3662_vm6, %v3088_v13, %v2310_v46  ;;  %v3335_v7 = vld [vmem:[%s4331_s1 + $0x330] sm:$0xff]  }
  0xc0   : > { %1923 = vmatprep.subr.bf16.mxu0 %v3349_v1  ;;  %2241 = vmatprep.subr.bf16.mxu1 %v3349_v1 }
  0xc1   : > { %v2314_v61 = vsel %vm3662_vm6, %v2312_v57, %v2313_v29 }
  0xc2   : > { %v3117_v11 = vcombine.high %v2311_v60, %v2314_v61  ;;  %v3116_v27 = vcombine.low %v2311_v60, %v2314_v61 }
  0xc3   : > { %1924 = vmatpush1.bf16.msra.mxu0 %v3321_v51  ;;  %2242 = vmatpush1.bf16.msra.mxu1 %v3322_v4  ;;  %v3066_v51 = vcombine.low %v2071_v38, %v2081_v53  ;;  %v2317_v4 = vrot.slane %v4130_v9, 5  ;;  %v3091_v9 = vrot.slane %v3087_v19, 9 }
  0xc4   : > { %2473 = vmatprep.subr.bf16.mxu0 %v3349_v1  ;;  %3183 = vmatprep.subr.bf16.mxu1 %v3349_v1 }
  0xc6   : > { %1934 = vmatmul.mubr.bf16.vlgmr.msra.gmra.mrb[48].mxu0 %v3000_v2  ;;  %2252 = vmatmul.mubr.bf16.vlgmr.msra.gmra.mrb[48].mxu1 %v3060_v50  ;;  %v3085_v2 = vld [vmem:[%s3432_s16 + $0x48] sm:$0xee]  ;;  %v2331_v50 = vrot.slane %v4181_v17, 5 }
  0xc7   : > { %2474 = vmatpush1.bf16.msra.mxu0 %v3325_v21  ;;  %3195 = vmatpush1.bf16.msra.mxu1 %v3325_v21  ;;  %v3089_v20 = vrot.slane %v3085_v2, 9  ;;  %v2319_v21 = vrot.slane %v2317_v4, 4 }
  0xc8   : > { %2475 = vmatprep.subr.bf16.mxu0 %v3349_v1  ;;  %3184 = vmatprep.subr.bf16.mxu1 %v3349_v1  ;;  %v2333_v42 = vrot.slane %v2331_v50, 4 }
  0xc9   : > { %3021 = vmatprep.mubr.msk.bf16.mxu0 %vm432_vm0, %v3003_v24  ;;  %3081 = vmatprep.mubr.msk.bf16.mxu1 %vm432_vm0, %v3063_v26  ;;  %v2318_v55 = vsel %vm3662_vm6, %v3089_v20, %v2317_v4  ;;  %v2321_v22 = vsel %vm3662_vm6, %v2319_v21, %v2320_v23  ;;  %v2332_v24 = vsel %vm3662_vm6, %v3091_v9, %v2331_v50 }
  0xca   : > { %v2335_v26 = vsel %vm3662_vm6, %v2333_v42, %v2334_v47  ;;  %v3119_v30 = vcombine.high %v2318_v55, %v2321_v22  ;;  %v3118_v14 = vcombine.low %v2318_v55, %v2321_v22 }
  0xcb   : > { %2476 = vmatpush1.bf16.msra.mxu0 %v3326_v28  ;;  %3196 = vmatpush1.bf16.msra.mxu1 %v3326_v28  ;;  %v3123_v63 = vcombine.high %v2332_v24, %v2335_v26 }
  0xcc   : > { %2477 = vmatprep.subr.bf16.mxu0 %v3349_v1  ;;  %3185 = vmatprep.subr.bf16.mxu1 %v3349_v1 }
  0xce   : > { %1942 = vmatmul.mubr.bf16.gmra.mrb[52].mxu0 %v3002_v33  ;;  %2260 = vmatmul.mubr.bf16.gmra.mrb[52].mxu1 %v3062_v25 }
  0xcf   : > { %2478 = vmatpush1.bf16.msra.mxu0 %v3329_v10  ;;  %3197 = vmatpush1.bf16.msra.mxu1 %v3329_v10 }
  0xd0   : > { %2479 = vmatprep.subr.bf16.mxu0 %v3349_v1  ;;  %3186 = vmatprep.subr.bf16.mxu1 %v3349_v1 }
  0xd1   : > { %3022 = vmatprep.mubr.msk.bf16.mxu0 %vm432_vm0, %v3885_v48  ;;  %3082 = vmatprep.mubr.msk.bf16.mxu1 %vm432_vm0, %v3065_v16  ;;  %v3086_v48 = vld [vmem:[%s3432_s16 + $0x60] sm:$0xee] }
  0xd2   : > { %v3090_v36 = vrot.slane %v3086_v48, 9 }
  0xd3   : > { %2480 = vmatpush1.bf16.msra.mxu0 %v3330_v58  ;;  %3198 = vmatpush1.bf16.msra.mxu1 %v3330_v58 }
  0xd4   : > { %2481 = vmatprep.subr.bf16.mxu0 %v3349_v1  ;;  %3187 = vmatprep.subr.bf16.mxu1 %v3349_v1  ;;  %v2325_v31 = vsel %vm3662_vm6, %v3090_v36, %v4016_v40  ;;  %v3337_v40 = vld [vmem:[%s4331_s1 + $0x340] sm:$0xff]  }
  0xd5   : > { %v3121_v12 = vcombine.high %v2325_v31, %v2328_v8  ;;  %v3120_v28 = vcombine.low %v2325_v31, %v2328_v8 }
  0xd6   : > { %1950 = vmatmul.mubr.bf16.gmra.mrb[56].mxu0 %v3902_v34  ;;  %2268 = vmatmul.mubr.bf16.gmra.mrb[56].mxu1 %v3064_v6  ;;  %v3006_v34 = vcombine.low %v4174_v44, %v4181_v17  ;;  %v3336_v44 = vld [vmem:[%s4331_s1 + $0x338] sm:$0xff]  }
  0xd7   : > { %2482 = vmatpush1.bf16.msra.mxu0 %v3331_v3  ;;  %3199 = vmatpush1.bf16.msra.mxu1 %v3331_v3  ;;  %v3340_v17 = vld [vmem:[%s4331_s1 + $0x358] sm:$0xff]  }
  0xd8   : > { %2483 = vmatprep.subr.bf16.mxu0 %v3349_v1  ;;  %3188 = vmatprep.subr.bf16.mxu1 %v3349_v1 }
  0xd9   : > { %3023 = vmatprep.mubr.msk.bf16.mxu0 %vm432_vm0, %v3007_v49  ;;  %3083 = vmatprep.mubr.msk.bf16.mxu1 %vm432_vm0, %v3067_v43 }
  0xdb   : > { %2484 = vmatpush1.bf16.msra.mxu0 %v3332_v32  ;;  %3200 = vmatpush1.bf16.msra.mxu1 %v3332_v32 }
  0xdc   : > { %2485 = vmatprep.subr.bf16.mxu0 %v3349_v1  ;;  %3189 = vmatprep.subr.bf16.mxu1 %v3349_v1 }
  0xde   : > { %1958 = vmatmul.mubr.bf16.gmra.mrb[60].mxu0 %v3006_v34  ;;  %2276 = vmatmul.mubr.bf16.gmra.mrb[60].mxu1 %v3066_v51 }
  0xdf   : > { %2486 = vmatpush1.bf16.msra.mxu0 %v3335_v7  ;;  %3201 = vmatpush1.bf16.msra.mxu1 %v3335_v7 }
  0xe0   : > { %2487 = vmatprep.subr.bf16.mxu0 %v3349_v1  ;;  %3190 = vmatprep.subr.bf16.mxu1 %v3349_v1 }
  0xe1   : > { %3136 = vmatprep.mubr.msk.bf16.mxu0 %vm432_vm0, %v3117_v11  ;;  %3138 = vmatprep.mubr.msk.bf16.mxu1 %vm432_vm0, %v3121_v12 }
  0xe3   : > { %2488 = vmatpush1.bf16.msra.mxu0 %v3336_v44  ;;  %3202 = vmatpush1.bf16.msra.mxu1 %v3336_v44 }
  0xe4   : > { %2489 = vmatprep.subr.bf16.mxu0 %v3349_v1  ;;  %3191 = vmatprep.subr.bf16.mxu1 %v3349_v1 }
  0xe7   : > { %2490 = vmatpush1.bf16.msra.mxu0 %v3337_v40  ;;  %3203 = vmatpush1.bf16.msra.mxu1 %v3337_v40 }
  0xe8   : > { %2491 = vmatprep.subr.bf16.mxu0 %v3349_v1  ;;  %3192 = vmatprep.subr.bf16.mxu1 %v3349_v1 }
  0xeb   : > { %2492 = vmatpush1.bf16.msra.mxu0 %v3338_v59  ;;  %3204 = vmatpush1.bf16.msra.mxu1 %v3338_v59 }
  0xec   : > { %2493 = vmatprep.subr.bf16.mxu0 %v3349_v1  ;;  %3193 = vmatprep.subr.bf16.mxu1 %v3349_v1 }
  0xef   : > { %2494 = vmatpush1.bf16.msra.mxu0 %v3339_v56  ;;  %3205 = vmatpush1.bf16.msra.mxu1 %v3339_v56 }
  0xf0   : > { %2495 = vmatprep.subr.bf16.mxu0 %v3349_v1  ;;  %3194 = vmatprep.subr.bf16.mxu1 %v3349_v1  ;;  %v3122_v1 = vcombine.low %v2332_v24, %v2335_v26 }
  0xf3   : > { %2496 = vmatpush1.bf16.msra.mxu0 %v3340_v17  ;;  %3206 = vmatpush1.bf16.msra.mxu1 %v3340_v17 }
  0xf6   : > { %2506 = vmatmul.mubr.bf16.vlgmr.msra.gmra.mrb[64].mxu0 %v3116_v27  ;;  %2522 = vmatmul.mubr.bf16.vlgmr.msra.gmra.mrb[64].mxu1 %v3120_v28 }
  0xf7   : > { %3137 = vmatprep.mubr.msk.bf16.mxu0 %vm432_vm0, %v3119_v30  ;;  %3139 = vmatprep.mubr.msk.bf16.mxu1 %vm432_vm0, %v3123_v63 }
  0xfe   : > { %2514 = vmatmul.mubr.bf16.gmra.mrb[68].mxu0 %v3118_v14  ;;  %2530 = vmatmul.mubr.bf16.gmra.mrb[68].mxu1 %v3122_v1 }
 0x109   : > { %v479_v18 = vpop.f32.mrb[0].mxu0  ;;  %v664_v5 = vpop.f32.mrb[0].mxu1 }
 0x10a   : > { %v481_v62 = vpop.f32.mrb[1].mxu0  ;;  %v665_v33 = vadd.f32 %v664_v5, %v479_v18  ;;  %v666_v54 = vpop.f32.mrb[1].mxu1 }
 0x10b   : > { %v482_v10 = vpop.f32.mrb[2].mxu0  ;;  %v667_v25 = vpop.f32.mrb[2].mxu1 }
 0x10c   : > { %v484_v35 = vpop.f32.mrb[3].mxu0  ;;  %v668_v37 = vadd.f32 %v667_v25, %v482_v10  ;;  %v669_v0 = vpop.f32.mrb[3].mxu1 }
 0x111   : > { %v487_v16 = vpop.f32.mrb[4].mxu0  ;;  %v672_v58 = vpop.f32.mrb[4].mxu1 }
 0x112   : > { %v489_v39 = vpop.f32.mrb[5].mxu0  ;;  %v673_v41 = vadd.f32 %v672_v58, %v487_v16  ;;  %v674_v52 = vpop.f32.mrb[5].mxu1 }
 0x113   : > { %v490_v46 = vpop.f32.mrb[6].mxu0  ;;  %v675_v3 = vpop.f32.mrb[6].mxu1 }
 0x114   : > { %v492_v6 = vpop.f32.mrb[7].mxu0  ;;  %v676_v38 = vadd.f32 %v675_v3, %v490_v46  ;;  %v677_v53 = vpop.f32.mrb[7].mxu1 }
 0x119   : > { %v495_v15 = vpop.f32.mrb[8].mxu0  ;;  %v680_v48 = vpop.f32.mrb[8].mxu1 }
 0x11a   : > { %v497_v49 = vpop.f32.mrb[9].mxu0  ;;  %v681_v43 = vadd.f32 %v680_v48, %v495_v15  ;;  %v682_v13 = vpop.f32.mrb[9].mxu1 }
 0x11b   : > { %v498_v57 = vpop.f32.mrb[10].mxu0  ;;  %v683_v29 = vpop.f32.mrb[10].mxu1 }
 0x11c   : > { %v500_v32 = vpop.f32.mrb[11].mxu0  ;;  %v684_v36 = vadd.f32 %v683_v29, %v498_v57  ;;  %v685_v45 = vpop.f32.mrb[11].mxu1 }
 0x121   : > { %v503_v34 = vpop.f32.mrb[12].mxu0  ;;  %v688_v60 = vpop.f32.mrb[12].mxu1 }
 0x122   : > { %v505_v61 = vpop.f32.mrb[13].mxu0  ;;  %v689_v7 = vadd.f32 %v688_v60, %v503_v34  ;;  %v690_v51 = vpop.f32.mrb[13].mxu1 }
 0x123   : > { %v506_v31 = vpop.f32.mrb[14].mxu0  ;;  %v691_v8 = vpop.f32.mrb[14].mxu1 }
 0x124   : > { %v508_v11 = vpop.f32.mrb[15].mxu0  ;;  %v692_v12 = vadd.f32 %v691_v8, %v506_v31  ;;  %v693_v44 = vpop.f32.mrb[15].mxu1 }
 0x139   : > { %v909_v40 = vpop.f32.mrb[16].mxu0  ;;  %v1136_v4 = vpop.f32.mrb[16].mxu1 }
 0x13a   : > { %v940_v59 = vadd.f32 %v909_v40, %v665_v33  ;;  %v911_v2 = vpop.f32.mrb[17].mxu0  ;;  %v1138_v50 = vpop.f32.mrb[17].mxu1 }
 0x13b   : > { %v912_v19 = vpop.f32.mrb[18].mxu0  ;;  %v1139_v21 = vpop.f32.mrb[18].mxu1 }
 0x13c   : > { %v1167_v56 = vadd.f32 %v1136_v4, %v940_v59  ;;  %v941_v20 = vadd.f32 %v912_v19, %v668_v37  ;;  %v914_v23 = vpop.f32.mrb[19].mxu0  ;;  %v1141_v9 = vpop.f32.mrb[19].mxu1 }
 0x13e   : > { %v1168_v42 = vadd.f32 %v1139_v21, %v941_v20 }
 0x141   : > { %v917_v47 = vpop.f32.mrb[20].mxu0  ;;  %v1144_v22 = vpop.f32.mrb[20].mxu1 }
 0x142   : > { %v942_v17 = vadd.f32 %v917_v47, %v673_v41  ;;  %v919_v55 = vpop.f32.mrb[21].mxu0  ;;  %v1146_v26 = vpop.f32.mrb[21].mxu1 }
 0x143   : > { %v920_v24 = vpop.f32.mrb[22].mxu0  ;;  %v1147_v30 = vpop.f32.mrb[22].mxu1 }
 0x144   : > { %v943_v27 = vadd.f32 %v920_v24, %v676_v38  ;;  %v1169_v28 = vadd.f32 %v1144_v22, %v942_v17  ;;  %v922_v63 = vpop.f32.mrb[23].mxu0  ;;  %v1149_v14 = vpop.f32.mrb[23].mxu1 }
 0x146   : > { %v1170_v1 = vadd.f32 %v1147_v30, %v943_v27 }
 0x149   : > { %v925_v18 = vpop.f32.mrb[24].mxu0  ;;  %v1152_v33 = vpop.f32.mrb[24].mxu1 }
 0x14a   : > { %v944_v5 = vadd.f32 %v925_v18, %v681_v43  ;;  %v927_v62 = vpop.f32.mrb[25].mxu0  ;;  %v1154_v10 = vpop.f32.mrb[25].mxu1 }
 0x14b   : > { %v928_v54 = vpop.f32.mrb[26].mxu0  ;;  %v1155_v37 = vpop.f32.mrb[26].mxu1 }
 0x14c   : > { %v945_v25 = vadd.f32 %v928_v54, %v684_v36  ;;  %v1171_v35 = vadd.f32 %v1152_v33, %v944_v5  ;;  %v930_v0 = vpop.f32.mrb[27].mxu0  ;;  %v1157_v16 = vpop.f32.mrb[27].mxu1 }
 0x14e   : > { %v1172_v58 = vadd.f32 %v1155_v37, %v945_v25 }
 0x151   : > { %v933_v39 = vpop.f32.mrb[28].mxu0  ;;  %v1160_v46 = vpop.f32.mrb[28].mxu1 }
 0x152   : > { %v946_v41 = vadd.f32 %v933_v39, %v689_v7  ;;  %v935_v52 = vpop.f32.mrb[29].mxu0  ;;  %v1162_v6 = vpop.f32.mrb[29].mxu1 }
 0x153   : > { %v936_v3 = vpop.f32.mrb[30].mxu0  ;;  %v1163_v15 = vpop.f32.mrb[30].mxu1 }
 0x154   : > { %v947_v38 = vadd.f32 %v936_v3, %v692_v12  ;;  %v1173_v53 = vadd.f32 %v1160_v46, %v946_v41  ;;  %v938_v48 = vpop.f32.mrb[31].mxu0  ;;  %v1165_v49 = vpop.f32.mrb[31].mxu1 }
 0x156   : > { %v1174_v43 = vadd.f32 %v1163_v15, %v947_v38 }
 0x169   : > { %v1454_v13 = vpop.f32.mrb[32].mxu0  ;;  %v1708_v29 = vpop.f32.mrb[32].mxu1 }
 0x16a   : > { %v1485_v57 = vadd.f32 %v1454_v13, %v1167_v56  ;;  %v1456_v32 = vpop.f32.mrb[33].mxu0  ;;  %v1710_v36 = vpop.f32.mrb[33].mxu1 }
 0x16b   : > { %v1457_v45 = vpop.f32.mrb[34].mxu0  ;;  %v1711_v61 = vpop.f32.mrb[34].mxu1 }
 0x16c   : > { %v1739_v34 = vadd.f32 %v1708_v29, %v1485_v57  ;;  %v1486_v60 = vadd.f32 %v1457_v45, %v1168_v42  ;;  %v1459_v7 = vpop.f32.mrb[35].mxu0  ;;  %v1713_v51 = vpop.f32.mrb[35].mxu1 }
 0x16e   : > { %v1740_v31 = vadd.f32 %v1711_v61, %v1486_v60 }
 0x171   : > { %v1462_v8 = vpop.f32.mrb[36].mxu0  ;;  %v1716_v44 = vpop.f32.mrb[36].mxu1 }
 0x172   : > { %v1487_v11 = vadd.f32 %v1462_v8, %v1169_v28  ;;  %v1464_v12 = vpop.f32.mrb[37].mxu0  ;;  %v1718_v59 = vpop.f32.mrb[37].mxu1 }
 0x173   : > { %v1465_v40 = vpop.f32.mrb[38].mxu0  ;;  %v1719_v50 = vpop.f32.mrb[38].mxu1 }
 0x174   : > { %v1488_v4 = vadd.f32 %v1465_v40, %v1170_v1  ;;  %v1741_v2 = vadd.f32 %v1716_v44, %v1487_v11  ;;  %v1467_v19 = vpop.f32.mrb[39].mxu0  ;;  %v1721_v56 = vpop.f32.mrb[39].mxu1 }
 0x176   : > { %v1742_v20 = vadd.f32 %v1719_v50, %v1488_v4 }
 0x179   : > { %v1470_v21 = vpop.f32.mrb[40].mxu0  ;;  %v1724_v42 = vpop.f32.mrb[40].mxu1 }
 0x17a   : > { %v1489_v23 = vadd.f32 %v1470_v21, %v1171_v35  ;;  %v1472_v9 = vpop.f32.mrb[41].mxu0  ;;  %v1726_v17 = vpop.f32.mrb[41].mxu1 }
 0x17b   : > { %v1473_v47 = vpop.f32.mrb[42].mxu0  ;;  %v1727_v24 = vpop.f32.mrb[42].mxu1 }
 0x17c   : > { %v1490_v55 = vadd.f32 %v1473_v47, %v1172_v58  ;;  %v1743_v22 = vadd.f32 %v1724_v42, %v1489_v23  ;;  %v1475_v26 = vpop.f32.mrb[43].mxu0  ;;  %v1729_v27 = vpop.f32.mrb[43].mxu1 }
 0x17d   : > { %v3140_v26 = vld [vmem:[%s4332_s2] ss:$0 sm:$0xff] }
 0x17e   : > { %v1744_v28 = vadd.f32 %v1727_v24, %v1490_v55 }
 0x181   : > { %v1478_v30 = vpop.f32.mrb[44].mxu0  ;;  %v1732_v1 = vpop.f32.mrb[44].mxu1 }
 0x182   : > { %v1491_v63 = vadd.f32 %v1478_v30, %v1173_v53  ;;  %v1480_v14 = vpop.f32.mrb[45].mxu0  ;;  %v1734_v5 = vpop.f32.mrb[45].mxu1 }
 0x183   : > { %v1481_v18 = vpop.f32.mrb[46].mxu0  ;;  %v1735_v54 = vpop.f32.mrb[46].mxu1 }
 0x184   : > { %v1492_v62 = vadd.f32 %v1481_v18, %v1174_v43  ;;  %v1745_v33 = vadd.f32 %v1732_v1, %v1491_v63  ;;  %v1483_v10 = vpop.f32.mrb[47].mxu0  ;;  %v1737_v25 = vpop.f32.mrb[47].mxu1 }
 0x186   : > { %v1746_v35 = vadd.f32 %v1735_v54, %v1492_v62 }
 0x199   : > { %v1935_v37 = vpop.f32.mrb[48].mxu0  ;;  %v2253_v16 = vpop.f32.mrb[48].mxu1 }
 0x19a   : > { %v1966_v0 = vadd.f32 %v1935_v37, %v1739_v34  ;;  %v1937_v58 = vpop.f32.mrb[49].mxu0  ;;  %v2255_v39 = vpop.f32.mrb[49].mxu1 }
 0x19b   : > { %v1938_v41 = vpop.f32.mrb[50].mxu0  ;;  %v2256_v3 = vpop.f32.mrb[50].mxu1 }
 0x19c   : > { %v2284_v52 = vadd.f32 %v2253_v16, %v1966_v0  ;;  %v1967_v46 = vadd.f32 %v1938_v41, %v1740_v31  ;;  %v1940_v6 = vpop.f32.mrb[51].mxu0  ;;  %v2258_v38 = vpop.f32.mrb[51].mxu1 }
 0x19e   : > { %v2285_v53 = vadd.f32 %v2256_v3, %v1967_v46 }
 0x1a1   : > { %v1943_v15 = vpop.f32.mrb[52].mxu0  ;;  %v2261_v43 = vpop.f32.mrb[52].mxu1 }
 0x1a2   : > { %v1968_v48 = vadd.f32 %v1943_v15, %v1741_v2  ;;  %v1945_v49 = vpop.f32.mrb[53].mxu0  ;;  %v2263_v57 = vpop.f32.mrb[53].mxu1 }
 0x1a3   : > { %v1946_v13 = vpop.f32.mrb[54].mxu0  ;;  %v2264_v36 = vpop.f32.mrb[54].mxu1 }
 0x1a4   : > { %v1969_v29 = vadd.f32 %v1946_v13, %v1742_v20  ;;  %v2286_v32 = vadd.f32 %v2261_v43, %v1968_v48  ;;  %v1948_v45 = vpop.f32.mrb[55].mxu0  ;;  %v2266_v34 = vpop.f32.mrb[55].mxu1 }
 0x1a6   : > { %v2287_v60 = vadd.f32 %v2264_v36, %v1969_v29 }
 0x1a9   : > { %v1951_v61 = vpop.f32.mrb[56].mxu0  ;;  %v2269_v31 = vpop.f32.mrb[56].mxu1 }
 0x1aa   : > { %v1970_v7 = vadd.f32 %v1951_v61, %v1743_v22  ;;  %v1953_v51 = vpop.f32.mrb[57].mxu0  ;;  %v2271_v11 = vpop.f32.mrb[57].mxu1 }
 0x1ab   : > { %v1954_v8 = vpop.f32.mrb[58].mxu0  ;;  %v2272_v40 = vpop.f32.mrb[58].mxu1 }
 0x1ac   : > { %v1971_v12 = vadd.f32 %v1954_v8, %v1744_v28  ;;  %v2288_v44 = vadd.f32 %v2269_v31, %v1970_v7  ;;  %v1956_v59 = vpop.f32.mrb[59].mxu0  ;;  %v2274_v4 = vpop.f32.mrb[59].mxu1 }
 0x1ae   : > { %v2289_v2 = vadd.f32 %v2272_v40, %v1971_v12 }
 0x1b1   : > { %v1959_v50 = vpop.f32.mrb[60].mxu0  ;;  %v2277_v20 = vpop.f32.mrb[60].mxu1 }
 0x1b2   : > { %v1972_v19 = vadd.f32 %v1959_v50, %v1745_v33  ;;  %v1961_v56 = vpop.f32.mrb[61].mxu0  ;;  %v2279_v23 = vpop.f32.mrb[61].mxu1 }
 0x1b3   : > { %v1962_v21 = vpop.f32.mrb[62].mxu0  ;;  %v2280_v47 = vpop.f32.mrb[62].mxu1 }
 0x1b4   : > { %v1973_v9 = vadd.f32 %v1962_v21, %v1746_v35  ;;  %v2290_v42 = vadd.f32 %v2277_v20, %v1972_v19  ;;  %v1964_v17 = vpop.f32.mrb[63].mxu0  ;;  %v2282_v55 = vpop.f32.mrb[63].mxu1 }
 0x1b6   : > { %v2291_v22 = vadd.f32 %v2280_v47, %v1973_v9 }
 0x1c9   : > { %v2507_v24 = vpop.f32.mrb[64].mxu0  ;;  %v2523_v28 = vpop.f32.mrb[64].mxu1 }
 0x1ca   : > { %v2538_v27 = vadd.f32 %v2507_v24, %v2284_v52  ;;  %v2509_v30 = vpop.f32.mrb[65].mxu0  ;;  %v2542_v63 = vadd.f32 %v2523_v28, %v2288_v44  ;;  %v2525_v14 = vpop.f32.mrb[65].mxu1 }
 0x1cb   : > { %v2510_v1 = vpop.f32.mrb[66].mxu0  ;;  %v2526_v62 = vpop.f32.mrb[66].mxu1 }
 0x1cc   : > { %v2553_v18 = vadd.f32 %v3140_v26, %v2538_v27  ;;  %v2539_v5 = vadd.f32 %v2510_v1, %v2285_v53  ;;  %v2512_v33 = vpop.f32.mrb[67].mxu0  ;;  %v2557_v54 = vadd.f32 %v3140_v26, %v2542_v63  ;;  %v2543_v10 = vadd.f32 %v2526_v62, %v2289_v2  ;;  %v2528_v25 = vpop.f32.mrb[67].mxu1 }
 0x1ce   : > { %v2554_v35 = vadd.f32 %v3140_v26, %v2539_v5  ;;  %v2558_v37 = vadd.f32 %v3140_v26, %v2543_v10  ;;  %v2561_v0 = vmax.f32 %v2553_v18, 0.0  ;;  %v2565_v58 = vmax.f32 %v2557_v54, 0.0 }
 0x1d0   : > { %v2562_v16 = vmax.f32 %v2554_v35, 0.0  ;;  %v2566_v39 = vmax.f32 %v2558_v37, 0.0 }
 0x1d1   : > { %v2515_v41 = vpop.f32.mrb[68].mxu0  ;;  %v2531_v3 = vpop.f32.mrb[68].mxu1 }
 0x1d2   : > { %v3163_v52 = vpack.c.bf16 %v2562_v16, %v2561_v0  ;;  %v2540_v46 = vadd.f32 %v2515_v41, %v2286_v32  ;;  %v2517_v6 = vpop.f32.mrb[69].mxu0  ;;  %v3173_v38 = vpack.c.bf16 %v2566_v39, %v2565_v58  ;;  %v2544_v53 = vadd.f32 %v2531_v3, %v2290_v42  ;;  %v2533_v15 = vpop.f32.mrb[69].mxu1 }
 0x1d3   : > { %v2518_v48 = vpop.f32.mrb[70].mxu0  ;;  %v2534_v13 = vpop.f32.mrb[70].mxu1 }
 0x1d4   : > { %3164 = vst [vmem:[%s170_s21] sm:$0xff] %v3163_v52   ;;  %v2555_v49 = vadd.f32 %v3140_v26, %v2540_v46  ;;  %v2541_v43 = vadd.f32 %v2518_v48, %v2287_v60  ;;  %v2520_v57 = vpop.f32.mrb[71].mxu0  ;;  %3181 = vst [vmem:[%s170_s21 + $0x10] sm:$0xff] %v3173_v38   ;;  %v2559_v29 = vadd.f32 %v3140_v26, %v2544_v53  ;;  %v2536_v45 = vpop.f32.mrb[71].mxu1 }
 0x1d5   : > { %v2545_v36 = vadd.f32 %v2534_v13, %v2291_v22 }
 0x1d6   : > { %v2556_v34 = vadd.f32 %v3140_v26, %v2541_v43  ;;  %v2563_v7 = vmax.f32 %v2555_v49, 0.0  ;;  %v2567_v32 = vmax.f32 %v2559_v29, 0.0 }
 0x1d7   : > { %v2560_v61 = vadd.f32 %v3140_v26, %v2545_v36 }
 0x1d8   : > { %v2564_v51 = vmax.f32 %v2556_v34, 0.0 }
 0x1d9   : > { %v2568_v31 = vmax.f32 %v2560_v61, 0.0 }
 0x1da   : > { %v3168_v8 = vpack.c.bf16 %v2564_v51, %v2563_v7 }
 0x1db   : > { %v3178_v11 = vpack.c.bf16 %v2568_v31, %v2567_v32 }
 0x1dc   : > { %3180 = vst [vmem:[%s170_s21 + $0x8] sm:$0xff] %v3168_v8  }
 0x1dd   : > { %3182 = vst [vmem:[%s170_s21 + $0x18] sm:$0xff] %v3178_v11  }
 0x1de PF: > { %s13_s12 = sadd.s32 1, %s3347_s12  }
 0x1df   : > { %p10_p4 = scmp.ge.s32.totalorder %s13_s12, 4  }
 0x1e1   :  { %12 = sbr.rel (!%p10_p4) target bundleno = 1 (0x1), region = 72 }

// kernel: _lambda_.30
= control target key start
LH: loop header
LB: loop body
LE: loop exit
PB: predicated region body
PF: predicated region fallthrough
CT: control target
= control target key end

     0   :  { %s1594_s12 = smov 0   ;;  %s1850_s0 = inlined_call_operand.vmem [shape: bf16[2,4,18,32], index: 0, kind: input, shape index: {}]   ;;  %s1851_s1 = inlined_call_operand.vmem [shape: bf16[9,32,128], index: 1, kind: input, shape index: {}]   ;;  %s1852_s2 = inlined_call_operand.vmem [shape: f32[1,128], index: 2, kind: input, shape index: {}]   ;;  %s1853_s3 = inlined_call_operand.vmem [shape: bf16[2,2,16,128], index: 3, kind: output, shape index: {}]  }
   0x1 LB: > { %s1246_s13 = sadd.s32 4294967295, %s1572_s12   ;;  %p1250_p0 = scmp.ge.s32.totalorder %s1572_s12, 1  ;;  %s1572_s12 = sphi %s1594_s12, %s13_s12  }
   0x2   : > { %p137_p1 = scmp.lt.s32.totalorder %s1572_s12, 3 }
   0x4   : > { %p138_p2 = pnand %p1250_p0, %p137_p1 }
   0x5   : > { %v1542_v0 = vld [vmem:[%s1851_s1 + $0x40] sm:$0xff] (!%p138_p2)   ;;  %p161_p3 = scmp.lt.s32.totalorder (!%p138_p2), %s1246_s13, 1  ;;  %v1543_v1 = vld [vmem:[%s1851_s1 + $0x10] sm:$0xff] (!%p138_p2)   ;;  %v1544_v2 = vld [vmem:[%s1851_s1 + $0x48] sm:$0xff] (!%p138_p2)   ;;  %vm182_vm0 = vsmask.f32 (!%p138_p2), 3328 }
   0x6   : > { %141 = sbr.rel (%p138_p2) target bundleno = 314 (0x13a), region = 32  ;;  %1461 = vmatprep.subr.bf16.mxu0 (!%p138_p2), %v1542_v0  ;;  %1429 = vmatprep.subr.bf16.mxu1 (!%p138_p2), %v1543_v1  ;;  %v1545_v3 = vld [vmem:[%s1851_s1 + $0x18] sm:$0xff] (!%p138_p2)   ;;  %v1620_v4 = vld [vmem:[%s1851_s1 + $0x50] sm:$0xff] (!%p138_p2)   ;;  %vm183_vm1 = vsmask.f32 (!%p138_p2), 7440  ;;  %v1630_v5 = vld [vmem:[%s1851_s1] sm:$0xff] (!%p138_p2)  }
   0x7   : > { %1462 = vmatpush3.bf16.msra.mxu0 (!%p138_p2), %v1542_v0  ;;  %1430 = vmatpush3.bf16.msra.mxu1 (!%p138_p2), %v1543_v1  ;;  %vm1666_vm2 = vmor (!%p138_p2), %vm182_vm0, %vm183_vm1  ;;  %vm256_vm3 = vcmask (!%p138_p2), 261120   ;;  %vm395_vm4 = vcmask (!%p138_p2), 1042432   ;;  %vm396_vm5 = vcmask (!%p138_p2), 1046532  }
   0x8   : > { %1463 = vmatprep.subr.bf16.mxu0 (!%p138_p2), %v1544_v2  ;;  %1431 = vmatprep.subr.bf16.mxu1 (!%p138_p2), %v1545_v3  ;;  %vm1708_vm6 = vmor (!%p138_p2), %vm395_vm4, %vm396_vm5 }
   0xb   : > { %1464 = vmatpush3.bf16.msra.mxu0 (!%p138_p2), %v1544_v2  ;;  %1432 = vmatpush3.bf16.msra.mxu1 (!%p138_p2), %v1545_v3 }
   0xc   : > { %1469 = vmatprep.subr.bf16.mxu0 (!%p138_p2), %v1620_v4  ;;  %1437 = vmatprep.subr.bf16.mxu1 (!%p138_p2), %v1630_v5 }
   0xd   : > { %s1859_s13 = smov (!%p161_p3, %s1246_s13), 1 }
   0xe   : > { %s1533_s22 = smul.u32 48, %s1859_s13  ;;  %s1377_s4 = sshll.u32 %s1859_s13, 4 }
   0xf   : > { %s170_s7 = scalar_lea.vmem %s1853_s3, %s1377_s4 }
  0x10   : > { %s1625_s27 = scalar_lea.vmem %s1850_s0, %s1533_s22 }
  0x11   : > { %v1633_v6 = vld [vmem:[%s1625_s27] sm:$0xf]  ;;  %v1636_v7 = vld [vmem:[%s1625_s27 + $0x4] sm:$0xf]  ;;  %v1639_v8 = vld [vmem:[%s1625_s27 + $0x8] sm:$0x1] }
  0x12   : > { %v186_v9 = vshrl.u32 %v1633_v6, 16  ;;  %v189_v10 = vshll.u32 %v1633_v6, 16  ;;  %v195_v11 = vshll.u32 %v1636_v7, 16  ;;  %v199_v12 = vshrl.u32 %v1636_v7, 16  ;;  %v1296_v13 = vld [vmem:[%s1625_s27 + $0xc] sm:$0xf] }
  0x13   : > { %v205_v14 = vshll.u32 %v1639_v8, 16  ;;  %v1649_v15 = vld [vmem:[%s1625_s27 + $0x10] sm:$0xf]  ;;  %v1652_v16 = vld [vmem:[%s1625_s27 + $0x14] sm:$0x1]  ;;  %v592_v22 = vshrl.u32 %v1296_v13, 16 }
  0x14   : > { %v188_v17 = vrot.slane %v186_v9, 4  ;;  %v191_v18 = vrot.slane %v189_v10, 5  ;;  %v197_v19 = vrot.slane %v195_v11, 5  ;;  %v201_v20 = vrot.slane %v199_v12, 4  ;;  %v1659_v29 = vld [vmem:[%s1625_s27 + $0xc] sm:$0xf] }
  0x15   : > { %v207_v21 = vrot.slane %v205_v14, 5  ;;  %v595_v23 = vshll.u32 %v1296_v13, 16  ;;  %v601_v24 = vshll.u32 %v1649_v15, 16  ;;  %v605_v27 = vshrl.u32 %v1649_v15, 16  ;;  %v1662_v30 = vld [vmem:[%s1625_s27 + $0x10] sm:$0xf] }
  0x16   : > { %v192_v25 = vor.u32 %v191_v18, %v188_v17  ;;  %v202_v26 = vor.u32 %v201_v20, %v197_v19  ;;  %v611_v28 = vshll.u32 %v1652_v16, 16  ;;  %v594_v32 = vrot.slane %v592_v22, 4  ;;  %v1671_v35 = vld [vmem:[%s1625_s27 + $0x14] sm:$0x1]  ;;  %v1299_v39 = vld [vmem:[%s1625_s27 + $0x18] sm:$0xf] }
  0x17   : > { %v597_v33 = vrot.slane %v595_v23, 5  ;;  %v603_v34 = vrot.slane %v601_v24, 5  ;;  %v607_v38 = vrot.slane %v605_v27, 4  ;;  %v210_v42 = vshrl.u32 %v1659_v29, 16  ;;  %v1682_v48 = vld [vmem:[%s1625_s27 + $0x1c] sm:$0xf] }
  0x18   : > { %v193_v36 = vrot.slane %v192_v25, 4  ;;  %v203_v37 = vrot.slane %v202_v26, 4  ;;  %v613_v41 = vrot.slane %v611_v28, 5  ;;  %v213_v43 = vshll.u32 %v1659_v29, 16  ;;  %v1687_v57 = vld [vmem:[%s1625_s27 + $0x20] sm:$0x1] }
  0x19   : > { %v598_v40 = vor.u32 %v597_v33, %v594_v32  ;;  %v608_v46 = vor.u32 %v607_v38, %v603_v34  ;;  %v219_v47 = vshll.u32 %v1662_v30, 16  ;;  %v212_v51 = vrot.slane %v210_v42, 4  ;;  %v1312_v2 = vld [vmem:[%s1625_s27 + $0xc] sm:$0xe]  ;;  %v1313_v42 = vld [vmem:[%s1625_s27 + $0x18] sm:$0xe] }
  0x1a   : > { %v198_v44 = vsel %vm1666_vm2, %v193_v36, %v197_v19  ;;  %v208_v45 = vsel %vm1666_vm2, %v203_v37, %v207_v21  ;;  %v215_v52 = vrot.slane %v213_v43, 5  ;;  %v223_v55 = vshrl.u32 %v1662_v30, 16 }
  0x1b   : > { %v1258_v49 = vcombine.low %v198_v44, %v208_v45  ;;  %v599_v50 = vrot.slane %v598_v40, 4  ;;  %v609_v53 = vrot.slane %v608_v46, 4  ;;  %v221_v54 = vrot.slane %v219_v47, 5 }
  0x1c   : > { %v229_v56 = vshll.u32 %v1671_v35, 16  ;;  %v731_v59 = vrot.slane %v1649_v15, 5  ;;  %v216_v60 = vor.u32 %v215_v52, %v212_v51  ;;  %v616_v61 = vshrl.u32 %v1299_v39, 16  ;;  %v1340_v51 = vld [vmem:[%s1625_s27 + $0x18] sm:$0xf] }
  0x1d   : > { %1433 = vmatprep.mubr.msk.bf16.mxu1 %vm256_vm3, %v1258_v49  ;;  %v604_v58 = vsel %vm1666_vm2, %v599_v50, %v603_v34  ;;  %v614_v62 = vsel %vm1666_vm2, %v609_v53, %v613_v41  ;;  %v225_v63 = vrot.slane %v223_v55, 4  ;;  %v619_v1 = vshll.u32 %v1299_v39, 16  ;;  %v389_v34 = vld [vmem:[%s1625_s27] sm:$0xe]  ;;  %v1548_v41 = vld [vmem:[%s1851_s1 + $0x58] sm:$0xff]  }
  0x1e   : > { %v231_v0 = vrot.slane %v229_v56, 5  ;;  %v1306_v3 = vcombine.low %v604_v58, %v614_v62  ;;  %v217_v9 = vrot.slane %v216_v60, 4  ;;  %v618_v10 = vrot.slane %v616_v61, 4  ;;  %v1553_v49 = vld [vmem:[%s1851_s1 + $0x20] sm:$0xff]   ;;  %v1743_v52 = vld [vmem:[%s1625_s27 + $0x1c] sm:$0xf] }
  0x1f   : > { %v625_v11 = vshll.u32 %v1682_v48, 16  ;;  %v226_v12 = vor.u32 %v225_v63, %v221_v54  ;;  %v621_v13 = vrot.slane %v619_v1, 5  ;;  %v629_v14 = vshrl.u32 %v1682_v48, 16  ;;  %v1551_v53 = vld [vmem:[%s1851_s1 + $0x60] sm:$0xff]   ;;  %v1555_v1 = vld [vmem:[%s1851_s1 + $0x28] sm:$0xff]  }
  0x20   : > { %v635_v15 = vshll.u32 %v1687_v57, 16  ;;  %1465 = vmatprep.mubr.msk.bf16.mxu0 %vm256_vm3, %v1306_v3  ;;  %v734_v17 = vrot.slane %v1652_v16, 5  ;;  %v222_v18 = vsel %vm1666_vm2, %v217_v9, %v221_v54  ;;  %v1314_v23 = vrot.slane %v1312_v2, 9 }
  0x21   : > { %v627_v19 = vrot.slane %v625_v11, 5  ;;  %v227_v20 = vrot.slane %v226_v12, 4  ;;  %v622_v21 = vor.u32 %v621_v13, %v618_v10  ;;  %v631_v22 = vrot.slane %v629_v14, 4  ;;  %v1769_v13 = vld [vmem:[%s1625_s27 + $0x20] sm:$0x1]  ;;  %v1554_v14 = vld [vmem:[%s1851_s1 + $0x68] sm:$0xff]  }
  0x22   : > { %v403_v24 = vrot.slane %v1639_v8, 5  ;;  %v1264_v25 = vcombine.low %v1633_v6, %v1636_v7  ;;  %v733_v16 = vrot.slane %v731_v59, 4  ;;  %v637_v33 = vrot.slane %v635_v15, 5  ;;  %v1549_v6 = vld [vmem:[%s1851_s1 + $0x8] sm:$0xff]   ;;  %v1556_v15 = vld [vmem:[%s1625_s27 + $0x18] sm:$0xff]  }
  0x23   : > { %v232_v27 = vsel %vm1666_vm2, %v227_v20, %v231_v0  ;;  %v623_v28 = vrot.slane %v622_v21, 4  ;;  %v632_v32 = vor.u32 %v631_v22, %v627_v19  ;;  %v400_v8 = vrot.slane %v1636_v7, 5  ;;  %v390_v0 = vld [vmem:[%s1625_s27 + $0xc] sm:$0xe] }
  0x24   : > { %v1259_v36 = vcombine.low %v222_v18, %v232_v27  ;;  %v732_v39 = vsel %vm1708_vm6, %v1314_v23, %v731_v59  ;;  %v735_v40 = vsel %vm1708_vm6, %v733_v16, %v734_v17  ;;  %v738_v43 = vrot.slane %v1682_v48, 5  ;;  %v1343_v17 = vld [vmem:[%s1625_s27 + $0x24] sm:$0xf]  ;;  %v1778_v18 = vld [vmem:[%s1625_s27 + $0x28] sm:$0xf] }
  0x25   : > { %v628_v37 = vsel %vm1666_vm2, %v623_v28, %v627_v19  ;;  %v633_v38 = vrot.slane %v632_v32, 4  ;;  %v1270_v44 = vrot.slane %v389_v34, 9  ;;  %v402_v45 = vrot.slane %v400_v8, 4  ;;  %v1557_v28 = vld [vmem:[%s1851_s1 + $0x70] sm:$0xff]  }
  0x26   : > { %1434 = vmatmul.mubr.msk.bf16.vlgmr.msra.gmra.mrb[0].mxu1 %vm256_vm3, %v1259_v36  ;;  %v1320_v47 = vcombine.low %v732_v39, %v735_v40  ;;  %v741_v48 = vrot.slane %v1687_v57, 5  ;;  %v1315_v50 = vrot.slane %v1313_v42, 9  ;;  %v923_v55 = vshrl.u32 %v1340_v51, 16  ;;  %v1561_v40 = vld [vmem:[%s1851_s1 + $0x38] sm:$0xff]  }
  0x27   : > { %v638_v7 = vsel %vm1666_vm2, %v633_v38, %v637_v33  ;;  %1438 = vmatpush3.bf16.msra.mxu1 %v1630_v5  ;;  %1441 = vmatprep.mubr.msk.bf16.mxu1 %vm256_vm3, %v1264_v25  ;;  %v740_v5 = vrot.slane %v738_v43, 4  ;;  %v401_v54 = vsel %vm1708_vm6, %v1270_v44, %v400_v8  ;;  %v926_v56 = vshll.u32 %v1340_v51, 16 }
  0x28   : > { %v1307_v46 = vcombine.low %v628_v37, %v638_v7  ;;  %1439 = vmatprep.subr.bf16.mxu1 %v1549_v6  ;;  %v932_v57 = vshll.u32 %v1743_v52, 16  ;;  %v936_v58 = vshrl.u32 %v1743_v52, 16  ;;  %v1265_v59 = vcombine.low %v1659_v29, %v1662_v30  ;;  %v1558_v7 = vld [vmem:[%s1625_s27 + $0x24] sm:$0xff]  }
  0x29   : > { %v407_v60 = vrot.slane %v1662_v30, 5  ;;  %v739_v61 = vsel %vm1708_vm6, %v1315_v50, %v738_v43  ;;  %v742_v62 = vsel %vm1708_vm6, %v740_v5, %v741_v48  ;;  %v925_v29 = vrot.slane %v923_v55, 4  ;;  %v1356_v50 = vld [vmem:[%s1625_s27 + $0x18] sm:$0xe] }
  0x2a   : > { %1466 = vmatmul.mubr.msk.bf16.vlgmr.msra.gmra.mrb[0].mxu0 %vm256_vm3, %v1307_v46  ;;  %v928_v30 = vrot.slane %v926_v56, 5  ;;  %v934_v2 = vrot.slane %v932_v57, 5  ;;  %v938_v3 = vrot.slane %v936_v58, 4  ;;  %v410_v9 = vrot.slane %v1671_v35, 5  ;;  %v1559_v35 = vld [vmem:[%s1851_s1 + $0x30] sm:$0xff]   ;;  %v1564_v56 = vld [vmem:[%s1625_s27 + $0x18] sm:$0xff]  }
  0x2b   : > { %1470 = vmatpush3.bf16.msra.mxu0 %v1620_v4  ;;  %1440 = vmatpush3.bf16.msra.mxu1 %v1549_v6  ;;  %v404_v4 = vsel %vm1708_vm6, %v402_v45, %v403_v24  ;;  %v1321_v10 = vcombine.low %v739_v61, %v742_v62  ;;  %v1271_v11 = vrot.slane %v390_v0, 9  ;;  %v409_v12 = vrot.slane %v407_v60, 4  ;;  %v1562_v6 = vld [vmem:[%s1625_s27 + $0xc] sm:$0xff]  }
  0x2c   : > { %1471 = vmatprep.subr.bf16.mxu0 %v1548_v41  ;;  %1473 = vmatprep.mubr.msk.bf16.mxu0 %vm256_vm3, %v1320_v47  ;;  %v1276_v63 = vcombine.low %v401_v54, %v404_v4  ;;  %v929_v19 = vor.u32 %v928_v30, %v925_v29  ;;  %v939_v20 = vor.u32 %v938_v3, %v934_v2  ;;  %v942_v21 = vshll.u32 %v1769_v13, 16  ;;  %v1560_v47 = vld [vmem:[%s1851_s1 + $0x78] sm:$0xff]   ;;  %v1563_v54 = vld [vmem:[%s1851_s1 + $0x80] sm:$0xff]   ;;  %v1565_v0 = vld [vmem:[%s1851_s1 + $0x88] sm:$0xff]  }
  0x2d   : > { %1445 = vmatprep.subr.bf16.mxu1 %v1553_v49  ;;  %v408_v22 = vsel %vm1708_vm6, %v1271_v11, %v407_v60  ;;  %v411_v23 = vsel %vm1708_vm6, %v409_v12, %v410_v9  ;;  %v947_v24 = vshrl.u32 %v1343_v17, 16  ;;  %v950_v25 = vshll.u32 %v1343_v17, 16 }
  0x2e   : > { %v956_v16 = vshll.u32 %v1778_v18, 16  ;;  %v960_v27 = vshrl.u32 %v1778_v18, 16  ;;  %v930_v32 = vrot.slane %v929_v19, 4  ;;  %v940_v33 = vrot.slane %v939_v20, 4 }
  0x2f   : > { %1472 = vmatpush3.bf16.msra.mxu0 %v1548_v41  ;;  %v944_v34 = vrot.slane %v942_v21, 5  ;;  %v1277_v36 = vcombine.low %v408_v22, %v411_v23  ;;  %v949_v8 = vrot.slane %v947_v24, 4  ;;  %v952_v37 = vrot.slane %v950_v25, 5  ;;  %v1345_v41 = vld [vmem:[%s1625_s27 + $0x2c] sm:$0x1] }
  0x30   : > { %1477 = vmatprep.subr.bf16.mxu0 %v1551_v53  ;;  %v958_v38 = vrot.slane %v956_v16, 5  ;;  %v962_v39 = vrot.slane %v960_v27, 4  ;;  %v935_v42 = vsel %vm1666_vm2, %v930_v32, %v934_v2  ;;  %v966_v46 = vshll.u32 %v1345_v41, 16 }
  0x31   : > { %v945_v43 = vsel %vm1666_vm2, %v940_v33, %v944_v34  ;;  %v953_v44 = vor.u32 %v952_v37, %v949_v8  ;;  %v1062_v48 = vrot.slane %v1743_v52, 5  ;;  %v1358_v4 = vrot.slane %v1356_v50, 9 }
  0x32   : > { %1442 = vmatmul.mubr.msk.bf16.vlgmr.msra.gmra.mrb[0].mxu1 %vm256_vm3, %v1265_v59  ;;  %v963_v45 = vor.u32 %v962_v39, %v958_v38  ;;  %v1065_v52 = vrot.slane %v1769_v13, 5  ;;  %v1072_v30 = vrot.slane %v1345_v41, 5 }
  0x33   : > { %1446 = vmatpush3.bf16.msra.mxu1 %v1553_v49  ;;  %1449 = vmatprep.mubr.msk.bf16.mxu1 %vm256_vm3, %v1276_v63  ;;  %v1350_v49 = vcombine.low %v935_v42, %v945_v43  ;;  %v954_v5 = vrot.slane %v953_v44, 4  ;;  %v1064_v55 = vrot.slane %v1062_v48, 4  ;;  %v1063_v59 = vsel %vm1708_vm6, %v1358_v4, %v1062_v48 }
  0x34   : > { %1447 = vmatprep.subr.bf16.mxu1 %v1555_v1  ;;  %v964_v51 = vrot.slane %v963_v45, 4  ;;  %v1069_v63 = vrot.slane %v1778_v18, 5 }
  0x35   : > { %v959_v57 = vsel %vm1666_vm2, %v954_v5, %v958_v38  ;;  %v1066_v60 = vsel %vm1708_vm6, %v1064_v55, %v1065_v52 }
  0x36   : > { %1474 = vmatmul.mubr.msk.bf16.vlgmr.msra.gmra.mrb[0].mxu0 %vm256_vm3, %v1321_v10  ;;  %v1364_v62 = vcombine.low %v1063_v59, %v1066_v60  ;;  %v1071_v29 = vrot.slane %v1069_v63, 4 }
  0x37   : > { %1478 = vmatpush3.bf16.msra.mxu0 %v1551_v53  ;;  %1448 = vmatpush3.bf16.msra.mxu1 %v1555_v1  ;;  %v968_v53 = vrot.slane %v966_v46, 5  ;;  %v1357_v1 = vld [vmem:[%s1625_s27 + $0x24] sm:$0xe] }
  0x38   : > { %1479 = vmatprep.subr.bf16.mxu0 %v1554_v14  ;;  %1481 = vmatprep.mubr.msk.bf16.mxu0 %vm256_vm3, %v1556_v15  ;;  %v1359_v31 = vrot.slane %v1357_v1, 9  ;;  %v1073_v3 = vsel %vm1708_vm6, %v1071_v29, %v1072_v30  ;;  %v1370_v15 = vld [vmem:[%s1852_s2] ss:$0 sm:$0xff] }
  0x39   : > { %1453 = vmatprep.subr.bf16.mxu1 %v1559_v35  ;;  %v969_v58 = vsel %vm1666_vm2, %v964_v51, %v968_v53 }
  0x3a   : > { %v1351_v61 = vcombine.low %v959_v57, %v969_v58  ;;  %v1070_v2 = vsel %vm1708_vm6, %v1359_v31, %v1069_v63 }
  0x3b   : > { %1480 = vmatpush3.bf16.msra.mxu0 %v1554_v14  ;;  %v1365_v9 = vcombine.low %v1070_v2, %v1073_v3 }
  0x3c   : > { %1485 = vmatprep.subr.bf16.mxu0 %v1557_v28 }
  0x3e   : > { %1450 = vmatmul.mubr.msk.bf16.vlgmr.msra.gmra.mrb[0].mxu1 %vm256_vm3, %v1277_v36 }
  0x3f   : > { %1454 = vmatpush3.bf16.msra.mxu1 %v1559_v35  ;;  %1457 = vmatprep.mubr.msk.bf16.mxu1 %vm256_vm3, %v1562_v6 }
  0x40   : > { %1455 = vmatprep.subr.bf16.mxu1 %v1561_v40 }
  0x42   : > { %1482 = vmatmul.mubr.msk.bf16.vlgmr.msra.gmra.mrb[0].mxu0 %vm256_vm3, %v1558_v7 }
  0x43   : > { %1486 = vmatpush3.bf16.msra.mxu0 %v1557_v28  ;;  %1456 = vmatpush3.bf16.msra.mxu1 %v1561_v40 }
  0x44   : > { %1487 = vmatprep.subr.bf16.mxu0 %v1560_v47  ;;  %1489 = vmatprep.mubr.msk.bf16.mxu0 %vm256_vm3, %v1350_v49 }
  0x47   : > { %1488 = vmatpush3.bf16.msra.mxu0 %v1560_v47 }
  0x48   : > { %1493 = vmatprep.subr.bf16.mxu0 %v1563_v54 }
  0x4a   : > { %1458 = vmatmul.mubr.msk.bf16.vlgmr.msra.gmra.mrb[0].mxu1 %vm256_vm3, %v1564_v56 }
  0x4e   : > { %1490 = vmatmul.mubr.msk.bf16.vlgmr.msra.gmra.mrb[0].mxu0 %vm256_vm3, %v1351_v61 }
  0x4f   : > { %1494 = vmatpush3.bf16.msra.mxu0 %v1563_v54  ;;  %1497 = vmatprep.mubr.msk.bf16.mxu0 %vm256_vm3, %v1364_v62 }
  0x50   : > { %1495 = vmatprep.subr.bf16.mxu0 %v1565_v0 }
  0x53   : > { %1496 = vmatpush3.bf16.msra.mxu0 %v1565_v0 }
  0x5a   : > { %1498 = vmatmul.mubr.msk.bf16.vlgmr.msra.gmra.mrb[0].mxu0 %vm256_vm3, %v1365_v9 }
 0x11d   : > { %v1459_v10 = vpop.f32.mrb[0].mxu1 }
 0x11e   : > { %v566_v11 = vpop.f32.mrb[1].mxu1 }
 0x11f   : > { %v1460_v12 = vpop.f32.mrb[2].mxu1 }
 0x120   : > { %v569_v13 = vpop.f32.mrb[3].mxu1 }
 0x12d   : > { %v1499_v14 = vpop.f32.mrb[0].mxu0 }
 0x12e   : > { %v1501_v17 = vadd.f32 %v1499_v14, %v1459_v10  ;;  %v1137_v18 = vpop.f32.mrb[1].mxu0 }
 0x12f   : > { %v1502_v35 = vadd.f32 %v1137_v18, %v566_v11  ;;  %v1500_v19 = vpop.f32.mrb[2].mxu0 }
 0x130   : > { %v1165_v20 = vadd.f32 %v1501_v17, %v1370_v15  ;;  %v1503_v26 = vadd.f32 %v1500_v19, %v1460_v12  ;;  %v1140_v21 = vpop.f32.mrb[3].mxu0 }
 0x131   : > { %v1163_v22 = vadd.f32 %v1502_v35, %v1370_v15  ;;  %v1504_v23 = vadd.f32 %v1140_v21, %v569_v13 }
 0x132   : > { %v1166_v24 = vadd.f32 %v1503_v26, %v1370_v15  ;;  %v1169_v16 = vmax.f32 %v1165_v20, 0.0 }
 0x133   : > { %v1164_v25 = vadd.f32 %v1504_v23, %v1370_v15  ;;  %v1167_v28 = vmax.f32 %v1163_v22, 0.0 }
 0x134   : > { %v1170_v27 = vmax.f32 %v1166_v24, 0.0 }
 0x135   : > { %v1168_v32 = vmax.f32 %v1164_v25, 0.0 }
 0x136   : > { %v1390_v33 = vpack.c.bf16 %v1170_v27, %v1169_v16 }
 0x137   : > { %v1385_v34 = vpack.c.bf16 %v1168_v32, %v1167_v28 }
 0x138   : > { %1392 = vst [vmem:[%s170_s7 + $0x8] sm:$0xff] %v1390_v33  }
 0x139   : > { %1386 = vst [vmem:[%s170_s7] sm:$0xff] %v1385_v34  }
 0x13a PF: > { %s13_s12 = sadd.s32 1, %s1572_s12  }
 0x13b   : > { %p10_p4 = scmp.ge.s32.totalorder %s13_s12, 4  }
 0x13d   :  { %12 = sbr.rel (!%p10_p4) target bundleno = 1 (0x1), region = 72 }

// kernel: _lambda_.45
= control target key start
LH: loop header
LB: loop body
LE: loop exit
PB: predicated region body
PF: predicated region fallthrough
CT: control target
= control target key end

     0   :  { %s4273_s12 = smov 0   ;;  %s5166_s0 = inlined_call_operand.vmem [shape: bf16[2,4,18,128], index: 0, kind: input, shape index: {}]   ;;  %s5167_s1 = inlined_call_operand.vmem [shape: bf16[9,128,384], index: 1, kind: input, shape index: {}]   ;;  %s5168_s2 = inlined_call_operand.vmem [shape: f32[1,384], index: 2, kind: input, shape index: {}]   ;;  %s5169_s3 = inlined_call_operand.vmem [shape: f32[2,2,16,384], index: 3, kind: output, shape index: {}]  }
   0x1 LB: > { %s3044_s13 = sadd.s32 4294967295, %s4250_s12   ;;  %p3048_p0 = scmp.ge.s32.totalorder %s4250_s12, 1  ;;  %s4250_s12 = sphi %s4273_s12, %s13_s12  }
   0x2   : > { %p137_p1 = scmp.lt.s32.totalorder %s4250_s12, 3 }
   0x4   : > { %p138_p2 = pnand %p3048_p0, %p137_p1 }
   0x5   : > { %v3950_v0 = vld [vmem:[%s5167_s1 + $0xc4] ss:$12 sps:$4 sm:$0xff] (!%p138_p2)   ;;  %v3952_v1 = vld [vmem:[%s5167_s1 + $0xc8] ss:$12 sps:$4 sm:$0xff] (!%p138_p2)   ;;  %v4252_v2 = vmov (!%p138_p2), 0   ;;  %p161_p3 = scmp.lt.s32.totalorder (!%p138_p2), %s3044_s13, 1 }
   0x6   : > { %141 = sbr.rel (%p138_p2) target bundleno = 520 (0x208), region = 32  ;;  %462 = vmatprep.mubr.bf16.mxu0 (!%p138_p2), %v4252_v2  ;;  %430 = vmatprep.subr.bf16.mxu0 (!%p138_p2), %v3950_v0  ;;  %v3953_v3 = vld [vmem:[%s5167_s1 + $0xc0] ss:$12 sps:$4 sm:$0xff] (!%p138_p2)   ;;  %v3954_v4 = vld [vmem:[%s5167_s1 + $0xdc] ss:$12 sps:$4 sm:$0xff] (!%p138_p2)   ;;  %vm780_vm3 = vcmask (!%p138_p2), 1042432  }
   0x7   : > { %3663 = vmatprep.subr.bf16.mxu1 (!%p138_p2), %v3952_v1  ;;  %431 = vmatpush1.bf16.msra.mxu0 (!%p138_p2), %v3953_v3  ;;  %v3956_v5 = vld [vmem:[%s5167_s1 + $0xe0] ss:$12 sps:$4 sm:$0xff] (!%p138_p2)   ;;  %v3957_v6 = vld [vmem:[%s5167_s1 + $0xd8] ss:$12 sps:$4 sm:$0xff] (!%p138_p2)   ;;  %v3961_v9 = vld [vmem:[%s5167_s1 + $0xf0] ss:$12 sps:$4 sm:$0xff] (!%p138_p2)  }
   0x8   : > { %3664 = vmatpush3.bf16.msra.mxu1 (!%p138_p2), %v3952_v1  ;;  %432 = vmatprep.subr.bf16.mxu0 (!%p138_p2), %v3954_v4  ;;  %v3958_v7 = vld [vmem:[%s5167_s1 + $0xf4] ss:$12 sps:$4 sm:$0xff] (!%p138_p2)   ;;  %v3960_v8 = vld [vmem:[%s5167_s1 + $0xf8] ss:$12 sps:$4 sm:$0xff] (!%p138_p2)   ;;  %v3964_v11 = vld [vmem:[%s5167_s1 + $0x110] ss:$12 sps:$4 sm:$0xff] (!%p138_p2)  }
   0x9   : > { %3665 = vmatprep.subr.bf16.mxu1 (!%p138_p2), %v3956_v5  ;;  %v3962_v10 = vld [vmem:[%s5167_s1 + $0x10c] ss:$12 sps:$4 sm:$0xff] (!%p138_p2)   ;;  %v3965_v12 = vld [vmem:[%s5167_s1 + $0x108] ss:$12 sps:$4 sm:$0xff] (!%p138_p2)   ;;  %v3966_v13 = vld [vmem:[%s5167_s1 + $0x124] ss:$12 sps:$4 sm:$0xff] (!%p138_p2)  }
   0xa   : > { %v3968_v14 = vld [vmem:[%s5167_s1 + $0x128] ss:$12 sps:$4 sm:$0xff] (!%p138_p2)   ;;  %v3969_v15 = vld [vmem:[%s5167_s1 + $0x120] ss:$12 sps:$4 sm:$0xff] (!%p138_p2)   ;;  %vm210_vm0 = vsmask.f32 (!%p138_p2), 3328 }
   0xb   : > { %433 = vmatpush1.bf16.msra.mxu0 (!%p138_p2), %v3957_v6  ;;  %v3970_v16 = vld [vmem:[%s5167_s1 + $0x13c] ss:$12 sps:$4 sm:$0xff] (!%p138_p2)   ;;  %v3972_v17 = vld [vmem:[%s5167_s1 + $0x140] ss:$12 sps:$4 sm:$0xff] (!%p138_p2)   ;;  %v3973_v18 = vld [vmem:[%s5167_s1 + $0x138] ss:$12 sps:$4 sm:$0xff] (!%p138_p2)  }
   0xc   : > { %3666 = vmatpush3.bf16.msra.mxu1 (!%p138_p2), %v3956_v5  ;;  %434 = vmatprep.subr.bf16.mxu0 (!%p138_p2), %v3958_v7  ;;  %vm211_vm1 = vsmask.f32 (!%p138_p2), 7440  ;;  %v3974_v27 = vld [vmem:[%s5167_s1 + $0x154] ss:$12 sps:$4 sm:$0xff] (!%p138_p2)   ;;  %v3976_v28 = vld [vmem:[%s5167_s1 + $0x158] ss:$12 sps:$4 sm:$0xff] (!%p138_p2)  }
   0xd   : > { %s5175_s13 = smov (!%p161_p3, %s3044_s13), 1  ;;  %3667 = vmatprep.subr.bf16.mxu1 %v3960_v8  ;;  %v3977_v31 = vld [vmem:[%s5167_s1 + $0x150] ss:$12 sps:$4 sm:$0xff]   ;;  %v3978_v34 = vld [vmem:[%s5167_s1 + $0x16c] ss:$12 sps:$4 sm:$0xff]   ;;  %vm4375_vm2 = vmor %vm210_vm0, %vm211_vm1  ;;  %vm781_vm4 = vcmask 1046532  }
   0xe   : > { %s3939_s9 = smul.u32 48, %s5175_s13  ;;  %v3980_v44 = vld [vmem:[%s5167_s1 + $0x170] ss:$12 sps:$4 sm:$0xff]   ;;  %v3981_v49 = vld [vmem:[%s5167_s1 + $0x168] ss:$12 sps:$4 sm:$0xff]   ;;  %vm4424_vm5 = vmor %vm780_vm3, %vm781_vm4 }
   0xf   : > { %435 = vmatpush1.bf16.msra.mxu0 %v3961_v9  ;;  %v3984_v57 = vld [vmem:[%s5167_s1 + $0x4] ss:$12 sps:$4 sm:$0xff]   ;;  %v3985_v60 = vld [vmem:[%s5167_s1 + $0x8] ss:$12 sps:$4 sm:$0xff]   ;;  %v3982_v1 = vld [vmem:[%s5167_s1] ss:$12 sps:$4 sm:$0xff]  }
  0x10   : > { %3668 = vmatpush3.bf16.msra.mxu1 %v3960_v8  ;;  %436 = vmatprep.subr.bf16.mxu0 %v3962_v10  ;;  %s4333_s22 = scalar_lea.vmem %s5166_s0, %s3939_s9  ;;  %v3988_v5 = vld [vmem:[%s5167_s1 + $0x1c] ss:$12 sps:$4 sm:$0xff]   ;;  %v3989_v7 = vld [vmem:[%s5167_s1 + $0x20] ss:$12 sps:$4 sm:$0xff]   ;;  %s3940_s17 = smul.u32 96, %s5175_s13 }
  0x11   : > { %3669 = vmatprep.subr.bf16.mxu1 %v3964_v11  ;;  %v4345_v19 = vld [vmem:[%s4333_s22] sm:$0xf]  ;;  %v4348_v20 = vld [vmem:[%s4333_s22 + $0x4] sm:$0xf]  ;;  %v4351_v21 = vld [vmem:[%s4333_s22 + $0x8] sm:$0x1] }
  0x12   : > { %v214_v22 = vshrl.u32 %v4345_v19, 16  ;;  %v217_v23 = vshll.u32 %v4345_v19, 16  ;;  %v223_v24 = vshll.u32 %v4348_v20, 16  ;;  %v227_v25 = vshrl.u32 %v4348_v20, 16  ;;  %v4371_v37 = vld [vmem:[%s4333_s22 + $0xc] sm:$0xf]  ;;  %s5149_s20 = scalar_lea.vmem %s5169_s3, %s3940_s17 }
  0x13   : > { %437 = vmatpush1.bf16.msra.mxu0 %v3965_v12  ;;  %v233_v26 = vshll.u32 %v4351_v21, 16  ;;  %v4380_v40 = vld [vmem:[%s4333_s22 + $0x10] sm:$0xf]  ;;  %v209_v41 = vld [vmem:[%s4333_s22 + $0x14] sm:$0x1]  ;;  %v238_v42 = vshrl.u32 %v4371_v37, 16  ;;  %v4418_v9 = vcombine.low %v4345_v19, %v4348_v20 }
  0x14   : > { %3670 = vmatpush3.bf16.msra.mxu1 %v3964_v11  ;;  %438 = vmatprep.subr.bf16.mxu0 %v3966_v13  ;;  %v216_v29 = vrot.slane %v214_v22, 4  ;;  %v219_v30 = vrot.slane %v217_v23, 5  ;;  %v225_v32 = vrot.slane %v223_v24, 5  ;;  %v229_v33 = vrot.slane %v227_v25, 4  ;;  %v3986_v11 = vld [vmem:[%s5167_s1 + $0x18] ss:$12 sps:$4 sm:$0xff]  }
  0x15   : > { %3671 = vmatprep.subr.bf16.mxu1 %v3968_v14  ;;  %v235_v36 = vrot.slane %v233_v26, 5  ;;  %v241_v43 = vshll.u32 %v4371_v37, 16  ;;  %v247_v46 = vshll.u32 %v4380_v40, 16  ;;  %v251_v47 = vshrl.u32 %v4380_v40, 16  ;;  %v3992_v13 = vld [vmem:[%s5167_s1 + $0x34] ss:$12 sps:$4 sm:$0xff]  }
  0x16   : > { %v220_v35 = vor.u32 %v219_v30, %v216_v29  ;;  %v230_v39 = vor.u32 %v229_v33, %v225_v32  ;;  %v257_v48 = vshll.u32 %v209_v41, 16  ;;  %v240_v51 = vrot.slane %v238_v42, 4  ;;  %v3997_v19 = vld [vmem:[%s5167_s1 + $0x50] ss:$12 sps:$4 sm:$0xff]   ;;  %v3994_v22 = vld [vmem:[%s5167_s1 + $0x48] ss:$12 sps:$4 sm:$0xff]  }
  0x17   : > { %439 = vmatpush1.bf16.msra.mxu0 %v3969_v15  ;;  %v243_v52 = vrot.slane %v241_v43, 5  ;;  %v249_v54 = vrot.slane %v247_v46, 5  ;;  %v253_v55 = vrot.slane %v251_v47, 4  ;;  %v795_v8 = vrot.slane %v209_v41, 5  ;;  %v3993_v15 = vld [vmem:[%s5167_s1 + $0x38] ss:$12 sps:$4 sm:$0xff]  }
  0x18   : > { %3672 = vmatpush3.bf16.msra.mxu1 %v3968_v14  ;;  %440 = vmatprep.subr.bf16.mxu0 %v3970_v16  ;;  %v221_v45 = vrot.slane %v220_v35, 4  ;;  %v231_v50 = vrot.slane %v230_v39, 4  ;;  %v259_v62 = vrot.slane %v257_v48, 5  ;;  %v792_v10 = vrot.slane %v4380_v40, 5  ;;  %v4000_v23 = vld [vmem:[%s5167_s1 + $0x64] ss:$12 sps:$4 sm:$0xff]  }
  0x19   : > { %3673 = vmatprep.subr.bf16.mxu1 %v3972_v17  ;;  %v244_v58 = vor.u32 %v243_v52, %v240_v51  ;;  %v254_v61 = vor.u32 %v253_v55, %v249_v54  ;;  %v4001_v24 = vld [vmem:[%s5167_s1 + $0x68] ss:$12 sps:$4 sm:$0xff]   ;;  %v3998_v25 = vld [vmem:[%s5167_s1 + $0x60] ss:$12 sps:$4 sm:$0xff]   ;;  %v4009_v30 = vld [vmem:[%s5167_s1 + $0x98] ss:$12 sps:$4 sm:$0xff]  }
  0x1a   : > { %v226_v53 = vsel %vm4375_vm2, %v221_v45, %v225_v32  ;;  %v236_v56 = vsel %vm4375_vm2, %v231_v50, %v235_v36  ;;  %v794_v14 = vrot.slane %v792_v10, 4  ;;  %v4004_v26 = vld [vmem:[%s5167_s1 + $0x7c] ss:$12 sps:$4 sm:$0xff]   ;;  %v4008_v29 = vld [vmem:[%s5167_s1 + $0x94] ss:$12 sps:$4 sm:$0xff]   ;;  %v788_v36 = vrot.slane %v4351_v21, 5 }
  0x1b   : > { %441 = vmatpush1.bf16.msra.mxu0 %v3973_v18  ;;  %v3083_v59 = vcombine.low %v226_v53, %v236_v56  ;;  %v245_v63 = vrot.slane %v244_v58, 4  ;;  %v255_v0 = vrot.slane %v254_v61, 4  ;;  %v3996_v18 = vld [vmem:[%s5167_s1 + $0x4c] ss:$12 sps:$4 sm:$0xff]   ;;  %v4006_v32 = vld [vmem:[%s5167_s1 + $0x90] ss:$12 sps:$4 sm:$0xff]   ;;  %v3110_v21 = vcombine.low %v4371_v37, %v4380_v40 }
  0x1c   : > { %3674 = vmatpush3.bf16.msra.mxu1 %v3972_v17  ;;  %442 = vmatprep.subr.bf16.mxu0 %v3974_v27  ;;  %v4440_v16 = vsel %vm4424_vm5, %v794_v14, %v795_v8  ;;  %v3990_v17 = vld [vmem:[%s5167_s1 + $0x30] ss:$12 sps:$4 sm:$0xff]   ;;  %v4005_v27 = vld [vmem:[%s5167_s1 + $0x80] ss:$12 sps:$4 sm:$0xff]   ;;  %v4018_v42 = vld [vmem:[%s5167_s1 + $0x188] ss:$12 sps:$4 sm:$0xff]  }
  0x1d   : > { %3675 = vmatprep.subr.bf16.mxu1 %v3976_v28  ;;  %3679 = vmatprep.mubr.bf16.mxu1 %v3083_v59  ;;  %v250_v3 = vsel %vm4375_vm2, %v245_v63, %v249_v54  ;;  %v260_v4 = vsel %vm4375_vm2, %v255_v0, %v259_v62  ;;  %v4012_v33 = vld [vmem:[%s5167_s1 + $0xac] ss:$12 sps:$4 sm:$0xff]   ;;  %v4017_v39 = vld [vmem:[%s5167_s1 + $0x184] ss:$12 sps:$4 sm:$0xff]   ;;  %v774_v41 = vld [vmem:[%s4333_s22] sm:$0xe] }
  0x1e   : > { %v3084_v6 = vcombine.low %v250_v3, %v260_v4  ;;  %v3135_v43 = vrot.slane %v774_v41, 9  ;;  %v775_v47 = vld [vmem:[%s4333_s22 + $0xc] sm:$0xe]  ;;  %v4022_v48 = vld [vmem:[%s5167_s1 + $0x19c] ss:$12 sps:$4 sm:$0xff]  }
  0x1f   : > { %443 = vmatpush1.bf16.msra.mxu0 %v3977_v31  ;;  %v785_v31 = vrot.slane %v4348_v20, 5  ;;  %v4010_v20 = vld [vmem:[%s5167_s1 + $0xa8] ss:$12 sps:$4 sm:$0xff]   ;;  %v4023_v50 = vld [vmem:[%s5167_s1 + $0x1a0] ss:$12 sps:$4 sm:$0xff]  }
  0x20   : > { %3676 = vmatpush3.bf16.msra.mxu1 %v3976_v28  ;;  %444 = vmatprep.subr.bf16.mxu0 %v3978_v34  ;;  %v4002_v28 = vld [vmem:[%s5167_s1 + $0x78] ss:$12 sps:$4 sm:$0xff]   ;;  %v4013_v34 = vld [vmem:[%s5167_s1 + $0xb0] ss:$12 sps:$4 sm:$0xff]   ;;  %v4026_v54 = vld [vmem:[%s5167_s1 + $0x1b4] ss:$12 sps:$4 sm:$0xff]  }
  0x21   : > { %3677 = vmatprep.subr.bf16.mxu1 %v3980_v44  ;;  %v787_v35 = vrot.slane %v785_v31, 4  ;;  %v786_v45 = vsel %vm4424_vm5, %v3135_v43, %v785_v31  ;;  %v4020_v52 = vld [vmem:[%s5167_s1 + $0x198] ss:$12 sps:$4 sm:$0xff]   ;;  %v4024_v55 = vld [vmem:[%s5167_s1 + $0x1b0] ss:$12 sps:$4 sm:$0xff]  }
  0x22   : > { %v4027_v40 = vld [vmem:[%s5167_s1 + $0x1b8] ss:$12 sps:$4 sm:$0xff]   ;;  %v4028_v58 = vld [vmem:[%s5167_s1 + $0x1c8] ss:$12 sps:$4 sm:$0xff]   ;;  %v4032_v61 = vld [vmem:[%s5167_s1 + $0x1e0] ss:$12 sps:$4 sm:$0xff]  }
  0x23   : > { %445 = vmatpush1.bf16.msra.mxu0 %v3981_v49  ;;  %v789_v46 = vsel %vm4424_vm5, %v787_v35, %v788_v36  ;;  %v3136_v49 = vrot.slane %v775_v47, 9  ;;  %v4030_v56 = vld [vmem:[%s5167_s1 + $0x1cc] ss:$12 sps:$4 sm:$0xff]   ;;  %v4038_v62 = vld [vmem:[%s5167_s1 + $0x1fc] ss:$12 sps:$4 sm:$0xff]  }
  0x24   : > { %3678 = vmatpush3.bf16.msra.mxu1 %v3980_v44  ;;  %672 = vmatprep.subr.bf16.mxu0 %v3984_v57  ;;  %v4015_v44 = vld [vmem:[%s5167_s1 + $0x180] ss:$12 sps:$4 sm:$0xff]   ;;  %v4517_v37 = vcombine.low %v786_v45, %v789_v46  ;;  %v4031_v57 = vld [vmem:[%s5167_s1 + $0x1d0] ss:$12 sps:$4 sm:$0xff]   ;;  %v4036_v0 = vld [vmem:[%s5167_s1 + $0x1f8] ss:$12 sps:$4 sm:$0xff]  }
  0x25   : > { %3683 = vmatprep.subr.bf16.mxu1 %v3985_v60  ;;  %v793_v51 = vsel %vm4424_vm5, %v3136_v49, %v792_v10  ;;  %v4039_v63 = vld [vmem:[%s5167_s1 + $0x200] ss:$12 sps:$4 sm:$0xff]   ;;  %v4043_v3 = vld [vmem:[%s5167_s1 + $0x218] ss:$12 sps:$4 sm:$0xff]   ;;  %v4040_v4 = vld [vmem:[%s5167_s1 + $0x210] ss:$12 sps:$4 sm:$0xff]  }
  0x26   : > { %463 = vmatmul.mubr.bf16.vlgmr.msra.gmra.mrb[0].mxu0 %v3083_v59  ;;  %v4527_v53 = vcombine.low %v793_v51, %v4440_v16  ;;  %v4034_v59 = vld [vmem:[%s5167_s1 + $0x1e4] ss:$12 sps:$4 sm:$0xff]   ;;  %v4048_v10 = vld [vmem:[%s5167_s1 + $0x240] ss:$12 sps:$4 sm:$0xff]   ;;  %v4659_v43 = vld [vmem:[%s4333_s22 + $0x14] sm:$0x1] }
  0x27   : > { %3680 = vmatmul.mubr.bf16.vlgmr.msra.gmra.mrb[0].mxu1 %v3084_v6  ;;  %673 = vmatpush1.bf16.msra.mxu0 %v3982_v1  ;;  %v4042_v1 = vld [vmem:[%s5167_s1 + $0x214] ss:$12 sps:$4 sm:$0xff]   ;;  %v4050_v8 = vld [vmem:[%s5167_s1 + $0x244] ss:$12 sps:$4 sm:$0xff]   ;;  %v1398_v47 = vshll.u32 %v4659_v43, 16 }
  0x28   : > { %3684 = vmatpush3.bf16.msra.mxu1 %v3985_v60  ;;  %674 = vmatprep.subr.bf16.mxu0 %v3988_v5  ;;  %v4035_v60 = vld [vmem:[%s5167_s1 + $0x1e8] ss:$12 sps:$4 sm:$0xff]   ;;  %v4046_v5 = vld [vmem:[%s5167_s1 + $0x22c] ss:$12 sps:$4 sm:$0xff]   ;;  %v4079_v49 = vld [vmem:[%s5167_s1 + $0x2f0] ss:$12 sps:$4 sm:$0xff]  }
  0x29   : > { %3685 = vmatprep.subr.bf16.mxu1 %v3989_v7  ;;  %472 = vmatprep.mubr.bf16.mxu0 %v4252_v2  ;;  %v4603_v14 = vld [vmem:[%s4333_s22 + $0xc] sm:$0xff]   ;;  %v4058_v16 = vld [vmem:[%s5167_s1 + $0x274] ss:$12 sps:$4 sm:$0xff]   ;;  %v4218_v38 = vld [vmem:[%s5167_s1 + $0x61c] ss:$12 sps:$4 sm:$0xff]  }
  0x2a   : > { %3699 = vmatprep.mubr.bf16.mxu1 %v4418_v9  ;;  %v4074_v35 = vld [vmem:[%s5167_s1 + $0x2d4] ss:$12 sps:$4 sm:$0xff]  }
  0x2b   : > { %675 = vmatpush1.bf16.msra.mxu0 %v3986_v11  ;;  %v4054_v11 = vld [vmem:[%s5167_s1 + $0x25c] ss:$12 sps:$4 sm:$0xff]  }
  0x2c   : > { %3686 = vmatpush3.bf16.msra.mxu1 %v3989_v7  ;;  %676 = vmatprep.subr.bf16.mxu0 %v3992_v13  ;;  %v4044_v7 = vld [vmem:[%s5167_s1 + $0x228] ss:$12 sps:$4 sm:$0xff]   ;;  %v4055_v13 = vld [vmem:[%s5167_s1 + $0x260] ss:$12 sps:$4 sm:$0xff]  }
  0x2d   : > { %3687 = vmatprep.subr.bf16.mxu1 %v3993_v15 }
  0x2e   : > { %473 = vmatmul.mubr.bf16.gmra.mrb[4].mxu0 %v3084_v6  ;;  %v4047_v6 = vld [vmem:[%s5167_s1 + $0x230] ss:$12 sps:$4 sm:$0xff]  }
  0x2f   : > { %677 = vmatpush1.bf16.msra.mxu0 %v3990_v17  ;;  %704 = vmatprep.mubr.bf16.mxu0 %v4252_v2  ;;  %v4059_v17 = vld [vmem:[%s5167_s1 + $0x278] ss:$12 sps:$4 sm:$0xff]  }
  0x30   : > { %3688 = vmatpush3.bf16.msra.mxu1 %v3993_v15  ;;  %678 = vmatprep.subr.bf16.mxu0 %v3996_v18  ;;  %v4052_v15 = vld [vmem:[%s5167_s1 + $0x258] ss:$12 sps:$4 sm:$0xff]   ;;  %v4056_v18 = vld [vmem:[%s5167_s1 + $0x270] ss:$12 sps:$4 sm:$0xff]  }
  0x31   : > { %3689 = vmatprep.subr.bf16.mxu1 %v3997_v19 }
  0x33   : > { %679 = vmatpush1.bf16.msra.mxu0 %v3994_v22  ;;  %v4063_v22 = vld [vmem:[%s5167_s1 + $0x290] ss:$12 sps:$4 sm:$0xff]  }
  0x34   : > { %3690 = vmatpush3.bf16.msra.mxu1 %v3997_v19  ;;  %680 = vmatprep.subr.bf16.mxu0 %v4000_v23  ;;  %v4062_v19 = vld [vmem:[%s5167_s1 + $0x28c] ss:$12 sps:$4 sm:$0xff]   ;;  %v4060_v23 = vld [vmem:[%s5167_s1 + $0x288] ss:$12 sps:$4 sm:$0xff]  }
  0x35   : > { %3691 = vmatprep.subr.bf16.mxu1 %v4001_v24 }
  0x37   : > { %681 = vmatpush1.bf16.msra.mxu0 %v3998_v25  ;;  %v4066_v25 = vld [vmem:[%s5167_s1 + $0x2a4] ss:$12 sps:$4 sm:$0xff]  }
  0x38   : > { %3692 = vmatpush3.bf16.msra.mxu1 %v4001_v24  ;;  %682 = vmatprep.subr.bf16.mxu0 %v4004_v26  ;;  %v3257_v24 = vld [vmem:[%s4333_s22 + $0xc] sm:$0xf]  ;;  %v4636_v26 = vld [vmem:[%s4333_s22 + $0x10] sm:$0xf] }
  0x39   : > { %3693 = vmatprep.subr.bf16.mxu1 %v4005_v27  ;;  %v1388_v31 = vshll.u32 %v4636_v26, 16 }
  0x3b   : > { %683 = vmatpush1.bf16.msra.mxu0 %v4002_v28  ;;  %v4064_v28 = vld [vmem:[%s5167_s1 + $0x2a0] ss:$12 sps:$4 sm:$0xff]   ;;  %v1390_v41 = vrot.slane %v1388_v31, 5  ;;  %v4106_v31 = vld [vmem:[%s5167_s1 + $0x390] ss:$12 sps:$4 sm:$0xff]  }
  0x3c   : > { %3694 = vmatpush3.bf16.msra.mxu1 %v4005_v27  ;;  %684 = vmatprep.subr.bf16.mxu0 %v4008_v29  ;;  %v4067_v27 = vld [vmem:[%s5167_s1 + $0x2a8] ss:$12 sps:$4 sm:$0xff]   ;;  %v1379_v29 = vshrl.u32 %v3257_v24, 16 }
  0x3d   : > { %3695 = vmatprep.subr.bf16.mxu1 %v4009_v30 }
  0x3e   : > { %v1381_v36 = vrot.slane %v1379_v29, 4 }
  0x3f   : > { %685 = vmatpush1.bf16.msra.mxu0 %v4006_v32  ;;  %v1392_v32 = vshrl.u32 %v4636_v26, 16 }
  0x40   : > { %3696 = vmatpush3.bf16.msra.mxu1 %v4009_v30  ;;  %686 = vmatprep.subr.bf16.mxu0 %v4012_v33  ;;  %v1382_v30 = vshll.u32 %v3257_v24, 16  ;;  %v4070_v33 = vld [vmem:[%s5167_s1 + $0x2bc] ss:$12 sps:$4 sm:$0xff]   ;;  %v4102_v24 = vld [vmem:[%s5167_s1 + $0x378] ss:$12 sps:$4 sm:$0xff]  }
  0x41   : > { %3697 = vmatprep.subr.bf16.mxu1 %v4013_v34 }
  0x43   : > { %687 = vmatpush1.bf16.msra.mxu0 %v4010_v20  ;;  %v4071_v20 = vld [vmem:[%s5167_s1 + $0x2c0] ss:$12 sps:$4 sm:$0xff]  }
  0x44   : > { %3698 = vmatpush3.bf16.msra.mxu1 %v4013_v34  ;;  %966 = vmatprep.subr.bf16.mxu0 %v4017_v39  ;;  %v4068_v34 = vld [vmem:[%s5167_s1 + $0x2b8] ss:$12 sps:$4 sm:$0xff]   ;;  %v1384_v39 = vrot.slane %v1382_v30, 5 }
  0x45   : > { %3703 = vmatprep.subr.bf16.mxu1 %v4018_v42  ;;  %v4109_v30 = vld [vmem:[%s5167_s1 + $0x398] ss:$12 sps:$4 sm:$0xff]  }
  0x46   : > { %705 = vmatmul.mubr.bf16.vlgmr.msra.gmra.mrb[0].mxu0 %v4418_v9  ;;  %v4051_v9 = vld [vmem:[%s5167_s1 + $0x248] ss:$12 sps:$4 sm:$0xff]   ;;  %v1385_v45 = vor.u32 %v1384_v39, %v1381_v36  ;;  %v3321_v36 = vld [vmem:[%s4333_s22 + $0xc] sm:$0xe]  ;;  %v4113_v39 = vld [vmem:[%s5167_s1 + $0x3b0] ss:$12 sps:$4 sm:$0xff]  }
  0x47   : > { %3700 = vmatmul.mubr.bf16.vlgmr.msra.gmra.mrb[0].mxu1 %v3110_v21  ;;  %967 = vmatpush1.bf16.msra.mxu0 %v4015_v44  ;;  %v4075_v44 = vld [vmem:[%s5167_s1 + $0x2d8] ss:$12 sps:$4 sm:$0xff]  }
  0x48   : > { %3704 = vmatpush3.bf16.msra.mxu1 %v4018_v42  ;;  %968 = vmatprep.subr.bf16.mxu0 %v4022_v48  ;;  %v1394_v42 = vrot.slane %v1392_v32, 4  ;;  %v4078_v48 = vld [vmem:[%s5167_s1 + $0x2ec] ss:$12 sps:$4 sm:$0xff]   ;;  %v1719_v32 = vrot.slane %v4636_v26, 5  ;;  %v4110_v26 = vld [vmem:[%s5167_s1 + $0x3a8] ss:$12 sps:$4 sm:$0xff]  }
  0x49   : > { %3705 = vmatprep.subr.bf16.mxu1 %v4023_v50  ;;  %714 = vmatprep.mubr.bf16.mxu0 %v4252_v2 }
  0x4a   : > { %3719 = vmatprep.mubr.bf16.mxu1 %v4517_v37  ;;  %v1395_v46 = vor.u32 %v1394_v42, %v1390_v41  ;;  %v3323_v42 = vrot.slane %v3321_v36, 9  ;;  %v4162_v36 = vld [vmem:[%s5167_s1 + $0x4e0] ss:$12 sps:$4 sm:$0xff]  }
  0x4b   : > { %969 = vmatpush1.bf16.msra.mxu0 %v4020_v52  ;;  %v1400_v52 = vrot.slane %v1398_v47, 5  ;;  %v4117_v47 = vld [vmem:[%s5167_s1 + $0x3c8] ss:$12 sps:$4 sm:$0xff]  }
  0x4c   : > { %3706 = vmatpush3.bf16.msra.mxu1 %v4023_v50  ;;  %970 = vmatprep.subr.bf16.mxu0 %v4026_v54  ;;  %v4076_v50 = vld [vmem:[%s5167_s1 + $0x2e8] ss:$12 sps:$4 sm:$0xff]   ;;  %v1396_v51 = vrot.slane %v1395_v46, 4 }
  0x4d   : > { %3707 = vmatprep.subr.bf16.mxu1 %v4027_v40  ;;  %v4084_v54 = vld [vmem:[%s5167_s1 + $0x308] ss:$12 sps:$4 sm:$0xff]  }
  0x4e   : > { %715 = vmatmul.mubr.bf16.gmra.mrb[4].mxu0 %v3110_v21  ;;  %v4072_v21 = vld [vmem:[%s5167_s1 + $0x2d0] ss:$12 sps:$4 sm:$0xff]  }
  0x4f   : > { %971 = vmatpush1.bf16.msra.mxu0 %v4024_v55  ;;  %998 = vmatprep.mubr.bf16.mxu0 %v4252_v2  ;;  %v4085_v55 = vld [vmem:[%s4333_s22 + $0x18] sm:$0xff]  }
  0x50   : > { %3708 = vmatpush3.bf16.msra.mxu1 %v4027_v40  ;;  %972 = vmatprep.subr.bf16.mxu0 %v4030_v56  ;;  %v4081_v40 = vld [vmem:[%s5167_s1 + $0x300] ss:$12 sps:$4 sm:$0xff]  }
  0x51   : > { %3709 = vmatprep.subr.bf16.mxu1 %v4031_v57 }
  0x53   : > { %973 = vmatpush1.bf16.msra.mxu0 %v4028_v58  ;;  %v4088_v58 = vld [vmem:[%s5167_s1 + $0x31c] ss:$12 sps:$4 sm:$0xff]  }
  0x54   : > { %3710 = vmatpush3.bf16.msra.mxu1 %v4031_v57  ;;  %974 = vmatprep.subr.bf16.mxu0 %v4034_v59  ;;  %v1401_v57 = vsel %vm4375_vm2, %v1396_v51, %v1400_v52  ;;  %v4089_v59 = vld [vmem:[%s5167_s1 + $0x320] ss:$12 sps:$4 sm:$0xff]  }
  0x55   : > { %3711 = vmatprep.subr.bf16.mxu1 %v4035_v60  ;;  %v4121_v51 = vld [vmem:[%s5167_s1 + $0x3e0] ss:$12 sps:$4 sm:$0xff]  }
  0x57   : > { %975 = vmatpush1.bf16.msra.mxu0 %v4032_v61  ;;  %v4086_v61 = vld [vmem:[%s5167_s1 + $0x318] ss:$12 sps:$4 sm:$0xff]  }
  0x58   : > { %3712 = vmatpush3.bf16.msra.mxu1 %v4035_v60  ;;  %976 = vmatprep.subr.bf16.mxu0 %v4038_v62  ;;  %v4092_v62 = vld [vmem:[%s5167_s1 + $0x334] ss:$12 sps:$4 sm:$0xff]  }
  0x59   : > { %3713 = vmatprep.subr.bf16.mxu1 %v4039_v63 }
  0x5b   : > { %977 = vmatpush1.bf16.msra.mxu0 %v4036_v0  ;;  %v4090_v0 = vld [vmem:[%s5167_s1 + $0x330] ss:$12 sps:$4 sm:$0xff]  }
  0x5c   : > { %3714 = vmatpush3.bf16.msra.mxu1 %v4039_v63  ;;  %978 = vmatprep.subr.bf16.mxu0 %v4042_v1  ;;  %v4093_v63 = vld [vmem:[%s5167_s1 + $0x338] ss:$12 sps:$4 sm:$0xff]  }
  0x5d   : > { %3715 = vmatprep.subr.bf16.mxu1 %v4043_v3  ;;  %v4096_v1 = vld [vmem:[%s5167_s1 + $0x34c] ss:$12 sps:$4 sm:$0xff]  }
  0x5f   : > { %979 = vmatpush1.bf16.msra.mxu0 %v4040_v4  ;;  %v3260_v4 = vld [vmem:[%s4333_s22 + $0x18] sm:$0xf] }
  0x60   : > { %3716 = vmatpush3.bf16.msra.mxu1 %v4043_v3  ;;  %980 = vmatprep.subr.bf16.mxu0 %v4046_v5  ;;  %v4097_v3 = vld [vmem:[%s5167_s1 + $0x350] ss:$12 sps:$4 sm:$0xff]  }
  0x61   : > { %3717 = vmatprep.subr.bf16.mxu1 %v4047_v6  ;;  %v4722_v5 = vld [vmem:[%s4333_s22 + $0x1c] sm:$0xf] }
  0x63   : > { %981 = vmatpush1.bf16.msra.mxu0 %v4044_v7  ;;  %v4100_v7 = vld [vmem:[%s5167_s1 + $0x364] ss:$12 sps:$4 sm:$0xff]  }
  0x64   : > { %3718 = vmatpush3.bf16.msra.mxu1 %v4047_v6  ;;  %1258 = vmatprep.subr.bf16.mxu0 %v4050_v8  ;;  %v4094_v6 = vld [vmem:[%s5167_s1 + $0x348] ss:$12 sps:$4 sm:$0xff]   ;;  %v1403_v8 = vshrl.u32 %v3260_v4, 16 }
  0x65   : > { %3723 = vmatprep.subr.bf16.mxu1 %v4051_v9 }
  0x66   : > { %999 = vmatmul.mubr.bf16.vlgmr.msra.gmra.mrb[0].mxu0 %v4517_v37  ;;  %v1386_v37 = vrot.slane %v1385_v45, 4 }
  0x67   : > { %3720 = vmatmul.mubr.bf16.vlgmr.msra.gmra.mrb[0].mxu1 %v4527_v53  ;;  %1259 = vmatpush1.bf16.msra.mxu0 %v4048_v10  ;;  %v1412_v10 = vshll.u32 %v4722_v5, 16 }
  0x68   : > { %3724 = vmatpush3.bf16.msra.mxu1 %v4051_v9  ;;  %1260 = vmatprep.subr.bf16.mxu0 %v4054_v11  ;;  %v1391_v56 = vsel %vm4375_vm2, %v1386_v37, %v1390_v41  ;;  %v1406_v9 = vshll.u32 %v3260_v4, 16  ;;  %v1416_v11 = vshrl.u32 %v4722_v5, 16  ;;  %v1721_v41 = vrot.slane %v1719_v32, 4  ;;  %v4120_v37 = vld [vmem:[%s5167_s1 + $0x3dc] ss:$12 sps:$4 sm:$0xff]  }
  0x69   : > { %3725 = vmatprep.subr.bf16.mxu1 %v4055_v13  ;;  %1008 = vmatprep.mubr.bf16.mxu0 %v4252_v2  ;;  %v4698_v60 = vcombine.low %v1391_v56, %v1401_v57  ;;  %v4128_v56 = vld [vmem:[%s5167_s1 + $0x40c] ss:$12 sps:$4 sm:$0xff]   ;;  %v4129_v57 = vld [vmem:[%s5167_s1 + $0x410] ss:$12 sps:$4 sm:$0xff]  }
  0x6a   : > { %3739 = vmatprep.mubr.bf16.mxu1 %v4603_v14  ;;  %v4141_v4 = vld [vmem:[%s5167_s1 + $0x458] ss:$12 sps:$4 sm:$0xff]  }
  0x6b   : > { %1261 = vmatpush1.bf16.msra.mxu0 %v4052_v15  ;;  %v4104_v15 = vld [vmem:[%s5167_s1 + $0x37c] ss:$12 sps:$4 sm:$0xff]  }
  0x6c   : > { %3726 = vmatpush3.bf16.msra.mxu1 %v4055_v13  ;;  %1262 = vmatprep.subr.bf16.mxu0 %v4058_v16  ;;  %v4098_v13 = vld [vmem:[%s5167_s1 + $0x360] ss:$12 sps:$4 sm:$0xff]  }
  0x6d   : > { %3727 = vmatprep.subr.bf16.mxu1 %v4059_v17  ;;  %v4105_v16 = vld [vmem:[%s5167_s1 + $0x380] ss:$12 sps:$4 sm:$0xff]  }
  0x6e   : > { %1009 = vmatmul.mubr.bf16.gmra.mrb[4].mxu0 %v4527_v53  ;;  %v4083_v53 = vld [vmem:[%s5167_s1 + $0x304] ss:$12 sps:$4 sm:$0xff]  }
  0x6f   : > { %1263 = vmatpush1.bf16.msra.mxu0 %v4056_v18  ;;  %1290 = vmatprep.mubr.bf16.mxu0 %v4252_v2  ;;  %v1408_v18 = vrot.slane %v1406_v9, 5  ;;  %v4144_v9 = vld [vmem:[%s5167_s1 + $0x46c] ss:$12 sps:$4 sm:$0xff]  }
  0x70   : > { %3728 = vmatpush3.bf16.msra.mxu1 %v4059_v17  ;;  %1264 = vmatprep.subr.bf16.mxu0 %v4062_v19  ;;  %v1405_v17 = vrot.slane %v1403_v8, 4  ;;  %v1414_v19 = vrot.slane %v1412_v10, 5 }
  0x71   : > { %3729 = vmatprep.subr.bf16.mxu1 %v4063_v22 }
  0x73   : > { %1265 = vmatpush1.bf16.msra.mxu0 %v4060_v23  ;;  %v4746_v23 = vld [vmem:[%s4333_s22 + $0x20] sm:$0x1] }
  0x74   : > { %3730 = vmatpush3.bf16.msra.mxu1 %v4063_v22  ;;  %1266 = vmatprep.subr.bf16.mxu0 %v4066_v25  ;;  %v1418_v22 = vrot.slane %v1416_v11, 4  ;;  %v4108_v25 = vld [vmem:[%s5167_s1 + $0x394] ss:$12 sps:$4 sm:$0xff]   ;;  %v1422_v29 = vshll.u32 %v4746_v23, 16  ;;  %v4145_v11 = vld [vmem:[%s5167_s1 + $0x470] ss:$12 sps:$4 sm:$0xff]  }
  0x75   : > { %3731 = vmatprep.subr.bf16.mxu1 %v4067_v27 }
  0x77   : > { %1267 = vmatpush1.bf16.msra.mxu0 %v4064_v28  ;;  %v1419_v28 = vor.u32 %v1418_v22, %v1414_v19  ;;  %v4152_v22 = vld [vmem:[%s5167_s1 + $0x49c] ss:$12 sps:$4 sm:$0xff]  }
  0x78   : > { %3732 = vmatpush3.bf16.msra.mxu1 %v4067_v27  ;;  %1268 = vmatprep.subr.bf16.mxu0 %v4070_v33  ;;  %v1409_v27 = vor.u32 %v1408_v18, %v1405_v17  ;;  %v4112_v33 = vld [vmem:[%s5167_s1 + $0x3ac] ss:$12 sps:$4 sm:$0xff]   ;;  %v4149_v17 = vld [vmem:[%s5167_s1 + $0x488] ss:$12 sps:$4 sm:$0xff]  }
  0x79   : > { %3733 = vmatprep.subr.bf16.mxu1 %v4071_v20  ;;  %v4146_v18 = vld [vmem:[%s5167_s1 + $0x480] ss:$12 sps:$4 sm:$0xff]  }
  0x7b   : > { %1269 = vmatpush1.bf16.msra.mxu0 %v4068_v34  ;;  %v1410_v34 = vrot.slane %v1409_v27, 4  ;;  %v4156_v27 = vld [vmem:[%s5167_s1 + $0x4b4] ss:$12 sps:$4 sm:$0xff]  }
  0x7c   : > { %3734 = vmatpush3.bf16.msra.mxu1 %v4071_v20  ;;  %1270 = vmatprep.subr.bf16.mxu0 %v4074_v35  ;;  %v1420_v20 = vrot.slane %v1419_v28, 4  ;;  %v1424_v35 = vrot.slane %v1422_v29, 5  ;;  %v4157_v28 = vld [vmem:[%s5167_s1 + $0x4b8] ss:$12 sps:$4 sm:$0xff]   ;;  %v4154_v29 = vld [vmem:[%s5167_s1 + $0x4b0] ss:$12 sps:$4 sm:$0xff]  }
  0x7d   : > { %3735 = vmatprep.subr.bf16.mxu1 %v4075_v44  ;;  %v1415_v45 = vsel %vm4375_vm2, %v1410_v34, %v1414_v19  ;;  %v3445_v34 = vld [vmem:[%s4333_s22 + $0x18] sm:$0xf] }
  0x7e   : > { %v1425_v46 = vsel %vm4375_vm2, %v1420_v20, %v1424_v35  ;;  %v4914_v20 = vld [vmem:[%s4333_s22 + $0x1c] sm:$0xf]  ;;  %v4165_v35 = vld [vmem:[%s5167_s1 + $0x4e8] ss:$12 sps:$4 sm:$0xff]  }
  0x7f   : > { %1271 = vmatpush1.bf16.msra.mxu0 %v4072_v21  ;;  %v4116_v21 = vld [vmem:[%s5167_s1 + $0x3c4] ss:$12 sps:$4 sm:$0xff]  }
  0x80   : > { %3736 = vmatpush3.bf16.msra.mxu1 %v4075_v44  ;;  %1272 = vmatprep.subr.bf16.mxu0 %v4078_v48  ;;  %v1722_v44 = vrot.slane %v4659_v43, 5  ;;  %v4114_v43 = vld [vmem:[%s5167_s1 + $0x3c0] ss:$12 sps:$4 sm:$0xff]   ;;  %v3296_v48 = vcombine.low %v1415_v45, %v1425_v46  ;;  %v4166_v45 = vld [vmem:[%s5167_s1 + $0x4f8] ss:$12 sps:$4 sm:$0xff]  }
  0x81   : > { %3737 = vmatprep.subr.bf16.mxu1 %v4079_v49 }
  0x83   : > { %1273 = vmatpush1.bf16.msra.mxu0 %v4076_v50  ;;  %v1723_v50 = vsel %vm4424_vm5, %v1721_v41, %v1722_v44  ;;  %v2322_v41 = vshll.u32 %v4914_v20, 16  ;;  %v4168_v44 = vld [vmem:[%s5167_s1 + $0x4fc] ss:$12 sps:$4 sm:$0xff]  }
  0x84   : > { %3738 = vmatpush3.bf16.msra.mxu1 %v4079_v49  ;;  %1595 = vmatprep.subr.bf16.mxu0 %v4083_v53  ;;  %v1720_v49 = vsel %vm4424_vm5, %v3323_v42, %v1719_v32  ;;  %v4118_v53 = vld [vmem:[%s5167_s1 + $0x3d8] ss:$12 sps:$4 sm:$0xff]   ;;  %v4158_v32 = vld [vmem:[%s5167_s1 + $0x4c8] ss:$12 sps:$4 sm:$0xff]   ;;  %v2326_v42 = vshrl.u32 %v4914_v20, 16 }
  0x85   : > { %3743 = vmatprep.subr.bf16.mxu1 %v4084_v54  ;;  %v4797_v52 = vcombine.low %v1720_v49, %v1723_v50  ;;  %v4172_v49 = vld [vmem:[%s5167_s1 + $0x514] ss:$12 sps:$4 sm:$0xff]  }
  0x86   : > { %1291 = vmatmul.mubr.bf16.vlgmr.msra.gmra.mrb[0].mxu0 %v4603_v14  ;;  %v4101_v14 = vld [vmem:[%s5167_s1 + $0x368] ss:$12 sps:$4 sm:$0xff]   ;;  %v4937_v50 = vld [vmem:[%s4333_s22 + $0x20] sm:$0x1] }
  0x87   : > { %3740 = vmatmul.mubr.bf16.vlgmr.msra.gmra.mrb[0].mxu1 %v4085_v55  ;;  %1596 = vmatpush1.bf16.msra.mxu0 %v4081_v40  ;;  %v4125_v40 = vld [vmem:[%s5167_s1 + $0x3f8] ss:$12 sps:$4 sm:$0xff]  }
  0x88   : > { %3744 = vmatpush3.bf16.msra.mxu1 %v4084_v54  ;;  %1597 = vmatprep.subr.bf16.mxu0 %v4088_v58  ;;  %v4124_v54 = vld [vmem:[%s5167_s1 + $0x3f4] ss:$12 sps:$4 sm:$0xff]  }
  0x89   : > { %3745 = vmatprep.subr.bf16.mxu1 %v4089_v59  ;;  %1300 = vmatprep.mubr.bf16.mxu0 %v4252_v2  ;;  %v4126_v58 = vld [vmem:[%s5167_s1 + $0x408] ss:$12 sps:$4 sm:$0xff]  }
  0x8a   : > { %3759 = vmatprep.mubr.bf16.mxu1 %v4698_v60 }
  0x8b   : > { %1598 = vmatpush1.bf16.msra.mxu0 %v4086_v61  ;;  %v4130_v61 = vld [vmem:[%s5167_s1 + $0x420] ss:$12 sps:$4 sm:$0xff]  }
  0x8c   : > { %3746 = vmatpush3.bf16.msra.mxu1 %v4089_v59  ;;  %1599 = vmatprep.subr.bf16.mxu0 %v4092_v62  ;;  %v4132_v59 = vld [vmem:[%s5167_s1 + $0x424] ss:$12 sps:$4 sm:$0xff]   ;;  %v4136_v62 = vld [vmem:[%s5167_s1 + $0x43c] ss:$12 sps:$4 sm:$0xff]  }
  0x8d   : > { %3747 = vmatprep.subr.bf16.mxu1 %v4093_v63 }
  0x8e   : > { %1301 = vmatmul.mubr.bf16.gmra.mrb[4].mxu0 %v4085_v55  ;;  %v4122_v55 = vld [vmem:[%s5167_s1 + $0x3f0] ss:$12 sps:$4 sm:$0xff]  }
  0x8f   : > { %1600 = vmatpush1.bf16.msra.mxu0 %v4090_v0  ;;  %1627 = vmatprep.mubr.bf16.mxu0 %v4252_v2  ;;  %v4134_v0 = vld [vmem:[%s5167_s1 + $0x438] ss:$12 sps:$4 sm:$0xff]  }
  0x90   : > { %3748 = vmatpush3.bf16.msra.mxu1 %v4093_v63  ;;  %1601 = vmatprep.subr.bf16.mxu0 %v4096_v1  ;;  %v4137_v63 = vld [vmem:[%s5167_s1 + $0x440] ss:$12 sps:$4 sm:$0xff]   ;;  %v1726_v1 = vrot.slane %v4722_v5, 5  ;;  %v1729_v5 = vrot.slane %v4746_v23, 5 }
  0x91   : > { %3749 = vmatprep.subr.bf16.mxu1 %v4097_v3  ;;  %v4153_v23 = vld [vmem:[%s5167_s1 + $0x4a0] ss:$12 sps:$4 sm:$0xff]  }
  0x92   : > { %v1728_v8 = vrot.slane %v1726_v1, 4 }
  0x93   : > { %1602 = vmatpush1.bf16.msra.mxu0 %v4094_v6  ;;  %v3322_v6 = vld [vmem:[%s4333_s22 + $0x18] sm:$0xe] }
  0x94   : > { %3750 = vmatpush3.bf16.msra.mxu1 %v4097_v3  ;;  %1603 = vmatprep.subr.bf16.mxu0 %v4100_v7  ;;  %v4140_v3 = vld [vmem:[%s5167_s1 + $0x454] ss:$12 sps:$4 sm:$0xff]   ;;  %v4138_v7 = vld [vmem:[%s5167_s1 + $0x450] ss:$12 sps:$4 sm:$0xff]   ;;  %v3324_v10 = vrot.slane %v3322_v6, 9 }
  0x95   : > { %3751 = vmatprep.subr.bf16.mxu1 %v4101_v14 }
  0x97   : > { %1604 = vmatpush1.bf16.msra.mxu0 %v4098_v13  ;;  %v4142_v13 = vld [vmem:[%s5167_s1 + $0x468] ss:$12 sps:$4 sm:$0xff]  }
  0x98   : > { %3752 = vmatpush3.bf16.msra.mxu1 %v4101_v14  ;;  %1605 = vmatprep.subr.bf16.mxu0 %v4104_v15  ;;  %v4148_v14 = vld [vmem:[%s5167_s1 + $0x484] ss:$12 sps:$4 sm:$0xff]   ;;  %v1727_v15 = vsel %vm4424_vm5, %v3324_v10, %v1726_v1  ;;  %v4194_v10 = vld [vmem:[%s5167_s1 + $0x58c] ss:$12 sps:$4 sm:$0xff]  }
  0x99   : > { %3753 = vmatprep.subr.bf16.mxu1 %v4105_v16 }
  0x9b   : > { %1606 = vmatpush1.bf16.msra.mxu0 %v4102_v24  ;;  %v4883_v24 = vld [vmem:[%s4333_s22 + $0x18] sm:$0xff]  }
  0x9c   : > { %3754 = vmatpush3.bf16.msra.mxu1 %v4105_v16  ;;  %1607 = vmatprep.subr.bf16.mxu0 %v4108_v25  ;;  %v1730_v16 = vsel %vm4424_vm5, %v1728_v8, %v1729_v5  ;;  %v4150_v25 = vld [vmem:[%s5167_s1 + $0x498] ss:$12 sps:$4 sm:$0xff]   ;;  %v4190_v8 = vld [vmem:[%s5167_s1 + $0x574] ss:$12 sps:$4 sm:$0xff]  }
  0x9d   : > { %3755 = vmatprep.subr.bf16.mxu1 %v4109_v30  ;;  %v3358_v19 = vcombine.low %v1727_v15, %v1730_v16  ;;  %v4191_v5 = vld [vmem:[%s5167_s1 + $0x578] ss:$12 sps:$4 sm:$0xff]   ;;  %v4192_v15 = vld [vmem:[%s5167_s1 + $0x588] ss:$12 sps:$4 sm:$0xff]  }
  0x9e   : > { %v4198_v16 = vld [vmem:[%s5167_s1 + $0x5a4] ss:$12 sps:$4 sm:$0xff]  }
  0x9f   : > { %1608 = vmatpush1.bf16.msra.mxu0 %v4106_v31  ;;  %v4161_v31 = vld [vmem:[%s5167_s1 + $0x4d0] ss:$12 sps:$4 sm:$0xff]  }
  0xa0   : > { %3756 = vmatpush3.bf16.msra.mxu1 %v4109_v30  ;;  %1609 = vmatprep.subr.bf16.mxu0 %v4112_v33  ;;  %v4160_v30 = vld [vmem:[%s5167_s1 + $0x4cc] ss:$12 sps:$4 sm:$0xff]   ;;  %v4164_v33 = vld [vmem:[%s5167_s1 + $0x4e4] ss:$12 sps:$4 sm:$0xff]  }
  0xa1   : > { %3757 = vmatprep.subr.bf16.mxu1 %v4113_v39 }
  0xa3   : > { %1610 = vmatpush1.bf16.msra.mxu0 %v4110_v26  ;;  %v2316_v26 = vshll.u32 %v3445_v34, 16 }
  0xa4   : > { %3758 = vmatpush3.bf16.msra.mxu1 %v4113_v39  ;;  %1900 = vmatprep.subr.bf16.mxu0 %v4116_v21  ;;  %v2313_v39 = vshrl.u32 %v3445_v34, 16  ;;  %v4169_v21 = vld [vmem:[%s5167_s1 + $0x500] ss:$12 sps:$4 sm:$0xff]  }
  0xa5   : > { %3763 = vmatprep.subr.bf16.mxu1 %v4117_v47  ;;  %v4206_v34 = vld [vmem:[%s5167_s1 + $0x5d4] ss:$12 sps:$4 sm:$0xff]  }
  0xa6   : > { %1628 = vmatmul.mubr.bf16.vlgmr.msra.gmra.mrb[0].mxu0 %v4698_v60  ;;  %v4133_v60 = vld [vmem:[%s5167_s1 + $0x428] ss:$12 sps:$4 sm:$0xff]   ;;  %v2315_v46 = vrot.slane %v2313_v39, 4 }
  0xa7   : > { %3760 = vmatmul.mubr.bf16.vlgmr.msra.gmra.mrb[0].mxu1 %v3296_v48  ;;  %1901 = vmatpush1.bf16.msra.mxu0 %v4114_v43  ;;  %v2324_v43 = vrot.slane %v2322_v41, 5  ;;  %v4204_v41 = vld [vmem:[%s5167_s1 + $0x5d0] ss:$12 sps:$4 sm:$0xff]  }
  0xa8   : > { %3764 = vmatpush3.bf16.msra.mxu1 %v4117_v47  ;;  %1902 = vmatprep.subr.bf16.mxu0 %v4120_v37  ;;  %v2318_v47 = vrot.slane %v2316_v26, 5  ;;  %v4173_v37 = vld [vmem:[%s5167_s1 + $0x518] ss:$12 sps:$4 sm:$0xff]  }
  0xa9   : > { %3765 = vmatprep.subr.bf16.mxu1 %v4121_v51  ;;  %1637 = vmatprep.mubr.bf16.mxu0 %v4252_v2  ;;  %v4207_v26 = vld [vmem:[%s5167_s1 + $0x5d8] ss:$12 sps:$4 sm:$0xff]  }
  0xaa   : > { %3779 = vmatprep.mubr.bf16.mxu1 %v4797_v52 }
  0xab   : > { %1903 = vmatpush1.bf16.msra.mxu0 %v4118_v53 }
  0xac   : > { %3766 = vmatpush3.bf16.msra.mxu1 %v4121_v51  ;;  %1904 = vmatprep.subr.bf16.mxu0 %v4124_v54  ;;  %v4170_v51 = vld [vmem:[%s5167_s1 + $0x510] ss:$12 sps:$4 sm:$0xff]   ;;  %v2332_v54 = vshll.u32 %v4937_v50, 16 }
  0xad   : > { %3767 = vmatprep.subr.bf16.mxu1 %v4125_v40 }
  0xae   : > { %1638 = vmatmul.mubr.bf16.gmra.mrb[4].mxu0 %v3296_v48  ;;  %v2328_v48 = vrot.slane %v2326_v42, 4  ;;  %v4210_v42 = vld [vmem:[%s5167_s1 + $0x5ec] ss:$12 sps:$4 sm:$0xff]  }
  0xaf   : > { %1905 = vmatpush1.bf16.msra.mxu0 %v4122_v55  ;;  %1932 = vmatprep.mubr.bf16.mxu0 %v4252_v2  ;;  %v4177_v55 = vld [vmem:[%s5167_s1 + $0x530] ss:$12 sps:$4 sm:$0xff]  }
  0xb0   : > { %3768 = vmatpush3.bf16.msra.mxu1 %v4125_v40  ;;  %1906 = vmatprep.subr.bf16.mxu0 %v4128_v56  ;;  %v2329_v53 = vor.u32 %v2328_v48, %v2324_v43  ;;  %v4176_v40 = vld [vmem:[%s5167_s1 + $0x52c] ss:$12 sps:$4 sm:$0xff]   ;;  %v4174_v56 = vld [vmem:[%s5167_s1 + $0x528] ss:$12 sps:$4 sm:$0xff]  }
  0xb1   : > { %3769 = vmatprep.subr.bf16.mxu1 %v4129_v57  ;;  %v4208_v48 = vld [vmem:[%s5167_s1 + $0x5e8] ss:$12 sps:$4 sm:$0xff]  }
  0xb3   : > { %1907 = vmatpush1.bf16.msra.mxu0 %v4126_v58  ;;  %v2330_v58 = vrot.slane %v2329_v53, 4 }
  0xb4   : > { %3770 = vmatpush3.bf16.msra.mxu1 %v4129_v57  ;;  %1908 = vmatprep.subr.bf16.mxu0 %v4132_v59  ;;  %v2334_v59 = vrot.slane %v2332_v54, 5  ;;  %v4215_v54 = vld [vmem:[%s5167_s1 + $0x608] ss:$12 sps:$4 sm:$0xff]  }
  0xb5   : > { %3771 = vmatprep.subr.bf16.mxu1 %v4133_v60 }
  0xb6   : > { %v2335_v1 = vsel %vm4375_vm2, %v2330_v58, %v2334_v59  ;;  %v4216_v59 = vld [vmem:[%s5167_s1 + $0x618] ss:$12 sps:$4 sm:$0xff]  }
  0xb7   : > { %1909 = vmatpush1.bf16.msra.mxu0 %v4130_v61  ;;  %v4182_v61 = vld [vmem:[%s5167_s1 + $0x548] ss:$12 sps:$4 sm:$0xff]  }
  0xb8   : > { %3772 = vmatpush3.bf16.msra.mxu1 %v4133_v60  ;;  %1910 = vmatprep.subr.bf16.mxu0 %v4136_v62  ;;  %v4181_v60 = vld [vmem:[%s5167_s1 + $0x544] ss:$12 sps:$4 sm:$0xff]   ;;  %v4179_v62 = vld [vmem:[%s5167_s1 + $0x540] ss:$12 sps:$4 sm:$0xff]  }
  0xb9   : > { %3773 = vmatprep.subr.bf16.mxu1 %v4137_v63 }
  0xbb   : > { %1911 = vmatpush1.bf16.msra.mxu0 %v4134_v0 }
  0xbc   : > { %3774 = vmatpush3.bf16.msra.mxu1 %v4137_v63  ;;  %1912 = vmatprep.subr.bf16.mxu0 %v4140_v3  ;;  %v4183_v63 = vld [vmem:[%s4333_s22 + $0x24] sm:$0xff]  }
  0xbd   : > { %3775 = vmatprep.subr.bf16.mxu1 %v4141_v4  ;;  %v4186_v3 = vld [vmem:[%s5167_s1 + $0x55c] ss:$12 sps:$4 sm:$0xff]  }
  0xbf   : > { %1913 = vmatpush1.bf16.msra.mxu0 %v4138_v7  ;;  %v4184_v7 = vld [vmem:[%s5167_s1 + $0x558] ss:$12 sps:$4 sm:$0xff]  }
  0xc0   : > { %3776 = vmatpush3.bf16.msra.mxu1 %v4141_v4  ;;  %1914 = vmatprep.subr.bf16.mxu0 %v4144_v9  ;;  %v4187_v4 = vld [vmem:[%s5167_s1 + $0x560] ss:$12 sps:$4 sm:$0xff]   ;;  %v4188_v9 = vld [vmem:[%s5167_s1 + $0x570] ss:$12 sps:$4 sm:$0xff]  }
  0xc1   : > { %3777 = vmatprep.subr.bf16.mxu1 %v4145_v11 }
  0xc3   : > { %1915 = vmatpush1.bf16.msra.mxu0 %v4142_v13  ;;  %v3448_v13 = vld [vmem:[%s4333_s22 + $0x24] sm:$0xf] }
  0xc4   : > { %3778 = vmatpush3.bf16.msra.mxu1 %v4145_v11  ;;  %2192 = vmatprep.subr.bf16.mxu0 %v4148_v14  ;;  %v4195_v11 = vld [vmem:[%s5167_s1 + $0x590] ss:$12 sps:$4 sm:$0xff]   ;;  %v5000_v14 = vld [vmem:[%s4333_s22 + $0x28] sm:$0xf] }
  0xc5   : > { %3783 = vmatprep.subr.bf16.mxu1 %v4149_v17 }
  0xc6   : > { %1933 = vmatmul.mubr.bf16.vlgmr.msra.gmra.mrb[0].mxu0 %v4797_v52  ;;  %v2319_v52 = vor.u32 %v2318_v47, %v2315_v46  ;;  %v3509_v47 = vld [vmem:[%s4333_s22 + $0x18] sm:$0xe] }
  0xc7   : > { %3780 = vmatmul.mubr.bf16.vlgmr.msra.gmra.mrb[0].mxu1 %v3358_v19  ;;  %2193 = vmatpush1.bf16.msra.mxu0 %v4146_v18  ;;  %v2340_v18 = vshll.u32 %v3448_v13, 16 }
  0xc8   : > { %3784 = vmatpush3.bf16.msra.mxu1 %v4149_v17  ;;  %2194 = vmatprep.subr.bf16.mxu0 %v4152_v22  ;;  %v2320_v57 = vrot.slane %v2319_v52, 4  ;;  %v2337_v17 = vshrl.u32 %v3448_v13, 16  ;;  %v2350_v22 = vshrl.u32 %v5000_v14, 16  ;;  %v3510_v13 = vld [vmem:[%s4333_s22 + $0x24] sm:$0xe] }
  0xc9   : > { %3785 = vmatprep.subr.bf16.mxu1 %v4153_v23  ;;  %1942 = vmatprep.mubr.bf16.mxu0 %v4252_v2 }
  0xca   : > { %3799 = vmatprep.mubr.bf16.mxu1 %v4883_v24  ;;  %v2325_v0 = vsel %vm4375_vm2, %v2320_v57, %v2324_v43  ;;  %v4211_v43 = vld [vmem:[%s5167_s1 + $0x5f0] ss:$12 sps:$4 sm:$0xff]   ;;  %v4219_v57 = vld [vmem:[%s5167_s1 + $0x620] ss:$12 sps:$4 sm:$0xff]  }
  0xcb   : > { %2195 = vmatpush1.bf16.msra.mxu0 %v4150_v25  ;;  %v4976_v6 = vcombine.low %v2325_v0, %v2335_v1  ;;  %v4202_v25 = vld [vmem:[%s5167_s1 + $0x5bc] ss:$12 sps:$4 sm:$0xff]  }
  0xcc   : > { %3786 = vmatpush3.bf16.msra.mxu1 %v4153_v23  ;;  %2196 = vmatprep.subr.bf16.mxu0 %v4156_v27  ;;  %v4199_v23 = vld [vmem:[%s5167_s1 + $0x5a8] ss:$12 sps:$4 sm:$0xff]   ;;  %v2339_v27 = vrot.slane %v2337_v17, 4  ;;  %v4227_v0 = vld [vmem:[%s5167_s1 + $0x650] ss:$12 sps:$4 sm:$0xff]   ;;  %v3512_v17 = vrot.slane %v3510_v13, 9 }
  0xcd   : > { %3787 = vmatprep.subr.bf16.mxu1 %v4157_v28  ;;  %v4224_v1 = vld [vmem:[%s5167_s1 + $0x648] ss:$12 sps:$4 sm:$0xff]  }
  0xce   : > { %1943 = vmatmul.mubr.bf16.gmra.mrb[4].mxu0 %v3358_v19  ;;  %v2346_v19 = vshll.u32 %v5000_v14, 16 }
  0xcf   : > { %2197 = vmatpush1.bf16.msra.mxu0 %v4154_v29  ;;  %2224 = vmatprep.mubr.bf16.mxu0 %v4252_v2 }
  0xd0   : > { %3788 = vmatpush3.bf16.msra.mxu1 %v4157_v28  ;;  %2198 = vmatprep.subr.bf16.mxu0 %v4160_v30  ;;  %v2342_v28 = vrot.slane %v2340_v18, 5  ;;  %v2348_v29 = vrot.slane %v2346_v19, 5  ;;  %v2352_v30 = vrot.slane %v2350_v22, 4  ;;  %v4243_v19 = vld [vmem:[%s5167_s1 + $0x6b0] ss:$12 sps:$4 sm:$0xff]  }
  0xd1   : > { %3789 = vmatprep.subr.bf16.mxu1 %v4161_v31  ;;  %v4240_v22 = vld [vmem:[%s5167_s1 + $0x6a8] ss:$12 sps:$4 sm:$0xff]  }
  0xd3   : > { %2199 = vmatpush1.bf16.msra.mxu0 %v4158_v32  ;;  %v5024_v32 = vld [vmem:[%s4333_s22 + $0x2c] sm:$0x1] }
  0xd4   : > { %3790 = vmatpush3.bf16.msra.mxu1 %v4161_v31  ;;  %2200 = vmatprep.subr.bf16.mxu0 %v4164_v33  ;;  %v4203_v31 = vld [vmem:[%s5167_s1 + $0x5c0] ss:$12 sps:$4 sm:$0xff]   ;;  %v4200_v33 = vld [vmem:[%s5167_s1 + $0x5b8] ss:$12 sps:$4 sm:$0xff]   ;;  %v2356_v39 = vshll.u32 %v5024_v32, 16 }
  0xd5   : > { %3791 = vmatprep.subr.bf16.mxu1 %v4165_v35 }
  0xd6   : > { %v2358_v46 = vrot.slane %v2356_v39, 5 }
  0xd7   : > { %2201 = vmatpush1.bf16.msra.mxu0 %v4162_v36  ;;  %v2353_v36 = vor.u32 %v2352_v30, %v2348_v29  ;;  %v2948_v30 = vld [vmem:[%s5168_s2] sm:$0x7] }
  0xd8   : > { %3792 = vmatpush3.bf16.msra.mxu1 %v4165_v35  ;;  %2202 = vmatprep.subr.bf16.mxu0 %v4168_v44  ;;  %v2343_v35 = vor.u32 %v2342_v28, %v2339_v27  ;;  %v2653_v44 = vrot.slane %v4914_v20, 5  ;;  %v2656_v20 = vrot.slane %v4937_v50, 5  ;;  %v4212_v50 = vld [vmem:[%s5167_s1 + $0x600] ss:$12 sps:$4 sm:$0xff]   ;;  %v2950_v27 = vlaneseq }
  0xd9   : > { %3793 = vmatprep.subr.bf16.mxu1 %v4169_v21 }
  0xda   : > { %v2951_v28 = vshrl.u32 %v2950_v27, 7 }
  0xdb   : > { %2203 = vmatpush1.bf16.msra.mxu0 %v4166_v45  ;;  %v2354_v45 = vrot.slane %v2353_v36, 4 }
  0xdc   : > { %3794 = vmatpush3.bf16.msra.mxu1 %v4169_v21  ;;  %2204 = vmatprep.subr.bf16.mxu0 %v4172_v49  ;;  %v2344_v21 = vrot.slane %v2343_v35, 4  ;;  %v3511_v49 = vrot.slane %v3509_v47, 9  ;;  %v2956_v12 = vsub.s32 1, %v2951_v28 }
  0xdd   : > { %3795 = vmatprep.subr.bf16.mxu1 %v4173_v37  ;;  %v2359_v53 = vsel %vm4375_vm2, %v2354_v45, %v2358_v46 }
  0xde   : > { %v2349_v52 = vsel %vm4375_vm2, %v2344_v21, %v2348_v29  ;;  %v2952_v29 = vsub.s32 0, %v2951_v28 }
  0xdf   : > { %2205 = vmatpush1.bf16.msra.mxu0 %v4170_v51  ;;  %v4214_v51 = vld [vmem:[%s5167_s1 + $0x604] ss:$12 sps:$4 sm:$0xff]  }
  0xe0   : > { %3796 = vmatpush3.bf16.msra.mxu1 %v4173_v37  ;;  %2206 = vmatprep.subr.bf16.mxu0 %v4176_v40  ;;  %v2655_v37 = vrot.slane %v2653_v44, 4  ;;  %v3484_v40 = vcombine.low %v2349_v52, %v2359_v53 }
  0xe1   : > { %3797 = vmatprep.subr.bf16.mxu1 %v4177_v55 }
  0xe3   : > { %2207 = vmatpush1.bf16.msra.mxu0 %v4174_v56  ;;  %v2657_v56 = vsel %vm4424_vm5, %v2655_v37, %v2656_v20 }
  0xe4   : > { %3798 = vmatpush3.bf16.msra.mxu1 %v4177_v55  ;;  %2529 = vmatprep.subr.bf16.mxu0 %v4181_v60  ;;  %v2654_v55 = vsel %vm4424_vm5, %v3511_v49, %v2653_v44  ;;  %v4222_v60 = vld [vmem:[%s5167_s1 + $0x634] ss:$12 sps:$4 sm:$0xff]  }
  0xe5   : > { %3803 = vmatprep.subr.bf16.mxu1 %v4182_v61  ;;  %v3545_v58 = vcombine.low %v2654_v55, %v2657_v56 }
  0xe6   : > { %2225 = vmatmul.mubr.bf16.vlgmr.msra.gmra.mrb[0].mxu0 %v4883_v24  ;;  %v4196_v24 = vld [vmem:[%s5167_s1 + $0x5a0] ss:$12 sps:$4 sm:$0xff]  }
  0xe7   : > { %3800 = vmatmul.mubr.bf16.vlgmr.msra.gmra.mrb[0].mxu1 %v4183_v63  ;;  %2530 = vmatpush1.bf16.msra.mxu0 %v4179_v62  ;;  %v4220_v62 = vld [vmem:[%s5167_s1 + $0x630] ss:$12 sps:$4 sm:$0xff]  }
  0xe8   : > { %3804 = vmatpush3.bf16.msra.mxu1 %v4182_v61  ;;  %2531 = vmatprep.subr.bf16.mxu0 %v4186_v3  ;;  %v4223_v61 = vld [vmem:[%s5167_s1 + $0x638] ss:$12 sps:$4 sm:$0xff]  }
  0xe9   : > { %3805 = vmatprep.subr.bf16.mxu1 %v4187_v4  ;;  %2234 = vmatprep.mubr.bf16.mxu0 %v4252_v2  ;;  %v4230_v3 = vld [vmem:[%s5167_s1 + $0x664] ss:$12 sps:$4 sm:$0xff]  }
  0xea   : > { %3819 = vmatprep.mubr.bf16.mxu1 %v4976_v6 }
  0xeb   : > { %2532 = vmatpush1.bf16.msra.mxu0 %v4184_v7  ;;  %v4234_v7 = vld [vmem:[%s5167_s1 + $0x67c] ss:$12 sps:$4 sm:$0xff]  }
  0xec   : > { %3806 = vmatpush3.bf16.msra.mxu1 %v4187_v4  ;;  %2533 = vmatprep.subr.bf16.mxu0 %v4190_v8  ;;  %v4231_v4 = vld [vmem:[%s5167_s1 + $0x668] ss:$12 sps:$4 sm:$0xff]   ;;  %v4235_v8 = vld [vmem:[%s5167_s1 + $0x680] ss:$12 sps:$4 sm:$0xff]  }
  0xed   : > { %3807 = vmatprep.subr.bf16.mxu1 %v4191_v5 }
  0xee   : > { %2235 = vmatmul.mubr.bf16.gmra.mrb[4].mxu0 %v4183_v63  ;;  %v4226_v63 = vld [vmem:[%s5167_s1 + $0x64c] ss:$12 sps:$4 sm:$0xff]  }
  0xef   : > { %2534 = vmatpush1.bf16.msra.mxu0 %v4188_v9  ;;  %2561 = vmatprep.mubr.bf16.mxu0 %v4252_v2  ;;  %v4238_v9 = vld [vmem:[%s5167_s1 + $0x694] ss:$12 sps:$4 sm:$0xff]  }
  0xf0   : > { %3808 = vmatpush3.bf16.msra.mxu1 %v4191_v5  ;;  %2535 = vmatprep.subr.bf16.mxu0 %v4194_v10  ;;  %v4232_v5 = vld [vmem:[%s5167_s1 + $0x678] ss:$12 sps:$4 sm:$0xff]   ;;  %v2660_v10 = vrot.slane %v5000_v14, 5  ;;  %v2663_v14 = vrot.slane %v5024_v32, 5  ;;  %v2953_v32 = vrot.slane %v2948_v30, %v2952_v29 }
  0xf1   : > { %3809 = vmatprep.subr.bf16.mxu1 %v4195_v11 }
  0xf2   : > { %v2662_v18 = vrot.slane %v2660_v10, 4 }
  0xf3   : > { %2536 = vmatpush1.bf16.msra.mxu0 %v4192_v15  ;;  %v4236_v15 = vld [vmem:[%s5167_s1 + $0x690] ss:$12 sps:$4 sm:$0xff]  }
  0xf4   : > { %3810 = vmatpush3.bf16.msra.mxu1 %v4195_v11  ;;  %2537 = vmatprep.subr.bf16.mxu0 %v4198_v16  ;;  %v4239_v11 = vld [vmem:[%s5167_s1 + $0x698] ss:$12 sps:$4 sm:$0xff]  }
  0xf5   : > { %3811 = vmatprep.subr.bf16.mxu1 %v4199_v23  ;;  %v4242_v16 = vld [vmem:[%s5167_s1 + $0x6ac] ss:$12 sps:$4 sm:$0xff]  }
  0xf7   : > { %2538 = vmatpush1.bf16.msra.mxu0 %v4196_v24  ;;  %v2664_v24 = vsel %vm4424_vm5, %v2662_v18, %v2663_v14 }
  0xf8   : > { %3812 = vmatpush3.bf16.msra.mxu1 %v4199_v23  ;;  %2539 = vmatprep.subr.bf16.mxu0 %v4202_v25  ;;  %v2661_v23 = vsel %vm4424_vm5, %v3512_v17, %v2660_v10 }
  0xf9   : > { %3813 = vmatprep.subr.bf16.mxu1 %v4203_v31  ;;  %v3546_v25 = vcombine.low %v2661_v23, %v2664_v24 }
  0xfb   : > { %2540 = vmatpush1.bf16.msra.mxu0 %v4200_v33 }
  0xfc   : > { %3814 = vmatpush3.bf16.msra.mxu1 %v4203_v31  ;;  %2541 = vmatprep.subr.bf16.mxu0 %v4206_v34  ;;  %v2960_v31 = vsub.s32 2, %v2951_v28  ;;  %v2957_v34 = vrot.slane %v2948_v30, %v2956_v12 }
  0xfd   : > { %3815 = vmatprep.subr.bf16.mxu1 %v4207_v26 }
  0xfe   : > { %v2961_v33 = vrot.slane %v2948_v30, %v2960_v31 }
  0xff   : > { %2542 = vmatpush1.bf16.msra.mxu0 %v4204_v41 }
 0x100   : > { %3816 = vmatpush3.bf16.msra.mxu1 %v4207_v26  ;;  %2543 = vmatprep.subr.bf16.mxu0 %v4210_v42 }
 0x101   : > { %3817 = vmatprep.subr.bf16.mxu1 %v4211_v43 }
 0x103   : > { %2544 = vmatpush1.bf16.msra.mxu0 %v4208_v48 }
 0x104   : > { %3818 = vmatpush3.bf16.msra.mxu1 %v4211_v43  ;;  %2834 = vmatprep.subr.bf16.mxu0 %v4214_v51 }
 0x105   : > { %3823 = vmatprep.subr.bf16.mxu1 %v4215_v54 }
 0x106   : > { %2562 = vmatmul.mubr.bf16.vlgmr.msra.gmra.mrb[0].mxu0 %v4976_v6  ;;  %v4228_v6 = vld [vmem:[%s5167_s1 + $0x660] ss:$12 sps:$4 sm:$0xff]  }
 0x107   : > { %3820 = vmatmul.mubr.bf16.vlgmr.msra.gmra.mrb[0].mxu1 %v3484_v40  ;;  %2835 = vmatpush1.bf16.msra.mxu0 %v4212_v50 }
 0x108   : > { %3824 = vmatpush3.bf16.msra.mxu1 %v4215_v54  ;;  %2836 = vmatprep.subr.bf16.mxu0 %v4218_v38 }
 0x109   : > { %3825 = vmatprep.subr.bf16.mxu1 %v4219_v57  ;;  %2571 = vmatprep.mubr.bf16.mxu0 %v4252_v2 }
 0x10a   : > { %3839 = vmatprep.mubr.bf16.mxu1 %v3545_v58 }
 0x10b   : > { %2837 = vmatpush1.bf16.msra.mxu0 %v4216_v59 }
 0x10c   : > { %3826 = vmatpush3.bf16.msra.mxu1 %v4219_v57  ;;  %2838 = vmatprep.subr.bf16.mxu0 %v4222_v60 }
 0x10d   : > { %3827 = vmatprep.subr.bf16.mxu1 %v4223_v61 }
 0x10e   : > { %2572 = vmatmul.mubr.bf16.gmra.mrb[4].mxu0 %v3484_v40 }
 0x10f   : > { %2839 = vmatpush1.bf16.msra.mxu0 %v4220_v62  ;;  %2866 = vmatprep.mubr.bf16.mxu0 %v4252_v2 }
 0x110   : > { %3828 = vmatpush3.bf16.msra.mxu1 %v4223_v61  ;;  %2840 = vmatprep.subr.bf16.mxu0 %v4226_v63 }
 0x111   : > { %3829 = vmatprep.subr.bf16.mxu1 %v4227_v0 }
 0x113   : > { %2841 = vmatpush1.bf16.msra.mxu0 %v4224_v1 }
 0x114   : > { %3830 = vmatpush3.bf16.msra.mxu1 %v4227_v0  ;;  %2842 = vmatprep.subr.bf16.mxu0 %v4230_v3 }
 0x115   : > { %3831 = vmatprep.subr.bf16.mxu1 %v4231_v4 }
 0x117   : > { %2843 = vmatpush1.bf16.msra.mxu0 %v4228_v6 }
 0x118   : > { %3832 = vmatpush3.bf16.msra.mxu1 %v4231_v4  ;;  %2844 = vmatprep.subr.bf16.mxu0 %v4234_v7 }
 0x119   : > { %3833 = vmatprep.subr.bf16.mxu1 %v4235_v8 }
 0x11b   : > { %2845 = vmatpush1.bf16.msra.mxu0 %v4232_v5 }
 0x11c   : > { %3834 = vmatpush3.bf16.msra.mxu1 %v4235_v8  ;;  %2846 = vmatprep.subr.bf16.mxu0 %v4238_v9 }
 0x11d   : > { %3835 = vmatprep.subr.bf16.mxu1 %v4239_v11 }
 0x11f   : > { %2847 = vmatpush1.bf16.msra.mxu0 %v4236_v15 }
 0x120   : > { %3836 = vmatpush3.bf16.msra.mxu1 %v4239_v11  ;;  %2848 = vmatprep.subr.bf16.mxu0 %v4242_v16 }
 0x121   : > { %3837 = vmatprep.subr.bf16.mxu1 %v4243_v19 }
 0x123   : > { %2849 = vmatpush1.bf16.msra.mxu0 %v4240_v22 }
 0x124   : > { %3838 = vmatpush3.bf16.msra.mxu1 %v4243_v19 }
 0x126   : > { %2867 = vmatmul.mubr.bf16.vlgmr.msra.gmra.mrb[0].mxu0 %v3545_v58 }
 0x127   : > { %3840 = vmatmul.mubr.bf16.vlgmr.msra.gmra.mrb[0].mxu1 %v3546_v25  ;;  %2876 = vmatprep.mubr.bf16.mxu0 %v4252_v2 }
 0x12e   : > { %2877 = vmatmul.mubr.bf16.gmra.mrb[4].mxu0 %v3546_v25 }
 0x1f9   : > { %v2868_v2 = vpop.f32.mrb[0].mxu0 }
 0x1fa   : > { %v2965_v35 = vadd.f32 %v2953_v32, %v2868_v2  ;;  %v3841_v36 = vpop.f32.mrb[0].mxu1  ;;  %v2870_v39 = vpop.f32.mrb[1].mxu0 }
 0x1fb   : > { %v2973_v26 = vadd.f32 %v3841_v36, %v2961_v33  ;;  %v2966_v41 = vadd.f32 %v2957_v34, %v2870_v39  ;;  %v2921_v42 = vpop.f32.mrb[1].mxu1  ;;  %v2872_v44 = vpop.f32.mrb[2].mxu0 }
 0x1fc   : > { %2977 = vst [vmem:[%s5149_s20] sm:$0xff] %v2965_v35  ;;  %v2967_v21 = vadd.f32 %v2961_v33, %v2921_v42  ;;  %v2968_v45 = vadd.f32 %v2953_v32, %v2872_v44  ;;  %v3842_v46 = vpop.f32.mrb[2].mxu1  ;;  %v2874_v47 = vpop.f32.mrb[3].mxu0 }
 0x1fd   : > { %2985 = vst [vmem:[%s5149_s20 + $0x40] sm:$0xff] %v2973_v26  ;;  %2978 = vst [vmem:[%s5149_s20 + $0x8] sm:$0xff] %v2966_v41  ;;  %v2976_v43 = vadd.f32 %v3842_v46, %v2961_v33  ;;  %v2969_v48 = vadd.f32 %v2957_v34, %v2874_v47  ;;  %v2924_v49 = vpop.f32.mrb[3].mxu1 }
 0x1fe   : > { %2979 = vst [vmem:[%s5149_s20 + $0x10] sm:$0xff] %v2967_v21  ;;  %2980 = vst [vmem:[%s5149_s20 + $0x18] sm:$0xff] %v2968_v45  ;;  %v2970_v37 = vadd.f32 %v2961_v33, %v2924_v49 }
 0x1ff   : > { %2988 = vst [vmem:[%s5149_s20 + $0x58] sm:$0xff] %v2976_v43  ;;  %2981 = vst [vmem:[%s5149_s20 + $0x20] sm:$0xff] %v2969_v48 }
 0x200   : > { %2982 = vst [vmem:[%s5149_s20 + $0x28] sm:$0xff] %v2970_v37 }
 0x201   : > { %v2878_v20 = vpop.f32.mrb[4].mxu0 }
 0x202   : > { %v2971_v51 = vadd.f32 %v2953_v32, %v2878_v20  ;;  %v2880_v52 = vpop.f32.mrb[5].mxu0 }
 0x203   : > { %v2972_v53 = vadd.f32 %v2957_v34, %v2880_v52  ;;  %v2882_v54 = vpop.f32.mrb[6].mxu0 }
 0x204   : > { %2983 = vst [vmem:[%s5149_s20 + $0x30] sm:$0xff] %v2971_v51  ;;  %v2974_v50 = vadd.f32 %v2953_v32, %v2882_v54  ;;  %v2884_v40 = vpop.f32.mrb[7].mxu0 }
 0x205   : > { %2984 = vst [vmem:[%s5149_s20 + $0x38] sm:$0xff] %v2972_v53  ;;  %v2975_v55 = vadd.f32 %v2957_v34, %v2884_v40 }
 0x206   : > { %2986 = vst [vmem:[%s5149_s20 + $0x48] sm:$0xff] %v2974_v50 }
 0x207   : > { %2987 = vst [vmem:[%s5149_s20 + $0x50] sm:$0xff] %v2975_v55 }
 0x208 PF: > { %s13_s12 = sadd.s32 1, %s4250_s12  }
 0x209   : > { %p10_p4 = scmp.ge.s32.totalorder %s13_s12, 4  }
 0x20b   :  { %12 = sbr.rel (!%p10_p4) target bundleno = 1 (0x1), region = 72 }

// kernel: _lambda_.43
= control target key start
LH: loop header
LB: loop body
LE: loop exit
PB: predicated region body
PF: predicated region fallthrough
CT: control target
= control target key end

     0   :  { %s341_s1 = inlined_call_operand.vmem [shape: bf16[256,128], index: 1, kind: input, shape index: {}]   ;;  %s342_s0 = inlined_call_operand.vmem [shape: bf16[8,256], index: 0, kind: input, shape index: {}]   ;;  %s343_s2 = inlined_call_operand.vmem [shape: f32[1,128], index: 2, kind: input, shape index: {}]   ;;  %s344_s3 = inlined_call_operand.vmem [shape: bf16[8,128], index: 3, kind: output, shape index: {}]  }
   0x1   :  { %v246_v0 = vld [vmem:[%s341_s1 + $0x40] sm:$0xff]   ;;  %v248_v2 = vld [vmem:[%s341_s1 + $0x48] sm:$0xff]   ;;  %v250_v4 = vld [vmem:[%s341_s1 + $0x50] sm:$0xff]  }
   0x2   :  { %v247_v1 = vld [vmem:[%s341_s1] sm:$0xff]   ;;  %224 = vmatprep.subr.bf16.mxu0 %v246_v0  ;;  %v249_v3 = vld [vmem:[%s341_s1 + $0x8] sm:$0xff]   ;;  %v251_v5 = vld [vmem:[%s341_s1 + $0x10] sm:$0xff]  }
   0x3   :  { %225 = vmatpush3.bf16.msra.mxu0 %v247_v1  ;;  %v252_v6 = vld [vmem:[%s341_s1 + $0x58] sm:$0xff]   ;;  %v254_v8 = vld [vmem:[%s341_s1 + $0x60] sm:$0xff]   ;;  %v256_v10 = vld [vmem:[%s341_s1 + $0x68] sm:$0xff]  }
   0x4   :  { %226 = vmatprep.subr.bf16.mxu0 %v248_v2  ;;  %v253_v7 = vld [vmem:[%s341_s1 + $0x18] sm:$0xff]   ;;  %v255_v9 = vld [vmem:[%s341_s1 + $0x20] sm:$0xff]   ;;  %v257_v13 = vld [vmem:[%s341_s1 + $0x28] sm:$0xff]  }
   0x5   :  { %v15_v11 = vld [vmem:[%s342_s0] sm:$0xff]  ;;  %v258_v14 = vld [vmem:[%s341_s1 + $0x70] sm:$0xff]   ;;  %v260_v16 = vld [vmem:[%s341_s1 + $0x78] sm:$0xff]  }
   0x6   :  { %v207_v12 = vcombine.high %v15_v11, %v15_v11  ;;  %v259_v15 = vld [vmem:[%s341_s1 + $0x30] sm:$0xff]   ;;  %v261_v17 = vld [vmem:[%s341_s1 + $0x38] sm:$0xff]   ;;  %v206_v18 = vcombine.low %v15_v11, %v15_v11  ;;  %v205_v20 = vld [vmem:[%s343_s2] ss:$0 sm:$0xff] }
   0x7   :  { %227 = vmatpush3.bf16.msra.mxu0 %v249_v3 }
   0x8   :  { %228 = vmatprep.subr.bf16.mxu0 %v250_v4  ;;  %190 = vmatprep.mubr.bf16.mxu0 %v207_v12 }
   0xb   :  { %229 = vmatpush3.bf16.msra.mxu0 %v251_v5 }
   0xc   :  { %230 = vmatprep.subr.bf16.mxu0 %v252_v6 }
   0xf   :  { %231 = vmatpush3.bf16.msra.mxu0 %v253_v7 }
  0x10   :  { %232 = vmatprep.subr.bf16.mxu0 %v254_v8 }
  0x13   :  { %233 = vmatpush3.bf16.msra.mxu0 %v255_v9 }
  0x14   :  { %234 = vmatprep.subr.bf16.mxu0 %v256_v10 }
  0x17   :  { %235 = vmatpush3.bf16.msra.mxu0 %v257_v13 }
  0x18   :  { %236 = vmatprep.subr.bf16.mxu0 %v258_v14 }
  0x1b   :  { %237 = vmatpush3.bf16.msra.mxu0 %v259_v15 }
  0x1c   :  { %238 = vmatprep.subr.bf16.mxu0 %v260_v16 }
  0x1f   :  { %239 = vmatpush3.bf16.msra.mxu0 %v261_v17 }
  0x22   :  { %191 = vmatmul.mubr.bf16.vlgmr.msra.gmra.mrb[0].mxu0 %v206_v18 }
  0xf5   :  { %v240_v19 = vpop.f32.mrb[0].mxu0 }
  0xf6   :  { %v241_v21 = vpop.f32.mrb[1].mxu0 }
  0xf7   :  { %v242_v22 = vadd.f32 %v241_v21, %v240_v19  ;;  %v243_v23 = vpop.f32.mrb[2].mxu0 }
  0xf8   :  { %v244_v24 = vpop.f32.mrb[3].mxu0 }
  0xf9   :  { %v193_v25 = vadd.f32 %v242_v22, %v205_v20 }
  0xfb   :  { %v198_v26 = vmax.f32 %v193_v25, 0.0 }
  0xfd   :  { %v199_v27 = vpack.c.bf16 %v198_v26, %v198_v26 }
  0xff   :  { %200 = vst [vmem:[%s344_s3] sm:$0xf] %v199_v27 }

// kernel: _lambda_.42
= control target key start
LH: loop header
LB: loop body
LE: loop exit
PB: predicated region body
PF: predicated region fallthrough
CT: control target
= control target key end

     0   :  { %s3312_s12 = smov 0   ;;  %s4184_s0 = inlined_call_operand.vmem [shape: bf16[2,2,17,512], index: 0, kind: input, shape index: {}]   ;;  %s4185_s1 = inlined_call_operand.vmem [shape: bf16[4,512,256], index: 1, kind: input, shape index: {}]   ;;  %s4186_s2 = inlined_call_operand.vmem [shape: f32[1,256], index: 2, kind: input, shape index: {}]   ;;  %s4187_s3 = inlined_call_operand.vmem [shape: bf16[2,1,16,256], index: 3, kind: output, shape index: {}]  }
   0x1 LB: > { %s2349_s13 = sadd.s32 4294967295, %s3290_s12   ;;  %p2353_p0 = scmp.ge.s32.totalorder %s3290_s12, 1  ;;  %s3290_s12 = sphi %s3312_s12, %s13_s12  }
   0x2   : > { %p137_p1 = scmp.lt.s32.totalorder %s3290_s12, 3 }
   0x4   : > { %p138_p2 = pnand %p2353_p0, %p137_p1 }
   0x5   : > { %v2879_v0 = vld [vmem:[%s4185_s1 + $0x204] ss:$8 sps:$4 sm:$0xff] (!%p138_p2)   ;;  %v2883_v2 = vld [vmem:[%s4185_s1 + $0x200] ss:$8 sps:$4 sm:$0xff] (!%p138_p2)   ;;  %v2885_v4 = vld [vmem:[%s4185_s1 + $0x214] ss:$8 sps:$4 sm:$0xff] (!%p138_p2)  }
   0x6   : > { %141 = sbr.rel (%p138_p2) target bundleno = 487 (0x1e7), region = 32  ;;  %v2881_v1 = vld [vmem:[%s4185_s1 + $0x404] ss:$8 sps:$4 sm:$0xff] (!%p138_p2)   ;;  %705 = vmatprep.subr.bf16.mxu1 (!%p138_p2), %v2879_v0  ;;  %v2884_v3 = vld [vmem:[%s4185_s1 + $0x400] ss:$8 sps:$4 sm:$0xff] (!%p138_p2)   ;;  %p161_p3 = scmp.lt.s32.totalorder (!%p138_p2), %s2349_s13, 1 }
   0x7   : > { %1611 = vmatprep.subr.bf16.mxu0 (!%p138_p2), %v2881_v1  ;;  %706 = vmatpush1.bf16.msra.mxu1 (!%p138_p2), %v2883_v2  ;;  %v2887_v5 = vld [vmem:[%s4185_s1 + $0x414] ss:$8 sps:$4 sm:$0xff] (!%p138_p2)   ;;  %v2889_v6 = vld [vmem:[%s4185_s1 + $0x210] ss:$8 sps:$4 sm:$0xff] (!%p138_p2)   ;;  %v2891_v8 = vld [vmem:[%s4185_s1 + $0x224] ss:$8 sps:$4 sm:$0xff] (!%p138_p2)  }
   0x8   : > { %1612 = vmatpush1.bf16.msra.mxu0 (!%p138_p2), %v2884_v3  ;;  %707 = vmatprep.subr.bf16.mxu1 (!%p138_p2), %v2885_v4  ;;  %v2890_v7 = vld [vmem:[%s4185_s1 + $0x410] ss:$8 sps:$4 sm:$0xff] (!%p138_p2)   ;;  %v2893_v9 = vld [vmem:[%s4185_s1 + $0x424] ss:$8 sps:$4 sm:$0xff] (!%p138_p2)   ;;  %v2895_v10 = vld [vmem:[%s4185_s1 + $0x220] ss:$8 sps:$4 sm:$0xff] (!%p138_p2)  }
   0x9   : > { %1613 = vmatprep.subr.bf16.mxu0 (!%p138_p2), %v2887_v5  ;;  %v2896_v11 = vld [vmem:[%s4185_s1 + $0x420] ss:$8 sps:$4 sm:$0xff] (!%p138_p2)   ;;  %v2897_v12 = vld [vmem:[%s4185_s1 + $0x234] ss:$8 sps:$4 sm:$0xff] (!%p138_p2)   ;;  %v2901_v14 = vld [vmem:[%s4185_s1 + $0x230] ss:$8 sps:$4 sm:$0xff] (!%p138_p2)  }
   0xa   : > { %v2899_v13 = vld [vmem:[%s4185_s1 + $0x434] ss:$8 sps:$4 sm:$0xff] (!%p138_p2)   ;;  %v2902_v15 = vld [vmem:[%s4185_s1 + $0x430] ss:$8 sps:$4 sm:$0xff] (!%p138_p2)   ;;  %v2903_v16 = vld [vmem:[%s4185_s1 + $0x244] ss:$8 sps:$4 sm:$0xff] (!%p138_p2)  }
   0xb   : > { %708 = vmatpush1.bf16.msra.mxu1 (!%p138_p2), %v2889_v6  ;;  %v2905_v17 = vld [vmem:[%s4185_s1 + $0x444] ss:$8 sps:$4 sm:$0xff] (!%p138_p2)   ;;  %v2907_v18 = vld [vmem:[%s4185_s1 + $0x240] ss:$8 sps:$4 sm:$0xff] (!%p138_p2)   ;;  %v2909_v20 = vld [vmem:[%s4185_s1 + $0x254] ss:$8 sps:$4 sm:$0xff] (!%p138_p2)  }
   0xc   : > { %1614 = vmatpush1.bf16.msra.mxu0 (!%p138_p2), %v2890_v7  ;;  %709 = vmatprep.subr.bf16.mxu1 (!%p138_p2), %v2891_v8  ;;  %v2908_v19 = vld [vmem:[%s4185_s1 + $0x440] ss:$8 sps:$4 sm:$0xff] (!%p138_p2)   ;;  %v2911_v21 = vld [vmem:[%s4185_s1 + $0x454] ss:$8 sps:$4 sm:$0xff] (!%p138_p2)   ;;  %v2913_v22 = vld [vmem:[%s4185_s1 + $0x250] ss:$8 sps:$4 sm:$0xff] (!%p138_p2)  }
   0xd   : > { %1615 = vmatprep.subr.bf16.mxu0 %v2893_v9  ;;  %v2914_v23 = vld [vmem:[%s4185_s1 + $0x450] ss:$8 sps:$4 sm:$0xff]   ;;  %v2915_v24 = vld [vmem:[%s4185_s1 + $0x264] ss:$8 sps:$4 sm:$0xff]   ;;  %v2919_v26 = vld [vmem:[%s4185_s1 + $0x260] ss:$8 sps:$4 sm:$0xff]  }
   0xe   : > { %v2917_v25 = vld [vmem:[%s4185_s1 + $0x464] ss:$8 sps:$4 sm:$0xff]   ;;  %v2920_v27 = vld [vmem:[%s4185_s1 + $0x460] ss:$8 sps:$4 sm:$0xff]   ;;  %v2921_v28 = vld [vmem:[%s4185_s1 + $0x274] ss:$8 sps:$4 sm:$0xff]  }
   0xf   : > { %710 = vmatpush1.bf16.msra.mxu1 %v2895_v10  ;;  %v2923_v29 = vld [vmem:[%s4185_s1 + $0x474] ss:$8 sps:$4 sm:$0xff]   ;;  %v2925_v30 = vld [vmem:[%s4185_s1 + $0x270] ss:$8 sps:$4 sm:$0xff]   ;;  %v2927_v32 = vld [vmem:[%s4185_s1 + $0x284] ss:$8 sps:$4 sm:$0xff]  }
  0x10   : > { %1616 = vmatpush1.bf16.msra.mxu0 %v2896_v11  ;;  %711 = vmatprep.subr.bf16.mxu1 %v2897_v12  ;;  %v2926_v31 = vld [vmem:[%s4185_s1 + $0x470] ss:$8 sps:$4 sm:$0xff]   ;;  %v2929_v33 = vld [vmem:[%s4185_s1 + $0x484] ss:$8 sps:$4 sm:$0xff]   ;;  %v2931_v34 = vld [vmem:[%s4185_s1 + $0x280] ss:$8 sps:$4 sm:$0xff]  }
  0x11   : > { %1617 = vmatprep.subr.bf16.mxu0 %v2899_v13  ;;  %v2932_v35 = vld [vmem:[%s4185_s1 + $0x480] ss:$8 sps:$4 sm:$0xff]   ;;  %v2933_v36 = vld [vmem:[%s4185_s1 + $0x294] ss:$8 sps:$4 sm:$0xff]   ;;  %s4189_s13 = smov (!%p161_p3, %s2349_s13), 1 }
  0x12   : > { %v2935_v37 = vld [vmem:[%s4185_s1 + $0x494] ss:$8 sps:$4 sm:$0xff]   ;;  %v2937_v38 = vld [vmem:[%s4185_s1 + $0x290] ss:$8 sps:$4 sm:$0xff]   ;;  %v2939_v40 = vld [vmem:[%s4185_s1 + $0x2a4] ss:$8 sps:$4 sm:$0xff]  }
  0x13   : > { %712 = vmatpush1.bf16.msra.mxu1 %v2901_v14  ;;  %v2938_v39 = vld [vmem:[%s4185_s1 + $0x490] ss:$8 sps:$4 sm:$0xff]   ;;  %s2870_s21 = smul.u32 96, %s4189_s13  ;;  %v2941_v41 = vld [vmem:[%s4185_s1 + $0x4a4] ss:$8 sps:$4 sm:$0xff]   ;;  %s2839_s19 = sshll.u32 %s4189_s13, 4 }
  0x14   : > { %1618 = vmatpush1.bf16.msra.mxu0 %v2902_v15  ;;  %713 = vmatprep.subr.bf16.mxu1 %v2903_v16  ;;  %v2943_v42 = vld [vmem:[%s4185_s1 + $0x2a0] ss:$8 sps:$4 sm:$0xff]   ;;  %v2945_v44 = vld [vmem:[%s4185_s1 + $0x2b4] ss:$8 sps:$4 sm:$0xff]   ;;  %v2949_v46 = vld [vmem:[%s4185_s1 + $0x2b0] ss:$8 sps:$4 sm:$0xff]   ;;  %s170_s22 = scalar_lea.vmem %s4187_s3, %s2839_s19 }
  0x15   : > { %1619 = vmatprep.subr.bf16.mxu0 %v2905_v17  ;;  %v2944_v43 = vld [vmem:[%s4185_s1 + $0x4a0] ss:$8 sps:$4 sm:$0xff]   ;;  %s3465_s5 = scalar_lea.vmem %s4184_s0, %s2870_s21  ;;  %v2947_v45 = vld [vmem:[%s4185_s1 + $0x4b4] ss:$8 sps:$4 sm:$0xff]   ;;  %v2950_v47 = vld [vmem:[%s4185_s1 + $0x4b0] ss:$8 sps:$4 sm:$0xff]  }
  0x16   : > { %v239_v48 = vld [vmem:[%s3465_s5 + $0x20] sm:$0x11]  ;;  %vm332_vm0 = vsmask.f32 7424  ;;  %v2957_v62 = vld [vmem:[%s4185_s1 + $0x2d4] ss:$8 sps:$4 sm:$0xff]  }
  0x17   : > { %714 = vmatpush1.bf16.msra.mxu1 %v2907_v18  ;;  %v3478_v49 = vld [vmem:[%s3465_s5 + $0x4] ss:$16 sps:$4 sm:$0xff]   ;;  %v2426_v51 = vcombine.high %v239_v48, %v239_v48  ;;  %v2955_v57 = vld [vmem:[%s4185_s1 + $0x2c0] ss:$8 sps:$4 sm:$0xff]   ;;  %v2961_v2 = vld [vmem:[%s4185_s1 + $0x2d0] ss:$8 sps:$4 sm:$0xff]   ;;  %v2425_v4 = vcombine.low %v239_v48, %v239_v48 }
  0x18   : > { %1620 = vmatpush1.bf16.msra.mxu0 %v2908_v19  ;;  %715 = vmatprep.subr.bf16.mxu1 %v2909_v20  ;;  %v2951_v50 = vld [vmem:[%s4185_s1 + $0x2c4] ss:$8 sps:$4 sm:$0xff]   ;;  %v346_v53 = vshrl.u32 %v3478_v49, 16  ;;  %v348_v54 = vshll.u32 %v3478_v49, 16  ;;  %v2956_v58 = vld [vmem:[%s4185_s1 + $0x4c0] ss:$8 sps:$4 sm:$0xff]  }
  0x19   : > { %1621 = vmatprep.subr.bf16.mxu0 %v2911_v21  ;;  %v2953_v52 = vld [vmem:[%s4185_s1 + $0x4c4] ss:$8 sps:$4 sm:$0xff]   ;;  %v353_v55 = vshll.u32 %v2426_v51, 16  ;;  %v2987_v61 = vld [vmem:[%s3465_s5] ss:$16 sps:$4 sm:$0xff]   ;;  %v341_v12 = vshll.u32 %v2425_v4, 16 }
  0x1a   : > { %v3489_v56 = vld [vmem:[%s3465_s5 + $0x34] ss:$16 sps:$4 sm:$0xff]   ;;  %v350_v59 = vrot.slane %v348_v54, 1  ;;  %v2962_v3 = vld [vmem:[%s4185_s1 + $0x4d0] ss:$8 sps:$4 sm:$0xff]   ;;  %v336_v5 = vshll.u32 %v2987_v61, 16 }
  0x1b   : > { %716 = vmatpush1.bf16.msra.mxu1 %v2913_v22  ;;  %v355_v60 = vrot.slane %v353_v55, 1  ;;  %v2959_v63 = vld [vmem:[%s4185_s1 + $0x4d4] ss:$8 sps:$4 sm:$0xff]   ;;  %1643 = vmatprep.mubr.bf16.mxu0 %v3489_v56  ;;  %v2963_v6 = vld [vmem:[%s4185_s1 + $0x2e4] ss:$8 sps:$4 sm:$0xff]   ;;  %v334_v10 = vshrl.u32 %v2987_v61, 16 }
  0x1c   : > { %1622 = vmatpush1.bf16.msra.mxu0 %v2914_v23  ;;  %717 = vmatprep.subr.bf16.mxu1 %v2915_v24  ;;  %v351_v0 = vor.u32 %v350_v59, %v346_v53  ;;  %v2965_v7 = vld [vmem:[%s4185_s1 + $0x4e4] ss:$8 sps:$4 sm:$0xff]   ;;  %v2967_v8 = vld [vmem:[%s4185_s1 + $0x2e0] ss:$8 sps:$4 sm:$0xff]   ;;  %v338_v11 = vrot.slane %v336_v5, 1  ;;  %v343_v18 = vrot.slane %v341_v12, 1 }
  0x1d   : > { %1623 = vmatprep.subr.bf16.mxu0 %v2917_v25  ;;  %v2968_v9 = vld [vmem:[%s4185_s1 + $0x4e0] ss:$8 sps:$4 sm:$0xff]   ;;  %v2969_v13 = vld [vmem:[%s4185_s1 + $0x2f4] ss:$8 sps:$4 sm:$0xff]   ;;  %v2973_v15 = vld [vmem:[%s4185_s1 + $0x2f0] ss:$8 sps:$4 sm:$0xff]  }
  0x1e   : > { %v356_v1 = vsel %vm332_vm0, %v351_v0, %v355_v60  ;;  %v2971_v14 = vld [vmem:[%s4185_s1 + $0x4f4] ss:$8 sps:$4 sm:$0xff]   ;;  %v2974_v16 = vld [vmem:[%s4185_s1 + $0x4f0] ss:$8 sps:$4 sm:$0xff]   ;;  %v339_v17 = vor.u32 %v338_v11, %v334_v10  ;;  %v2980_v19 = vld [vmem:[%s4185_s1 + $0x304] ss:$8 sps:$4 sm:$0xff]  }
  0x1f   : > { %718 = vmatpush1.bf16.msra.mxu1 %v2919_v26  ;;  %737 = vmatprep.mubr.bf16.mxu1 %v356_v1  ;;  %v2986_v20 = vld [vmem:[%s4185_s1 + $0x504] ss:$8 sps:$4 sm:$0xff]   ;;  %v3543_v21 = vld [vmem:[%s3465_s5 + $0x30] ss:$16 sps:$4 sm:$0xff]   ;;  %v2991_v25 = vld [vmem:[%s4185_s1 + $0x314] ss:$8 sps:$4 sm:$0xff]  }
  0x20   : > { %1624 = vmatpush1.bf16.msra.mxu0 %v2920_v27  ;;  %719 = vmatprep.subr.bf16.mxu1 %v2921_v28  ;;  %v2978_v22 = vld [vmem:[%s4185_s1 + $0x300] ss:$8 sps:$4 sm:$0xff]   ;;  %v344_v24 = vsel %vm332_vm0, %v339_v17, %v343_v18  ;;  %v2994_v26 = vld [vmem:[%s4185_s1 + $0x514] ss:$8 sps:$4 sm:$0xff]   ;;  %v2989_v27 = vld [vmem:[%s4185_s1 + $0x310] ss:$8 sps:$4 sm:$0xff]  }
  0x21   : > { %1625 = vmatprep.subr.bf16.mxu0 %v2923_v29  ;;  %v2984_v23 = vld [vmem:[%s4185_s1 + $0x500] ss:$8 sps:$4 sm:$0xff]   ;;  %v2992_v28 = vld [vmem:[%s4185_s1 + $0x510] ss:$8 sps:$4 sm:$0xff]   ;;  %v2997_v29 = vld [vmem:[%s4185_s1 + $0x324] ss:$8 sps:$4 sm:$0xff]  }
  0x22   : > { %v3022_v48 = vld [vmem:[%s4185_s1 + $0x560] ss:$8 sps:$4 sm:$0xff]   ;;  %v3030_v51 = vld [vmem:[%s4185_s1 + $0x574] ss:$8 sps:$4 sm:$0xff]   ;;  %v3025_v55 = vld [vmem:[%s4185_s1 + $0x370] ss:$8 sps:$4 sm:$0xff]  }
  0x23   : > { %720 = vmatpush1.bf16.msra.mxu1 %v2925_v30  ;;  %v3000_v30 = vld [vmem:[%s4185_s1 + $0x524] ss:$8 sps:$4 sm:$0xff]   ;;  %v3028_v59 = vld [vmem:[%s4185_s1 + $0x570] ss:$8 sps:$4 sm:$0xff]   ;;  %v3034_v4 = vld [vmem:[%s4185_s1 + $0x580] ss:$8 sps:$4 sm:$0xff]  }
  0x24   : > { %1626 = vmatpush1.bf16.msra.mxu0 %v2926_v31  ;;  %721 = vmatprep.subr.bf16.mxu1 %v2927_v32  ;;  %v2995_v31 = vld [vmem:[%s4185_s1 + $0x320] ss:$8 sps:$4 sm:$0xff]   ;;  %v3635_v53 = vld [vmem:[%s3465_s5 + $0xc] ss:$16 sps:$4 sm:$0xff]   ;;  %v3052_v17 = vld [vmem:[%s4185_s1 + $0x5b0] ss:$8 sps:$4 sm:$0xff]  }
  0x25   : > { %1627 = vmatprep.subr.bf16.mxu0 %v2929_v33  ;;  %v2998_v32 = vld [vmem:[%s4185_s1 + $0x520] ss:$8 sps:$4 sm:$0xff]   ;;  %v3003_v33 = vld [vmem:[%s4185_s1 + $0x334] ss:$8 sps:$4 sm:$0xff]   ;;  %v3045_v10 = vld [vmem:[%s4185_s1 + $0x3a4] ss:$8 sps:$4 sm:$0xff]  }
  0x26   : > { %v3648_v61 = vld [vmem:[%s3465_s5 + $0x3c] ss:$16 sps:$4 sm:$0xff]   ;;  %v3043_v12 = vld [vmem:[%s4185_s1 + $0x3a0] ss:$8 sps:$4 sm:$0xff]  }
  0x27   : > { %722 = vmatpush1.bf16.msra.mxu1 %v2931_v34  ;;  %v3006_v34 = vld [vmem:[%s4185_s1 + $0x534] ss:$8 sps:$4 sm:$0xff]   ;;  %v3048_v11 = vld [vmem:[%s4185_s1 + $0x5a4] ss:$8 sps:$4 sm:$0xff]  }
  0x28   : > { %1628 = vmatpush1.bf16.msra.mxu0 %v2932_v35  ;;  %723 = vmatprep.subr.bf16.mxu1 %v2933_v36  ;;  %v3001_v35 = vld [vmem:[%s4185_s1 + $0x330] ss:$8 sps:$4 sm:$0xff]   ;;  %v3039_v5 = vld [vmem:[%s4185_s1 + $0x394] ss:$8 sps:$4 sm:$0xff]   ;;  %v3057_v18 = vld [vmem:[%s4185_s1 + $0x3c4] ss:$8 sps:$4 sm:$0xff]  }
  0x29   : > { %1629 = vmatprep.subr.bf16.mxu0 %v2935_v37  ;;  %v3004_v36 = vld [vmem:[%s4185_s1 + $0x530] ss:$8 sps:$4 sm:$0xff]   ;;  %v3009_v37 = vld [vmem:[%s4185_s1 + $0x344] ss:$8 sps:$4 sm:$0xff]  }
  0x2b   : > { %724 = vmatpush1.bf16.msra.mxu1 %v2937_v38  ;;  %v3012_v38 = vld [vmem:[%s4185_s1 + $0x544] ss:$8 sps:$4 sm:$0xff]  }
  0x2c   : > { %1630 = vmatpush1.bf16.msra.mxu0 %v2938_v39  ;;  %725 = vmatprep.subr.bf16.mxu1 %v2939_v40  ;;  %v3007_v39 = vld [vmem:[%s4185_s1 + $0x340] ss:$8 sps:$4 sm:$0xff]  }
  0x2d   : > { %1631 = vmatprep.subr.bf16.mxu0 %v2941_v41  ;;  %v3010_v40 = vld [vmem:[%s4185_s1 + $0x540] ss:$8 sps:$4 sm:$0xff]   ;;  %v3015_v41 = vld [vmem:[%s4185_s1 + $0x354] ss:$8 sps:$4 sm:$0xff]  }
  0x2f   : > { %726 = vmatpush1.bf16.msra.mxu1 %v2943_v42  ;;  %v3018_v42 = vld [vmem:[%s4185_s1 + $0x554] ss:$8 sps:$4 sm:$0xff]  }
  0x30   : > { %1632 = vmatpush1.bf16.msra.mxu0 %v2944_v43  ;;  %727 = vmatprep.subr.bf16.mxu1 %v2945_v44  ;;  %v3013_v43 = vld [vmem:[%s4185_s1 + $0x350] ss:$8 sps:$4 sm:$0xff]  }
  0x31   : > { %1633 = vmatprep.subr.bf16.mxu0 %v2947_v45  ;;  %v3016_v44 = vld [vmem:[%s4185_s1 + $0x550] ss:$8 sps:$4 sm:$0xff]   ;;  %v3021_v45 = vld [vmem:[%s4185_s1 + $0x364] ss:$8 sps:$4 sm:$0xff]  }
  0x33   : > { %728 = vmatpush1.bf16.msra.mxu1 %v2949_v46  ;;  %v3024_v46 = vld [vmem:[%s4185_s1 + $0x564] ss:$8 sps:$4 sm:$0xff]  }
  0x34   : > { %1634 = vmatpush1.bf16.msra.mxu0 %v2950_v47  ;;  %729 = vmatprep.subr.bf16.mxu1 %v2951_v50  ;;  %v3019_v47 = vld [vmem:[%s4185_s1 + $0x360] ss:$8 sps:$4 sm:$0xff]   ;;  %v3027_v50 = vld [vmem:[%s4185_s1 + $0x374] ss:$8 sps:$4 sm:$0xff]  }
  0x35   : > { %1635 = vmatprep.subr.bf16.mxu0 %v2953_v52  ;;  %v3632_v52 = vld [vmem:[%s3465_s5 + $0x28] sm:$0x11] }
  0x36   : > { %v2428_v54 = vcombine.high %v3632_v52, %v3632_v52 }
  0x37   : > { %730 = vmatpush1.bf16.msra.mxu1 %v2955_v57  ;;  %v370_v57 = vshrl.u32 %v3635_v53, 16 }
  0x38   : > { %1636 = vmatpush1.bf16.msra.mxu0 %v2956_v58  ;;  %731 = vmatprep.subr.bf16.mxu1 %v2957_v62  ;;  %v372_v58 = vshll.u32 %v3635_v53, 16  ;;  %v377_v60 = vshll.u32 %v2428_v54, 16  ;;  %v3033_v62 = vld [vmem:[%s4185_s1 + $0x384] ss:$8 sps:$4 sm:$0xff]   ;;  %v3096_v54 = vld [vmem:[%s4185_s1 + $0x610] ss:$8 sps:$4 sm:$0xff]  }
  0x39   : > { %1637 = vmatprep.subr.bf16.mxu0 %v2959_v63  ;;  %v3036_v63 = vld [vmem:[%s4185_s1 + $0x584] ss:$8 sps:$4 sm:$0xff]  }
  0x3a   : > { %v374_v0 = vrot.slane %v372_v58, 1  ;;  %v379_v1 = vrot.slane %v377_v60, 1  ;;  %v3104_v58 = vld [vmem:[%s4185_s1 + $0x624] ss:$8 sps:$4 sm:$0xff]   ;;  %v3099_v60 = vld [vmem:[%s4185_s1 + $0x20] ss:$8 sps:$4 sm:$0xff]  }
  0x3b   : > { %732 = vmatpush1.bf16.msra.mxu1 %v2961_v2  ;;  %v3031_v2 = vld [vmem:[%s4185_s1 + $0x380] ss:$8 sps:$4 sm:$0xff]  }
  0x3c   : > { %1638 = vmatpush1.bf16.msra.mxu0 %v2962_v3  ;;  %733 = vmatprep.subr.bf16.mxu1 %v2963_v6  ;;  %v375_v3 = vor.u32 %v374_v0, %v370_v57  ;;  %v3042_v6 = vld [vmem:[%s4185_s1 + $0x594] ss:$8 sps:$4 sm:$0xff]   ;;  %v3101_v57 = vld [vmem:[%s4185_s1 + $0x24] ss:$8 sps:$4 sm:$0xff]  }
  0x3d   : > { %1639 = vmatprep.subr.bf16.mxu0 %v2965_v7  ;;  %v3800_v0 = vld [vmem:[%s3465_s5 + $0x50] sm:$0x11] }
  0x3e   : > { %v380_v7 = vsel %vm332_vm0, %v375_v3, %v379_v1  ;;  %v2768_v1 = vcombine.high %v3800_v0, %v3800_v0 }
  0x3f   : > { %734 = vmatpush1.bf16.msra.mxu1 %v2967_v8  ;;  %v3037_v8 = vld [vmem:[%s4185_s1 + $0x390] ss:$8 sps:$4 sm:$0xff]  }
  0x40   : > { %1640 = vmatpush1.bf16.msra.mxu0 %v2968_v9  ;;  %735 = vmatprep.subr.bf16.mxu1 %v2969_v13  ;;  %v3040_v9 = vld [vmem:[%s4185_s1 + $0x590] ss:$8 sps:$4 sm:$0xff]   ;;  %v3046_v13 = vld [vmem:[%s4185_s1 + $0x5a0] ss:$8 sps:$4 sm:$0xff]  }
  0x41   : > { %1641 = vmatprep.subr.bf16.mxu0 %v2971_v14  ;;  %v3051_v14 = vld [vmem:[%s4185_s1 + $0x3b4] ss:$8 sps:$4 sm:$0xff]  }
  0x43   : > { %736 = vmatpush1.bf16.msra.mxu1 %v2973_v15  ;;  %v3054_v15 = vld [vmem:[%s4185_s1 + $0x5b4] ss:$8 sps:$4 sm:$0xff]  }
  0x44   : > { %1642 = vmatpush1.bf16.msra.mxu0 %v2974_v16  ;;  %748 = vmatprep.subr.bf16.mxu1 %v2980_v19  ;;  %v3049_v16 = vld [vmem:[%s4185_s1 + $0x3b0] ss:$8 sps:$4 sm:$0xff]   ;;  %v3060_v19 = vld [vmem:[%s4185_s1 + $0x5c4] ss:$8 sps:$4 sm:$0xff]  }
  0x45   : > { %1654 = vmatprep.subr.bf16.mxu0 %v2986_v20  ;;  %v3055_v20 = vld [vmem:[%s4185_s1 + $0x3c0] ss:$8 sps:$4 sm:$0xff]  }
  0x46   : > { %738 = vmatmul.mubr.bf16.vlgmr.msra.gmra.mrb[0].mxu1 %v344_v24  ;;  %v3716_v24 = vld [vmem:[%s3465_s5 + $0x8] ss:$16 sps:$4 sm:$0xff]  }
  0x47   : > { %1644 = vmatmul.mubr.bf16.vlgmr.msra.gmra.mrb[0].mxu0 %v3543_v21  ;;  %749 = vmatpush1.bf16.msra.mxu1 %v2978_v22  ;;  %v3058_v22 = vld [vmem:[%s4185_s1 + $0x5c0] ss:$8 sps:$4 sm:$0xff]  }
  0x48   : > { %1655 = vmatpush1.bf16.msra.mxu0 %v2984_v23  ;;  %750 = vmatprep.subr.bf16.mxu1 %v2991_v25  ;;  %v3063_v23 = vld [vmem:[%s4185_s1 + $0x3d4] ss:$8 sps:$4 sm:$0xff]  }
  0x49   : > { %1656 = vmatprep.subr.bf16.mxu0 %v2994_v26  ;;  %1686 = vmatprep.mubr.bf16.mxu0 %v3648_v61  ;;  %v3066_v25 = vld [vmem:[%s4185_s1 + $0x5d4] ss:$8 sps:$4 sm:$0xff]   ;;  %v3061_v26 = vld [vmem:[%s4185_s1 + $0x3d0] ss:$8 sps:$4 sm:$0xff]  }
  0x4a   : > { %780 = vmatprep.mubr.bf16.mxu1 %v380_v7  ;;  %v3116_v7 = vld [vmem:[%s4185_s1 + $0x644] ss:$8 sps:$4 sm:$0xff]  }
  0x4b   : > { %751 = vmatpush1.bf16.msra.mxu1 %v2989_v27  ;;  %v3064_v27 = vld [vmem:[%s4185_s1 + $0x5d0] ss:$8 sps:$4 sm:$0xff]  }
  0x4c   : > { %1657 = vmatpush1.bf16.msra.mxu0 %v2992_v28  ;;  %752 = vmatprep.subr.bf16.mxu1 %v2997_v29  ;;  %v3069_v28 = vld [vmem:[%s4185_s1 + $0x3e4] ss:$8 sps:$4 sm:$0xff]   ;;  %v2427_v29 = vcombine.low %v3632_v52, %v3632_v52  ;;  %v3093_v52 = vld [vmem:[%s4185_s1 + $0x10] ss:$8 sps:$4 sm:$0xff]  }
  0x4d   : > { %1658 = vmatprep.subr.bf16.mxu0 %v3000_v30  ;;  %v360_v30 = vshll.u32 %v3716_v24, 16 }
  0x4f   : > { %753 = vmatpush1.bf16.msra.mxu1 %v2995_v31  ;;  %v3072_v31 = vld [vmem:[%s4185_s1 + $0x5e4] ss:$8 sps:$4 sm:$0xff]  }
  0x50   : > { %1659 = vmatpush1.bf16.msra.mxu0 %v2998_v32  ;;  %754 = vmatprep.subr.bf16.mxu1 %v3003_v33  ;;  %v3067_v32 = vld [vmem:[%s4185_s1 + $0x3e0] ss:$8 sps:$4 sm:$0xff]  }
  0x51   : > { %1660 = vmatprep.subr.bf16.mxu0 %v3006_v34  ;;  %v3070_v33 = vld [vmem:[%s4185_s1 + $0x5e0] ss:$8 sps:$4 sm:$0xff]   ;;  %v3075_v34 = vld [vmem:[%s4185_s1 + $0x3f4] ss:$8 sps:$4 sm:$0xff]  }
  0x53   : > { %755 = vmatpush1.bf16.msra.mxu1 %v3001_v35  ;;  %v358_v35 = vshrl.u32 %v3716_v24, 16 }
  0x54   : > { %1661 = vmatpush1.bf16.msra.mxu0 %v3004_v36  ;;  %756 = vmatprep.subr.bf16.mxu1 %v3009_v37  ;;  %v362_v36 = vrot.slane %v360_v30, 1  ;;  %v365_v37 = vshll.u32 %v2427_v29, 16  ;;  %v3138_v29 = vld [vmem:[%s4185_s1 + $0x680] ss:$8 sps:$4 sm:$0xff]   ;;  %v3143_v30 = vld [vmem:[%s4185_s1 + $0x94] ss:$8 sps:$4 sm:$0xff]  }
  0x55   : > { %1662 = vmatprep.subr.bf16.mxu0 %v3012_v38  ;;  %v3078_v38 = vld [vmem:[%s4185_s1 + $0x5f4] ss:$8 sps:$4 sm:$0xff]  }
  0x57   : > { %757 = vmatpush1.bf16.msra.mxu1 %v3007_v39  ;;  %v3073_v39 = vld [vmem:[%s4185_s1 + $0x3f0] ss:$8 sps:$4 sm:$0xff]  }
  0x58   : > { %1663 = vmatpush1.bf16.msra.mxu0 %v3010_v40  ;;  %758 = vmatprep.subr.bf16.mxu1 %v3015_v41  ;;  %v3076_v40 = vld [vmem:[%s4185_s1 + $0x5f0] ss:$8 sps:$4 sm:$0xff]   ;;  %v3084_v41 = vld [vmem:[%s4185_s1 + $0x4] ss:$8 sps:$4 sm:$0xff]  }
  0x59   : > { %1664 = vmatprep.subr.bf16.mxu0 %v3018_v42  ;;  %v363_v42 = vor.u32 %v362_v36, %v358_v35  ;;  %v3152_v35 = vld [vmem:[%s4185_s1 + $0x6a4] ss:$8 sps:$4 sm:$0xff]   ;;  %v3147_v36 = vld [vmem:[%s4185_s1 + $0xa0] ss:$8 sps:$4 sm:$0xff]  }
  0x5b   : > { %759 = vmatpush1.bf16.msra.mxu1 %v3013_v43  ;;  %v367_v43 = vrot.slane %v365_v37, 1  ;;  %v3150_v37 = vld [vmem:[%s4185_s1 + $0x6a0] ss:$8 sps:$4 sm:$0xff]  }
  0x5c   : > { %1665 = vmatpush1.bf16.msra.mxu0 %v3016_v44  ;;  %760 = vmatprep.subr.bf16.mxu1 %v3021_v45  ;;  %v3090_v44 = vld [vmem:[%s4185_s1 + $0x604] ss:$8 sps:$4 sm:$0xff]   ;;  %v3082_v45 = vld [vmem:[%s4185_s1] ss:$8 sps:$4 sm:$0xff]  }
  0x5d   : > { %1666 = vmatprep.subr.bf16.mxu0 %v3024_v46  ;;  %v3765_v46 = vld [vmem:[%s3465_s5 + $0x38] ss:$16 sps:$4 sm:$0xff]  }
  0x5f   : > { %761 = vmatpush1.bf16.msra.mxu1 %v3019_v47  ;;  %v3088_v47 = vld [vmem:[%s4185_s1 + $0x600] ss:$8 sps:$4 sm:$0xff]  }
  0x60   : > { %1667 = vmatpush1.bf16.msra.mxu0 %v3022_v48  ;;  %762 = vmatprep.subr.bf16.mxu1 %v3027_v50  ;;  %v368_v48 = vsel %vm332_vm0, %v363_v42, %v367_v43  ;;  %v3095_v50 = vld [vmem:[%s4185_s1 + $0x14] ss:$8 sps:$4 sm:$0xff]   ;;  %v3161_v42 = vld [vmem:[%s4185_s1 + $0xc4] ss:$8 sps:$4 sm:$0xff]  }
  0x61   : > { %1668 = vmatprep.subr.bf16.mxu0 %v3030_v51  ;;  %v3098_v51 = vld [vmem:[%s4185_s1 + $0x614] ss:$8 sps:$4 sm:$0xff]   ;;  %v3164_v43 = vld [vmem:[%s4185_s1 + $0x6c4] ss:$8 sps:$4 sm:$0xff]  }
  0x63   : > { %763 = vmatpush1.bf16.msra.mxu1 %v3025_v55  ;;  %v1813_v55 = vshll.u32 %v3489_v56, 16 }
  0x64   : > { %1669 = vmatpush1.bf16.msra.mxu0 %v3028_v59  ;;  %764 = vmatprep.subr.bf16.mxu1 %v3033_v62  ;;  %v1811_v59 = vshrl.u32 %v3489_v56, 16  ;;  %v3102_v62 = vld [vmem:[%s4185_s1 + $0x620] ss:$8 sps:$4 sm:$0xff]   ;;  %v3110_v56 = vld [vmem:[%s4185_s1 + $0x634] ss:$8 sps:$4 sm:$0xff]  }
  0x65   : > { %1670 = vmatprep.subr.bf16.mxu0 %v3036_v63  ;;  %v1815_v63 = vrot.slane %v1813_v55, 1  ;;  %v3941_v55 = vld [vmem:[%s3465_s5 + $0x58] sm:$0x11] }
  0x67   : > { %765 = vmatpush1.bf16.msra.mxu1 %v3031_v2  ;;  %v3105_v2 = vld [vmem:[%s4185_s1 + $0x30] ss:$8 sps:$4 sm:$0xff]   ;;  %v1816_v3 = vor.u32 %v1815_v63, %v1811_v59  ;;  %v1799_v59 = vshrl.u32 %v3543_v21, 16  ;;  %v3171_v63 = vld [vmem:[%s4185_s1 + $0xe0] ss:$8 sps:$4 sm:$0xff]  }
  0x68   : > { %1671 = vmatpush1.bf16.msra.mxu0 %v3034_v4  ;;  %766 = vmatprep.subr.bf16.mxu1 %v3039_v5  ;;  %v1818_v4 = vshll.u32 %v2768_v1, 16  ;;  %v3108_v5 = vld [vmem:[%s4185_s1 + $0x630] ss:$8 sps:$4 sm:$0xff]   ;;  %v3182_v1 = vld [vmem:[%s4185_s1 + $0x6f4] ss:$8 sps:$4 sm:$0xff]  }
  0x69   : > { %1672 = vmatprep.subr.bf16.mxu0 %v3042_v6  ;;  %v3113_v6 = vld [vmem:[%s4185_s1 + $0x44] ss:$8 sps:$4 sm:$0xff]  }
  0x6b   : > { %767 = vmatpush1.bf16.msra.mxu1 %v3037_v8  ;;  %v1820_v8 = vrot.slane %v1818_v4, 1 }
  0x6c   : > { %1673 = vmatpush1.bf16.msra.mxu0 %v3040_v9  ;;  %768 = vmatprep.subr.bf16.mxu1 %v3045_v10  ;;  %v3111_v10 = vld [vmem:[%s4185_s1 + $0x40] ss:$8 sps:$4 sm:$0xff]  }
  0x6d   : > { %1674 = vmatprep.subr.bf16.mxu0 %v3048_v11  ;;  %v1821_v9 = vsel %vm332_vm0, %v1816_v3, %v1820_v8  ;;  %v3114_v11 = vld [vmem:[%s4185_s1 + $0x640] ss:$8 sps:$4 sm:$0xff]  }
  0x6f   : > { %769 = vmatpush1.bf16.msra.mxu1 %v3043_v12  ;;  %v3119_v12 = vld [vmem:[%s4185_s1 + $0x54] ss:$8 sps:$4 sm:$0xff]  }
  0x70   : > { %1675 = vmatpush1.bf16.msra.mxu0 %v3046_v13  ;;  %770 = vmatprep.subr.bf16.mxu1 %v3051_v14  ;;  %v3122_v13 = vld [vmem:[%s4185_s1 + $0x654] ss:$8 sps:$4 sm:$0xff]   ;;  %v3117_v14 = vld [vmem:[%s4185_s1 + $0x50] ss:$8 sps:$4 sm:$0xff]  }
  0x71   : > { %1676 = vmatprep.subr.bf16.mxu0 %v3054_v15  ;;  %v3120_v15 = vld [vmem:[%s4185_s1 + $0x650] ss:$8 sps:$4 sm:$0xff]  }
  0x73   : > { %771 = vmatpush1.bf16.msra.mxu1 %v3049_v16  ;;  %v3125_v16 = vld [vmem:[%s4185_s1 + $0x64] ss:$8 sps:$4 sm:$0xff]  }
  0x74   : > { %1677 = vmatpush1.bf16.msra.mxu0 %v3052_v17  ;;  %772 = vmatprep.subr.bf16.mxu1 %v3057_v18  ;;  %v3128_v17 = vld [vmem:[%s4185_s1 + $0x664] ss:$8 sps:$4 sm:$0xff]   ;;  %v3123_v18 = vld [vmem:[%s4185_s1 + $0x60] ss:$8 sps:$4 sm:$0xff]  }
  0x75   : > { %1678 = vmatprep.subr.bf16.mxu0 %v3060_v19  ;;  %v3126_v19 = vld [vmem:[%s4185_s1 + $0x660] ss:$8 sps:$4 sm:$0xff]  }
  0x77   : > { %773 = vmatpush1.bf16.msra.mxu1 %v3055_v20  ;;  %v3131_v20 = vld [vmem:[%s4185_s1 + $0x74] ss:$8 sps:$4 sm:$0xff]  }
  0x78   : > { %1679 = vmatpush1.bf16.msra.mxu0 %v3058_v22  ;;  %774 = vmatprep.subr.bf16.mxu1 %v3063_v23  ;;  %v3134_v22 = vld [vmem:[%s4185_s1 + $0x674] ss:$8 sps:$4 sm:$0xff]   ;;  %v3129_v23 = vld [vmem:[%s4185_s1 + $0x70] ss:$8 sps:$4 sm:$0xff]  }
  0x79   : > { %1680 = vmatprep.subr.bf16.mxu0 %v3066_v25  ;;  %v3132_v25 = vld [vmem:[%s4185_s1 + $0x670] ss:$8 sps:$4 sm:$0xff]  }
  0x7b   : > { %775 = vmatpush1.bf16.msra.mxu1 %v3061_v26  ;;  %v3137_v26 = vld [vmem:[%s4185_s1 + $0x84] ss:$8 sps:$4 sm:$0xff]  }
  0x7c   : > { %1681 = vmatpush1.bf16.msra.mxu0 %v3064_v27  ;;  %776 = vmatprep.subr.bf16.mxu1 %v3069_v28  ;;  %v3140_v27 = vld [vmem:[%s4185_s1 + $0x684] ss:$8 sps:$4 sm:$0xff]   ;;  %v3135_v28 = vld [vmem:[%s4185_s1 + $0x80] ss:$8 sps:$4 sm:$0xff]  }
  0x7d   : > { %1682 = vmatprep.subr.bf16.mxu0 %v3072_v31  ;;  %v3146_v31 = vld [vmem:[%s4185_s1 + $0x694] ss:$8 sps:$4 sm:$0xff]  }
  0x7f   : > { %777 = vmatpush1.bf16.msra.mxu1 %v3067_v32  ;;  %v3141_v32 = vld [vmem:[%s4185_s1 + $0x90] ss:$8 sps:$4 sm:$0xff]  }
  0x80   : > { %1683 = vmatpush1.bf16.msra.mxu0 %v3070_v33  ;;  %778 = vmatprep.subr.bf16.mxu1 %v3075_v34  ;;  %v3144_v33 = vld [vmem:[%s4185_s1 + $0x690] ss:$8 sps:$4 sm:$0xff]   ;;  %v3149_v34 = vld [vmem:[%s4185_s1 + $0xa4] ss:$8 sps:$4 sm:$0xff]  }
  0x81   : > { %1684 = vmatprep.subr.bf16.mxu0 %v3078_v38  ;;  %v3155_v38 = vld [vmem:[%s4185_s1 + $0xb4] ss:$8 sps:$4 sm:$0xff]  }
  0x83   : > { %779 = vmatpush1.bf16.msra.mxu1 %v3073_v39  ;;  %v3158_v39 = vld [vmem:[%s4185_s1 + $0x6b4] ss:$8 sps:$4 sm:$0xff]  }
  0x84   : > { %1685 = vmatpush1.bf16.msra.mxu0 %v3076_v40  ;;  %1115 = vmatprep.subr.bf16.mxu1 %v3084_v41  ;;  %v3153_v40 = vld [vmem:[%s4185_s1 + $0xb0] ss:$8 sps:$4 sm:$0xff]  }
  0x85   : > { %2170 = vmatprep.subr.bf16.mxu0 %v3090_v44  ;;  %v3156_v41 = vld [vmem:[%s4185_s1 + $0x6b0] ss:$8 sps:$4 sm:$0xff]   ;;  %v3159_v44 = vld [vmem:[%s4185_s1 + $0xc0] ss:$8 sps:$4 sm:$0xff]  }
  0x86   : > { %781 = vmatmul.mubr.bf16.vlgmr.msra.gmra.mrb[0].mxu1 %v368_v48  ;;  %v3170_v48 = vld [vmem:[%s4185_s1 + $0x6d4] ss:$8 sps:$4 sm:$0xff]  }
  0x87   : > { %1687 = vmatmul.mubr.bf16.vlgmr.msra.gmra.mrb[0].mxu0 %v3765_v46  ;;  %1116 = vmatpush1.bf16.msra.mxu1 %v3082_v45  ;;  %v3162_v45 = vld [vmem:[%s4185_s1 + $0x6c0] ss:$8 sps:$4 sm:$0xff]  }
  0x88   : > { %2171 = vmatpush1.bf16.msra.mxu0 %v3088_v47  ;;  %1117 = vmatprep.subr.bf16.mxu1 %v3095_v50  ;;  %v3167_v47 = vld [vmem:[%s4185_s1 + $0xd4] ss:$8 sps:$4 sm:$0xff]   ;;  %v1801_v50 = vshll.u32 %v3543_v21, 16 }
  0x89   : > { %2172 = vmatprep.subr.bf16.mxu0 %v3098_v51  ;;  %1147 = vmatprep.mubr.bf16.mxu1 %v3478_v49  ;;  %v3107_v49 = vld [vmem:[%s4185_s1 + $0x34] ss:$8 sps:$4 sm:$0xff]   ;;  %v3165_v51 = vld [vmem:[%s4185_s1 + $0xd0] ss:$8 sps:$4 sm:$0xff]  }
  0x8a   : > { %2202 = vmatprep.mubr.bf16.mxu0 %v1821_v9  ;;  %v3179_v21 = vld [vmem:[%s4185_s1 + $0xf4] ss:$8 sps:$4 sm:$0xff]   ;;  %v3189_v9 = vld [vmem:[%s4185_s1 + $0x704] ss:$8 sps:$4 sm:$0xff]  }
  0x8b   : > { %1118 = vmatpush1.bf16.msra.mxu1 %v3093_v52  ;;  %v3168_v52 = vld [vmem:[%s4185_s1 + $0x6d0] ss:$8 sps:$4 sm:$0xff]  }
  0x8c   : > { %2173 = vmatpush1.bf16.msra.mxu0 %v3096_v54  ;;  %1119 = vmatprep.subr.bf16.mxu1 %v3101_v57  ;;  %v2767_v54 = vcombine.low %v3800_v0, %v3800_v0  ;;  %v3173_v57 = vld [vmem:[%s4185_s1 + $0xe4] ss:$8 sps:$4 sm:$0xff]   ;;  %v3174_v0 = vld [vmem:[%s4185_s1 + $0x6e0] ss:$8 sps:$4 sm:$0xff]  }
  0x8d   : > { %2174 = vmatprep.subr.bf16.mxu0 %v3104_v58  ;;  %v3176_v58 = vld [vmem:[%s4185_s1 + $0x6e4] ss:$8 sps:$4 sm:$0xff]  }
  0x8f   : > { %1120 = vmatpush1.bf16.msra.mxu1 %v3099_v60  ;;  %v2770_v60 = vcombine.high %v3941_v55, %v3941_v55 }
  0x90   : > { %2175 = vmatpush1.bf16.msra.mxu0 %v3102_v62  ;;  %1121 = vmatprep.subr.bf16.mxu1 %v3107_v49  ;;  %v1837_v62 = vshll.u32 %v3648_v61, 16  ;;  %v1803_v49 = vrot.slane %v1801_v50, 1  ;;  %v3233_v50 = vld [vmem:[%s4185_s1 + $0x180] ss:$8 sps:$4 sm:$0xff]  }
  0x91   : > { %2176 = vmatprep.subr.bf16.mxu0 %v3110_v56  ;;  %v1806_v56 = vshll.u32 %v2767_v54, 16  ;;  %v1842_v4 = vshll.u32 %v2770_v60, 16  ;;  %v3244_v54 = vld [vmem:[%s4185_s1 + $0x794] ss:$8 sps:$4 sm:$0xff]   ;;  %v3250_v60 = vld [vmem:[%s4185_s1 + $0x7a4] ss:$8 sps:$4 sm:$0xff]  }
  0x92   : > { %v1839_v3 = vrot.slane %v1837_v62, 1  ;;  %v3245_v62 = vld [vmem:[%s4185_s1 + $0x1a0] ss:$8 sps:$4 sm:$0xff]  }
  0x93   : > { %1122 = vmatpush1.bf16.msra.mxu1 %v3105_v2  ;;  %v1835_v2 = vshrl.u32 %v3648_v61, 16  ;;  %v1808_v8 = vrot.slane %v1806_v56, 1  ;;  %v3185_v61 = vld [vmem:[%s4185_s1 + $0x104] ss:$8 sps:$4 sm:$0xff]   ;;  %v3251_v56 = vld [vmem:[%s4185_s1 + $0x1b0] ss:$8 sps:$4 sm:$0xff]  }
  0x94   : > { %2177 = vmatpush1.bf16.msra.mxu0 %v3108_v5  ;;  %1123 = vmatprep.subr.bf16.mxu1 %v3113_v6  ;;  %v3177_v5 = vld [vmem:[%s4185_s1 + $0xf0] ss:$8 sps:$4 sm:$0xff]  }
  0x95   : > { %2178 = vmatprep.subr.bf16.mxu0 %v3116_v7  ;;  %v3180_v6 = vld [vmem:[%s4185_s1 + $0x6f0] ss:$8 sps:$4 sm:$0xff]   ;;  %v1804_v7 = vor.u32 %v1803_v49, %v1799_v59  ;;  %v3247_v59 = vld [vmem:[%s4185_s1 + $0x1a4] ss:$8 sps:$4 sm:$0xff]   ;;  %v3256_v49 = vld [vmem:[%s4185_s1 + $0x7b4] ss:$8 sps:$4 sm:$0xff]  }
  0x97   : > { %1124 = vmatpush1.bf16.msra.mxu1 %v3111_v10  ;;  %v1840_v10 = vor.u32 %v1839_v3, %v1835_v2  ;;  %v3262_v2 = vld [vmem:[%s4185_s1 + $0x7c4] ss:$8 sps:$4 sm:$0xff]   ;;  %v3257_v3 = vld [vmem:[%s4185_s1 + $0x1c0] ss:$8 sps:$4 sm:$0xff]  }
  0x98   : > { %2179 = vmatpush1.bf16.msra.mxu0 %v3114_v11  ;;  %1125 = vmatprep.subr.bf16.mxu1 %v3119_v12  ;;  %v1844_v11 = vrot.slane %v1842_v4, 1  ;;  %v3183_v12 = vld [vmem:[%s4185_s1 + $0x100] ss:$8 sps:$4 sm:$0xff]  }
  0x99   : > { %2180 = vmatprep.subr.bf16.mxu0 %v3122_v13  ;;  %v3187_v13 = vld [vmem:[%s4185_s1 + $0x700] ss:$8 sps:$4 sm:$0xff]  }
  0x9a   : > { %v3260_v4 = vld [vmem:[%s4185_s1 + $0x7c0] ss:$8 sps:$4 sm:$0xff]  }
  0x9b   : > { %1126 = vmatpush1.bf16.msra.mxu1 %v3117_v14  ;;  %v1809_v14 = vsel %vm332_vm0, %v1804_v7, %v1808_v8  ;;  %v3263_v7 = vld [vmem:[%s4185_s1 + $0x1d0] ss:$8 sps:$4 sm:$0xff]  }
  0x9c   : > { %2181 = vmatpush1.bf16.msra.mxu0 %v3120_v15  ;;  %1127 = vmatprep.subr.bf16.mxu1 %v3125_v16  ;;  %v3193_v15 = vld [vmem:[%s4185_s1 + $0x114] ss:$8 sps:$4 sm:$0xff]   ;;  %v3266_v8 = vld [vmem:[%s4185_s1 + $0x7d0] ss:$8 sps:$4 sm:$0xff]  }
  0x9d   : > { %2182 = vmatprep.subr.bf16.mxu0 %v3128_v17  ;;  %v3196_v16 = vld [vmem:[%s4185_s1 + $0x714] ss:$8 sps:$4 sm:$0xff]   ;;  %v3283_v17 = vld [vmem:[%s3465_s5] ss:$16 sps:$4 sm:$0xff]  }
  0x9f   : > { %1128 = vmatpush1.bf16.msra.mxu1 %v3123_v18  ;;  %v1845_v18 = vsel %vm332_vm0, %v1840_v10, %v1844_v11  ;;  %v3271_v10 = vld [vmem:[%s4185_s1 + $0x1e4] ss:$8 sps:$4 sm:$0xff]  }
  0xa0   : > { %2183 = vmatpush1.bf16.msra.mxu0 %v3126_v19  ;;  %1129 = vmatprep.subr.bf16.mxu1 %v3131_v20  ;;  %v3191_v19 = vld [vmem:[%s4185_s1 + $0x110] ss:$8 sps:$4 sm:$0xff]   ;;  %v3274_v11 = vld [vmem:[%s4185_s1 + $0x7e4] ss:$8 sps:$4 sm:$0xff]  }
  0xa1   : > { %2184 = vmatprep.subr.bf16.mxu0 %v3134_v22  ;;  %v3194_v20 = vld [vmem:[%s4185_s1 + $0x710] ss:$8 sps:$4 sm:$0xff]   ;;  %v3199_v22 = vld [vmem:[%s4185_s1 + $0x124] ss:$8 sps:$4 sm:$0xff]  }
  0xa3   : > { %1130 = vmatpush1.bf16.msra.mxu1 %v3129_v23  ;;  %v3202_v23 = vld [vmem:[%s4185_s1 + $0x724] ss:$8 sps:$4 sm:$0xff]  }
  0xa4   : > { %2185 = vmatpush1.bf16.msra.mxu0 %v3132_v25  ;;  %1131 = vmatprep.subr.bf16.mxu1 %v3137_v26  ;;  %v3197_v25 = vld [vmem:[%s4185_s1 + $0x120] ss:$8 sps:$4 sm:$0xff]  }
  0xa5   : > { %2186 = vmatprep.subr.bf16.mxu0 %v3140_v27  ;;  %v3200_v26 = vld [vmem:[%s4185_s1 + $0x720] ss:$8 sps:$4 sm:$0xff]   ;;  %v3205_v27 = vld [vmem:[%s4185_s1 + $0x134] ss:$8 sps:$4 sm:$0xff]  }
  0xa7   : > { %1132 = vmatpush1.bf16.msra.mxu1 %v3135_v28  ;;  %v3203_v28 = vld [vmem:[%s4185_s1 + $0x130] ss:$8 sps:$4 sm:$0xff]  }
  0xa8   : > { %2187 = vmatpush1.bf16.msra.mxu0 %v3138_v29  ;;  %1133 = vmatprep.subr.bf16.mxu1 %v3143_v30  ;;  %v3206_v29 = vld [vmem:[%s4185_s1 + $0x730] ss:$8 sps:$4 sm:$0xff]   ;;  %v3211_v30 = vld [vmem:[%s4185_s1 + $0x144] ss:$8 sps:$4 sm:$0xff]  }
  0xa9   : > { %2188 = vmatprep.subr.bf16.mxu0 %v3146_v31  ;;  %v3214_v31 = vld [vmem:[%s4185_s1 + $0x744] ss:$8 sps:$4 sm:$0xff]  }
  0xab   : > { %1134 = vmatpush1.bf16.msra.mxu1 %v3141_v32  ;;  %v3209_v32 = vld [vmem:[%s4185_s1 + $0x140] ss:$8 sps:$4 sm:$0xff]  }
  0xac   : > { %2189 = vmatpush1.bf16.msra.mxu0 %v3144_v33  ;;  %1135 = vmatprep.subr.bf16.mxu1 %v3149_v34  ;;  %v3212_v33 = vld [vmem:[%s4185_s1 + $0x740] ss:$8 sps:$4 sm:$0xff]   ;;  %v3217_v34 = vld [vmem:[%s4185_s1 + $0x154] ss:$8 sps:$4 sm:$0xff]  }
  0xad   : > { %2190 = vmatprep.subr.bf16.mxu0 %v3152_v35  ;;  %v3220_v35 = vld [vmem:[%s4185_s1 + $0x754] ss:$8 sps:$4 sm:$0xff]  }
  0xaf   : > { %1136 = vmatpush1.bf16.msra.mxu1 %v3147_v36  ;;  %v3215_v36 = vld [vmem:[%s4185_s1 + $0x150] ss:$8 sps:$4 sm:$0xff]  }
  0xb0   : > { %2191 = vmatpush1.bf16.msra.mxu0 %v3150_v37  ;;  %1137 = vmatprep.subr.bf16.mxu1 %v3155_v38  ;;  %v3218_v37 = vld [vmem:[%s4185_s1 + $0x750] ss:$8 sps:$4 sm:$0xff]   ;;  %v3223_v38 = vld [vmem:[%s4185_s1 + $0x164] ss:$8 sps:$4 sm:$0xff]  }
  0xb1   : > { %2192 = vmatprep.subr.bf16.mxu0 %v3158_v39  ;;  %v3226_v39 = vld [vmem:[%s4185_s1 + $0x764] ss:$8 sps:$4 sm:$0xff]  }
  0xb3   : > { %1138 = vmatpush1.bf16.msra.mxu1 %v3153_v40  ;;  %v3221_v40 = vld [vmem:[%s4185_s1 + $0x160] ss:$8 sps:$4 sm:$0xff]  }
  0xb4   : > { %2193 = vmatpush1.bf16.msra.mxu0 %v3156_v41  ;;  %1139 = vmatprep.subr.bf16.mxu1 %v3161_v42  ;;  %v3224_v41 = vld [vmem:[%s4185_s1 + $0x760] ss:$8 sps:$4 sm:$0xff]   ;;  %v3229_v42 = vld [vmem:[%s4185_s1 + $0x174] ss:$8 sps:$4 sm:$0xff]  }
  0xb5   : > { %2194 = vmatprep.subr.bf16.mxu0 %v3164_v43  ;;  %v3232_v43 = vld [vmem:[%s4185_s1 + $0x774] ss:$8 sps:$4 sm:$0xff]  }
  0xb7   : > { %1140 = vmatpush1.bf16.msra.mxu1 %v3159_v44  ;;  %v3227_v44 = vld [vmem:[%s4185_s1 + $0x170] ss:$8 sps:$4 sm:$0xff]  }
  0xb8   : > { %2195 = vmatpush1.bf16.msra.mxu0 %v3162_v45  ;;  %1141 = vmatprep.subr.bf16.mxu1 %v3167_v47  ;;  %v3230_v45 = vld [vmem:[%s4185_s1 + $0x770] ss:$8 sps:$4 sm:$0xff]   ;;  %v3235_v47 = vld [vmem:[%s4185_s1 + $0x184] ss:$8 sps:$4 sm:$0xff]  }
  0xb9   : > { %2196 = vmatprep.subr.bf16.mxu0 %v3170_v48  ;;  %v3238_v48 = vld [vmem:[%s4185_s1 + $0x784] ss:$8 sps:$4 sm:$0xff]  }
  0xbb   : > { %1142 = vmatpush1.bf16.msra.mxu1 %v3165_v51  ;;  %v3236_v51 = vld [vmem:[%s4185_s1 + $0x780] ss:$8 sps:$4 sm:$0xff]  }
  0xbc   : > { %2197 = vmatpush1.bf16.msra.mxu0 %v3168_v52  ;;  %1143 = vmatprep.subr.bf16.mxu1 %v3173_v57  ;;  %v3241_v52 = vld [vmem:[%s4185_s1 + $0x194] ss:$8 sps:$4 sm:$0xff]   ;;  %v3239_v57 = vld [vmem:[%s4185_s1 + $0x190] ss:$8 sps:$4 sm:$0xff]  }
  0xbd   : > { %2198 = vmatprep.subr.bf16.mxu0 %v3176_v58  ;;  %v3242_v58 = vld [vmem:[%s4185_s1 + $0x790] ss:$8 sps:$4 sm:$0xff]  }
  0xbf   : > { %1144 = vmatpush1.bf16.msra.mxu1 %v3171_v63  ;;  %v3248_v63 = vld [vmem:[%s4185_s1 + $0x7a0] ss:$8 sps:$4 sm:$0xff]  }
  0xc0   : > { %2199 = vmatpush1.bf16.msra.mxu0 %v3174_v0  ;;  %1145 = vmatprep.subr.bf16.mxu1 %v3179_v21  ;;  %v3253_v0 = vld [vmem:[%s4185_s1 + $0x1b4] ss:$8 sps:$4 sm:$0xff]   ;;  %v3254_v21 = vld [vmem:[%s4185_s1 + $0x7b0] ss:$8 sps:$4 sm:$0xff]  }
  0xc1   : > { %2200 = vmatprep.subr.bf16.mxu0 %v3182_v1  ;;  %v3259_v1 = vld [vmem:[%s4185_s1 + $0x1c4] ss:$8 sps:$4 sm:$0xff]  }
  0xc3   : > { %1146 = vmatpush1.bf16.msra.mxu1 %v3177_v5  ;;  %v3265_v5 = vld [vmem:[%s4185_s1 + $0x1d4] ss:$8 sps:$4 sm:$0xff]  }
  0xc4   : > { %2201 = vmatpush1.bf16.msra.mxu0 %v3180_v6  ;;  %1158 = vmatprep.subr.bf16.mxu1 %v3185_v61  ;;  %v3268_v6 = vld [vmem:[%s4185_s1 + $0x7d4] ss:$8 sps:$4 sm:$0xff]   ;;  %v2769_v61 = vcombine.low %v3941_v55, %v3941_v55  ;;  %v3269_v55 = vld [vmem:[%s4185_s1 + $0x1e0] ss:$8 sps:$4 sm:$0xff]  }
  0xc5   : > { %2213 = vmatprep.subr.bf16.mxu0 %v3189_v9  ;;  %v1825_v9 = vshll.u32 %v3765_v46, 16 }
  0xc6   : > { %1148 = vmatmul.mubr.bf16.vlgmr.msra.gmra.mrb[0].mxu1 %v3283_v17  ;;  %v3275_v17 = vld [vmem:[%s4185_s1 + $0x1f0] ss:$8 sps:$4 sm:$0xff]  }
  0xc7   : > { %2203 = vmatmul.mubr.bf16.vlgmr.msra.gmra.mrb[0].mxu0 %v1809_v14  ;;  %1159 = vmatpush1.bf16.msra.mxu1 %v3183_v12  ;;  %v1823_v12 = vshrl.u32 %v3765_v46, 16  ;;  %v1827_v14 = vrot.slane %v1825_v9, 1  ;;  %v3280_v46 = vld [vmem:[%s4185_s1 + $0x7f4] ss:$8 sps:$4 sm:$0xff]  }
  0xc8   : > { %2214 = vmatpush1.bf16.msra.mxu0 %v3187_v13  ;;  %1160 = vmatprep.subr.bf16.mxu1 %v3193_v15  ;;  %v3272_v13 = vld [vmem:[%s4185_s1 + $0x7e0] ss:$8 sps:$4 sm:$0xff]   ;;  %v1830_v15 = vshll.u32 %v2769_v61, 16 }
  0xc9   : > { %2215 = vmatprep.subr.bf16.mxu0 %v3196_v16  ;;  %1190 = vmatprep.mubr.bf16.mxu1 %v3635_v53  ;;  %v3208_v53 = vld [vmem:[%s4185_s1 + $0x734] ss:$8 sps:$4 sm:$0xff]  }
  0xca   : > { %2245 = vmatprep.mubr.bf16.mxu0 %v1845_v18  ;;  %v3277_v16 = vld [vmem:[%s4185_s1 + $0x1f4] ss:$8 sps:$4 sm:$0xff]   ;;  %v3278_v18 = vld [vmem:[%s4185_s1 + $0x7f0] ss:$8 sps:$4 sm:$0xff]  }
  0xcb   : > { %1161 = vmatpush1.bf16.msra.mxu1 %v3191_v19  ;;  %v1828_v19 = vor.u32 %v1827_v14, %v1823_v12 }
  0xcc   : > { %2216 = vmatpush1.bf16.msra.mxu0 %v3194_v20  ;;  %1162 = vmatprep.subr.bf16.mxu1 %v3199_v22  ;;  %v1832_v20 = vrot.slane %v1830_v15, 1 }
  0xcd   : > { %2217 = vmatprep.subr.bf16.mxu0 %v3202_v23  ;;  %v2262_v23 = vlaneseq }
  0xce   : > { %v1833_v22 = vsel %vm332_vm0, %v1828_v19, %v1832_v20 }
  0xcf   : > { %1163 = vmatpush1.bf16.msra.mxu1 %v3197_v25  ;;  %v2263_v25 = vshrl.u32 %v2262_v23, 7 }
  0xd0   : > { %2218 = vmatpush1.bf16.msra.mxu0 %v3200_v26  ;;  %1164 = vmatprep.subr.bf16.mxu1 %v3205_v27  ;;  %v2260_v27 = vld [vmem:[%s4186_s2] sm:$0x3] }
  0xd1   : > { %2219 = vmatprep.subr.bf16.mxu0 %v3208_v53  ;;  %v2264_v26 = vsub.s32 0, %v2263_v25  ;;  %v2268_v53 = vsub.s32 1, %v2263_v25 }
  0xd3   : > { %1165 = vmatpush1.bf16.msra.mxu1 %v3203_v28  ;;  %v2265_v28 = vrot.slane %v2260_v27, %v2264_v26 }
  0xd4   : > { %2220 = vmatpush1.bf16.msra.mxu0 %v3206_v29  ;;  %1166 = vmatprep.subr.bf16.mxu1 %v3211_v30 }
  0xd5   : > { %2221 = vmatprep.subr.bf16.mxu0 %v3214_v31  ;;  %v2269_v31 = vrot.slane %v2260_v27, %v2268_v53 }
  0xd7   : > { %1167 = vmatpush1.bf16.msra.mxu1 %v3209_v32 }
  0xd8   : > { %2222 = vmatpush1.bf16.msra.mxu0 %v3212_v33  ;;  %1168 = vmatprep.subr.bf16.mxu1 %v3217_v34 }
  0xd9   : > { %2223 = vmatprep.subr.bf16.mxu0 %v3220_v35 }
  0xdb   : > { %1169 = vmatpush1.bf16.msra.mxu1 %v3215_v36 }
  0xdc   : > { %2224 = vmatpush1.bf16.msra.mxu0 %v3218_v37  ;;  %1170 = vmatprep.subr.bf16.mxu1 %v3223_v38 }
  0xdd   : > { %2225 = vmatprep.subr.bf16.mxu0 %v3226_v39 }
  0xdf   : > { %1171 = vmatpush1.bf16.msra.mxu1 %v3221_v40 }
  0xe0   : > { %2226 = vmatpush1.bf16.msra.mxu0 %v3224_v41  ;;  %1172 = vmatprep.subr.bf16.mxu1 %v3229_v42 }
  0xe1   : > { %2227 = vmatprep.subr.bf16.mxu0 %v3232_v43 }
  0xe3   : > { %1173 = vmatpush1.bf16.msra.mxu1 %v3227_v44 }
  0xe4   : > { %2228 = vmatpush1.bf16.msra.mxu0 %v3230_v45  ;;  %1174 = vmatprep.subr.bf16.mxu1 %v3235_v47 }
  0xe5   : > { %2229 = vmatprep.subr.bf16.mxu0 %v3238_v48 }
  0xe7   : > { %1175 = vmatpush1.bf16.msra.mxu1 %v3233_v50 }
  0xe8   : > { %2230 = vmatpush1.bf16.msra.mxu0 %v3236_v51  ;;  %1176 = vmatprep.subr.bf16.mxu1 %v3241_v52 }
  0xe9   : > { %2231 = vmatprep.subr.bf16.mxu0 %v3244_v54 }
  0xeb   : > { %1177 = vmatpush1.bf16.msra.mxu1 %v3239_v57 }
  0xec   : > { %2232 = vmatpush1.bf16.msra.mxu0 %v3242_v58  ;;  %1178 = vmatprep.subr.bf16.mxu1 %v3247_v59 }
  0xed   : > { %2233 = vmatprep.subr.bf16.mxu0 %v3250_v60 }
  0xef   : > { %1179 = vmatpush1.bf16.msra.mxu1 %v3245_v62 }
  0xf0   : > { %2234 = vmatpush1.bf16.msra.mxu0 %v3248_v63  ;;  %1180 = vmatprep.subr.bf16.mxu1 %v3253_v0 }
  0xf1   : > { %2235 = vmatprep.subr.bf16.mxu0 %v3256_v49 }
  0xf3   : > { %1181 = vmatpush1.bf16.msra.mxu1 %v3251_v56 }
  0xf4   : > { %2236 = vmatpush1.bf16.msra.mxu0 %v3254_v21  ;;  %1182 = vmatprep.subr.bf16.mxu1 %v3259_v1 }
  0xf5   : > { %2237 = vmatprep.subr.bf16.mxu0 %v3262_v2 }
  0xf7   : > { %1183 = vmatpush1.bf16.msra.mxu1 %v3257_v3 }
  0xf8   : > { %2238 = vmatpush1.bf16.msra.mxu0 %v3260_v4  ;;  %1184 = vmatprep.subr.bf16.mxu1 %v3265_v5 }
  0xf9   : > { %2239 = vmatprep.subr.bf16.mxu0 %v3268_v6 }
  0xfb   : > { %1185 = vmatpush1.bf16.msra.mxu1 %v3263_v7 }
  0xfc   : > { %2240 = vmatpush1.bf16.msra.mxu0 %v3266_v8  ;;  %1186 = vmatprep.subr.bf16.mxu1 %v3271_v10 }
  0xfd   : > { %2241 = vmatprep.subr.bf16.mxu0 %v3274_v11 }
  0xff   : > { %1187 = vmatpush1.bf16.msra.mxu1 %v3269_v55 }
 0x100   : > { %2242 = vmatpush1.bf16.msra.mxu0 %v3272_v13  ;;  %1188 = vmatprep.subr.bf16.mxu1 %v3277_v16 }
 0x101   : > { %2243 = vmatprep.subr.bf16.mxu0 %v3280_v46 }
 0x103   : > { %1189 = vmatpush1.bf16.msra.mxu1 %v3275_v17 }
 0x104   : > { %2244 = vmatpush1.bf16.msra.mxu0 %v3278_v18 }
 0x106   : > { %1191 = vmatmul.mubr.bf16.vlgmr.msra.gmra.mrb[0].mxu1 %v3716_v24 }
 0x107   : > { %2246 = vmatmul.mubr.bf16.vlgmr.msra.gmra.mrb[0].mxu0 %v1833_v22 }
 0x1d9   : > { %v1192_v29 = vpop.f32.mrb[0].mxu1 }
 0x1da   : > { %v2247_v30 = vpop.f32.mrb[0].mxu0  ;;  %v1194_v33 = vpop.f32.mrb[1].mxu1 }
 0x1db   : > { %v2842_v32 = vadd.f32 %v2247_v30, %v1192_v29  ;;  %v2249_v34 = vpop.f32.mrb[1].mxu0  ;;  %v1196_v36 = vpop.f32.mrb[2].mxu1 }
 0x1dc   : > { %v2843_v35 = vadd.f32 %v2249_v34, %v1194_v33  ;;  %v2251_v24 = vpop.f32.mrb[2].mxu0  ;;  %v1198_v39 = vpop.f32.mrb[3].mxu1 }
 0x1dd   : > { %v2272_v37 = vadd.f32 %v2842_v32, %v2265_v28  ;;  %v2844_v38 = vadd.f32 %v2251_v24, %v1196_v36  ;;  %v2253_v40 = vpop.f32.mrb[3].mxu0 }
 0x1de   : > { %v2273_v41 = vadd.f32 %v2843_v35, %v2269_v31  ;;  %v2845_v42 = vadd.f32 %v2253_v40, %v1198_v39 }
 0x1df   : > { %v2276_v43 = vmax.f32 %v2272_v37, 0.0  ;;  %v2274_v44 = vadd.f32 %v2844_v38, %v2265_v28 }
 0x1e0   : > { %v2277_v45 = vmax.f32 %v2273_v41, 0.0  ;;  %v2275_v47 = vadd.f32 %v2845_v42, %v2269_v31 }
 0x1e1   : > { %v2278_v48 = vmax.f32 %v2274_v44, 0.0 }
 0x1e2   : > { %v2840_v50 = vpack.c.bf16 %v2277_v45, %v2276_v43  ;;  %v2279_v51 = vmax.f32 %v2275_v47, 0.0 }
 0x1e4   : > { %2292 = vst [vmem:[%s170_s22] sm:$0xff] %v2840_v50  ;;  %v2841_v52 = vpack.c.bf16 %v2279_v51, %v2278_v48 }
 0x1e6   : > { %2293 = vst [vmem:[%s170_s22 + $0x8] sm:$0xff] %v2841_v52 }
 0x1e7 PF: > { %s13_s12 = sadd.s32 1, %s3290_s12  }
 0x1e8   : > { %p10_p4 = scmp.ge.s32.totalorder %s13_s12, 4  }
 0x1ea   :  { %12 = sbr.rel (!%p10_p4) target bundleno = 1 (0x1), region = 66 }

// kernel: _lambda_.47
= control target key start
LH: loop header
LB: loop body
LE: loop exit
PB: predicated region body
PF: predicated region fallthrough
CT: control target
= control target key end

     0   :  { %s2822_s12 = smov 0   ;;  %s3344_s0 = inlined_call_operand.vmem [shape: bf16[2,3,18,256], index: 0, kind: input, shape index: {}]   ;;  %s3345_s1 = inlined_call_operand.vmem [shape: bf16[9,256,128], index: 1, kind: input, shape index: {}]   ;;  %s3346_s2 = inlined_call_operand.vmem [shape: f32[1,128], index: 2, kind: input, shape index: {}]   ;;  %s3347_s3 = inlined_call_operand.vmem [shape: f32[2,1,16,128], index: 3, kind: output, shape index: {}]  }
   0x1 LB: > { %s1979_s13 = sadd.s32 4294967295, %s2800_s12   ;;  %p1983_p0 = scmp.ge.s32.totalorder %s2800_s12, 1  ;;  %s2800_s12 = sphi %s2822_s12, %s13_s12  }
   0x2   : > { %p137_p1 = scmp.lt.s32.totalorder %s2800_s12, 3 }
   0x4   : > { %p138_p2 = pnand %p1983_p0, %p137_p1 }
   0x5   : > { %v2632_v0 = vld [vmem:[%s3345_s1 + $0xc0] sm:$0xff] (!%p138_p2)   ;;  %v2636_v4 = vld [vmem:[%s3345_s1 + $0xc8] sm:$0xff] (!%p138_p2)   ;;  %v2640_v8 = vld [vmem:[%s3345_s1 + $0xd0] sm:$0xff] (!%p138_p2)   ;;  %p161_p3 = scmp.lt.s32.totalorder (!%p138_p2), %s1979_s13, 1  ;;  %vm253_vm0 = vsmask.f32 (!%p138_p2), 7424 }
   0x6   : > { %141 = sbr.rel (%p138_p2) target bundleno = 389 (0x185), region = 32  ;;  %v2633_v1 = vld [vmem:[%s3345_s1 + $0x40] sm:$0xff] (!%p138_p2)   ;;  %2425 = vmatprep.subr.bf16.mxu0 (!%p138_p2), %v2632_v0  ;;  %v2637_v5 = vld [vmem:[%s3345_s1 + $0x48] sm:$0xff] (!%p138_p2)   ;;  %v2641_v9 = vld [vmem:[%s3345_s1 + $0x50] sm:$0xff] (!%p138_p2)   ;;  %vm595_vm1 = vcmask (!%p138_p2), 1046528  }
   0x7   : > { %v2634_v2 = vld [vmem:[%s3345_s1 + $0x80] sm:$0xff] (!%p138_p2)   ;;  %2447 = vmatprep.subr.bf16.mxu1 (!%p138_p2), %v2633_v1  ;;  %v2638_v6 = vld [vmem:[%s3345_s1 + $0x88] sm:$0xff] (!%p138_p2)   ;;  %v2642_v10 = vld [vmem:[%s3345_s1 + $0x90] sm:$0xff] (!%p138_p2)  }
   0x8   : > { %v2635_v3 = vld [vmem:[%s3345_s1] sm:$0xff] (!%p138_p2)   ;;  %2426 = vmatpush3.bf16.msra.mxu0 (!%p138_p2), %v2634_v2  ;;  %v2639_v7 = vld [vmem:[%s3345_s1 + $0x8] sm:$0xff] (!%p138_p2)   ;;  %v2643_v11 = vld [vmem:[%s3345_s1 + $0x10] sm:$0xff] (!%p138_p2)  }
   0x9   : > { %2448 = vmatpush3.bf16.msra.mxu1 (!%p138_p2), %v2635_v3  ;;  %2427 = vmatprep.subr.bf16.mxu0 (!%p138_p2), %v2636_v4  ;;  %v2644_v12 = vld [vmem:[%s3345_s1 + $0xd8] sm:$0xff] (!%p138_p2)   ;;  %v2648_v16 = vld [vmem:[%s3345_s1 + $0xe0] sm:$0xff] (!%p138_p2)   ;;  %v2652_v20 = vld [vmem:[%s3345_s1 + $0xe8] sm:$0xff] (!%p138_p2)  }
   0xa   : > { %2449 = vmatprep.subr.bf16.mxu1 (!%p138_p2), %v2637_v5  ;;  %v2645_v13 = vld [vmem:[%s3345_s1 + $0x58] sm:$0xff] (!%p138_p2)   ;;  %v2649_v17 = vld [vmem:[%s3345_s1 + $0x60] sm:$0xff] (!%p138_p2)   ;;  %v2653_v21 = vld [vmem:[%s3345_s1 + $0x68] sm:$0xff] (!%p138_p2)  }
   0xb   : > { %v2646_v14 = vld [vmem:[%s3345_s1 + $0x98] sm:$0xff] (!%p138_p2)   ;;  %v2650_v18 = vld [vmem:[%s3345_s1 + $0xa0] sm:$0xff] (!%p138_p2)   ;;  %v2654_v22 = vld [vmem:[%s3345_s1 + $0xa8] sm:$0xff] (!%p138_p2)  }
   0xc   : > { %2428 = vmatpush3.bf16.msra.mxu0 (!%p138_p2), %v2638_v6  ;;  %v2647_v15 = vld [vmem:[%s3345_s1 + $0x18] sm:$0xff] (!%p138_p2)   ;;  %v2651_v19 = vld [vmem:[%s3345_s1 + $0x20] sm:$0xff] (!%p138_p2)   ;;  %v2655_v23 = vld [vmem:[%s3345_s1 + $0x28] sm:$0xff] (!%p138_p2)  }
   0xd   : > { %2450 = vmatpush3.bf16.msra.mxu1 %v2639_v7  ;;  %2429 = vmatprep.subr.bf16.mxu0 %v2640_v8  ;;  %s3349_s13 = smov (!%p161_p3, %s1979_s13), 1  ;;  %v2656_v24 = vld [vmem:[%s3345_s1 + $0xf0] sm:$0xff]   ;;  %v2660_v28 = vld [vmem:[%s3345_s1 + $0xf8] sm:$0xff]   ;;  %v2668_v39 = vld [vmem:[%s3345_s1 + $0x140] sm:$0xff]  }
   0xe   : > { %2451 = vmatprep.subr.bf16.mxu1 %v2641_v9  ;;  %v2657_v25 = vld [vmem:[%s3345_s1 + $0x70] sm:$0xff]   ;;  %s2623_s16 = smul.u32 72, %s3349_s13  ;;  %v2661_v29 = vld [vmem:[%s3345_s1 + $0x78] sm:$0xff]   ;;  %v2670_v46 = vld [vmem:[%s3345_s1 + $0x1c0] sm:$0xff]   ;;  %s2424_s14 = sshll.u32 %s3349_s13, 4 }
   0xf   : > { %v2658_v26 = vld [vmem:[%s3345_s1 + $0xb0] sm:$0xff]   ;;  %v2662_v30 = vld [vmem:[%s3345_s1 + $0xb8] sm:$0xff]   ;;  %v2671_v47 = vld [vmem:[%s3345_s1 + $0x180] sm:$0xff]   ;;  %s170_s19 = scalar_lea.vmem %s3347_s3, %s2424_s14 }
  0x10   : > { %2430 = vmatpush3.bf16.msra.mxu0 %v2642_v10  ;;  %v2659_v27 = vld [vmem:[%s3345_s1 + $0x30] sm:$0xff]   ;;  %s2930_s27 = scalar_lea.vmem %s3344_s0, %s2623_s16  ;;  %v2663_v31 = vld [vmem:[%s3345_s1 + $0x38] sm:$0xff]   ;;  %v2669_v53 = vld [vmem:[%s3345_s1 + $0x100] sm:$0xff]  }
  0x11   : > { %2452 = vmatpush3.bf16.msra.mxu1 %v2643_v11  ;;  %2431 = vmatprep.subr.bf16.mxu0 %v2644_v12  ;;  %v172_v32 = vld [vmem:[%s2930_s27] sm:$0xff]  ;;  %v2940_v33 = vld [vmem:[%s2930_s27 + $0x8] sm:$0xff]  ;;  %v206_v34 = vld [vmem:[%s2930_s27 + $0x10] sm:$0x11] }
  0x12   : > { %2453 = vmatprep.subr.bf16.mxu1 %v2645_v13  ;;  %v2020_v35 = vcombine.high %v172_v32, %v2940_v33  ;;  %v2944_v36 = vcombine.high %v206_v34, %v206_v34  ;;  %v2019_v37 = vcombine.low %v172_v32, %v2940_v33  ;;  %v2947_v38 = vcombine.low %v206_v34, %v206_v34  ;;  %v2672_v55 = vld [vmem:[%s3345_s1 + $0x148] sm:$0xff]   ;;  %v2676_v61 = vld [vmem:[%s3345_s1 + $0x150] sm:$0xff]   ;;  %v2680_v1 = vld [vmem:[%s3345_s1 + $0x158] sm:$0xff]  }
  0x13   : > { %v2674_v57 = vld [vmem:[%s3345_s1 + $0x1c8] sm:$0xff]   ;;  %v2678_v62 = vld [vmem:[%s3345_s1 + $0x1d0] sm:$0xff]   ;;  %v2682_v2 = vld [vmem:[%s3345_s1 + $0x1d8] sm:$0xff]  }
  0x14   : > { %2432 = vmatpush3.bf16.msra.mxu0 %v2646_v14  ;;  %v267_v40 = vshrl.u32 %v2020_v35, 16  ;;  %v269_v41 = vshll.u32 %v2020_v35, 16  ;;  %v274_v42 = vshll.u32 %v2944_v36, 16  ;;  %547 = vmatprep.mubr.bf16.mxu1 %v2020_v35  ;;  %v255_v43 = vshrl.u32 %v2019_v37, 16  ;;  %v2675_v59 = vld [vmem:[%s3345_s1 + $0x188] sm:$0xff]   ;;  %v2679_v63 = vld [vmem:[%s3345_s1 + $0x190] sm:$0xff]  }
  0x15   : > { %2454 = vmatpush3.bf16.msra.mxu1 %v2647_v15  ;;  %2433 = vmatprep.subr.bf16.mxu0 %v2648_v16  ;;  %v257_v44 = vshll.u32 %v2019_v37, 16  ;;  %v262_v45 = vshll.u32 %v2947_v38, 16  ;;  %v2673_v60 = vld [vmem:[%s3345_s1 + $0x108] sm:$0xff]   ;;  %v2677_v0 = vld [vmem:[%s3345_s1 + $0x110] sm:$0xff]   ;;  %v2683_v3 = vld [vmem:[%s3345_s1 + $0x198] sm:$0xff]  }
  0x16   : > { %2455 = vmatprep.subr.bf16.mxu1 %v2649_v17  ;;  %v271_v48 = vrot.slane %v269_v41, 1  ;;  %v276_v49 = vrot.slane %v274_v42, 1  ;;  %v2681_v4 = vld [vmem:[%s3345_s1 + $0x118] sm:$0xff]   ;;  %v2684_v5 = vld [vmem:[%s3345_s1 + $0x160] sm:$0xff]   ;;  %v2688_v9 = vld [vmem:[%s3345_s1 + $0x168] sm:$0xff]  }
  0x17   : > { %v259_v50 = vrot.slane %v257_v44, 1  ;;  %v264_v51 = vrot.slane %v262_v45, 1  ;;  %v2686_v6 = vld [vmem:[%s3345_s1 + $0x1e0] sm:$0xff]   ;;  %v2690_v10 = vld [vmem:[%s3345_s1 + $0x1e8] sm:$0xff]   ;;  %v2692_v13 = vld [vmem:[%s3345_s1 + $0x170] sm:$0xff]  }
  0x18   : > { %2434 = vmatpush3.bf16.msra.mxu0 %v2650_v18  ;;  %v272_v52 = vor.u32 %v271_v48, %v267_v40  ;;  %v2687_v7 = vld [vmem:[%s3345_s1 + $0x1a0] sm:$0xff]   ;;  %v2691_v11 = vld [vmem:[%s3345_s1 + $0x1a8] sm:$0xff]   ;;  %v2694_v14 = vld [vmem:[%s3345_s1 + $0x1f0] sm:$0xff]  }
  0x19   : > { %2456 = vmatpush3.bf16.msra.mxu1 %v2651_v19  ;;  %2435 = vmatprep.subr.bf16.mxu0 %v2652_v20  ;;  %v260_v54 = vor.u32 %v259_v50, %v255_v43  ;;  %v2685_v8 = vld [vmem:[%s3345_s1 + $0x120] sm:$0xff]   ;;  %v2689_v12 = vld [vmem:[%s3345_s1 + $0x128] sm:$0xff]   ;;  %v2695_v15 = vld [vmem:[%s3345_s1 + $0x1b0] sm:$0xff]  }
  0x1a   : > { %2457 = vmatprep.subr.bf16.mxu1 %v2653_v21  ;;  %v277_v56 = vsel %vm253_vm0, %v272_v52, %v276_v49  ;;  %v2693_v16 = vld [vmem:[%s3345_s1 + $0x130] sm:$0xff]   ;;  %v2696_v17 = vld [vmem:[%s3345_s1 + $0x178] sm:$0xff]   ;;  %v556_v19 = vld [vmem:[%s2930_s27] sm:$0xee]  ;;  %v600_v21 = vrot.slane %v2944_v36, 1 }
  0x1b   : > { %408 = vmatprep.mubr.bf16.mxu0 %v277_v56  ;;  %v265_v58 = vsel %vm253_vm0, %v260_v54, %v264_v51  ;;  %v2698_v18 = vld [vmem:[%s3345_s1 + $0x1f8] sm:$0xff]   ;;  %v2088_v20 = vcombine.high %v556_v19, %v2940_v33  ;;  %v2706_v34 = vld [vmem:[%s3345_s1 + $0x2c0] sm:$0xff]   ;;  %v2711_v40 = vld [vmem:[%s3345_s1 + $0x288] sm:$0xff]  }
  0x1c   : > { %2436 = vmatpush3.bf16.msra.mxu0 %v2654_v22  ;;  %v2700_v22 = vld [vmem:[%s3345_s1 + $0x1b8] sm:$0xff]   ;;  %v2707_v35 = vld [vmem:[%s3345_s1 + $0x280] sm:$0xff]   ;;  %v2709_v41 = vld [vmem:[%s3345_s1 + $0x208] sm:$0xff]  }
  0x1d   : > { %2458 = vmatpush3.bf16.msra.mxu1 %v2655_v23  ;;  %2437 = vmatprep.subr.bf16.mxu0 %v2656_v24  ;;  %v2087_v23 = vcombine.low %v556_v19, %v2940_v33  ;;  %v2697_v24 = vld [vmem:[%s3345_s1 + $0x138] sm:$0xff]   ;;  %v2712_v42 = vld [vmem:[%s3345_s1 + $0x250] sm:$0xff]   ;;  %v2720_v50 = vld [vmem:[%s3345_s1 + $0x260] sm:$0xff]  }
  0x1e   : > { %2459 = vmatprep.subr.bf16.mxu1 %v2657_v25  ;;  %v597_v25 = vrot.slane %v2947_v38, 1  ;;  %v2708_v38 = vld [vmem:[%s3345_s1 + $0x248] sm:$0xff]   ;;  %v2714_v43 = vld [vmem:[%s3345_s1 + $0x2d0] sm:$0xff]   ;;  %v2719_v48 = vld [vmem:[%s3345_s1 + $0x298] sm:$0xff]  }
  0x1f   : > { %v2715_v44 = vld [vmem:[%s3345_s1 + $0x290] sm:$0xff]   ;;  %v2717_v49 = vld [vmem:[%s3345_s1 + $0x218] sm:$0xff]   ;;  %v2722_v51 = vld [vmem:[%s3345_s1 + $0x2e0] sm:$0xff]  }
  0x20   : > { %2438 = vmatpush3.bf16.msra.mxu0 %v2658_v26  ;;  %v2105_v26 = vld [vmem:[%s2930_s27 + $0x18] sm:$0xff]  ;;  %v2713_v45 = vld [vmem:[%s3345_s1 + $0x210] sm:$0xff]   ;;  %v2723_v52 = vld [vmem:[%s3345_s1 + $0x2a0] sm:$0xff]  }
  0x21   : > { %2460 = vmatpush3.bf16.msra.mxu1 %v2659_v27  ;;  %2439 = vmatprep.subr.bf16.mxu0 %v2660_v28  ;;  %v599_v27 = vrot.slane %v2088_v20, 1  ;;  %v596_v28 = vrot.slane %v2087_v23, 1  ;;  %v2724_v54 = vld [vmem:[%s3345_s1 + $0x268] sm:$0xff]   ;;  %v2740_v19 = vld [vmem:[%s3345_s1 + $0x300] sm:$0xff]  }
  0x22   : > { %2461 = vmatprep.subr.bf16.mxu1 %v2661_v29  ;;  %v2702_v29 = vld [vmem:[%s3345_s1 + $0x240] sm:$0xff]   ;;  %v2727_v56 = vld [vmem:[%s3345_s1 + $0x2a8] sm:$0xff]  }
  0x23   : > { %v601_v33 = vsel %vm595_vm1, %v599_v27, %v600_v21  ;;  %v598_v36 = vsel %vm595_vm1, %v596_v28, %v597_v25  ;;  %v2744_v28 = vld [vmem:[%s3345_s1 + $0x348] sm:$0xff]  }
  0x24   : > { %2440 = vmatpush3.bf16.msra.mxu0 %v2662_v30  ;;  %v3059_v30 = vld [vmem:[%s2930_s27 + $0x20] sm:$0xff] }
  0x25   : > { %2462 = vmatpush3.bf16.msra.mxu1 %v2663_v31  ;;  %2469 = vmatprep.subr.bf16.mxu0 %v2668_v39  ;;  %v3062_v31 = vcombine.low %v2105_v26, %v3059_v30  ;;  %v3065_v32 = vcombine.high %v2105_v26, %v3059_v30  ;;  %v2710_v39 = vld [vmem:[%s3345_s1 + $0x2c8] sm:$0xff]   ;;  %v2743_v26 = vld [vmem:[%s3345_s1 + $0x380] sm:$0xff]  }
  0x26   : > { %2491 = vmatprep.subr.bf16.mxu1 %v2670_v46  ;;  %v2716_v46 = vld [vmem:[%s3345_s1 + $0x258] sm:$0xff]  }
  0x27   : > { %409 = vmatmul.mubr.bf16.vlgmr.msra.gmra.mrb[0].mxu0 %v265_v58  ;;  %v2725_v58 = vld [vmem:[%s3345_s1 + $0x228] sm:$0xff]  }
  0x28   : > { %548 = vmatmul.mubr.bf16.vlgmr.msra.gmra.mrb[0].mxu1 %v2019_v37  ;;  %2470 = vmatpush3.bf16.msra.mxu0 %v2669_v53  ;;  %v2705_v37 = vld [vmem:[%s3345_s1 + $0x200] sm:$0xff]  }
  0x29   : > { %2492 = vmatpush3.bf16.msra.mxu1 %v2671_v47  ;;  %2471 = vmatprep.subr.bf16.mxu0 %v2672_v55  ;;  %v2718_v47 = vld [vmem:[%s3345_s1 + $0x2d8] sm:$0xff]   ;;  %v2721_v53 = vld [vmem:[%s3345_s1 + $0x220] sm:$0xff]   ;;  %v2726_v55 = vld [vmem:[%s3345_s1 + $0x2e8] sm:$0xff]  }
  0x2a   : > { %2493 = vmatprep.subr.bf16.mxu1 %v2674_v57  ;;  %732 = vmatprep.mubr.bf16.mxu0 %v601_v33  ;;  %v992_v57 = vshll.u32 %v3065_v32, 16  ;;  %v2745_v33 = vld [vmem:[%s3345_s1 + $0x308] sm:$0xff]  }
  0x2b   : > { %917 = vmatprep.mubr.bf16.mxu1 %v3065_v32 }
  0x2c   : > { %2472 = vmatpush3.bf16.msra.mxu0 %v2673_v60  ;;  %v2728_v60 = vld [vmem:[%s3345_s1 + $0x270] sm:$0xff]  }
  0x2d   : > { %2494 = vmatpush3.bf16.msra.mxu1 %v2675_v59  ;;  %2473 = vmatprep.subr.bf16.mxu0 %v2676_v61  ;;  %v980_v59 = vshll.u32 %v3062_v31, 16  ;;  %v990_v61 = vshrl.u32 %v3065_v32, 16 }
  0x2e   : > { %2495 = vmatprep.subr.bf16.mxu1 %v2678_v62  ;;  %v2730_v62 = vld [vmem:[%s3345_s1 + $0x2f0] sm:$0xff]  }
  0x30   : > { %2474 = vmatpush3.bf16.msra.mxu0 %v2677_v0  ;;  %v2731_v0 = vld [vmem:[%s3345_s1 + $0x2b0] sm:$0xff]  }
  0x31   : > { %2496 = vmatpush3.bf16.msra.mxu1 %v2679_v63  ;;  %2475 = vmatprep.subr.bf16.mxu0 %v2680_v1  ;;  %v978_v63 = vshrl.u32 %v3062_v31, 16  ;;  %v994_v1 = vrot.slane %v992_v57, 1  ;;  %v2769_v57 = vld [vmem:[%s3345_s1 + $0x338] sm:$0xff]  }
  0x32   : > { %2497 = vmatprep.subr.bf16.mxu1 %v2682_v2  ;;  %v2729_v2 = vld [vmem:[%s3345_s1 + $0x230] sm:$0xff]  }
  0x34   : > { %2476 = vmatpush3.bf16.msra.mxu0 %v2681_v4  ;;  %v2732_v4 = vld [vmem:[%s3345_s1 + $0x278] sm:$0xff]  }
  0x35   : > { %2498 = vmatpush3.bf16.msra.mxu1 %v2683_v3  ;;  %2477 = vmatprep.subr.bf16.mxu0 %v2684_v5  ;;  %v982_v3 = vrot.slane %v980_v59, 1  ;;  %v2734_v5 = vld [vmem:[%s3345_s1 + $0x2f8] sm:$0xff]   ;;  %v2263_v59 = vld [vmem:[%s2930_s27 + $0x30] sm:$0xff] }
  0x36   : > { %2499 = vmatprep.subr.bf16.mxu1 %v2686_v6  ;;  %v2159_v6 = vld [vmem:[%s2930_s27 + $0x28] sm:$0x11] }
  0x38   : > { %2478 = vmatpush3.bf16.msra.mxu0 %v2685_v8  ;;  %v2736_v8 = vld [vmem:[%s3345_s1 + $0x2b8] sm:$0xff]  }
  0x39   : > { %2500 = vmatpush3.bf16.msra.mxu1 %v2687_v7  ;;  %2479 = vmatprep.subr.bf16.mxu0 %v2688_v9  ;;  %v2195_v7 = vcombine.high %v2159_v6, %v2159_v6  ;;  %v2194_v9 = vcombine.low %v2159_v6, %v2159_v6 }
  0x3a   : > { %2501 = vmatprep.subr.bf16.mxu1 %v2690_v10  ;;  %v2733_v10 = vld [vmem:[%s3345_s1 + $0x238] sm:$0xff]  }
  0x3b   : > { %v1182_v21 = vrot.slane %v2194_v9, 1 }
  0x3c   : > { %2480 = vmatpush3.bf16.msra.mxu0 %v2689_v12  ;;  %v983_v12 = vor.u32 %v982_v3, %v978_v63  ;;  %v2773_v63 = vld [vmem:[%s3345_s1 + $0x3b8] sm:$0xff]  }
  0x3d   : > { %2502 = vmatpush3.bf16.msra.mxu1 %v2691_v11  ;;  %2481 = vmatprep.subr.bf16.mxu0 %v2692_v13  ;;  %v995_v11 = vor.u32 %v994_v1, %v990_v61  ;;  %v2212_v13 = vld [vmem:[%s2930_s27 + $0x18] sm:$0xee]  ;;  %v2317_v1 = vld [vmem:[%s2930_s27 + $0x40] sm:$0x11] }
  0x3e   : > { %2503 = vmatprep.subr.bf16.mxu1 %v2694_v14  ;;  %v997_v14 = vshll.u32 %v2195_v7, 16  ;;  %v2245_v20 = vcombine.low %v2212_v13, %v3059_v30  ;;  %v2352_v6 = vcombine.low %v2317_v1, %v2317_v1 }
  0x40   : > { %2482 = vmatpush3.bf16.msra.mxu0 %v2693_v16  ;;  %v2738_v16 = vld [vmem:[%s3345_s1 + $0x340] sm:$0xff]   ;;  %v999_v23 = vrot.slane %v997_v14, 1  ;;  %v1181_v27 = vrot.slane %v2245_v20, 1  ;;  %v2780_v20 = vld [vmem:[%s3345_s1 + $0x450] sm:$0xff]  }
  0x41   : > { %2504 = vmatpush3.bf16.msra.mxu1 %v2695_v15  ;;  %2483 = vmatprep.subr.bf16.mxu0 %v2696_v17  ;;  %v985_v15 = vshll.u32 %v2194_v9, 16  ;;  %v2246_v17 = vcombine.high %v2212_v13, %v3059_v30 }
  0x42   : > { %2505 = vmatprep.subr.bf16.mxu1 %v2698_v18  ;;  %v1185_v18 = vrot.slane %v2195_v7, 1  ;;  %v1183_v32 = vsel %vm595_vm1, %v1181_v27, %v1182_v21 }
  0x43   : > { %v1184_v25 = vrot.slane %v2246_v17, 1 }
  0x44   : > { %2484 = vmatpush3.bf16.msra.mxu0 %v2697_v24  ;;  %v987_v24 = vrot.slane %v985_v15, 1 }
  0x45   : > { %2506 = vmatpush3.bf16.msra.mxu1 %v2700_v22  ;;  %2513 = vmatprep.subr.bf16.mxu0 %v2702_v29  ;;  %v2742_v22 = vld [vmem:[%s3345_s1 + $0x3c0] sm:$0xff]   ;;  %v1000_v29 = vsel %vm253_vm0, %v995_v11, %v999_v23  ;;  %v1570_v11 = vshll.u32 %v2352_v6, 16  ;;  %v2782_v23 = vld [vmem:[%s3345_s1 + $0x458] sm:$0xff]  }
  0x46   : > { %2535 = vmatprep.subr.bf16.mxu1 %v2706_v34  ;;  %v988_v30 = vsel %vm253_vm0, %v983_v12, %v987_v24  ;;  %v2746_v34 = vld [vmem:[%s3345_s1 + $0x3c8] sm:$0xff]   ;;  %v2783_v24 = vld [vmem:[%s3345_s1 + $0x418] sm:$0xff]  }
  0x47   : > { %733 = vmatmul.mubr.bf16.vlgmr.msra.gmra.mrb[4].mxu0 %v598_v36  ;;  %v2748_v36 = vld [vmem:[%s3345_s1 + $0x350] sm:$0xff]   ;;  %v2778_v12 = vld [vmem:[%s3345_s1 + $0x448] sm:$0xff]  }
  0x48   : > { %918 = vmatmul.mubr.bf16.vlgmr.msra.gmra.mrb[4].mxu1 %v3062_v31  ;;  %2514 = vmatpush3.bf16.msra.mxu0 %v2705_v37  ;;  %v1186_v31 = vsel %vm595_vm1, %v1184_v25, %v1185_v18  ;;  %v2749_v37 = vld [vmem:[%s3345_s1 + $0x310] sm:$0xff]   ;;  %v2779_v18 = vld [vmem:[%s3345_s1 + $0x408] sm:$0xff]   ;;  %v2784_v25 = vld [vmem:[%s3345_s1 + $0x460] sm:$0xff]  }
  0x49   : > { %2536 = vmatpush3.bf16.msra.mxu1 %v2707_v35  ;;  %2515 = vmatprep.subr.bf16.mxu0 %v2708_v38  ;;  %v2747_v35 = vld [vmem:[%s3345_s1 + $0x388] sm:$0xff]   ;;  %v2750_v38 = vld [vmem:[%s3345_s1 + $0x3d0] sm:$0xff]  }
  0x4a   : > { %2537 = vmatprep.subr.bf16.mxu1 %v2710_v39  ;;  %1131 = vmatprep.mubr.bf16.mxu0 %v1000_v29  ;;  %v2751_v39 = vld [vmem:[%s3345_s1 + $0x390] sm:$0xff]   ;;  %v2785_v29 = vld [vmem:[%s3345_s1 + $0x420] sm:$0xff]  }
  0x4b   : > { %1317 = vmatprep.mubr.bf16.mxu1 %v1186_v31 }
  0x4c   : > { %2516 = vmatpush3.bf16.msra.mxu0 %v2709_v41  ;;  %v2753_v41 = vld [vmem:[%s3345_s1 + $0x318] sm:$0xff]  }
  0x4d   : > { %2538 = vmatpush3.bf16.msra.mxu1 %v2711_v40  ;;  %2517 = vmatprep.subr.bf16.mxu0 %v2712_v42  ;;  %v2752_v40 = vld [vmem:[%s3345_s1 + $0x358] sm:$0xff]  }
  0x4e   : > { %2539 = vmatprep.subr.bf16.mxu1 %v2714_v43  ;;  %v2754_v42 = vld [vmem:[%s3345_s1 + $0x3d8] sm:$0xff]  }
  0x4f   : > { %v2755_v43 = vld [vmem:[%s3345_s1 + $0x398] sm:$0xff]  }
  0x50   : > { %2518 = vmatpush3.bf16.msra.mxu0 %v2713_v45  ;;  %v2757_v45 = vld [vmem:[%s3345_s1 + $0x320] sm:$0xff]  }
  0x51   : > { %2540 = vmatpush3.bf16.msra.mxu1 %v2715_v44  ;;  %2519 = vmatprep.subr.bf16.mxu0 %v2716_v46  ;;  %v2756_v44 = vld [vmem:[%s3345_s1 + $0x360] sm:$0xff]  }
  0x52   : > { %2541 = vmatprep.subr.bf16.mxu1 %v2718_v47  ;;  %v2758_v46 = vld [vmem:[%s3345_s1 + $0x3e0] sm:$0xff]  }
  0x53   : > { %v2759_v47 = vld [vmem:[%s3345_s1 + $0x3a0] sm:$0xff]  }
  0x54   : > { %2520 = vmatpush3.bf16.msra.mxu0 %v2717_v49  ;;  %v2761_v49 = vld [vmem:[%s3345_s1 + $0x328] sm:$0xff]  }
  0x55   : > { %2542 = vmatpush3.bf16.msra.mxu1 %v2719_v48  ;;  %2521 = vmatprep.subr.bf16.mxu0 %v2720_v50  ;;  %v2760_v48 = vld [vmem:[%s3345_s1 + $0x368] sm:$0xff]  }
  0x56   : > { %2543 = vmatprep.subr.bf16.mxu1 %v2722_v51  ;;  %v2762_v50 = vld [vmem:[%s3345_s1 + $0x3e8] sm:$0xff]  }
  0x57   : > { %v2763_v51 = vld [vmem:[%s3345_s1 + $0x3a8] sm:$0xff]  }
  0x58   : > { %2522 = vmatpush3.bf16.msra.mxu0 %v2721_v53  ;;  %v2765_v53 = vld [vmem:[%s3345_s1 + $0x330] sm:$0xff]  }
  0x59   : > { %2544 = vmatpush3.bf16.msra.mxu1 %v2723_v52  ;;  %2523 = vmatprep.subr.bf16.mxu0 %v2724_v54  ;;  %v2764_v52 = vld [vmem:[%s3345_s1 + $0x370] sm:$0xff]  }
  0x5a   : > { %2545 = vmatprep.subr.bf16.mxu1 %v2726_v55  ;;  %v2766_v54 = vld [vmem:[%s3345_s1 + $0x3f0] sm:$0xff]  }
  0x5b   : > { %v2767_v55 = vld [vmem:[%s3345_s1 + $0x3b0] sm:$0xff]  }
  0x5c   : > { %2524 = vmatpush3.bf16.msra.mxu0 %v2725_v58  ;;  %v2770_v58 = vld [vmem:[%s3345_s1 + $0x3f8] sm:$0xff]  }
  0x5d   : > { %2546 = vmatpush3.bf16.msra.mxu1 %v2727_v56  ;;  %2525 = vmatprep.subr.bf16.mxu0 %v2728_v60  ;;  %v2768_v56 = vld [vmem:[%s3345_s1 + $0x378] sm:$0xff]  }
  0x5e   : > { %2547 = vmatprep.subr.bf16.mxu1 %v2730_v62  ;;  %v3271_v60 = vld [vmem:[%s2930_s27 + $0x38] sm:$0xff] }
  0x5f   : > { %v2297_v61 = vcombine.low %v2263_v59, %v3271_v60  ;;  %v2298_v62 = vcombine.high %v2263_v59, %v3271_v60 }
  0x60   : > { %2526 = vmatpush3.bf16.msra.mxu0 %v2729_v2  ;;  %v2353_v2 = vcombine.high %v2317_v1, %v2317_v1 }
  0x61   : > { %2548 = vmatpush3.bf16.msra.mxu1 %v2731_v0  ;;  %2527 = vmatprep.subr.bf16.mxu0 %v2732_v4  ;;  %v2774_v0 = vld [vmem:[%s3345_s1 + $0x440] sm:$0xff]   ;;  %v1575_v3 = vshrl.u32 %v2298_v62, 16  ;;  %v1577_v4 = vshll.u32 %v2298_v62, 16  ;;  %v1563_v7 = vshrl.u32 %v2297_v61, 16 }
  0x62   : > { %2549 = vmatprep.subr.bf16.mxu1 %v2734_v5  ;;  %v2776_v5 = vld [vmem:[%s3345_s1 + $0x400] sm:$0xff]  }
  0x63   : > { %v1579_v9 = vrot.slane %v1577_v4, 1 }
  0x64   : > { %2528 = vmatpush3.bf16.msra.mxu0 %v2733_v10  ;;  %v1582_v10 = vshll.u32 %v2353_v2, 16 }
  0x65   : > { %2550 = vmatpush3.bf16.msra.mxu1 %v2736_v8  ;;  %2557 = vmatprep.subr.bf16.mxu0 %v2738_v16  ;;  %v1565_v8 = vshll.u32 %v2297_v61, 16  ;;  %v1580_v14 = vor.u32 %v1579_v9, %v1575_v3  ;;  %v1572_v16 = vrot.slane %v1570_v11, 1 }
  0x66   : > { %2579 = vmatprep.subr.bf16.mxu1 %v2742_v22  ;;  %v1584_v15 = vrot.slane %v1582_v10, 1  ;;  %v2781_v22 = vld [vmem:[%s3345_s1 + $0x410] sm:$0xff]  }
  0x67   : > { %1132 = vmatmul.mubr.bf16.vlgmr.msra.gmra.mrb[8].mxu0 %v988_v30  ;;  %v1567_v13 = vrot.slane %v1565_v8, 1  ;;  %v2786_v30 = vld [vmem:[%s3345_s1 + $0x468] sm:$0xff]  }
  0x68   : > { %1318 = vmatmul.mubr.bf16.vlgmr.msra.gmra.mrb[8].mxu1 %v1183_v32  ;;  %2558 = vmatpush3.bf16.msra.mxu0 %v2740_v19  ;;  %v1585_v19 = vsel %vm253_vm0, %v1580_v14, %v1584_v15 }
  0x69   : > { %2580 = vmatpush3.bf16.msra.mxu1 %v2743_v26  ;;  %2559 = vmatprep.subr.bf16.mxu0 %v2744_v28  ;;  %v1568_v17 = vor.u32 %v1567_v13, %v1563_v7  ;;  %v2370_v26 = vld [vmem:[%s2930_s27 + $0x30] sm:$0xee]  ;;  %v1770_v28 = vrot.slane %v2353_v2, 1 }
  0x6a   : > { %2581 = vmatprep.subr.bf16.mxu1 %v2746_v34  ;;  %1502 = vmatprep.mubr.bf16.mxu0 %v2298_v62  ;;  %v2404_v27 = vcombine.high %v2370_v26, %v3271_v60  ;;  %v2788_v34 = vld [vmem:[%s3345_s1 + $0x470] sm:$0xff]  }
  0x6b   : > { %1716 = vmatprep.mubr.bf16.mxu1 %v1585_v19  ;;  %v1573_v21 = vsel %vm253_vm0, %v1568_v17, %v1572_v16 }
  0x6c   : > { %2560 = vmatpush3.bf16.msra.mxu0 %v2745_v33  ;;  %v1769_v31 = vrot.slane %v2404_v27, 1  ;;  %v2787_v33 = vld [vmem:[%s3345_s1 + $0x428] sm:$0xff]  }
  0x6d   : > { %2582 = vmatpush3.bf16.msra.mxu1 %v2747_v35  ;;  %2561 = vmatprep.subr.bf16.mxu0 %v2748_v36  ;;  %v2789_v35 = vld [vmem:[%s3345_s1 + $0x430] sm:$0xff]   ;;  %v2403_v36 = vcombine.low %v2370_v26, %v3271_v60 }
  0x6e   : > { %2583 = vmatprep.subr.bf16.mxu1 %v2750_v38  ;;  %v1771_v32 = vsel %vm595_vm1, %v1769_v31, %v1770_v28  ;;  %v2791_v38 = vld [vmem:[%s3345_s1 + $0x438] sm:$0xff]  }
  0x70   : > { %2562 = vmatpush3.bf16.msra.mxu0 %v2749_v37  ;;  %v2790_v37 = vld [vmem:[%s3345_s1 + $0x478] sm:$0xff]  }
  0x71   : > { %2584 = vmatpush3.bf16.msra.mxu1 %v2751_v39  ;;  %2563 = vmatprep.subr.bf16.mxu0 %v2752_v40  ;;  %v1766_v39 = vrot.slane %v2403_v36, 1  ;;  %v1767_v40 = vrot.slane %v2352_v6, 1 }
  0x72   : > { %2585 = vmatprep.subr.bf16.mxu1 %v2754_v42 }
  0x74   : > { %2564 = vmatpush3.bf16.msra.mxu0 %v2753_v41  ;;  %v1768_v41 = vsel %vm595_vm1, %v1766_v39, %v1767_v40 }
  0x75   : > { %2586 = vmatpush3.bf16.msra.mxu1 %v2755_v43  ;;  %2565 = vmatprep.subr.bf16.mxu0 %v2756_v44 }
  0x76   : > { %2587 = vmatprep.subr.bf16.mxu1 %v2758_v46 }
  0x78   : > { %2566 = vmatpush3.bf16.msra.mxu0 %v2757_v45 }
  0x79   : > { %2588 = vmatpush3.bf16.msra.mxu1 %v2759_v47  ;;  %2567 = vmatprep.subr.bf16.mxu0 %v2760_v48 }
  0x7a   : > { %2589 = vmatprep.subr.bf16.mxu1 %v2762_v50 }
  0x7c   : > { %2568 = vmatpush3.bf16.msra.mxu0 %v2761_v49 }
  0x7d   : > { %2590 = vmatpush3.bf16.msra.mxu1 %v2763_v51  ;;  %2569 = vmatprep.subr.bf16.mxu0 %v2764_v52 }
  0x7e   : > { %2591 = vmatprep.subr.bf16.mxu1 %v2766_v54 }
  0x80   : > { %2570 = vmatpush3.bf16.msra.mxu0 %v2765_v53 }
  0x81   : > { %2592 = vmatpush3.bf16.msra.mxu1 %v2767_v55  ;;  %2571 = vmatprep.subr.bf16.mxu0 %v2768_v56 }
  0x82   : > { %2593 = vmatprep.subr.bf16.mxu1 %v2770_v58 }
  0x84   : > { %2572 = vmatpush3.bf16.msra.mxu0 %v2769_v57 }
  0x85   : > { %2594 = vmatpush3.bf16.msra.mxu1 %v2773_v63  ;;  %2601 = vmatprep.subr.bf16.mxu0 %v2774_v0 }
  0x87   : > { %1503 = vmatmul.mubr.bf16.vlgmr.msra.gmra.mrb[12].mxu0 %v2297_v61 }
  0x88   : > { %2602 = vmatpush3.bf16.msra.mxu0 %v2776_v5  ;;  %1717 = vmatmul.mubr.bf16.vlgmr.msra.gmra.mrb[12].mxu1 %v1573_v21 }
  0x89   : > { %2603 = vmatprep.subr.bf16.mxu0 %v2778_v12  ;;  %1902 = vmatprep.mubr.bf16.mxu0 %v1771_v32 }
  0x8c   : > { %2604 = vmatpush3.bf16.msra.mxu0 %v2779_v18 }
  0x8d   : > { %2605 = vmatprep.subr.bf16.mxu0 %v2780_v20 }
  0x90   : > { %2606 = vmatpush3.bf16.msra.mxu0 %v2781_v22 }
  0x91   : > { %2607 = vmatprep.subr.bf16.mxu0 %v2782_v23 }
  0x94   : > { %2608 = vmatpush3.bf16.msra.mxu0 %v2783_v24 }
  0x95   : > { %2609 = vmatprep.subr.bf16.mxu0 %v2784_v25 }
  0x98   : > { %2610 = vmatpush3.bf16.msra.mxu0 %v2785_v29 }
  0x99   : > { %2611 = vmatprep.subr.bf16.mxu0 %v2786_v30 }
  0x9c   : > { %2612 = vmatpush3.bf16.msra.mxu0 %v2787_v33 }
  0x9d   : > { %2613 = vmatprep.subr.bf16.mxu0 %v2788_v34 }
  0xa0   : > { %2614 = vmatpush3.bf16.msra.mxu0 %v2789_v35 }
  0xa1   : > { %2615 = vmatprep.subr.bf16.mxu0 %v2790_v37 }
  0xa4   : > { %2616 = vmatpush3.bf16.msra.mxu0 %v2791_v38 }
  0xa7   : > { %1903 = vmatmul.mubr.bf16.vlgmr.msra.gmra.mrb[16].mxu0 %v1768_v41 }
  0xfa   : > { %v2441_v48 = vpop.f32.mrb[0].mxu0 }
  0xfb   : > { %v2463_v42 = vpop.f32.mrb[0].mxu1  ;;  %v2442_v49 = vpop.f32.mrb[1].mxu0 }
  0xfc   : > { %v2464_v43 = vpop.f32.mrb[1].mxu1  ;;  %v2443_v50 = vadd.f32 %v2442_v49, %v2441_v48  ;;  %v2444_v51 = vpop.f32.mrb[2].mxu0 }
  0xfd   : > { %v2465_v44 = vadd.f32 %v2464_v43, %v2463_v42  ;;  %v2466_v45 = vpop.f32.mrb[2].mxu1  ;;  %v2445_v52 = vpop.f32.mrb[3].mxu0 }
  0xfe   : > { %v2467_v46 = vpop.f32.mrb[3].mxu1  ;;  %v2446_v54 = vadd.f32 %v2445_v52, %v2444_v51 }
  0xff   : > { %v2468_v47 = vadd.f32 %v2467_v46, %v2466_v45  ;;  %v550_v53 = vadd.f32 %v2465_v44, %v2443_v50  ;;  %v2421_v44 = vld [vmem:[%s3346_s2] ss:$0 sm:$0xff] }
 0x101   : > { %v553_v55 = vadd.f32 %v2468_v47, %v2446_v54 }
 0x11a   : > { %v2485_v60 = vpop.f32.mrb[4].mxu0 }
 0x11b   : > { %v2507_v56 = vpop.f32.mrb[4].mxu1  ;;  %v2486_v62 = vpop.f32.mrb[5].mxu0 }
 0x11c   : > { %v2508_v57 = vpop.f32.mrb[5].mxu1  ;;  %v2487_v0 = vadd.f32 %v2486_v62, %v2485_v60  ;;  %v2488_v1 = vpop.f32.mrb[6].mxu0 }
 0x11d   : > { %v2509_v58 = vadd.f32 %v2508_v57, %v2507_v56  ;;  %v2510_v59 = vpop.f32.mrb[6].mxu1  ;;  %v2489_v2 = vpop.f32.mrb[7].mxu0 }
 0x11e   : > { %v2511_v61 = vpop.f32.mrb[7].mxu1  ;;  %v741_v3 = vadd.f32 %v2487_v0, %v550_v53  ;;  %v2490_v4 = vadd.f32 %v2489_v2, %v2488_v1 }
 0x11f   : > { %v2512_v63 = vadd.f32 %v2511_v61, %v2510_v59 }
 0x120   : > { %v742_v5 = vadd.f32 %v2490_v4, %v553_v55  ;;  %v926_v6 = vadd.f32 %v2509_v58, %v741_v3 }
 0x122   : > { %v927_v7 = vadd.f32 %v2512_v63, %v742_v5 }
 0x13a   : > { %v2529_v8 = vpop.f32.mrb[8].mxu0 }
 0x13b   : > { %v2551_v9 = vpop.f32.mrb[8].mxu1  ;;  %v2530_v10 = vpop.f32.mrb[9].mxu0 }
 0x13c   : > { %v2552_v11 = vpop.f32.mrb[9].mxu1  ;;  %v2531_v12 = vadd.f32 %v2530_v10, %v2529_v8  ;;  %v2532_v13 = vpop.f32.mrb[10].mxu0 }
 0x13d   : > { %v2553_v14 = vadd.f32 %v2552_v11, %v2551_v9  ;;  %v2554_v15 = vpop.f32.mrb[10].mxu1  ;;  %v2533_v16 = vpop.f32.mrb[11].mxu0 }
 0x13e   : > { %v2555_v17 = vpop.f32.mrb[11].mxu1  ;;  %v1140_v18 = vadd.f32 %v2531_v12, %v926_v6  ;;  %v2534_v19 = vadd.f32 %v2533_v16, %v2532_v13 }
 0x13f   : > { %v2556_v20 = vadd.f32 %v2555_v17, %v2554_v15 }
 0x140   : > { %v1141_v21 = vadd.f32 %v2534_v19, %v927_v7  ;;  %v1326_v22 = vadd.f32 %v2553_v14, %v1140_v18 }
 0x142   : > { %v1327_v23 = vadd.f32 %v2556_v20, %v1141_v21 }
 0x15a   : > { %v2573_v24 = vpop.f32.mrb[12].mxu0 }
 0x15b   : > { %v2574_v25 = vpop.f32.mrb[13].mxu0  ;;  %v2595_v30 = vpop.f32.mrb[12].mxu1 }
 0x15c   : > { %v2575_v26 = vadd.f32 %v2574_v25, %v2573_v24  ;;  %v2576_v27 = vpop.f32.mrb[14].mxu0  ;;  %v2596_v32 = vpop.f32.mrb[13].mxu1 }
 0x15d   : > { %v2577_v28 = vpop.f32.mrb[15].mxu0  ;;  %v2597_v34 = vadd.f32 %v2596_v32, %v2595_v30  ;;  %v2598_v35 = vpop.f32.mrb[14].mxu1 }
 0x15e   : > { %v1511_v29 = vadd.f32 %v2575_v26, %v1326_v22  ;;  %v2578_v31 = vadd.f32 %v2577_v28, %v2576_v27  ;;  %v2599_v36 = vpop.f32.mrb[15].mxu1 }
 0x15f   : > { %v2600_v38 = vadd.f32 %v2599_v36, %v2598_v35 }
 0x160   : > { %v1512_v33 = vadd.f32 %v2578_v31, %v1327_v23  ;;  %v1725_v37 = vadd.f32 %v2597_v34, %v1511_v29 }
 0x162   : > { %v1726_v39 = vadd.f32 %v2600_v38, %v1512_v33 }
 0x17a   : > { %v2617_v40 = vpop.f32.mrb[16].mxu0 }
 0x17b   : > { %v2618_v41 = vpop.f32.mrb[17].mxu0 }
 0x17c   : > { %v2619_v42 = vadd.f32 %v2618_v41, %v2617_v40  ;;  %v2620_v43 = vpop.f32.mrb[18].mxu0 }
 0x17d   : > { %v2621_v45 = vpop.f32.mrb[19].mxu0 }
 0x17e   : > { %v1911_v46 = vadd.f32 %v2619_v42, %v1725_v37  ;;  %v2622_v47 = vadd.f32 %v2621_v45, %v2620_v43 }
 0x180   : > { %v1920_v48 = vadd.f32 %v2421_v44, %v1911_v46  ;;  %v1912_v49 = vadd.f32 %v2622_v47, %v1726_v39 }
 0x182   : > { %1922 = vst [vmem:[%s170_s19] sm:$0xff] %v1920_v48  ;;  %v1921_v50 = vadd.f32 %v2421_v44, %v1912_v49 }
 0x184   : > { %1923 = vst [vmem:[%s170_s19 + $0x8] sm:$0xff] %v1921_v50 }
 0x185 PF: > { %s13_s12 = sadd.s32 1, %s2800_s12  }
 0x186   : > { %p10_p4 = scmp.ge.s32.totalorder %s13_s12, 4  }
 0x188   :  { %12 = sbr.rel (!%p10_p4) target bundleno = 1 (0x1), region = 72 }

</bundles_post_ra>
